<compile_context>
chip_gen: v7x
topology: tpu7x:2x2x1
jax: 0.10.0
libtpu: 0.0.40
codegen_flags: <defaults>
</compile_context>

<pallas_src>
import functools

import jax
import jax.numpy as jnp
from jax.experimental import pallas as pl
from jax.experimental.pallas import tpu as pltpu


# ----------------------------------------------------------------------------- #
# Helpers
# ----------------------------------------------------------------------------- #
def _round_up(x, m):
    return ((x + m - 1) // m) * m


def _k_tiling(K):
    """Pick (Kp, TK) so Kp % TK == 0, TK <= 512, both multiples of 128."""
    Kp = _round_up(K, 128)
    if Kp <= 512:
        return Kp, Kp
    return _round_up(K, 512), 512


# ----------------------------------------------------------------------------- #
# Pallas kernels
# ----------------------------------------------------------------------------- #
def _mm_bias_kernel(x_ref, w_ref, b_ref, o_ref, acc_ref, *, relu):
    """Fused (X @ W + b) with optional ReLU.

    Grid = (M tiles, K tiles); K is a reduction axis accumulated into a f32 VMEM
    scratch; bias + ReLU epilogue and the store happen on the last K step.
    Operands are bf16, accumulation/epilogue f32.
    """
    @pl.when(pl.program_id(1) == 0)
    def _():
        acc_ref[...] = jnp.zeros_like(acc_ref)

    acc_ref[...] += jnp.dot(x_ref[...], w_ref[...],
                            preferred_element_type=jnp.float32)

    @pl.when(pl.program_id(1) == pl.num_programs(1) - 1)
    def _():
        y = acc_ref[...] + b_ref[...]
        if relu:
            y = jnp.maximum(y, 0.0)
        o_ref[...] = y.astype(o_ref.dtype)


def _attnpool_kernel(q_ref, k_ref, v_ref, seg_ref, segt_ref, o_ref, *, scale):
    """CLIP AttentionPool2d attention for one batch element (grid over B).

    q: (1, C) projected mean-token query; k, v: (S, C) projected keys/values;
    seg: (C, H) head-membership matrix, segt = seg.T.  Per-head score reduction
    and head->channel expansion are expressed as MXU matmuls; no per-head loops.
    """
    q = q_ref[...]                                   # (1, C)
    k = k_ref[...]                                   # (S, C)
    v = v_ref[...]                                   # (S, C)

    qk = q * k                                       # (S, C) sublane broadcast
    s = jnp.dot(qk, seg_ref[...],
                preferred_element_type=jnp.float32) * scale       # (S, H)
    s = s - jnp.max(s, axis=0, keepdims=True)
    e = jnp.exp(s)
    p = e * pl.reciprocal(jnp.sum(e, axis=0, keepdims=True), approx=True)  # (S, H)
    p_full = jnp.dot(p, segt_ref[...],
                     preferred_element_type=jnp.float32)           # (S, C)
    o_ref[...] = jnp.sum(p_full * v, axis=0, keepdims=True)        # (1, C)


# ----------------------------------------------------------------------------- #
# Pallas wrappers
# ----------------------------------------------------------------------------- #
def pallas_matmul(x, prep, relu=False):
    """y = x @ W + b (optionally ReLU) using a pre-folded/padded bf16 weight.

    x: (M, K) float; prep: dict with wp (Kp, Np) bf16, bp (1, Np) f32, K, N, TK.
    Returns (M, N) float32.
    """
    M, K = x.shape
    assert K == prep["K"], (K, prep["K"])
    N = prep["N"]
    wp, bp, TK = prep["wp"], prep["bp"], prep["TK"]
    Kp, Np = wp.shape

    TM = min(512, _round_up(M, 8))
    Mp = _round_up(M, TM)

    xp = x.astype(jnp.bfloat16)
    if Mp != M or Kp != K:
        xp = jnp.pad(xp, ((0, Mp - M), (0, Kp - K)))

    out = pl.pallas_call(
        functools.partial(_mm_bias_kernel, relu=relu),
        out_shape=jax.ShapeDtypeStruct((Mp, Np), jnp.float32),
        grid=(Mp // TM, Kp // TK),
        in_specs=[
            pl.BlockSpec((TM, TK), lambda i, k: (i, k)),
            pl.BlockSpec((TK, Np), lambda i, k: (k, 0)),
            pl.BlockSpec((1, Np), lambda i, k: (0, 0)),
        ],
        out_specs=pl.BlockSpec((TM, Np), lambda i, k: (i, 0)),
        scratch_shapes=[pltpu.VMEM((TM, Np), jnp.float32)],
        compiler_params=pltpu.CompilerParams(
            dimension_semantics=("parallel", "arbitrary")),
    )(xp, wp, bp)

    if Mp != M or Np != N:
        out = out[:M, :N]
    return out


def pallas_attnpool(q, k, v, seg, seg_t, scale):
    """q: (B, C), k/v: (B, S, C), seg: (C, H), seg_t: (H, C) -> (B, C)."""
    B, S, C = k.shape
    H = seg.shape[1]
    q3 = q.reshape(B, 1, C)
    out = pl.pallas_call(
        functools.partial(_attnpool_kernel, scale=scale),
        out_shape=jax.ShapeDtypeStruct((B, 1, C), jnp.float32),
        grid=(B,),
        in_specs=[
            pl.BlockSpec((None, 1, C), lambda b: (b, 0, 0)),
            pl.BlockSpec((None, S, C), lambda b: (b, 0, 0)),
            pl.BlockSpec((None, S, C), lambda b: (b, 0, 0)),
            pl.BlockSpec((C, H), lambda b: (0, 0)),
            pl.BlockSpec((H, C), lambda b: (0, 0)),
        ],
        out_specs=pl.BlockSpec((None, 1, C), lambda b: (b, 0, 0)),
        compiler_params=pltpu.CompilerParams(dimension_semantics=("parallel",)),
    )(q3, k, v, seg, seg_t)
    return out.reshape(B, C)


# ----------------------------------------------------------------------------- #
# Glue (im2col, pooling, functional modules)
# ----------------------------------------------------------------------------- #
def im2col(x, kh, kw, stride, pad):
    """x: NHWC -> (B*Ho*Wo, kh*kw*C) patches (row-major over (kh, kw, C))."""
    B, H, W, C = x.shape
    if kh == 1 and kw == 1 and stride == 1 and pad == 0:
        return x.reshape(B * H * W, C), H, W
    if pad:
        x = jnp.pad(x, ((0, 0), (pad, pad), (pad, pad), (0, 0)))
    Hp, Wp = H + 2 * pad, W + 2 * pad
    Ho = (Hp - kh) // stride + 1
    Wo = (Wp - kw) // stride + 1
    cols = []
    for i in range(kh):
        for j in range(kw):
            cols.append(x[:, i:i + (Ho - 1) * stride + 1:stride,
                          j:j + (Wo - 1) * stride + 1:stride, :])
    patches = jnp.concatenate(cols, axis=-1)               # (B, Ho, Wo, kh*kw*C)
    return patches.reshape(B * Ho * Wo, kh * kw * C), Ho, Wo


def avg_pool(x, n):
    """nn.AvgPool2d(n) on NHWC."""
    B, H, W, C = x.shape
    return x.reshape(B, H // n, n, W // n, n, C).mean(axis=(2, 4))


def conv_bn(x, cp, stride, pad, relu):
    """Conv2d(bias=False) + BatchNorm(eval) [+ ReLU] via im2col + Pallas matmul.
    BN is pre-folded into cp['wp']/cp['bp'] (see prep_conv)."""
    B = x.shape[0]
    patches, Ho, Wo = im2col(x, cp["kh"], cp["kw"], stride, pad)
    y = pallas_matmul(patches, cp, relu=relu)
    return y.reshape(B, Ho, Wo, cp["N"])


def bottleneck(x, bp):
    """CLIP ModifiedResNet Bottleneck (anti-aliased: stride via AvgPool)."""
    s = bp["stride"]
    out = conv_bn(x, bp["conv1"], stride=1, pad=0, relu=True)
    out = conv_bn(out, bp["conv2"], stride=1, pad=1, relu=True)
    if s > 1:
        out = avg_pool(out, s)
    out = conv_bn(out, bp["conv3"], stride=1, pad=0, relu=False)
    if "down" in bp:
        idn = avg_pool(x, s) if s > 1 else x
        idn = conv_bn(idn, bp["down"], stride=1, pad=0, relu=False)
    else:
        idn = x
    return jnp.maximum(out + idn, 0.0)


def attn_pool(x, p, num_heads):
    """CLIP AttentionPool2d: NHWC features -> (B, output_dim)."""
    B, H, W, C = x.shape
    seq = x.reshape(B, H * W, C)
    mean = jnp.mean(seq, axis=1, keepdims=True)
    tok = jnp.concatenate([mean, seq], axis=1) + p["pos"][None]   # (B, S, C)
    S = H * W + 1
    tok_flat = tok.reshape(B * S, C)

    # Fused q/k/v projection: one matmul over the shared token matrix.
    qkv = pallas_matmul(tok_flat, p["qkv"]).reshape(B, S, 3 * C)
    q = qkv[:, 0, :C]                                              # (B, C) mean token
    k = qkv[:, :, C:2 * C]                                         # (B, S, C)
    v = qkv[:, :, 2 * C:]                                          # (B, S, C)

    head_dim = C // num_heads
    attn = pallas_attnpool(q, k, v, p["seg"], p["seg_t"], head_dim ** -0.5)
    return pallas_matmul(attn, p["c"])                             # (B, output_dim)


# ----------------------------------------------------------------------------- #
# Deterministic synthetic parameters (raw) + one-time preparation (folded/padded)
# ----------------------------------------------------------------------------- #
def conv_params(key, kh, kw, cin, cout):
    k1, k2, k3, k4, k5 = jax.random.split(key, 5)
    std = (2.0 / (kh * kw * cin)) ** 0.5
    return {
        "w": jax.random.normal(k1, (kh, kw, cin, cout), jnp.float32) * std,
        "gamma": 1.0 + 0.1 * jax.random.normal(k2, (cout,), jnp.float32),
        "beta": 0.1 * jax.random.normal(k3, (cout,), jnp.float32),
        "mean": 0.1 * jax.random.normal(k4, (cout,), jnp.float32),
        "var": 1.0 + 0.1 * jax.random.uniform(k5, (cout,), jnp.float32),
    }


def linear_params(key, din, dout):
    k1, k2 = jax.random.split(key)
    std = din ** -0.5
    return {"w": jax.random.normal(k1, (din, dout), jnp.float32) * std,
            "b": jax.random.normal(k2, (dout,), jnp.float32) * std}


def make_layer_params(key, inplanes, planes, blocks, stride):
    out = []
    for i in range(blocks):
        s = stride if i == 0 else 1
        key, k1, k2, k3, k4 = jax.random.split(key, 5)
        bp = {
            "conv1": conv_params(k1, 1, 1, inplanes, planes),
            "conv2": conv_params(k2, 3, 3, planes, planes),
            "conv3": conv_params(k3, 1, 1, planes, planes * 4),
            "stride": s,
        }
        if s > 1 or inplanes != planes * 4:
            bp["down"] = conv_params(k4, 1, 1, inplanes, planes * 4)
        out.append(bp)
        inplanes = planes * 4
    return out, inplanes


def init_params(key, width=8, layers=(3, 4, 6, 3), input_resolution=64,
                output_dim=1024, num_classes=10):
    p = {}
    key, k1, k2, k3 = jax.random.split(key, 4)
    p["conv1"] = conv_params(k1, 3, 3, 3, width // 2)
    p["conv2"] = conv_params(k2, 3, 3, width // 2, width // 2)
    p["conv3"] = conv_params(k3, 3, 3, width // 2, width)
    inplanes = width
    planes_list = (width, width * 2, width * 4, width * 8)
    strides = (1, 2, 2, 2)
    p["layers"] = []
    for li in range(4):
        key, sub = jax.random.split(key)
        blocks, inplanes = make_layer_params(sub, inplanes, planes_list[li],
                                             layers[li], strides[li])
        p["layers"].append(blocks)
    embed_dim = width * 32
    spacial = input_resolution // 32
    S = spacial * spacial + 1
    key, kp, kq, kk, kv, kc, kcls = jax.random.split(key, 7)
    p["attnpool"] = {
        "pos": jax.random.normal(kp, (S, embed_dim), jnp.float32) / embed_dim ** 0.5,
        "q": linear_params(kq, embed_dim, embed_dim),
        "k": linear_params(kk, embed_dim, embed_dim),
        "v": linear_params(kv, embed_dim, embed_dim),
        "c": linear_params(kc, embed_dim, output_dim),
    }
    p["classifier"] = linear_params(kcls, output_dim, num_classes)
    p["heads"] = embed_dim // 64
    return p


def prep_matmul(w, b):
    """Pad (K,N) weight / (N,) bias to lane-aligned shapes, weight in bf16."""
    K, N = w.shape
    Kp, TK = _k_tiling(K)
    Np = _round_up(N, 128)
    wp = jnp.pad(w.astype(jnp.float32), ((0, Kp - K), (0, Np - N))).astype(jnp.bfloat16)
    bp = jnp.pad(b.astype(jnp.float32), (0, Np - N)).reshape(1, Np)
    return {"wp": wp, "bp": bp, "K": K, "N": N, "TK": TK}


def prep_conv(cp):
    """Fold eval-mode BN into conv weight/bias, reshape to (K, N), pad, bf16."""
    w = cp["w"]                                            # (kh, kw, cin, cout)
    kh, kw, cin, cout = w.shape
    scale = cp["gamma"] * jax.lax.rsqrt(cp["var"] + 1e-5)
    w_f = (w * scale[None, None, None, :]).reshape(kh * kw * cin, cout)
    b_f = cp["beta"] - cp["mean"] * scale
    d = prep_matmul(w_f, b_f)
    d["kh"], d["kw"] = kh, kw
    return d


def prepare_params(p):
    """One-time prep: BN folding / reshape / padding / bf16 hoisted out of forward."""
    q = {"conv1": prep_conv(p["conv1"]),
         "conv2": prep_conv(p["conv2"]),
         "conv3": prep_conv(p["conv3"]),
         "layers": []}
    for layer in p["layers"]:
        blocks = []
        for bp in layer:
            nb = {"stride": bp["stride"],
                  "conv1": prep_conv(bp["conv1"]),
                  "conv2": prep_conv(bp["conv2"]),
                  "conv3": prep_conv(bp["conv3"])}
            if "down" in bp:
                nb["down"] = prep_conv(bp["down"])
            blocks.append(nb)
        q["layers"].append(blocks)

    ap = p["attnpool"]
    C = ap["q"]["w"].shape[0]
    num_heads = p["heads"]
    head_dim = C // num_heads
    w_qkv = jnp.concatenate([ap["q"]["w"], ap["k"]["w"], ap["v"]["w"]], axis=1)
    b_qkv = jnp.concatenate([ap["q"]["b"], ap["k"]["b"], ap["v"]["b"]], axis=0)
    seg = (jnp.arange(C)[:, None] // head_dim
           == jnp.arange(num_heads)[None, :]).astype(jnp.float32)   # (C, H)
    q["attnpool"] = {
        "pos": ap["pos"],
        "qkv": prep_matmul(w_qkv, b_qkv),
        "c": prep_matmul(ap["c"]["w"], ap["c"]["b"]),
        "seg": seg,
        "seg_t": seg.T,
    }
    q["classifier"] = prep_matmul(p["classifier"]["w"], p["classifier"]["b"])
    q["heads"] = num_heads
    return q


# ----------------------------------------------------------------------------- #
# CustomCLIP.forward
# ----------------------------------------------------------------------------- #
def custom_clip_forward(x_nchw, p):
    # layout: x_nchw is (B, 3, H, W) float32 (PyTorch NCHW); convert to NHWC.
    x = jnp.transpose(x_nchw, (0, 2, 3, 1)).astype(jnp.float32)
    # ModifiedResNet stem
    x = conv_bn(x, p["conv1"], stride=2, pad=1, relu=True)
    x = conv_bn(x, p["conv2"], stride=1, pad=1, relu=True)
    x = conv_bn(x, p["conv3"], stride=1, pad=1, relu=True)
    x = avg_pool(x, 2)
    # Residual layers 1..4
    for layer in p["layers"]:
        for bp in layer:
            x = bottleneck(x, bp)
    # Attention pooling head -> (B, 1024)
    feat = attn_pool(x, p["attnpool"], p["heads"])
    # Classifier: Linear(1024, num_classes)
    return pallas_matmul(feat, p["classifier"])


if __name__ == "__main__":
    key = jax.random.PRNGKey(0)
    pkey, xkey = jax.random.split(key)
    raw_params = init_params(pkey, width=8, layers=(3, 4, 6, 3),
                             input_resolution=64, output_dim=1024, num_classes=10)
    prepped = prepare_params(raw_params)     # hoisted: BN fold, pad, bf16 cast
    x = jax.random.normal(xkey, (2, 3, 64, 64), jnp.float32)

    fwd = jax.jit(lambda img: custom_clip_forward(img, prepped))
    logits = fwd(x)
    jax.block_until_ready(logits)

    assert logits.shape == (2, 10), logits.shape
    assert bool(jnp.all(jnp.isfinite(logits)))
    print("KERNEL_OK")
</pallas_src>

<mosaic_0001>
module attributes {stable_mosaic.version = 11 : i64} {
  func.func @_mm_bias_kernel(%arg0: i32, %arg1: i32, %arg2: memref<512x128xbf16, #tpu.memory_space<vmem>>, %arg3: memref<128x128xbf16, #tpu.memory_space<vmem>>, %arg4: memref<1x128xf32, #tpu.memory_space<vmem>>, %arg5: memref<512x128xf32, #tpu.memory_space<vmem>>, %arg6: memref<512x128xf32, #tpu.memory_space<vmem>>) attributes {dimension_semantics = [#tpu.dimension_semantics<parallel>, #tpu.dimension_semantics<arbitrary>], iteration_bounds = array<i64: 4, 1>, scalar_prefetch = 0 : i64, scratch_operands = 1 : i64, tpu.core_type = #tpu.core_type<tc>, window_params = [{transform_indices = @transform_0, window_bounds = array<i64: 512, 128>}, {transform_indices = @transform_1, window_bounds = array<i64: 128, 128>}, {pipeline_mode = #tpu.pipeline_mode<synchronous>, transform_indices = @transform_2, window_bounds = array<i64: 1, 128>}, {transform_indices = @transform_3, window_bounds = array<i64: 512, 128>}]} {
    %c0_i32 = arith.constant 0 : i32
    %0 = arith.cmpi eq, %arg1, %c0_i32 : i32
    %1 = arith.extui %0 : i1 to i32
    %c0_i32_0 = arith.constant 0 : i32
    %2 = arith.cmpi ne, %1, %c0_i32_0 : i32
    scf.if %2 {
      %cst_10 = arith.constant 0.000000e+00 : f32
      %12 = vector.broadcast %cst_10 : f32 to vector<512x128xf32>
      %c0_11 = arith.constant 0 : index
      %c0_12 = arith.constant 0 : index
      %13 = vector.load %arg6[%c0_11, %c0_12] : memref<512x128xf32, #tpu.memory_space<vmem>>, vector<512x128xf32>
      tpu.vector_store %arg6[%c0_11, %c0_12], %12 {strides = array<i32>} : memref<512x128xf32, #tpu.memory_space<vmem>>, vector<512x128xf32>,
    } else {
    }
    %c0 = arith.constant 0 : index
    %c0_1 = arith.constant 0 : index
    %3 = vector.load %arg6[%c0, %c0_1] : memref<512x128xf32, #tpu.memory_space<vmem>>, vector<512x128xf32>
    %c0_2 = arith.constant 0 : index
    %c0_3 = arith.constant 0 : index
    %4 = vector.load %arg2[%c0_2, %c0_3] : memref<512x128xbf16, #tpu.memory_space<vmem>>, vector<512x128xbf16>
    %c0_4 = arith.constant 0 : index
    %c0_5 = arith.constant 0 : index
    %5 = vector.load %arg3[%c0_4, %c0_5] : memref<128x128xbf16, #tpu.memory_space<vmem>>, vector<128x128xbf16>
    %cst = arith.constant dense<0.000000e+00> : vector<512x128xf32>
    %6 = tpu.matmul %4, %5, %cst {dimension_numbers = #tpu.dot_dimension_numbers<[1], [0], [0], [1], [0, 0, 1, 1], [], []>} : vector<512x128xbf16>, vector<128x128xbf16>, vector<512x128xf32> -> vector<512x128xf32>
    %7 = arith.addf %3, %6 : vector<512x128xf32>
    %c0_6 = arith.constant 0 : index
    %c0_7 = arith.constant 0 : index
    %8 = vector.load %arg6[%c0_6, %c0_7] : memref<512x128xf32, #tpu.memory_space<vmem>>, vector<512x128xf32>
    tpu.vector_store %arg6[%c0_6, %c0_7], %7 {strides = array<i32>} : memref<512x128xf32, #tpu.memory_space<vmem>>, vector<512x128xf32>,
    %c0_i32_8 = arith.constant 0 : i32
    %9 = arith.cmpi eq, %arg1, %c0_i32_8 : i32
    %10 = arith.extui %9 : i1 to i32
    %c0_i32_9 = arith.constant 0 : i32
    %11 = arith.cmpi ne, %10, %c0_i32_9 : i32
    scf.if %11 {
      %c0_10 = arith.constant 0 : index
      %c0_11 = arith.constant 0 : index
      %12 = vector.load %arg6[%c0_10, %c0_11] : memref<512x128xf32, #tpu.memory_space<vmem>>, vector<512x128xf32>
      %c0_12 = arith.constant 0 : index
      %c0_13 = arith.constant 0 : index
      %13 = vector.load %arg4[%c0_12, %c0_13] : memref<1x128xf32, #tpu.memory_space<vmem>>, vector<1x128xf32>
      %14 = vector.broadcast %13 : vector<1x128xf32> to vector<512x128xf32>
      %15 = arith.addf %12, %14 : vector<512x128xf32>
      %cst_14 = arith.constant 0.000000e+00 : f32
      %16 = vector.broadcast %cst_14 : f32 to vector<512x128xf32>
      %17 = arith.maximumf %15, %16 : vector<512x128xf32>
      %c0_15 = arith.constant 0 : index
      %c0_16 = arith.constant 0 : index
      %18 = vector.load %arg5[%c0_15, %c0_16] : memref<512x128xf32, #tpu.memory_space<vmem>>, vector<512x128xf32>
      tpu.vector_store %arg5[%c0_15, %c0_16], %17 {strides = array<i32>} : memref<512x128xf32, #tpu.memory_space<vmem>>, vector<512x128xf32>,
    } else {
    }
    return
  }
  func.func @transform_0(%arg0: i32, %arg1: i32) -> (i32, i32) {
    %c0_i32 = arith.constant 0 : i32
    return %arg0, %arg1 : i32, i32
  }
  func.func @transform_1(%arg0: i32, %arg1: i32) -> (i32, i32) {
    %c0_i32 = arith.constant 0 : i32
    %c0_i32_0 = arith.constant 0 : i32
    return %arg1, %c0_i32 : i32, i32
  }
  func.func @transform_2(%arg0: i32, %arg1: i32) -> (i32, i32) {
    %c0_i32 = arith.constant 0 : i32
    %c0_i32_0 = arith.constant 0 : i32
    %c0_i32_1 = arith.constant 0 : i32
    return %c0_i32, %c0_i32_0 : i32, i32
  }
  func.func @transform_3(%arg0: i32, %arg1: i32) -> (i32, i32) {
    %c0_i32 = arith.constant 0 : i32
    %c0_i32_0 = arith.constant 0 : i32
    return %arg0, %c0_i32 : i32, i32
  }
}

module attributes {stable_mosaic.version = 11 : i64} {
  func.func @_mm_bias_kernel(%arg0: i32, %arg1: i32, %arg2: memref<512x128xbf16, #tpu.memory_space<vmem>>, %arg3: memref<128x128xbf16, #tpu.memory_space<vmem>>, %arg4: memref<1x128xf32, #tpu.memory_space<vmem>>, %arg5: memref<512x128xf32, #tpu.memory_space<vmem>>, %arg6: memref<512x128xf32, #tpu.memory_space<vmem>>) attributes {dimension_semantics = [#tpu.dimension_semantics<parallel>, #tpu.dimension_semantics<arbitrary>], iteration_bounds = array<i64: 1, 1>, scalar_prefetch = 0 : i64, scratch_operands = 1 : i64, tpu.core_type = #tpu.core_type<tc>, window_params = [{transform_indices = @transform_0, window_bounds = array<i64: 512, 128>}, {transform_indices = @transform_1, window_bounds = array<i64: 128, 128>}, {pipeline_mode = #tpu.pipeline_mode<synchronous>, transform_indices = @transform_2, window_bounds = array<i64: 1, 128>}, {transform_indices = @transform_3, window_bounds = array<i64: 512, 128>}]} {
    %c0_i32 = arith.constant 0 : i32
    %0 = arith.cmpi eq, %arg1, %c0_i32 : i32
    %1 = arith.extui %0 : i1 to i32
    %c0_i32_0 = arith.constant 0 : i32
    %2 = arith.cmpi ne, %1, %c0_i32_0 : i32
    scf.if %2 {
      %cst_10 = arith.constant 0.000000e+00 : f32
      %12 = vector.broadcast %cst_10 : f32 to vector<512x128xf32>
      %c0_11 = arith.constant 0 : index
      %c0_12 = arith.constant 0 : index
      %13 = vector.load %arg6[%c0_11, %c0_12] : memref<512x128xf32, #tpu.memory_space<vmem>>, vector<512x128xf32>
      tpu.vector_store %arg6[%c0_11, %c0_12], %12 {strides = array<i32>} : memref<512x128xf32, #tpu.memory_space<vmem>>, vector<512x128xf32>,
    } else {
    }
    %c0 = arith.constant 0 : index
    %c0_1 = arith.constant 0 : index
    %3 = vector.load %arg6[%c0, %c0_1] : memref<512x128xf32, #tpu.memory_space<vmem>>, vector<512x128xf32>
    %c0_2 = arith.constant 0 : index
    %c0_3 = arith.constant 0 : index
    %4 = vector.load %arg2[%c0_2, %c0_3] : memref<512x128xbf16, #tpu.memory_space<vmem>>, vector<512x128xbf16>
    %c0_4 = arith.constant 0 : index
    %c0_5 = arith.constant 0 : index
    %5 = vector.load %arg3[%c0_4, %c0_5] : memref<128x128xbf16, #tpu.memory_space<vmem>>, vector<128x128xbf16>
    %cst = arith.constant dense<0.000000e+00> : vector<512x128xf32>
    %6 = tpu.matmul %4, %5, %cst {dimension_numbers = #tpu.dot_dimension_numbers<[1], [0], [0], [1], [0, 0, 1, 1], [], []>} : vector<512x128xbf16>, vector<128x128xbf16>, vector<512x128xf32> -> vector<512x128xf32>
    %7 = arith.addf %3, %6 : vector<512x128xf32>
    %c0_6 = arith.constant 0 : index
    %c0_7 = arith.constant 0 : index
    %8 = vector.load %arg6[%c0_6, %c0_7] : memref<512x128xf32, #tpu.memory_space<vmem>>, vector<512x128xf32>
    tpu.vector_store %arg6[%c0_6, %c0_7], %7 {strides = array<i32>} : memref<512x128xf32, #tpu.memory_space<vmem>>, vector<512x128xf32>,
    %c0_i32_8 = arith.constant 0 : i32
    %9 = arith.cmpi eq, %arg1, %c0_i32_8 : i32
    %10 = arith.extui %9 : i1 to i32
    %c0_i32_9 = arith.constant 0 : i32
    %11 = arith.cmpi ne, %10, %c0_i32_9 : i32
    scf.if %11 {
      %c0_10 = arith.constant 0 : index
      %c0_11 = arith.constant 0 : index
      %12 = vector.load %arg6[%c0_10, %c0_11] : memref<512x128xf32, #tpu.memory_space<vmem>>, vector<512x128xf32>
      %c0_12 = arith.constant 0 : index
      %c0_13 = arith.constant 0 : index
      %13 = vector.load %arg4[%c0_12, %c0_13] : memref<1x128xf32, #tpu.memory_space<vmem>>, vector<1x128xf32>
      %14 = vector.broadcast %13 : vector<1x128xf32> to vector<512x128xf32>
      %15 = arith.addf %12, %14 : vector<512x128xf32>
      %cst_14 = arith.constant 0.000000e+00 : f32
      %16 = vector.broadcast %cst_14 : f32 to vector<512x128xf32>
      %17 = arith.maximumf %15, %16 : vector<512x128xf32>
      %c0_15 = arith.constant 0 : index
      %c0_16 = arith.constant 0 : index
      %18 = vector.load %arg5[%c0_15, %c0_16] : memref<512x128xf32, #tpu.memory_space<vmem>>, vector<512x128xf32>
      tpu.vector_store %arg5[%c0_15, %c0_16], %17 {strides = array<i32>} : memref<512x128xf32, #tpu.memory_space<vmem>>, vector<512x128xf32>,
    } else {
    }
    return
  }
  func.func @transform_0(%arg0: i32, %arg1: i32) -> (i32, i32) {
    %c0_i32 = arith.constant 0 : i32
    return %arg0, %arg1 : i32, i32
  }
  func.func @transform_1(%arg0: i32, %arg1: i32) -> (i32, i32) {
    %c0_i32 = arith.constant 0 : i32
    %c0_i32_0 = arith.constant 0 : i32
    return %arg1, %c0_i32 : i32, i32
  }
  func.func @transform_2(%arg0: i32, %arg1: i32) -> (i32, i32) {
    %c0_i32 = arith.constant 0 : i32
    %c0_i32_0 = arith.constant 0 : i32
    %c0_i32_1 = arith.constant 0 : i32
    return %c0_i32, %c0_i32_0 : i32, i32
  }
  func.func @transform_3(%arg0: i32, %arg1: i32) -> (i32, i32) {
    %c0_i32 = arith.constant 0 : i32
    %c0_i32_0 = arith.constant 0 : i32
    return %arg0, %c0_i32 : i32, i32
  }
}

module attributes {stable_mosaic.version = 11 : i64} {
  func.func @_mm_bias_kernel(%arg0: i32, %arg1: i32, %arg2: memref<512x128xbf16, #tpu.memory_space<vmem>>, %arg3: memref<128x128xbf16, #tpu.memory_space<vmem>>, %arg4: memref<1x128xf32, #tpu.memory_space<vmem>>, %arg5: memref<512x128xf32, #tpu.memory_space<vmem>>, %arg6: memref<512x128xf32, #tpu.memory_space<vmem>>) attributes {dimension_semantics = [#tpu.dimension_semantics<parallel>, #tpu.dimension_semantics<arbitrary>], iteration_bounds = array<i64: 1, 1>, scalar_prefetch = 0 : i64, scratch_operands = 1 : i64, tpu.core_type = #tpu.core_type<tc>, window_params = [{transform_indices = @transform_0, window_bounds = array<i64: 512, 128>}, {transform_indices = @transform_1, window_bounds = array<i64: 128, 128>}, {pipeline_mode = #tpu.pipeline_mode<synchronous>, transform_indices = @transform_2, window_bounds = array<i64: 1, 128>}, {transform_indices = @transform_3, window_bounds = array<i64: 512, 128>}]} {
    %c0_i32 = arith.constant 0 : i32
    %0 = arith.cmpi eq, %arg1, %c0_i32 : i32
    %1 = arith.extui %0 : i1 to i32
    %c0_i32_0 = arith.constant 0 : i32
    %2 = arith.cmpi ne, %1, %c0_i32_0 : i32
    scf.if %2 {
      %cst_10 = arith.constant 0.000000e+00 : f32
      %12 = vector.broadcast %cst_10 : f32 to vector<512x128xf32>
      %c0_11 = arith.constant 0 : index
      %c0_12 = arith.constant 0 : index
      %13 = vector.load %arg6[%c0_11, %c0_12] : memref<512x128xf32, #tpu.memory_space<vmem>>, vector<512x128xf32>
      tpu.vector_store %arg6[%c0_11, %c0_12], %12 {strides = array<i32>} : memref<512x128xf32, #tpu.memory_space<vmem>>, vector<512x128xf32>,
    } else {
    }
    %c0 = arith.constant 0 : index
    %c0_1 = arith.constant 0 : index
    %3 = vector.load %arg6[%c0, %c0_1] : memref<512x128xf32, #tpu.memory_space<vmem>>, vector<512x128xf32>
    %c0_2 = arith.constant 0 : index
    %c0_3 = arith.constant 0 : index
    %4 = vector.load %arg2[%c0_2, %c0_3] : memref<512x128xbf16, #tpu.memory_space<vmem>>, vector<512x128xbf16>
    %c0_4 = arith.constant 0 : index
    %c0_5 = arith.constant 0 : index
    %5 = vector.load %arg3[%c0_4, %c0_5] : memref<128x128xbf16, #tpu.memory_space<vmem>>, vector<128x128xbf16>
    %cst = arith.constant dense<0.000000e+00> : vector<512x128xf32>
    %6 = tpu.matmul %4, %5, %cst {dimension_numbers = #tpu.dot_dimension_numbers<[1], [0], [0], [1], [0, 0, 1, 1], [], []>} : vector<512x128xbf16>, vector<128x128xbf16>, vector<512x128xf32> -> vector<512x128xf32>
    %7 = arith.addf %3, %6 : vector<512x128xf32>
    %c0_6 = arith.constant 0 : index
    %c0_7 = arith.constant 0 : index
    %8 = vector.load %arg6[%c0_6, %c0_7] : memref<512x128xf32, #tpu.memory_space<vmem>>, vector<512x128xf32>
    tpu.vector_store %arg6[%c0_6, %c0_7], %7 {strides = array<i32>} : memref<512x128xf32, #tpu.memory_space<vmem>>, vector<512x128xf32>,
    %c0_i32_8 = arith.constant 0 : i32
    %9 = arith.cmpi eq, %arg1, %c0_i32_8 : i32
    %10 = arith.extui %9 : i1 to i32
    %c0_i32_9 = arith.constant 0 : i32
    %11 = arith.cmpi ne, %10, %c0_i32_9 : i32
    scf.if %11 {
      %c0_10 = arith.constant 0 : index
      %c0_11 = arith.constant 0 : index
      %12 = vector.load %arg6[%c0_10, %c0_11] : memref<512x128xf32, #tpu.memory_space<vmem>>, vector<512x128xf32>
      %c0_12 = arith.constant 0 : index
      %c0_13 = arith.constant 0 : index
      %13 = vector.load %arg4[%c0_12, %c0_13] : memref<1x128xf32, #tpu.memory_space<vmem>>, vector<1x128xf32>
      %14 = vector.broadcast %13 : vector<1x128xf32> to vector<512x128xf32>
      %15 = arith.addf %12, %14 : vector<512x128xf32>
      %c0_14 = arith.constant 0 : index
      %c0_15 = arith.constant 0 : index
      %16 = vector.load %arg5[%c0_14, %c0_15] : memref<512x128xf32, #tpu.memory_space<vmem>>, vector<512x128xf32>
      tpu.vector_store %arg5[%c0_14, %c0_15], %15 {strides = array<i32>} : memref<512x128xf32, #tpu.memory_space<vmem>>, vector<512x128xf32>,
    } else {
    }
    return
  }
  func.func @transform_0(%arg0: i32, %arg1: i32) -> (i32, i32) {
    %c0_i32 = arith.constant 0 : i32
    return %arg0, %arg1 : i32, i32
  }
  func.func @transform_1(%arg0: i32, %arg1: i32) -> (i32, i32) {
    %c0_i32 = arith.constant 0 : i32
    %c0_i32_0 = arith.constant 0 : i32
    return %arg1, %c0_i32 : i32, i32
  }
  func.func @transform_2(%arg0: i32, %arg1: i32) -> (i32, i32) {
    %c0_i32 = arith.constant 0 : i32
    %c0_i32_0 = arith.constant 0 : i32
    %c0_i32_1 = arith.constant 0 : i32
    return %c0_i32, %c0_i32_0 : i32, i32
  }
  func.func @transform_3(%arg0: i32, %arg1: i32) -> (i32, i32) {
    %c0_i32 = arith.constant 0 : i32
    %c0_i32_0 = arith.constant 0 : i32
    return %arg0, %c0_i32 : i32, i32
  }
}

module attributes {stable_mosaic.version = 11 : i64} {
  func.func @_mm_bias_kernel(%arg0: i32, %arg1: i32, %arg2: memref<512x256xbf16, #tpu.memory_space<vmem>>, %arg3: memref<256x128xbf16, #tpu.memory_space<vmem>>, %arg4: memref<1x128xf32, #tpu.memory_space<vmem>>, %arg5: memref<512x128xf32, #tpu.memory_space<vmem>>, %arg6: memref<512x128xf32, #tpu.memory_space<vmem>>) attributes {dimension_semantics = [#tpu.dimension_semantics<parallel>, #tpu.dimension_semantics<arbitrary>], iteration_bounds = array<i64: 1, 1>, scalar_prefetch = 0 : i64, scratch_operands = 1 : i64, tpu.core_type = #tpu.core_type<tc>, window_params = [{transform_indices = @transform_0, window_bounds = array<i64: 512, 256>}, {transform_indices = @transform_1, window_bounds = array<i64: 256, 128>}, {pipeline_mode = #tpu.pipeline_mode<synchronous>, transform_indices = @transform_2, window_bounds = array<i64: 1, 128>}, {transform_indices = @transform_3, window_bounds = array<i64: 512, 128>}]} {
    %c0_i32 = arith.constant 0 : i32
    %0 = arith.cmpi eq, %arg1, %c0_i32 : i32
    %1 = arith.extui %0 : i1 to i32
    %c0_i32_0 = arith.constant 0 : i32
    %2 = arith.cmpi ne, %1, %c0_i32_0 : i32
    scf.if %2 {
      %cst_10 = arith.constant 0.000000e+00 : f32
      %12 = vector.broadcast %cst_10 : f32 to vector<512x128xf32>
      %c0_11 = arith.constant 0 : index
      %c0_12 = arith.constant 0 : index
      %13 = vector.load %arg6[%c0_11, %c0_12] : memref<512x128xf32, #tpu.memory_space<vmem>>, vector<512x128xf32>
      tpu.vector_store %arg6[%c0_11, %c0_12], %12 {strides = array<i32>} : memref<512x128xf32, #tpu.memory_space<vmem>>, vector<512x128xf32>,
    } else {
    }
    %c0 = arith.constant 0 : index
    %c0_1 = arith.constant 0 : index
    %3 = vector.load %arg6[%c0, %c0_1] : memref<512x128xf32, #tpu.memory_space<vmem>>, vector<512x128xf32>
    %c0_2 = arith.constant 0 : index
    %c0_3 = arith.constant 0 : index
    %4 = vector.load %arg2[%c0_2, %c0_3] : memref<512x256xbf16, #tpu.memory_space<vmem>>, vector<512x256xbf16>
    %c0_4 = arith.constant 0 : index
    %c0_5 = arith.constant 0 : index
    %5 = vector.load %arg3[%c0_4, %c0_5] : memref<256x128xbf16, #tpu.memory_space<vmem>>, vector<256x128xbf16>
    %cst = arith.constant dense<0.000000e+00> : vector<512x128xf32>
    %6 = tpu.matmul %4, %5, %cst {dimension_numbers = #tpu.dot_dimension_numbers<[1], [0], [0], [1], [0, 0, 1, 1], [], []>} : vector<512x256xbf16>, vector<256x128xbf16>, vector<512x128xf32> -> vector<512x128xf32>
    %7 = arith.addf %3, %6 : vector<512x128xf32>
    %c0_6 = arith.constant 0 : index
    %c0_7 = arith.constant 0 : index
    %8 = vector.load %arg6[%c0_6, %c0_7] : memref<512x128xf32, #tpu.memory_space<vmem>>, vector<512x128xf32>
    tpu.vector_store %arg6[%c0_6, %c0_7], %7 {strides = array<i32>} : memref<512x128xf32, #tpu.memory_space<vmem>>, vector<512x128xf32>,
    %c0_i32_8 = arith.constant 0 : i32
    %9 = arith.cmpi eq, %arg1, %c0_i32_8 : i32
    %10 = arith.extui %9 : i1 to i32
    %c0_i32_9 = arith.constant 0 : i32
    %11 = arith.cmpi ne, %10, %c0_i32_9 : i32
    scf.if %11 {
      %c0_10 = arith.constant 0 : index
      %c0_11 = arith.constant 0 : index
      %12 = vector.load %arg6[%c0_10, %c0_11] : memref<512x128xf32, #tpu.memory_space<vmem>>, vector<512x128xf32>
      %c0_12 = arith.constant 0 : index
      %c0_13 = arith.constant 0 : index
      %13 = vector.load %arg4[%c0_12, %c0_13] : memref<1x128xf32, #tpu.memory_space<vmem>>, vector<1x128xf32>
      %14 = vector.broadcast %13 : vector<1x128xf32> to vector<512x128xf32>
      %15 = arith.addf %12, %14 : vector<512x128xf32>
      %cst_14 = arith.constant 0.000000e+00 : f32
      %16 = vector.broadcast %cst_14 : f32 to vector<512x128xf32>
      %17 = arith.maximumf %15, %16 : vector<512x128xf32>
      %c0_15 = arith.constant 0 : index
      %c0_16 = arith.constant 0 : index
      %18 = vector.load %arg5[%c0_15, %c0_16] : memref<512x128xf32, #tpu.memory_space<vmem>>, vector<512x128xf32>
      tpu.vector_store %arg5[%c0_15, %c0_16], %17 {strides = array<i32>} : memref<512x128xf32, #tpu.memory_space<vmem>>, vector<512x128xf32>,
    } else {
    }
    return
  }
  func.func @transform_0(%arg0: i32, %arg1: i32) -> (i32, i32) {
    %c0_i32 = arith.constant 0 : i32
    return %arg0, %arg1 : i32, i32
  }
  func.func @transform_1(%arg0: i32, %arg1: i32) -> (i32, i32) {
    %c0_i32 = arith.constant 0 : i32
    %c0_i32_0 = arith.constant 0 : i32
    return %arg1, %c0_i32 : i32, i32
  }
  func.func @transform_2(%arg0: i32, %arg1: i32) -> (i32, i32) {
    %c0_i32 = arith.constant 0 : i32
    %c0_i32_0 = arith.constant 0 : i32
    %c0_i32_1 = arith.constant 0 : i32
    return %c0_i32, %c0_i32_0 : i32, i32
  }
  func.func @transform_3(%arg0: i32, %arg1: i32) -> (i32, i32) {
    %c0_i32 = arith.constant 0 : i32
    %c0_i32_0 = arith.constant 0 : i32
    return %arg0, %c0_i32 : i32, i32
  }
}

module attributes {stable_mosaic.version = 11 : i64} {
  func.func @_mm_bias_kernel(%arg0: i32, %arg1: i32, %arg2: memref<128x128xbf16, #tpu.memory_space<vmem>>, %arg3: memref<128x128xbf16, #tpu.memory_space<vmem>>, %arg4: memref<1x128xf32, #tpu.memory_space<vmem>>, %arg5: memref<128x128xf32, #tpu.memory_space<vmem>>, %arg6: memref<128x128xf32, #tpu.memory_space<vmem>>) attributes {dimension_semantics = [#tpu.dimension_semantics<parallel>, #tpu.dimension_semantics<arbitrary>], iteration_bounds = array<i64: 1, 1>, scalar_prefetch = 0 : i64, scratch_operands = 1 : i64, tpu.core_type = #tpu.core_type<tc>, window_params = [{transform_indices = @transform_0, window_bounds = array<i64: 128, 128>}, {transform_indices = @transform_1, window_bounds = array<i64: 128, 128>}, {pipeline_mode = #tpu.pipeline_mode<synchronous>, transform_indices = @transform_2, window_bounds = array<i64: 1, 128>}, {transform_indices = @transform_3, window_bounds = array<i64: 128, 128>}]} {
    %c0_i32 = arith.constant 0 : i32
    %0 = arith.cmpi eq, %arg1, %c0_i32 : i32
    %1 = arith.extui %0 : i1 to i32
    %c0_i32_0 = arith.constant 0 : i32
    %2 = arith.cmpi ne, %1, %c0_i32_0 : i32
    scf.if %2 {
      %cst_10 = arith.constant 0.000000e+00 : f32
      %12 = vector.broadcast %cst_10 : f32 to vector<128x128xf32>
      %c0_11 = arith.constant 0 : index
      %c0_12 = arith.constant 0 : index
      %13 = vector.load %arg6[%c0_11, %c0_12] : memref<128x128xf32, #tpu.memory_space<vmem>>, vector<128x128xf32>
      tpu.vector_store %arg6[%c0_11, %c0_12], %12 {strides = array<i32>} : memref<128x128xf32, #tpu.memory_space<vmem>>, vector<128x128xf32>,
    } else {
    }
    %c0 = arith.constant 0 : index
    %c0_1 = arith.constant 0 : index
    %3 = vector.load %arg6[%c0, %c0_1] : memref<128x128xf32, #tpu.memory_space<vmem>>, vector<128x128xf32>
    %c0_2 = arith.constant 0 : index
    %c0_3 = arith.constant 0 : index
    %4 = vector.load %arg2[%c0_2, %c0_3] : memref<128x128xbf16, #tpu.memory_space<vmem>>, vector<128x128xbf16>
    %c0_4 = arith.constant 0 : index
    %c0_5 = arith.constant 0 : index
    %5 = vector.load %arg3[%c0_4, %c0_5] : memref<128x128xbf16, #tpu.memory_space<vmem>>, vector<128x128xbf16>
    %cst = arith.constant dense<0.000000e+00> : vector<128x128xf32>
    %6 = tpu.matmul %4, %5, %cst {dimension_numbers = #tpu.dot_dimension_numbers<[1], [0], [0], [1], [0, 0, 1, 1], [], []>} : vector<128x128xbf16>, vector<128x128xbf16>, vector<128x128xf32> -> vector<128x128xf32>
    %7 = arith.addf %3, %6 : vector<128x128xf32>
    %c0_6 = arith.constant 0 : index
    %c0_7 = arith.constant 0 : index
    %8 = vector.load %arg6[%c0_6, %c0_7] : memref<128x128xf32, #tpu.memory_space<vmem>>, vector<128x128xf32>
    tpu.vector_store %arg6[%c0_6, %c0_7], %7 {strides = array<i32>} : memref<128x128xf32, #tpu.memory_space<vmem>>, vector<128x128xf32>,
    %c0_i32_8 = arith.constant 0 : i32
    %9 = arith.cmpi eq, %arg1, %c0_i32_8 : i32
    %10 = arith.extui %9 : i1 to i32
    %c0_i32_9 = arith.constant 0 : i32
    %11 = arith.cmpi ne, %10, %c0_i32_9 : i32
    scf.if %11 {
      %c0_10 = arith.constant 0 : index
      %c0_11 = arith.constant 0 : index
      %12 = vector.load %arg6[%c0_10, %c0_11] : memref<128x128xf32, #tpu.memory_space<vmem>>, vector<128x128xf32>
      %c0_12 = arith.constant 0 : index
      %c0_13 = arith.constant 0 : index
      %13 = vector.load %arg4[%c0_12, %c0_13] : memref<1x128xf32, #tpu.memory_space<vmem>>, vector<1x128xf32>
      %14 = vector.broadcast %13 : vector<1x128xf32> to vector<128x128xf32>
      %15 = arith.addf %12, %14 : vector<128x128xf32>
      %c0_14 = arith.constant 0 : index
      %c0_15 = arith.constant 0 : index
      %16 = vector.load %arg5[%c0_14, %c0_15] : memref<128x128xf32, #tpu.memory_space<vmem>>, vector<128x128xf32>
      tpu.vector_store %arg5[%c0_14, %c0_15], %15 {strides = array<i32>} : memref<128x128xf32, #tpu.memory_space<vmem>>, vector<128x128xf32>,
    } else {
    }
    return
  }
  func.func @transform_0(%arg0: i32, %arg1: i32) -> (i32, i32) {
    %c0_i32 = arith.constant 0 : i32
    return %arg0, %arg1 : i32, i32
  }
  func.func @transform_1(%arg0: i32, %arg1: i32) -> (i32, i32) {
    %c0_i32 = arith.constant 0 : i32
    %c0_i32_0 = arith.constant 0 : i32
    return %arg1, %c0_i32 : i32, i32
  }
  func.func @transform_2(%arg0: i32, %arg1: i32) -> (i32, i32) {
    %c0_i32 = arith.constant 0 : i32
    %c0_i32_0 = arith.constant 0 : i32
    %c0_i32_1 = arith.constant 0 : i32
    return %c0_i32, %c0_i32_0 : i32, i32
  }
  func.func @transform_3(%arg0: i32, %arg1: i32) -> (i32, i32) {
    %c0_i32 = arith.constant 0 : i32
    %c0_i32_0 = arith.constant 0 : i32
    return %arg0, %c0_i32 : i32, i32
  }
}

module attributes {stable_mosaic.version = 11 : i64} {
  func.func @_mm_bias_kernel(%arg0: i32, %arg1: i32, %arg2: memref<128x128xbf16, #tpu.memory_space<vmem>>, %arg3: memref<128x128xbf16, #tpu.memory_space<vmem>>, %arg4: memref<1x128xf32, #tpu.memory_space<vmem>>, %arg5: memref<128x128xf32, #tpu.memory_space<vmem>>, %arg6: memref<128x128xf32, #tpu.memory_space<vmem>>) attributes {dimension_semantics = [#tpu.dimension_semantics<parallel>, #tpu.dimension_semantics<arbitrary>], iteration_bounds = array<i64: 1, 1>, scalar_prefetch = 0 : i64, scratch_operands = 1 : i64, tpu.core_type = #tpu.core_type<tc>, window_params = [{transform_indices = @transform_0, window_bounds = array<i64: 128, 128>}, {transform_indices = @transform_1, window_bounds = array<i64: 128, 128>}, {pipeline_mode = #tpu.pipeline_mode<synchronous>, transform_indices = @transform_2, window_bounds = array<i64: 1, 128>}, {transform_indices = @transform_3, window_bounds = array<i64: 128, 128>}]} {
    %c0_i32 = arith.constant 0 : i32
    %0 = arith.cmpi eq, %arg1, %c0_i32 : i32
    %1 = arith.extui %0 : i1 to i32
    %c0_i32_0 = arith.constant 0 : i32
    %2 = arith.cmpi ne, %1, %c0_i32_0 : i32
    scf.if %2 {
      %cst_10 = arith.constant 0.000000e+00 : f32
      %12 = vector.broadcast %cst_10 : f32 to vector<128x128xf32>
      %c0_11 = arith.constant 0 : index
      %c0_12 = arith.constant 0 : index
      %13 = vector.load %arg6[%c0_11, %c0_12] : memref<128x128xf32, #tpu.memory_space<vmem>>, vector<128x128xf32>
      tpu.vector_store %arg6[%c0_11, %c0_12], %12 {strides = array<i32>} : memref<128x128xf32, #tpu.memory_space<vmem>>, vector<128x128xf32>,
    } else {
    }
    %c0 = arith.constant 0 : index
    %c0_1 = arith.constant 0 : index
    %3 = vector.load %arg6[%c0, %c0_1] : memref<128x128xf32, #tpu.memory_space<vmem>>, vector<128x128xf32>
    %c0_2 = arith.constant 0 : index
    %c0_3 = arith.constant 0 : index
    %4 = vector.load %arg2[%c0_2, %c0_3] : memref<128x128xbf16, #tpu.memory_space<vmem>>, vector<128x128xbf16>
    %c0_4 = arith.constant 0 : index
    %c0_5 = arith.constant 0 : index
    %5 = vector.load %arg3[%c0_4, %c0_5] : memref<128x128xbf16, #tpu.memory_space<vmem>>, vector<128x128xbf16>
    %cst = arith.constant dense<0.000000e+00> : vector<128x128xf32>
    %6 = tpu.matmul %4, %5, %cst {dimension_numbers = #tpu.dot_dimension_numbers<[1], [0], [0], [1], [0, 0, 1, 1], [], []>} : vector<128x128xbf16>, vector<128x128xbf16>, vector<128x128xf32> -> vector<128x128xf32>
    %7 = arith.addf %3, %6 : vector<128x128xf32>
    %c0_6 = arith.constant 0 : index
    %c0_7 = arith.constant 0 : index
    %8 = vector.load %arg6[%c0_6, %c0_7] : memref<128x128xf32, #tpu.memory_space<vmem>>, vector<128x128xf32>
    tpu.vector_store %arg6[%c0_6, %c0_7], %7 {strides = array<i32>} : memref<128x128xf32, #tpu.memory_space<vmem>>, vector<128x128xf32>,
    %c0_i32_8 = arith.constant 0 : i32
    %9 = arith.cmpi eq, %arg1, %c0_i32_8 : i32
    %10 = arith.extui %9 : i1 to i32
    %c0_i32_9 = arith.constant 0 : i32
    %11 = arith.cmpi ne, %10, %c0_i32_9 : i32
    scf.if %11 {
      %c0_10 = arith.constant 0 : index
      %c0_11 = arith.constant 0 : index
      %12 = vector.load %arg6[%c0_10, %c0_11] : memref<128x128xf32, #tpu.memory_space<vmem>>, vector<128x128xf32>
      %c0_12 = arith.constant 0 : index
      %c0_13 = arith.constant 0 : index
      %13 = vector.load %arg4[%c0_12, %c0_13] : memref<1x128xf32, #tpu.memory_space<vmem>>, vector<1x128xf32>
      %14 = vector.broadcast %13 : vector<1x128xf32> to vector<128x128xf32>
      %15 = arith.addf %12, %14 : vector<128x128xf32>
      %cst_14 = arith.constant 0.000000e+00 : f32
      %16 = vector.broadcast %cst_14 : f32 to vector<128x128xf32>
      %17 = arith.maximumf %15, %16 : vector<128x128xf32>
      %c0_15 = arith.constant 0 : index
      %c0_16 = arith.constant 0 : index
      %18 = vector.load %arg5[%c0_15, %c0_16] : memref<128x128xf32, #tpu.memory_space<vmem>>, vector<128x128xf32>
      tpu.vector_store %arg5[%c0_15, %c0_16], %17 {strides = array<i32>} : memref<128x128xf32, #tpu.memory_space<vmem>>, vector<128x128xf32>,
    } else {
    }
    return
  }
  func.func @transform_0(%arg0: i32, %arg1: i32) -> (i32, i32) {
    %c0_i32 = arith.constant 0 : i32
    return %arg0, %arg1 : i32, i32
  }
  func.func @transform_1(%arg0: i32, %arg1: i32) -> (i32, i32) {
    %c0_i32 = arith.constant 0 : i32
    %c0_i32_0 = arith.constant 0 : i32
    return %arg1, %c0_i32 : i32, i32
  }
  func.func @transform_2(%arg0: i32, %arg1: i32) -> (i32, i32) {
    %c0_i32 = arith.constant 0 : i32
    %c0_i32_0 = arith.constant 0 : i32
    %c0_i32_1 = arith.constant 0 : i32
    return %c0_i32, %c0_i32_0 : i32, i32
  }
  func.func @transform_3(%arg0: i32, %arg1: i32) -> (i32, i32) {
    %c0_i32 = arith.constant 0 : i32
    %c0_i32_0 = arith.constant 0 : i32
    return %arg0, %c0_i32 : i32, i32
  }
}

module attributes {stable_mosaic.version = 11 : i64} {
  func.func @_mm_bias_kernel(%arg0: i32, %arg1: i32, %arg2: memref<128x256xbf16, #tpu.memory_space<vmem>>, %arg3: memref<256x128xbf16, #tpu.memory_space<vmem>>, %arg4: memref<1x128xf32, #tpu.memory_space<vmem>>, %arg5: memref<128x128xf32, #tpu.memory_space<vmem>>, %arg6: memref<128x128xf32, #tpu.memory_space<vmem>>) attributes {dimension_semantics = [#tpu.dimension_semantics<parallel>, #tpu.dimension_semantics<arbitrary>], iteration_bounds = array<i64: 1, 1>, scalar_prefetch = 0 : i64, scratch_operands = 1 : i64, tpu.core_type = #tpu.core_type<tc>, window_params = [{transform_indices = @transform_0, window_bounds = array<i64: 128, 256>}, {transform_indices = @transform_1, window_bounds = array<i64: 256, 128>}, {pipeline_mode = #tpu.pipeline_mode<synchronous>, transform_indices = @transform_2, window_bounds = array<i64: 1, 128>}, {transform_indices = @transform_3, window_bounds = array<i64: 128, 128>}]} {
    %c0_i32 = arith.constant 0 : i32
    %0 = arith.cmpi eq, %arg1, %c0_i32 : i32
    %1 = arith.extui %0 : i1 to i32
    %c0_i32_0 = arith.constant 0 : i32
    %2 = arith.cmpi ne, %1, %c0_i32_0 : i32
    scf.if %2 {
      %cst_10 = arith.constant 0.000000e+00 : f32
      %12 = vector.broadcast %cst_10 : f32 to vector<128x128xf32>
      %c0_11 = arith.constant 0 : index
      %c0_12 = arith.constant 0 : index
      %13 = vector.load %arg6[%c0_11, %c0_12] : memref<128x128xf32, #tpu.memory_space<vmem>>, vector<128x128xf32>
      tpu.vector_store %arg6[%c0_11, %c0_12], %12 {strides = array<i32>} : memref<128x128xf32, #tpu.memory_space<vmem>>, vector<128x128xf32>,
    } else {
    }
    %c0 = arith.constant 0 : index
    %c0_1 = arith.constant 0 : index
    %3 = vector.load %arg6[%c0, %c0_1] : memref<128x128xf32, #tpu.memory_space<vmem>>, vector<128x128xf32>
    %c0_2 = arith.constant 0 : index
    %c0_3 = arith.constant 0 : index
    %4 = vector.load %arg2[%c0_2, %c0_3] : memref<128x256xbf16, #tpu.memory_space<vmem>>, vector<128x256xbf16>
    %c0_4 = arith.constant 0 : index
    %c0_5 = arith.constant 0 : index
    %5 = vector.load %arg3[%c0_4, %c0_5] : memref<256x128xbf16, #tpu.memory_space<vmem>>, vector<256x128xbf16>
    %cst = arith.constant dense<0.000000e+00> : vector<128x128xf32>
    %6 = tpu.matmul %4, %5, %cst {dimension_numbers = #tpu.dot_dimension_numbers<[1], [0], [0], [1], [0, 0, 1, 1], [], []>} : vector<128x256xbf16>, vector<256x128xbf16>, vector<128x128xf32> -> vector<128x128xf32>
    %7 = arith.addf %3, %6 : vector<128x128xf32>
    %c0_6 = arith.constant 0 : index
    %c0_7 = arith.constant 0 : index
    %8 = vector.load %arg6[%c0_6, %c0_7] : memref<128x128xf32, #tpu.memory_space<vmem>>, vector<128x128xf32>
    tpu.vector_store %arg6[%c0_6, %c0_7], %7 {strides = array<i32>} : memref<128x128xf32, #tpu.memory_space<vmem>>, vector<128x128xf32>,
    %c0_i32_8 = arith.constant 0 : i32
    %9 = arith.cmpi eq, %arg1, %c0_i32_8 : i32
    %10 = arith.extui %9 : i1 to i32
    %c0_i32_9 = arith.constant 0 : i32
    %11 = arith.cmpi ne, %10, %c0_i32_9 : i32
    scf.if %11 {
      %c0_10 = arith.constant 0 : index
      %c0_11 = arith.constant 0 : index
      %12 = vector.load %arg6[%c0_10, %c0_11] : memref<128x128xf32, #tpu.memory_space<vmem>>, vector<128x128xf32>
      %c0_12 = arith.constant 0 : index
      %c0_13 = arith.constant 0 : index
      %13 = vector.load %arg4[%c0_12, %c0_13] : memref<1x128xf32, #tpu.memory_space<vmem>>, vector<1x128xf32>
      %14 = vector.broadcast %13 : vector<1x128xf32> to vector<128x128xf32>
      %15 = arith.addf %12, %14 : vector<128x128xf32>
      %cst_14 = arith.constant 0.000000e+00 : f32
      %16 = vector.broadcast %cst_14 : f32 to vector<128x128xf32>
      %17 = arith.maximumf %15, %16 : vector<128x128xf32>
      %c0_15 = arith.constant 0 : index
      %c0_16 = arith.constant 0 : index
      %18 = vector.load %arg5[%c0_15, %c0_16] : memref<128x128xf32, #tpu.memory_space<vmem>>, vector<128x128xf32>
      tpu.vector_store %arg5[%c0_15, %c0_16], %17 {strides = array<i32>} : memref<128x128xf32, #tpu.memory_space<vmem>>, vector<128x128xf32>,
    } else {
    }
    return
  }
  func.func @transform_0(%arg0: i32, %arg1: i32) -> (i32, i32) {
    %c0_i32 = arith.constant 0 : i32
    return %arg0, %arg1 : i32, i32
  }
  func.func @transform_1(%arg0: i32, %arg1: i32) -> (i32, i32) {
    %c0_i32 = arith.constant 0 : i32
    %c0_i32_0 = arith.constant 0 : i32
    return %arg1, %c0_i32 : i32, i32
  }
  func.func @transform_2(%arg0: i32, %arg1: i32) -> (i32, i32) {
    %c0_i32 = arith.constant 0 : i32
    %c0_i32_0 = arith.constant 0 : i32
    %c0_i32_1 = arith.constant 0 : i32
    return %c0_i32, %c0_i32_0 : i32, i32
  }
  func.func @transform_3(%arg0: i32, %arg1: i32) -> (i32, i32) {
    %c0_i32 = arith.constant 0 : i32
    %c0_i32_0 = arith.constant 0 : i32
    return %arg0, %c0_i32 : i32, i32
  }
}

module attributes {stable_mosaic.version = 11 : i64} {
  func.func @_mm_bias_kernel(%arg0: i32, %arg1: i32, %arg2: memref<128x384xbf16, #tpu.memory_space<vmem>>, %arg3: memref<384x128xbf16, #tpu.memory_space<vmem>>, %arg4: memref<1x128xf32, #tpu.memory_space<vmem>>, %arg5: memref<128x128xf32, #tpu.memory_space<vmem>>, %arg6: memref<128x128xf32, #tpu.memory_space<vmem>>) attributes {dimension_semantics = [#tpu.dimension_semantics<parallel>, #tpu.dimension_semantics<arbitrary>], iteration_bounds = array<i64: 1, 1>, scalar_prefetch = 0 : i64, scratch_operands = 1 : i64, tpu.core_type = #tpu.core_type<tc>, window_params = [{transform_indices = @transform_0, window_bounds = array<i64: 128, 384>}, {transform_indices = @transform_1, window_bounds = array<i64: 384, 128>}, {pipeline_mode = #tpu.pipeline_mode<synchronous>, transform_indices = @transform_2, window_bounds = array<i64: 1, 128>}, {transform_indices = @transform_3, window_bounds = array<i64: 128, 128>}]} {
    %c0_i32 = arith.constant 0 : i32
    %0 = arith.cmpi eq, %arg1, %c0_i32 : i32
    %1 = arith.extui %0 : i1 to i32
    %c0_i32_0 = arith.constant 0 : i32
    %2 = arith.cmpi ne, %1, %c0_i32_0 : i32
    scf.if %2 {
      %cst_10 = arith.constant 0.000000e+00 : f32
      %12 = vector.broadcast %cst_10 : f32 to vector<128x128xf32>
      %c0_11 = arith.constant 0 : index
      %c0_12 = arith.constant 0 : index
      %13 = vector.load %arg6[%c0_11, %c0_12] : memref<128x128xf32, #tpu.memory_space<vmem>>, vector<128x128xf32>
      tpu.vector_store %arg6[%c0_11, %c0_12], %12 {strides = array<i32>} : memref<128x128xf32, #tpu.memory_space<vmem>>, vector<128x128xf32>,
    } else {
    }
    %c0 = arith.constant 0 : index
    %c0_1 = arith.constant 0 : index
    %3 = vector.load %arg6[%c0, %c0_1] : memref<128x128xf32, #tpu.memory_space<vmem>>, vector<128x128xf32>
    %c0_2 = arith.constant 0 : index
    %c0_3 = arith.constant 0 : index
    %4 = vector.load %arg2[%c0_2, %c0_3] : memref<128x384xbf16, #tpu.memory_space<vmem>>, vector<128x384xbf16>
    %c0_4 = arith.constant 0 : index
    %c0_5 = arith.constant 0 : index
    %5 = vector.load %arg3[%c0_4, %c0_5] : memref<384x128xbf16, #tpu.memory_space<vmem>>, vector<384x128xbf16>
    %cst = arith.constant dense<0.000000e+00> : vector<128x128xf32>
    %6 = tpu.matmul %4, %5, %cst {dimension_numbers = #tpu.dot_dimension_numbers<[1], [0], [0], [1], [0, 0, 1, 1], [], []>} : vector<128x384xbf16>, vector<384x128xbf16>, vector<128x128xf32> -> vector<128x128xf32>
    %7 = arith.addf %3, %6 : vector<128x128xf32>
    %c0_6 = arith.constant 0 : index
    %c0_7 = arith.constant 0 : index
    %8 = vector.load %arg6[%c0_6, %c0_7] : memref<128x128xf32, #tpu.memory_space<vmem>>, vector<128x128xf32>
    tpu.vector_store %arg6[%c0_6, %c0_7], %7 {strides = array<i32>} : memref<128x128xf32, #tpu.memory_space<vmem>>, vector<128x128xf32>,
    %c0_i32_8 = arith.constant 0 : i32
    %9 = arith.cmpi eq, %arg1, %c0_i32_8 : i32
    %10 = arith.extui %9 : i1 to i32
    %c0_i32_9 = arith.constant 0 : i32
    %11 = arith.cmpi ne, %10, %c0_i32_9 : i32
    scf.if %11 {
      %c0_10 = arith.constant 0 : index
      %c0_11 = arith.constant 0 : index
      %12 = vector.load %arg6[%c0_10, %c0_11] : memref<128x128xf32, #tpu.memory_space<vmem>>, vector<128x128xf32>
      %c0_12 = arith.constant 0 : index
      %c0_13 = arith.constant 0 : index
      %13 = vector.load %arg4[%c0_12, %c0_13] : memref<1x128xf32, #tpu.memory_space<vmem>>, vector<1x128xf32>
      %14 = vector.broadcast %13 : vector<1x128xf32> to vector<128x128xf32>
      %15 = arith.addf %12, %14 : vector<128x128xf32>
      %cst_14 = arith.constant 0.000000e+00 : f32
      %16 = vector.broadcast %cst_14 : f32 to vector<128x128xf32>
      %17 = arith.maximumf %15, %16 : vector<128x128xf32>
      %c0_15 = arith.constant 0 : index
      %c0_16 = arith.constant 0 : index
      %18 = vector.load %arg5[%c0_15, %c0_16] : memref<128x128xf32, #tpu.memory_space<vmem>>, vector<128x128xf32>
      tpu.vector_store %arg5[%c0_15, %c0_16], %17 {strides = array<i32>} : memref<128x128xf32, #tpu.memory_space<vmem>>, vector<128x128xf32>,
    } else {
    }
    return
  }
  func.func @transform_0(%arg0: i32, %arg1: i32) -> (i32, i32) {
    %c0_i32 = arith.constant 0 : i32
    return %arg0, %arg1 : i32, i32
  }
  func.func @transform_1(%arg0: i32, %arg1: i32) -> (i32, i32) {
    %c0_i32 = arith.constant 0 : i32
    %c0_i32_0 = arith.constant 0 : i32
    return %arg1, %c0_i32 : i32, i32
  }
  func.func @transform_2(%arg0: i32, %arg1: i32) -> (i32, i32) {
    %c0_i32 = arith.constant 0 : i32
    %c0_i32_0 = arith.constant 0 : i32
    %c0_i32_1 = arith.constant 0 : i32
    return %c0_i32, %c0_i32_0 : i32, i32
  }
  func.func @transform_3(%arg0: i32, %arg1: i32) -> (i32, i32) {
    %c0_i32 = arith.constant 0 : i32
    %c0_i32_0 = arith.constant 0 : i32
    return %arg0, %c0_i32 : i32, i32
  }
}

module attributes {stable_mosaic.version = 11 : i64} {
  func.func @_mm_bias_kernel(%arg0: i32, %arg1: i32, %arg2: memref<32x128xbf16, #tpu.memory_space<vmem>>, %arg3: memref<128x128xbf16, #tpu.memory_space<vmem>>, %arg4: memref<1x128xf32, #tpu.memory_space<vmem>>, %arg5: memref<32x128xf32, #tpu.memory_space<vmem>>, %arg6: memref<32x128xf32, #tpu.memory_space<vmem>>) attributes {dimension_semantics = [#tpu.dimension_semantics<parallel>, #tpu.dimension_semantics<arbitrary>], iteration_bounds = array<i64: 1, 1>, scalar_prefetch = 0 : i64, scratch_operands = 1 : i64, tpu.core_type = #tpu.core_type<tc>, window_params = [{transform_indices = @transform_0, window_bounds = array<i64: 32, 128>}, {transform_indices = @transform_1, window_bounds = array<i64: 128, 128>}, {pipeline_mode = #tpu.pipeline_mode<synchronous>, transform_indices = @transform_2, window_bounds = array<i64: 1, 128>}, {transform_indices = @transform_3, window_bounds = array<i64: 32, 128>}]} {
    %c0_i32 = arith.constant 0 : i32
    %0 = arith.cmpi eq, %arg1, %c0_i32 : i32
    %1 = arith.extui %0 : i1 to i32
    %c0_i32_0 = arith.constant 0 : i32
    %2 = arith.cmpi ne, %1, %c0_i32_0 : i32
    scf.if %2 {
      %cst_10 = arith.constant 0.000000e+00 : f32
      %12 = vector.broadcast %cst_10 : f32 to vector<32x128xf32>
      %c0_11 = arith.constant 0 : index
      %c0_12 = arith.constant 0 : index
      %13 = vector.load %arg6[%c0_11, %c0_12] : memref<32x128xf32, #tpu.memory_space<vmem>>, vector<32x128xf32>
      tpu.vector_store %arg6[%c0_11, %c0_12], %12 {strides = array<i32>} : memref<32x128xf32, #tpu.memory_space<vmem>>, vector<32x128xf32>,
    } else {
    }
    %c0 = arith.constant 0 : index
    %c0_1 = arith.constant 0 : index
    %3 = vector.load %arg6[%c0, %c0_1] : memref<32x128xf32, #tpu.memory_space<vmem>>, vector<32x128xf32>
    %c0_2 = arith.constant 0 : index
    %c0_3 = arith.constant 0 : index
    %4 = vector.load %arg2[%c0_2, %c0_3] : memref<32x128xbf16, #tpu.memory_space<vmem>>, vector<32x128xbf16>
    %c0_4 = arith.constant 0 : index
    %c0_5 = arith.constant 0 : index
    %5 = vector.load %arg3[%c0_4, %c0_5] : memref<128x128xbf16, #tpu.memory_space<vmem>>, vector<128x128xbf16>
    %cst = arith.constant dense<0.000000e+00> : vector<32x128xf32>
    %6 = tpu.matmul %4, %5, %cst {dimension_numbers = #tpu.dot_dimension_numbers<[1], [0], [0], [1], [0, 0, 1, 1], [], []>} : vector<32x128xbf16>, vector<128x128xbf16>, vector<32x128xf32> -> vector<32x128xf32>
    %7 = arith.addf %3, %6 : vector<32x128xf32>
    %c0_6 = arith.constant 0 : index
    %c0_7 = arith.constant 0 : index
    %8 = vector.load %arg6[%c0_6, %c0_7] : memref<32x128xf32, #tpu.memory_space<vmem>>, vector<32x128xf32>
    tpu.vector_store %arg6[%c0_6, %c0_7], %7 {strides = array<i32>} : memref<32x128xf32, #tpu.memory_space<vmem>>, vector<32x128xf32>,
    %c0_i32_8 = arith.constant 0 : i32
    %9 = arith.cmpi eq, %arg1, %c0_i32_8 : i32
    %10 = arith.extui %9 : i1 to i32
    %c0_i32_9 = arith.constant 0 : i32
    %11 = arith.cmpi ne, %10, %c0_i32_9 : i32
    scf.if %11 {
      %c0_10 = arith.constant 0 : index
      %c0_11 = arith.constant 0 : index
      %12 = vector.load %arg6[%c0_10, %c0_11] : memref<32x128xf32, #tpu.memory_space<vmem>>, vector<32x128xf32>
      %c0_12 = arith.constant 0 : index
      %c0_13 = arith.constant 0 : index
      %13 = vector.load %arg4[%c0_12, %c0_13] : memref<1x128xf32, #tpu.memory_space<vmem>>, vector<1x128xf32>
      %14 = vector.broadcast %13 : vector<1x128xf32> to vector<32x128xf32>
      %15 = arith.addf %12, %14 : vector<32x128xf32>
      %c0_14 = arith.constant 0 : index
      %c0_15 = arith.constant 0 : index
      %16 = vector.load %arg5[%c0_14, %c0_15] : memref<32x128xf32, #tpu.memory_space<vmem>>, vector<32x128xf32>
      tpu.vector_store %arg5[%c0_14, %c0_15], %15 {strides = array<i32>} : memref<32x128xf32, #tpu.memory_space<vmem>>, vector<32x128xf32>,
    } else {
    }
    return
  }
  func.func @transform_0(%arg0: i32, %arg1: i32) -> (i32, i32) {
    %c0_i32 = arith.constant 0 : i32
    return %arg0, %arg1 : i32, i32
  }
  func.func @transform_1(%arg0: i32, %arg1: i32) -> (i32, i32) {
    %c0_i32 = arith.constant 0 : i32
    %c0_i32_0 = arith.constant 0 : i32
    return %arg1, %c0_i32 : i32, i32
  }
  func.func @transform_2(%arg0: i32, %arg1: i32) -> (i32, i32) {
    %c0_i32 = arith.constant 0 : i32
    %c0_i32_0 = arith.constant 0 : i32
    %c0_i32_1 = arith.constant 0 : i32
    return %c0_i32, %c0_i32_0 : i32, i32
  }
  func.func @transform_3(%arg0: i32, %arg1: i32) -> (i32, i32) {
    %c0_i32 = arith.constant 0 : i32
    %c0_i32_0 = arith.constant 0 : i32
    return %arg0, %c0_i32 : i32, i32
  }
}

module attributes {stable_mosaic.version = 11 : i64} {
  func.func @_mm_bias_kernel(%arg0: i32, %arg1: i32, %arg2: memref<32x128xbf16, #tpu.memory_space<vmem>>, %arg3: memref<128x128xbf16, #tpu.memory_space<vmem>>, %arg4: memref<1x128xf32, #tpu.memory_space<vmem>>, %arg5: memref<32x128xf32, #tpu.memory_space<vmem>>, %arg6: memref<32x128xf32, #tpu.memory_space<vmem>>) attributes {dimension_semantics = [#tpu.dimension_semantics<parallel>, #tpu.dimension_semantics<arbitrary>], iteration_bounds = array<i64: 1, 1>, scalar_prefetch = 0 : i64, scratch_operands = 1 : i64, tpu.core_type = #tpu.core_type<tc>, window_params = [{transform_indices = @transform_0, window_bounds = array<i64: 32, 128>}, {transform_indices = @transform_1, window_bounds = array<i64: 128, 128>}, {pipeline_mode = #tpu.pipeline_mode<synchronous>, transform_indices = @transform_2, window_bounds = array<i64: 1, 128>}, {transform_indices = @transform_3, window_bounds = array<i64: 32, 128>}]} {
    %c0_i32 = arith.constant 0 : i32
    %0 = arith.cmpi eq, %arg1, %c0_i32 : i32
    %1 = arith.extui %0 : i1 to i32
    %c0_i32_0 = arith.constant 0 : i32
    %2 = arith.cmpi ne, %1, %c0_i32_0 : i32
    scf.if %2 {
      %cst_10 = arith.constant 0.000000e+00 : f32
      %12 = vector.broadcast %cst_10 : f32 to vector<32x128xf32>
      %c0_11 = arith.constant 0 : index
      %c0_12 = arith.constant 0 : index
      %13 = vector.load %arg6[%c0_11, %c0_12] : memref<32x128xf32, #tpu.memory_space<vmem>>, vector<32x128xf32>
      tpu.vector_store %arg6[%c0_11, %c0_12], %12 {strides = array<i32>} : memref<32x128xf32, #tpu.memory_space<vmem>>, vector<32x128xf32>,
    } else {
    }
    %c0 = arith.constant 0 : index
    %c0_1 = arith.constant 0 : index
    %3 = vector.load %arg6[%c0, %c0_1] : memref<32x128xf32, #tpu.memory_space<vmem>>, vector<32x128xf32>
    %c0_2 = arith.constant 0 : index
    %c0_3 = arith.constant 0 : index
    %4 = vector.load %arg2[%c0_2, %c0_3] : memref<32x128xbf16, #tpu.memory_space<vmem>>, vector<32x128xbf16>
    %c0_4 = arith.constant 0 : index
    %c0_5 = arith.constant 0 : index
    %5 = vector.load %arg3[%c0_4, %c0_5] : memref<128x128xbf16, #tpu.memory_space<vmem>>, vector<128x128xbf16>
    %cst = arith.constant dense<0.000000e+00> : vector<32x128xf32>
    %6 = tpu.matmul %4, %5, %cst {dimension_numbers = #tpu.dot_dimension_numbers<[1], [0], [0], [1], [0, 0, 1, 1], [], []>} : vector<32x128xbf16>, vector<128x128xbf16>, vector<32x128xf32> -> vector<32x128xf32>
    %7 = arith.addf %3, %6 : vector<32x128xf32>
    %c0_6 = arith.constant 0 : index
    %c0_7 = arith.constant 0 : index
    %8 = vector.load %arg6[%c0_6, %c0_7] : memref<32x128xf32, #tpu.memory_space<vmem>>, vector<32x128xf32>
    tpu.vector_store %arg6[%c0_6, %c0_7], %7 {strides = array<i32>} : memref<32x128xf32, #tpu.memory_space<vmem>>, vector<32x128xf32>,
    %c0_i32_8 = arith.constant 0 : i32
    %9 = arith.cmpi eq, %arg1, %c0_i32_8 : i32
    %10 = arith.extui %9 : i1 to i32
    %c0_i32_9 = arith.constant 0 : i32
    %11 = arith.cmpi ne, %10, %c0_i32_9 : i32
    scf.if %11 {
      %c0_10 = arith.constant 0 : index
      %c0_11 = arith.constant 0 : index
      %12 = vector.load %arg6[%c0_10, %c0_11] : memref<32x128xf32, #tpu.memory_space<vmem>>, vector<32x128xf32>
      %c0_12 = arith.constant 0 : index
      %c0_13 = arith.constant 0 : index
      %13 = vector.load %arg4[%c0_12, %c0_13] : memref<1x128xf32, #tpu.memory_space<vmem>>, vector<1x128xf32>
      %14 = vector.broadcast %13 : vector<1x128xf32> to vector<32x128xf32>
      %15 = arith.addf %12, %14 : vector<32x128xf32>
      %cst_14 = arith.constant 0.000000e+00 : f32
      %16 = vector.broadcast %cst_14 : f32 to vector<32x128xf32>
      %17 = arith.maximumf %15, %16 : vector<32x128xf32>
      %c0_15 = arith.constant 0 : index
      %c0_16 = arith.constant 0 : index
      %18 = vector.load %arg5[%c0_15, %c0_16] : memref<32x128xf32, #tpu.memory_space<vmem>>, vector<32x128xf32>
      tpu.vector_store %arg5[%c0_15, %c0_16], %17 {strides = array<i32>} : memref<32x128xf32, #tpu.memory_space<vmem>>, vector<32x128xf32>,
    } else {
    }
    return
  }
  func.func @transform_0(%arg0: i32, %arg1: i32) -> (i32, i32) {
    %c0_i32 = arith.constant 0 : i32
    return %arg0, %arg1 : i32, i32
  }
  func.func @transform_1(%arg0: i32, %arg1: i32) -> (i32, i32) {
    %c0_i32 = arith.constant 0 : i32
    %c0_i32_0 = arith.constant 0 : i32
    return %arg1, %c0_i32 : i32, i32
  }
  func.func @transform_2(%arg0: i32, %arg1: i32) -> (i32, i32) {
    %c0_i32 = arith.constant 0 : i32
    %c0_i32_0 = arith.constant 0 : i32
    %c0_i32_1 = arith.constant 0 : i32
    return %c0_i32, %c0_i32_0 : i32, i32
  }
  func.func @transform_3(%arg0: i32, %arg1: i32) -> (i32, i32) {
    %c0_i32 = arith.constant 0 : i32
    %c0_i32_0 = arith.constant 0 : i32
    return %arg0, %c0_i32 : i32, i32
  }
}

module attributes {stable_mosaic.version = 11 : i64} {
  func.func @_mm_bias_kernel(%arg0: i32, %arg1: i32, %arg2: memref<32x384xbf16, #tpu.memory_space<vmem>>, %arg3: memref<384x128xbf16, #tpu.memory_space<vmem>>, %arg4: memref<1x128xf32, #tpu.memory_space<vmem>>, %arg5: memref<32x128xf32, #tpu.memory_space<vmem>>, %arg6: memref<32x128xf32, #tpu.memory_space<vmem>>) attributes {dimension_semantics = [#tpu.dimension_semantics<parallel>, #tpu.dimension_semantics<arbitrary>], iteration_bounds = array<i64: 1, 1>, scalar_prefetch = 0 : i64, scratch_operands = 1 : i64, tpu.core_type = #tpu.core_type<tc>, window_params = [{transform_indices = @transform_0, window_bounds = array<i64: 32, 384>}, {transform_indices = @transform_1, window_bounds = array<i64: 384, 128>}, {pipeline_mode = #tpu.pipeline_mode<synchronous>, transform_indices = @transform_2, window_bounds = array<i64: 1, 128>}, {transform_indices = @transform_3, window_bounds = array<i64: 32, 128>}]} {
    %c0_i32 = arith.constant 0 : i32
    %0 = arith.cmpi eq, %arg1, %c0_i32 : i32
    %1 = arith.extui %0 : i1 to i32
    %c0_i32_0 = arith.constant 0 : i32
    %2 = arith.cmpi ne, %1, %c0_i32_0 : i32
    scf.if %2 {
      %cst_10 = arith.constant 0.000000e+00 : f32
      %12 = vector.broadcast %cst_10 : f32 to vector<32x128xf32>
      %c0_11 = arith.constant 0 : index
      %c0_12 = arith.constant 0 : index
      %13 = vector.load %arg6[%c0_11, %c0_12] : memref<32x128xf32, #tpu.memory_space<vmem>>, vector<32x128xf32>
      tpu.vector_store %arg6[%c0_11, %c0_12], %12 {strides = array<i32>} : memref<32x128xf32, #tpu.memory_space<vmem>>, vector<32x128xf32>,
    } else {
    }
    %c0 = arith.constant 0 : index
    %c0_1 = arith.constant 0 : index
    %3 = vector.load %arg6[%c0, %c0_1] : memref<32x128xf32, #tpu.memory_space<vmem>>, vector<32x128xf32>
    %c0_2 = arith.constant 0 : index
    %c0_3 = arith.constant 0 : index
    %4 = vector.load %arg2[%c0_2, %c0_3] : memref<32x384xbf16, #tpu.memory_space<vmem>>, vector<32x384xbf16>
    %c0_4 = arith.constant 0 : index
    %c0_5 = arith.constant 0 : index
    %5 = vector.load %arg3[%c0_4, %c0_5] : memref<384x128xbf16, #tpu.memory_space<vmem>>, vector<384x128xbf16>
    %cst = arith.constant dense<0.000000e+00> : vector<32x128xf32>
    %6 = tpu.matmul %4, %5, %cst {dimension_numbers = #tpu.dot_dimension_numbers<[1], [0], [0], [1], [0, 0, 1, 1], [], []>} : vector<32x384xbf16>, vector<384x128xbf16>, vector<32x128xf32> -> vector<32x128xf32>
    %7 = arith.addf %3, %6 : vector<32x128xf32>
    %c0_6 = arith.constant 0 : index
    %c0_7 = arith.constant 0 : index
    %8 = vector.load %arg6[%c0_6, %c0_7] : memref<32x128xf32, #tpu.memory_space<vmem>>, vector<32x128xf32>
    tpu.vector_store %arg6[%c0_6, %c0_7], %7 {strides = array<i32>} : memref<32x128xf32, #tpu.memory_space<vmem>>, vector<32x128xf32>,
    %c0_i32_8 = arith.constant 0 : i32
    %9 = arith.cmpi eq, %arg1, %c0_i32_8 : i32
    %10 = arith.extui %9 : i1 to i32
    %c0_i32_9 = arith.constant 0 : i32
    %11 = arith.cmpi ne, %10, %c0_i32_9 : i32
    scf.if %11 {
      %c0_10 = arith.constant 0 : index
      %c0_11 = arith.constant 0 : index
      %12 = vector.load %arg6[%c0_10, %c0_11] : memref<32x128xf32, #tpu.memory_space<vmem>>, vector<32x128xf32>
      %c0_12 = arith.constant 0 : index
      %c0_13 = arith.constant 0 : index
      %13 = vector.load %arg4[%c0_12, %c0_13] : memref<1x128xf32, #tpu.memory_space<vmem>>, vector<1x128xf32>
      %14 = vector.broadcast %13 : vector<1x128xf32> to vector<32x128xf32>
      %15 = arith.addf %12, %14 : vector<32x128xf32>
      %cst_14 = arith.constant 0.000000e+00 : f32
      %16 = vector.broadcast %cst_14 : f32 to vector<32x128xf32>
      %17 = arith.maximumf %15, %16 : vector<32x128xf32>
      %c0_15 = arith.constant 0 : index
      %c0_16 = arith.constant 0 : index
      %18 = vector.load %arg5[%c0_15, %c0_16] : memref<32x128xf32, #tpu.memory_space<vmem>>, vector<32x128xf32>
      tpu.vector_store %arg5[%c0_15, %c0_16], %17 {strides = array<i32>} : memref<32x128xf32, #tpu.memory_space<vmem>>, vector<32x128xf32>,
    } else {
    }
    return
  }
  func.func @transform_0(%arg0: i32, %arg1: i32) -> (i32, i32) {
    %c0_i32 = arith.constant 0 : i32
    return %arg0, %arg1 : i32, i32
  }
  func.func @transform_1(%arg0: i32, %arg1: i32) -> (i32, i32) {
    %c0_i32 = arith.constant 0 : i32
    %c0_i32_0 = arith.constant 0 : i32
    return %arg1, %c0_i32 : i32, i32
  }
  func.func @transform_2(%arg0: i32, %arg1: i32) -> (i32, i32) {
    %c0_i32 = arith.constant 0 : i32
    %c0_i32_0 = arith.constant 0 : i32
    %c0_i32_1 = arith.constant 0 : i32
    return %c0_i32, %c0_i32_0 : i32, i32
  }
  func.func @transform_3(%arg0: i32, %arg1: i32) -> (i32, i32) {
    %c0_i32 = arith.constant 0 : i32
    %c0_i32_0 = arith.constant 0 : i32
    return %arg0, %c0_i32 : i32, i32
  }
}

module attributes {stable_mosaic.version = 11 : i64} {
  func.func @_mm_bias_kernel(%arg0: i32, %arg1: i32, %arg2: memref<32x512xbf16, #tpu.memory_space<vmem>>, %arg3: memref<512x128xbf16, #tpu.memory_space<vmem>>, %arg4: memref<1x128xf32, #tpu.memory_space<vmem>>, %arg5: memref<32x128xf32, #tpu.memory_space<vmem>>, %arg6: memref<32x128xf32, #tpu.memory_space<vmem>>) attributes {dimension_semantics = [#tpu.dimension_semantics<parallel>, #tpu.dimension_semantics<arbitrary>], iteration_bounds = array<i64: 1, 2>, scalar_prefetch = 0 : i64, scratch_operands = 1 : i64, tpu.core_type = #tpu.core_type<tc>, window_params = [{transform_indices = @transform_0, window_bounds = array<i64: 32, 512>}, {transform_indices = @transform_1, window_bounds = array<i64: 512, 128>}, {pipeline_mode = #tpu.pipeline_mode<synchronous>, transform_indices = @transform_2, window_bounds = array<i64: 1, 128>}, {transform_indices = @transform_3, window_bounds = array<i64: 32, 128>}]} {
    %c0_i32 = arith.constant 0 : i32
    %0 = arith.cmpi eq, %arg1, %c0_i32 : i32
    %1 = arith.extui %0 : i1 to i32
    %c0_i32_0 = arith.constant 0 : i32
    %2 = arith.cmpi ne, %1, %c0_i32_0 : i32
    scf.if %2 {
      %cst_9 = arith.constant 0.000000e+00 : f32
      %12 = vector.broadcast %cst_9 : f32 to vector<32x128xf32>
      %c0_10 = arith.constant 0 : index
      %c0_11 = arith.constant 0 : index
      %13 = vector.load %arg6[%c0_10, %c0_11] : memref<32x128xf32, #tpu.memory_space<vmem>>, vector<32x128xf32>
      tpu.vector_store %arg6[%c0_10, %c0_11], %12 {strides = array<i32>} : memref<32x128xf32, #tpu.memory_space<vmem>>, vector<32x128xf32>,
    } else {
    }
    %c0 = arith.constant 0 : index
    %c0_1 = arith.constant 0 : index
    %3 = vector.load %arg6[%c0, %c0_1] : memref<32x128xf32, #tpu.memory_space<vmem>>, vector<32x128xf32>
    %c0_2 = arith.constant 0 : index
    %c0_3 = arith.constant 0 : index
    %4 = vector.load %arg2[%c0_2, %c0_3] : memref<32x512xbf16, #tpu.memory_space<vmem>>, vector<32x512xbf16>
    %c0_4 = arith.constant 0 : index
    %c0_5 = arith.constant 0 : index
    %5 = vector.load %arg3[%c0_4, %c0_5] : memref<512x128xbf16, #tpu.memory_space<vmem>>, vector<512x128xbf16>
    %cst = arith.constant dense<0.000000e+00> : vector<32x128xf32>
    %6 = tpu.matmul %4, %5, %cst {dimension_numbers = #tpu.dot_dimension_numbers<[1], [0], [0], [1], [0, 0, 1, 1], [], []>} : vector<32x512xbf16>, vector<512x128xbf16>, vector<32x128xf32> -> vector<32x128xf32>
    %7 = arith.addf %3, %6 : vector<32x128xf32>
    %c0_6 = arith.constant 0 : index
    %c0_7 = arith.constant 0 : index
    %8 = vector.load %arg6[%c0_6, %c0_7] : memref<32x128xf32, #tpu.memory_space<vmem>>, vector<32x128xf32>
    tpu.vector_store %arg6[%c0_6, %c0_7], %7 {strides = array<i32>} : memref<32x128xf32, #tpu.memory_space<vmem>>, vector<32x128xf32>,
    %c1_i32 = arith.constant 1 : i32
    %9 = arith.cmpi eq, %arg1, %c1_i32 : i32
    %10 = arith.extui %9 : i1 to i32
    %c0_i32_8 = arith.constant 0 : i32
    %11 = arith.cmpi ne, %10, %c0_i32_8 : i32
    scf.if %11 {
      %c0_9 = arith.constant 0 : index
      %c0_10 = arith.constant 0 : index
      %12 = vector.load %arg6[%c0_9, %c0_10] : memref<32x128xf32, #tpu.memory_space<vmem>>, vector<32x128xf32>
      %c0_11 = arith.constant 0 : index
      %c0_12 = arith.constant 0 : index
      %13 = vector.load %arg4[%c0_11, %c0_12] : memref<1x128xf32, #tpu.memory_space<vmem>>, vector<1x128xf32>
      %14 = vector.broadcast %13 : vector<1x128xf32> to vector<32x128xf32>
      %15 = arith.addf %12, %14 : vector<32x128xf32>
      %cst_13 = arith.constant 0.000000e+00 : f32
      %16 = vector.broadcast %cst_13 : f32 to vector<32x128xf32>
      %17 = arith.maximumf %15, %16 : vector<32x128xf32>
      %c0_14 = arith.constant 0 : index
      %c0_15 = arith.constant 0 : index
      %18 = vector.load %arg5[%c0_14, %c0_15] : memref<32x128xf32, #tpu.memory_space<vmem>>, vector<32x128xf32>
      tpu.vector_store %arg5[%c0_14, %c0_15], %17 {strides = array<i32>} : memref<32x128xf32, #tpu.memory_space<vmem>>, vector<32x128xf32>,
    } else {
    }
    return
  }
  func.func @transform_0(%arg0: i32, %arg1: i32) -> (i32, i32) {
    %c0_i32 = arith.constant 0 : i32
    return %arg0, %arg1 : i32, i32
  }
  func.func @transform_1(%arg0: i32, %arg1: i32) -> (i32, i32) {
    %c0_i32 = arith.constant 0 : i32
    %c0_i32_0 = arith.constant 0 : i32
    return %arg1, %c0_i32 : i32, i32
  }
  func.func @transform_2(%arg0: i32, %arg1: i32) -> (i32, i32) {
    %c0_i32 = arith.constant 0 : i32
    %c0_i32_0 = arith.constant 0 : i32
    %c0_i32_1 = arith.constant 0 : i32
    return %c0_i32, %c0_i32_0 : i32, i32
  }
  func.func @transform_3(%arg0: i32, %arg1: i32) -> (i32, i32) {
    %c0_i32 = arith.constant 0 : i32
    %c0_i32_0 = arith.constant 0 : i32
    return %arg0, %c0_i32 : i32, i32
  }
}

module attributes {stable_mosaic.version = 11 : i64} {
  func.func @_mm_bias_kernel(%arg0: i32, %arg1: i32, %arg2: memref<8x128xbf16, #tpu.memory_space<vmem>>, %arg3: memref<128x256xbf16, #tpu.memory_space<vmem>>, %arg4: memref<1x256xf32, #tpu.memory_space<vmem>>, %arg5: memref<8x256xf32, #tpu.memory_space<vmem>>, %arg6: memref<8x256xf32, #tpu.memory_space<vmem>>) attributes {dimension_semantics = [#tpu.dimension_semantics<parallel>, #tpu.dimension_semantics<arbitrary>], iteration_bounds = array<i64: 1, 1>, scalar_prefetch = 0 : i64, scratch_operands = 1 : i64, tpu.core_type = #tpu.core_type<tc>, window_params = [{transform_indices = @transform_0, window_bounds = array<i64: 8, 128>}, {transform_indices = @transform_1, window_bounds = array<i64: 128, 256>}, {pipeline_mode = #tpu.pipeline_mode<synchronous>, transform_indices = @transform_2, window_bounds = array<i64: 1, 256>}, {transform_indices = @transform_3, window_bounds = array<i64: 8, 256>}]} {
    %c0_i32 = arith.constant 0 : i32
    %0 = arith.cmpi eq, %arg1, %c0_i32 : i32
    %1 = arith.extui %0 : i1 to i32
    %c0_i32_0 = arith.constant 0 : i32
    %2 = arith.cmpi ne, %1, %c0_i32_0 : i32
    scf.if %2 {
      %cst_10 = arith.constant 0.000000e+00 : f32
      %12 = vector.broadcast %cst_10 : f32 to vector<8x256xf32>
      %c0_11 = arith.constant 0 : index
      %c0_12 = arith.constant 0 : index
      %13 = vector.load %arg6[%c0_11, %c0_12] : memref<8x256xf32, #tpu.memory_space<vmem>>, vector<8x256xf32>
      tpu.vector_store %arg6[%c0_11, %c0_12], %12 {strides = array<i32>} : memref<8x256xf32, #tpu.memory_space<vmem>>, vector<8x256xf32>,
    } else {
    }
    %c0 = arith.constant 0 : index
    %c0_1 = arith.constant 0 : index
    %3 = vector.load %arg6[%c0, %c0_1] : memref<8x256xf32, #tpu.memory_space<vmem>>, vector<8x256xf32>
    %c0_2 = arith.constant 0 : index
    %c0_3 = arith.constant 0 : index
    %4 = vector.load %arg2[%c0_2, %c0_3] : memref<8x128xbf16, #tpu.memory_space<vmem>>, vector<8x128xbf16>
    %c0_4 = arith.constant 0 : index
    %c0_5 = arith.constant 0 : index
    %5 = vector.load %arg3[%c0_4, %c0_5] : memref<128x256xbf16, #tpu.memory_space<vmem>>, vector<128x256xbf16>
    %cst = arith.constant dense<0.000000e+00> : vector<8x256xf32>
    %6 = tpu.matmul %4, %5, %cst {dimension_numbers = #tpu.dot_dimension_numbers<[1], [0], [0], [1], [0, 0, 1, 1], [], []>} : vector<8x128xbf16>, vector<128x256xbf16>, vector<8x256xf32> -> vector<8x256xf32>
    %7 = arith.addf %3, %6 : vector<8x256xf32>
    %c0_6 = arith.constant 0 : index
    %c0_7 = arith.constant 0 : index
    %8 = vector.load %arg6[%c0_6, %c0_7] : memref<8x256xf32, #tpu.memory_space<vmem>>, vector<8x256xf32>
    tpu.vector_store %arg6[%c0_6, %c0_7], %7 {strides = array<i32>} : memref<8x256xf32, #tpu.memory_space<vmem>>, vector<8x256xf32>,
    %c0_i32_8 = arith.constant 0 : i32
    %9 = arith.cmpi eq, %arg1, %c0_i32_8 : i32
    %10 = arith.extui %9 : i1 to i32
    %c0_i32_9 = arith.constant 0 : i32
    %11 = arith.cmpi ne, %10, %c0_i32_9 : i32
    scf.if %11 {
      %c0_10 = arith.constant 0 : index
      %c0_11 = arith.constant 0 : index
      %12 = vector.load %arg6[%c0_10, %c0_11] : memref<8x256xf32, #tpu.memory_space<vmem>>, vector<8x256xf32>
      %c0_12 = arith.constant 0 : index
      %c0_13 = arith.constant 0 : index
      %13 = vector.load %arg4[%c0_12, %c0_13] : memref<1x256xf32, #tpu.memory_space<vmem>>, vector<1x256xf32>
      %14 = vector.broadcast %13 : vector<1x256xf32> to vector<8x256xf32>
      %15 = arith.addf %12, %14 : vector<8x256xf32>
      %c0_14 = arith.constant 0 : index
      %c0_15 = arith.constant 0 : index
      %16 = vector.load %arg5[%c0_14, %c0_15] : memref<8x256xf32, #tpu.memory_space<vmem>>, vector<8x256xf32>
      tpu.vector_store %arg5[%c0_14, %c0_15], %15 {strides = array<i32>} : memref<8x256xf32, #tpu.memory_space<vmem>>, vector<8x256xf32>,
    } else {
    }
    return
  }
  func.func @transform_0(%arg0: i32, %arg1: i32) -> (i32, i32) {
    %c0_i32 = arith.constant 0 : i32
    return %arg0, %arg1 : i32, i32
  }
  func.func @transform_1(%arg0: i32, %arg1: i32) -> (i32, i32) {
    %c0_i32 = arith.constant 0 : i32
    %c0_i32_0 = arith.constant 0 : i32
    return %arg1, %c0_i32 : i32, i32
  }
  func.func @transform_2(%arg0: i32, %arg1: i32) -> (i32, i32) {
    %c0_i32 = arith.constant 0 : i32
    %c0_i32_0 = arith.constant 0 : i32
    %c0_i32_1 = arith.constant 0 : i32
    return %c0_i32, %c0_i32_0 : i32, i32
  }
  func.func @transform_3(%arg0: i32, %arg1: i32) -> (i32, i32) {
    %c0_i32 = arith.constant 0 : i32
    %c0_i32_0 = arith.constant 0 : i32
    return %arg0, %c0_i32 : i32, i32
  }
}

module attributes {stable_mosaic.version = 11 : i64} {
  func.func @_mm_bias_kernel(%arg0: i32, %arg1: i32, %arg2: memref<8x512xbf16, #tpu.memory_space<vmem>>, %arg3: memref<512x128xbf16, #tpu.memory_space<vmem>>, %arg4: memref<1x128xf32, #tpu.memory_space<vmem>>, %arg5: memref<8x128xf32, #tpu.memory_space<vmem>>, %arg6: memref<8x128xf32, #tpu.memory_space<vmem>>) attributes {dimension_semantics = [#tpu.dimension_semantics<parallel>, #tpu.dimension_semantics<arbitrary>], iteration_bounds = array<i64: 1, 2>, scalar_prefetch = 0 : i64, scratch_operands = 1 : i64, tpu.core_type = #tpu.core_type<tc>, window_params = [{transform_indices = @transform_0, window_bounds = array<i64: 8, 512>}, {transform_indices = @transform_1, window_bounds = array<i64: 512, 128>}, {pipeline_mode = #tpu.pipeline_mode<synchronous>, transform_indices = @transform_2, window_bounds = array<i64: 1, 128>}, {transform_indices = @transform_3, window_bounds = array<i64: 8, 128>}]} {
    %c0_i32 = arith.constant 0 : i32
    %0 = arith.cmpi eq, %arg1, %c0_i32 : i32
    %1 = arith.extui %0 : i1 to i32
    %c0_i32_0 = arith.constant 0 : i32
    %2 = arith.cmpi ne, %1, %c0_i32_0 : i32
    scf.if %2 {
      %cst_9 = arith.constant 0.000000e+00 : f32
      %12 = vector.broadcast %cst_9 : f32 to vector<8x128xf32>
      %c0_10 = arith.constant 0 : index
      %c0_11 = arith.constant 0 : index
      %13 = vector.load %arg6[%c0_10, %c0_11] : memref<8x128xf32, #tpu.memory_space<vmem>>, vector<8x128xf32>
      tpu.vector_store %arg6[%c0_10, %c0_11], %12 {strides = array<i32>} : memref<8x128xf32, #tpu.memory_space<vmem>>, vector<8x128xf32>,
    } else {
    }
    %c0 = arith.constant 0 : index
    %c0_1 = arith.constant 0 : index
    %3 = vector.load %arg6[%c0, %c0_1] : memref<8x128xf32, #tpu.memory_space<vmem>>, vector<8x128xf32>
    %c0_2 = arith.constant 0 : index
    %c0_3 = arith.constant 0 : index
    %4 = vector.load %arg2[%c0_2, %c0_3] : memref<8x512xbf16, #tpu.memory_space<vmem>>, vector<8x512xbf16>
    %c0_4 = arith.constant 0 : index
    %c0_5 = arith.constant 0 : index
    %5 = vector.load %arg3[%c0_4, %c0_5] : memref<512x128xbf16, #tpu.memory_space<vmem>>, vector<512x128xbf16>
    %cst = arith.constant dense<0.000000e+00> : vector<8x128xf32>
    %6 = tpu.matmul %4, %5, %cst {dimension_numbers = #tpu.dot_dimension_numbers<[1], [0], [0], [1], [0, 0, 1, 1], [], []>} : vector<8x512xbf16>, vector<512x128xbf16>, vector<8x128xf32> -> vector<8x128xf32>
    %7 = arith.addf %3, %6 : vector<8x128xf32>
    %c0_6 = arith.constant 0 : index
    %c0_7 = arith.constant 0 : index
    %8 = vector.load %arg6[%c0_6, %c0_7] : memref<8x128xf32, #tpu.memory_space<vmem>>, vector<8x128xf32>
    tpu.vector_store %arg6[%c0_6, %c0_7], %7 {strides = array<i32>} : memref<8x128xf32, #tpu.memory_space<vmem>>, vector<8x128xf32>,
    %c1_i32 = arith.constant 1 : i32
    %9 = arith.cmpi eq, %arg1, %c1_i32 : i32
    %10 = arith.extui %9 : i1 to i32
    %c0_i32_8 = arith.constant 0 : i32
    %11 = arith.cmpi ne, %10, %c0_i32_8 : i32
    scf.if %11 {
      %c0_9 = arith.constant 0 : index
      %c0_10 = arith.constant 0 : index
      %12 = vector.load %arg6[%c0_9, %c0_10] : memref<8x128xf32, #tpu.memory_space<vmem>>, vector<8x128xf32>
      %c0_11 = arith.constant 0 : index
      %c0_12 = arith.constant 0 : index
      %13 = vector.load %arg4[%c0_11, %c0_12] : memref<1x128xf32, #tpu.memory_space<vmem>>, vector<1x128xf32>
      %14 = vector.broadcast %13 : vector<1x128xf32> to vector<8x128xf32>
      %15 = arith.addf %12, %14 : vector<8x128xf32>
      %cst_13 = arith.constant 0.000000e+00 : f32
      %16 = vector.broadcast %cst_13 : f32 to vector<8x128xf32>
      %17 = arith.maximumf %15, %16 : vector<8x128xf32>
      %c0_14 = arith.constant 0 : index
      %c0_15 = arith.constant 0 : index
      %18 = vector.load %arg5[%c0_14, %c0_15] : memref<8x128xf32, #tpu.memory_space<vmem>>, vector<8x128xf32>
      tpu.vector_store %arg5[%c0_14, %c0_15], %17 {strides = array<i32>} : memref<8x128xf32, #tpu.memory_space<vmem>>, vector<8x128xf32>,
    } else {
    }
    return
  }
  func.func @transform_0(%arg0: i32, %arg1: i32) -> (i32, i32) {
    %c0_i32 = arith.constant 0 : i32
    return %arg0, %arg1 : i32, i32
  }
  func.func @transform_1(%arg0: i32, %arg1: i32) -> (i32, i32) {
    %c0_i32 = arith.constant 0 : i32
    %c0_i32_0 = arith.constant 0 : i32
    return %arg1, %c0_i32 : i32, i32
  }
  func.func @transform_2(%arg0: i32, %arg1: i32) -> (i32, i32) {
    %c0_i32 = arith.constant 0 : i32
    %c0_i32_0 = arith.constant 0 : i32
    %c0_i32_1 = arith.constant 0 : i32
    return %c0_i32, %c0_i32_0 : i32, i32
  }
  func.func @transform_3(%arg0: i32, %arg1: i32) -> (i32, i32) {
    %c0_i32 = arith.constant 0 : i32
    %c0_i32_0 = arith.constant 0 : i32
    return %arg0, %c0_i32 : i32, i32
  }
}

module attributes {stable_mosaic.version = 11 : i64} {
  func.func @_mm_bias_kernel(%arg0: i32, %arg1: i32, %arg2: memref<8x256xbf16, #tpu.memory_space<vmem>>, %arg3: memref<256x128xbf16, #tpu.memory_space<vmem>>, %arg4: memref<1x128xf32, #tpu.memory_space<vmem>>, %arg5: memref<8x128xf32, #tpu.memory_space<vmem>>, %arg6: memref<8x128xf32, #tpu.memory_space<vmem>>) attributes {dimension_semantics = [#tpu.dimension_semantics<parallel>, #tpu.dimension_semantics<arbitrary>], iteration_bounds = array<i64: 1, 1>, scalar_prefetch = 0 : i64, scratch_operands = 1 : i64, tpu.core_type = #tpu.core_type<tc>, window_params = [{transform_indices = @transform_0, window_bounds = array<i64: 8, 256>}, {transform_indices = @transform_1, window_bounds = array<i64: 256, 128>}, {pipeline_mode = #tpu.pipeline_mode<synchronous>, transform_indices = @transform_2, window_bounds = array<i64: 1, 128>}, {transform_indices = @transform_3, window_bounds = array<i64: 8, 128>}]} {
    %c0_i32 = arith.constant 0 : i32
    %0 = arith.cmpi eq, %arg1, %c0_i32 : i32
    %1 = arith.extui %0 : i1 to i32
    %c0_i32_0 = arith.constant 0 : i32
    %2 = arith.cmpi ne, %1, %c0_i32_0 : i32
    scf.if %2 {
      %cst_10 = arith.constant 0.000000e+00 : f32
      %12 = vector.broadcast %cst_10 : f32 to vector<8x128xf32>
      %c0_11 = arith.constant 0 : index
      %c0_12 = arith.constant 0 : index
      %13 = vector.load %arg6[%c0_11, %c0_12] : memref<8x128xf32, #tpu.memory_space<vmem>>, vector<8x128xf32>
      tpu.vector_store %arg6[%c0_11, %c0_12], %12 {strides = array<i32>} : memref<8x128xf32, #tpu.memory_space<vmem>>, vector<8x128xf32>,
    } else {
    }
    %c0 = arith.constant 0 : index
    %c0_1 = arith.constant 0 : index
    %3 = vector.load %arg6[%c0, %c0_1] : memref<8x128xf32, #tpu.memory_space<vmem>>, vector<8x128xf32>
    %c0_2 = arith.constant 0 : index
    %c0_3 = arith.constant 0 : index
    %4 = vector.load %arg2[%c0_2, %c0_3] : memref<8x256xbf16, #tpu.memory_space<vmem>>, vector<8x256xbf16>
    %c0_4 = arith.constant 0 : index
    %c0_5 = arith.constant 0 : index
    %5 = vector.load %arg3[%c0_4, %c0_5] : memref<256x128xbf16, #tpu.memory_space<vmem>>, vector<256x128xbf16>
    %cst = arith.constant dense<0.000000e+00> : vector<8x128xf32>
    %6 = tpu.matmul %4, %5, %cst {dimension_numbers = #tpu.dot_dimension_numbers<[1], [0], [0], [1], [0, 0, 1, 1], [], []>} : vector<8x256xbf16>, vector<256x128xbf16>, vector<8x128xf32> -> vector<8x128xf32>
    %7 = arith.addf %3, %6 : vector<8x128xf32>
    %c0_6 = arith.constant 0 : index
    %c0_7 = arith.constant 0 : index
    %8 = vector.load %arg6[%c0_6, %c0_7] : memref<8x128xf32, #tpu.memory_space<vmem>>, vector<8x128xf32>
    tpu.vector_store %arg6[%c0_6, %c0_7], %7 {strides = array<i32>} : memref<8x128xf32, #tpu.memory_space<vmem>>, vector<8x128xf32>,
    %c0_i32_8 = arith.constant 0 : i32
    %9 = arith.cmpi eq, %arg1, %c0_i32_8 : i32
    %10 = arith.extui %9 : i1 to i32
    %c0_i32_9 = arith.constant 0 : i32
    %11 = arith.cmpi ne, %10, %c0_i32_9 : i32
    scf.if %11 {
      %c0_10 = arith.constant 0 : index
      %c0_11 = arith.constant 0 : index
      %12 = vector.load %arg6[%c0_10, %c0_11] : memref<8x128xf32, #tpu.memory_space<vmem>>, vector<8x128xf32>
      %c0_12 = arith.constant 0 : index
      %c0_13 = arith.constant 0 : index
      %13 = vector.load %arg4[%c0_12, %c0_13] : memref<1x128xf32, #tpu.memory_space<vmem>>, vector<1x128xf32>
      %14 = vector.broadcast %13 : vector<1x128xf32> to vector<8x128xf32>
      %15 = arith.addf %12, %14 : vector<8x128xf32>
      %cst_14 = arith.constant 0.000000e+00 : f32
      %16 = vector.broadcast %cst_14 : f32 to vector<8x128xf32>
      %17 = arith.maximumf %15, %16 : vector<8x128xf32>
      %c0_15 = arith.constant 0 : index
      %c0_16 = arith.constant 0 : index
      %18 = vector.load %arg5[%c0_15, %c0_16] : memref<8x128xf32, #tpu.memory_space<vmem>>, vector<8x128xf32>
      tpu.vector_store %arg5[%c0_15, %c0_16], %17 {strides = array<i32>} : memref<8x128xf32, #tpu.memory_space<vmem>>, vector<8x128xf32>,
    } else {
    }
    return
  }
  func.func @transform_0(%arg0: i32, %arg1: i32) -> (i32, i32) {
    %c0_i32 = arith.constant 0 : i32
    return %arg0, %arg1 : i32, i32
  }
  func.func @transform_1(%arg0: i32, %arg1: i32) -> (i32, i32) {
    %c0_i32 = arith.constant 0 : i32
    %c0_i32_0 = arith.constant 0 : i32
    return %arg1, %c0_i32 : i32, i32
  }
  func.func @transform_2(%arg0: i32, %arg1: i32) -> (i32, i32) {
    %c0_i32 = arith.constant 0 : i32
    %c0_i32_0 = arith.constant 0 : i32
    %c0_i32_1 = arith.constant 0 : i32
    return %c0_i32, %c0_i32_0 : i32, i32
  }
  func.func @transform_3(%arg0: i32, %arg1: i32) -> (i32, i32) {
    %c0_i32 = arith.constant 0 : i32
    %c0_i32_0 = arith.constant 0 : i32
    return %arg0, %c0_i32 : i32, i32
  }
}

module attributes {stable_mosaic.version = 11 : i64} {
  func.func @_mm_bias_kernel(%arg0: i32, %arg1: i32, %arg2: memref<16x256xbf16, #tpu.memory_space<vmem>>, %arg3: memref<256x768xbf16, #tpu.memory_space<vmem>>, %arg4: memref<1x768xf32, #tpu.memory_space<vmem>>, %arg5: memref<16x768xf32, #tpu.memory_space<vmem>>, %arg6: memref<16x768xf32, #tpu.memory_space<vmem>>) attributes {dimension_semantics = [#tpu.dimension_semantics<parallel>, #tpu.dimension_semantics<arbitrary>], iteration_bounds = array<i64: 1, 1>, scalar_prefetch = 0 : i64, scratch_operands = 1 : i64, tpu.core_type = #tpu.core_type<tc>, window_params = [{transform_indices = @transform_0, window_bounds = array<i64: 16, 256>}, {transform_indices = @transform_1, window_bounds = array<i64: 256, 768>}, {pipeline_mode = #tpu.pipeline_mode<synchronous>, transform_indices = @transform_2, window_bounds = array<i64: 1, 768>}, {transform_indices = @transform_3, window_bounds = array<i64: 16, 768>}]} {
    %c0_i32 = arith.constant 0 : i32
    %0 = arith.cmpi eq, %arg1, %c0_i32 : i32
    %1 = arith.extui %0 : i1 to i32
    %c0_i32_0 = arith.constant 0 : i32
    %2 = arith.cmpi ne, %1, %c0_i32_0 : i32
    scf.if %2 {
      %cst_10 = arith.constant 0.000000e+00 : f32
      %12 = vector.broadcast %cst_10 : f32 to vector<16x768xf32>
      %c0_11 = arith.constant 0 : index
      %c0_12 = arith.constant 0 : index
      %13 = vector.load %arg6[%c0_11, %c0_12] : memref<16x768xf32, #tpu.memory_space<vmem>>, vector<16x768xf32>
      tpu.vector_store %arg6[%c0_11, %c0_12], %12 {strides = array<i32>} : memref<16x768xf32, #tpu.memory_space<vmem>>, vector<16x768xf32>,
    } else {
    }
    %c0 = arith.constant 0 : index
    %c0_1 = arith.constant 0 : index
    %3 = vector.load %arg6[%c0, %c0_1] : memref<16x768xf32, #tpu.memory_space<vmem>>, vector<16x768xf32>
    %c0_2 = arith.constant 0 : index
    %c0_3 = arith.constant 0 : index
    %4 = vector.load %arg2[%c0_2, %c0_3] : memref<16x256xbf16, #tpu.memory_space<vmem>>, vector<16x256xbf16>
    %c0_4 = arith.constant 0 : index
    %c0_5 = arith.constant 0 : index
    %5 = vector.load %arg3[%c0_4, %c0_5] : memref<256x768xbf16, #tpu.memory_space<vmem>>, vector<256x768xbf16>
    %cst = arith.constant dense<0.000000e+00> : vector<16x768xf32>
    %6 = tpu.matmul %4, %5, %cst {dimension_numbers = #tpu.dot_dimension_numbers<[1], [0], [0], [1], [0, 0, 1, 1], [], []>} : vector<16x256xbf16>, vector<256x768xbf16>, vector<16x768xf32> -> vector<16x768xf32>
    %7 = arith.addf %3, %6 : vector<16x768xf32>
    %c0_6 = arith.constant 0 : index
    %c0_7 = arith.constant 0 : index
    %8 = vector.load %arg6[%c0_6, %c0_7] : memref<16x768xf32, #tpu.memory_space<vmem>>, vector<16x768xf32>
    tpu.vector_store %arg6[%c0_6, %c0_7], %7 {strides = array<i32>} : memref<16x768xf32, #tpu.memory_space<vmem>>, vector<16x768xf32>,
    %c0_i32_8 = arith.constant 0 : i32
    %9 = arith.cmpi eq, %arg1, %c0_i32_8 : i32
    %10 = arith.extui %9 : i1 to i32
    %c0_i32_9 = arith.constant 0 : i32
    %11 = arith.cmpi ne, %10, %c0_i32_9 : i32
    scf.if %11 {
      %c0_10 = arith.constant 0 : index
      %c0_11 = arith.constant 0 : index
      %12 = vector.load %arg6[%c0_10, %c0_11] : memref<16x768xf32, #tpu.memory_space<vmem>>, vector<16x768xf32>
      %c0_12 = arith.constant 0 : index
      %c0_13 = arith.constant 0 : index
      %13 = vector.load %arg4[%c0_12, %c0_13] : memref<1x768xf32, #tpu.memory_space<vmem>>, vector<1x768xf32>
      %14 = vector.broadcast %13 : vector<1x768xf32> to vector<16x768xf32>
      %15 = arith.addf %12, %14 : vector<16x768xf32>
      %c0_14 = arith.constant 0 : index
      %c0_15 = arith.constant 0 : index
      %16 = vector.load %arg5[%c0_14, %c0_15] : memref<16x768xf32, #tpu.memory_space<vmem>>, vector<16x768xf32>
      tpu.vector_store %arg5[%c0_14, %c0_15], %15 {strides = array<i32>} : memref<16x768xf32, #tpu.memory_space<vmem>>, vector<16x768xf32>,
    } else {
    }
    return
  }
  func.func @transform_0(%arg0: i32, %arg1: i32) -> (i32, i32) {
    %c0_i32 = arith.constant 0 : i32
    return %arg0, %arg1 : i32, i32
  }
  func.func @transform_1(%arg0: i32, %arg1: i32) -> (i32, i32) {
    %c0_i32 = arith.constant 0 : i32
    %c0_i32_0 = arith.constant 0 : i32
    return %arg1, %c0_i32 : i32, i32
  }
  func.func @transform_2(%arg0: i32, %arg1: i32) -> (i32, i32) {
    %c0_i32 = arith.constant 0 : i32
    %c0_i32_0 = arith.constant 0 : i32
    %c0_i32_1 = arith.constant 0 : i32
    return %c0_i32, %c0_i32_0 : i32, i32
  }
  func.func @transform_3(%arg0: i32, %arg1: i32) -> (i32, i32) {
    %c0_i32 = arith.constant 0 : i32
    %c0_i32_0 = arith.constant 0 : i32
    return %arg0, %c0_i32 : i32, i32
  }
}

module attributes {stable_mosaic.version = 11 : i64} {
  func.func @_attnpool_kernel(%arg0: i32, %arg1: memref<1x1x256xf32, #tpu.memory_space<vmem>>, %arg2: memref<1x5x256xf32, #tpu.memory_space<vmem>>, %arg3: memref<1x5x256xf32, #tpu.memory_space<vmem>>, %arg4: memref<256x4xf32, #tpu.memory_space<vmem>>, %arg5: memref<4x256xf32, #tpu.memory_space<vmem>>, %arg6: memref<1x1x256xf32, #tpu.memory_space<vmem>>) attributes {dimension_semantics = [#tpu.dimension_semantics<parallel>], iteration_bounds = array<i64: 2>, scalar_prefetch = 0 : i64, scratch_operands = 0 : i64, tpu.core_type = #tpu.core_type<tc>, window_params = [{transform_indices = @transform_0, window_bounds = array<i64: 1, 1, 256>}, {transform_indices = @transform_1, window_bounds = array<i64: 1, 5, 256>}, {transform_indices = @transform_2, window_bounds = array<i64: 1, 5, 256>}, {pipeline_mode = #tpu.pipeline_mode<synchronous>, transform_indices = @transform_3, window_bounds = array<i64: 256, 4>}, {pipeline_mode = #tpu.pipeline_mode<synchronous>, transform_indices = @transform_4, window_bounds = array<i64: 4, 256>}, {transform_indices = @transform_5, window_bounds = array<i64: 1, 1, 256>}]} {
    %c0 = arith.constant 0 : index
    %c0_0 = arith.constant 0 : index
    %c0_1 = arith.constant 0 : index
    %0 = vector.load %arg1[%c0, %c0_0, %c0_1] : memref<1x1x256xf32, #tpu.memory_space<vmem>>, vector<1x1x256xf32>
    %1 = vector.shape_cast %0 : vector<1x1x256xf32> to vector<1x256xf32>
    %c0_2 = arith.constant 0 : index
    %c0_3 = arith.constant 0 : index
    %c0_4 = arith.constant 0 : index
    %2 = vector.load %arg2[%c0_2, %c0_3, %c0_4] : memref<1x5x256xf32, #tpu.memory_space<vmem>>, vector<1x5x256xf32>
    %3 = vector.shape_cast %2 : vector<1x5x256xf32> to vector<5x256xf32>
    %c0_5 = arith.constant 0 : index
    %c0_6 = arith.constant 0 : index
    %c0_7 = arith.constant 0 : index
    %4 = vector.load %arg3[%c0_5, %c0_6, %c0_7] : memref<1x5x256xf32, #tpu.memory_space<vmem>>, vector<1x5x256xf32>
    %5 = vector.shape_cast %4 : vector<1x5x256xf32> to vector<5x256xf32>
    %6 = vector.broadcast %1 : vector<1x256xf32> to vector<5x256xf32>
    %7 = arith.mulf %6, %3 : vector<5x256xf32>
    %c0_8 = arith.constant 0 : index
    %c0_9 = arith.constant 0 : index
    %8 = vector.load %arg4[%c0_8, %c0_9] : memref<256x4xf32, #tpu.memory_space<vmem>>, vector<256x4xf32>
    %cst = arith.constant dense<0.000000e+00> : vector<5x4xf32>
    %9 = tpu.matmul %7, %8, %cst {dimension_numbers = #tpu.dot_dimension_numbers<[1], [0], [0], [1], [0, 0, 1, 1], [], []>} : vector<5x256xf32>, vector<256x4xf32>, vector<5x4xf32> -> vector<5x4xf32>
    %cst_10 = arith.constant 1.250000e-01 : f32
    %10 = vector.broadcast %cst_10 : f32 to vector<5x4xf32>
    %11 = arith.mulf %9, %10 : vector<5x4xf32>
    %cst_11 = arith.constant dense<0xFF800000> : vector<4xf32>
    %12 = vector.multi_reduction <maximumf>, %11, %cst_11 [0] : vector<5x4xf32> to vector<4xf32>
    %13 = vector.shape_cast %12 : vector<4xf32> to vector<1x4xf32>
    %14 = vector.broadcast %13 : vector<1x4xf32> to vector<5x4xf32>
    %15 = arith.subf %11, %14 : vector<5x4xf32>
    %16 = math.exp %15 : vector<5x4xf32>
    %cst_12 = arith.constant dense<0.000000e+00> : vector<4xf32>
    %17 = vector.multi_reduction <add>, %16, %cst_12 [0] : vector<5x4xf32> to vector<4xf32>
    %18 = vector.shape_cast %17 : vector<4xf32> to vector<1x4xf32>
    %19 = tpu.reciprocal %18 {approx = true} : vector<1x4xf32> -> vector<1x4xf32>
    %20 = vector.broadcast %19 : vector<1x4xf32> to vector<5x4xf32>
    %21 = arith.mulf %16, %20 : vector<5x4xf32>
    %c0_13 = arith.constant 0 : index
    %c0_14 = arith.constant 0 : index
    %22 = vector.load %arg5[%c0_13, %c0_14] : memref<4x256xf32, #tpu.memory_space<vmem>>, vector<4x256xf32>
    %cst_15 = arith.constant dense<0.000000e+00> : vector<5x256xf32>
    %23 = tpu.matmul %21, %22, %cst_15 {dimension_numbers = #tpu.dot_dimension_numbers<[1], [0], [0], [1], [0, 0, 1, 1], [], []>} : vector<5x4xf32>, vector<4x256xf32>, vector<5x256xf32> -> vector<5x256xf32>
    %24 = arith.mulf %23, %5 : vector<5x256xf32>
    %cst_16 = arith.constant dense<0.000000e+00> : vector<256xf32>
    %25 = vector.multi_reduction <add>, %24, %cst_16 [0] : vector<5x256xf32> to vector<256xf32>
    %26 = vector.shape_cast %25 : vector<256xf32> to vector<1x256xf32>
    %c0_17 = arith.constant 0 : index
    %c0_18 = arith.constant 0 : index
    %c0_19 = arith.constant 0 : index
    %27 = vector.load %arg6[%c0_17, %c0_18, %c0_19] : memref<1x1x256xf32, #tpu.memory_space<vmem>>, vector<1x1x256xf32>
    %28 = vector.shape_cast %27 : vector<1x1x256xf32> to vector<1x256xf32>
    %29 = vector.shape_cast %26 : vector<1x256xf32> to vector<1x1x256xf32>
    tpu.vector_store %arg6[%c0_17, %c0_18, %c0_19], %29 {strides = array<i32>} : memref<1x1x256xf32, #tpu.memory_space<vmem>>, vector<1x1x256xf32>,
    return
  }
  func.func @transform_0(%arg0: i32) -> (i32, i32, i32) {
    %c0_i32 = arith.constant 0 : i32
    %c0_i32_0 = arith.constant 0 : i32
    %c0_i32_1 = arith.constant 0 : i32
    return %arg0, %c0_i32, %c0_i32_0 : i32, i32, i32
  }
  func.func @transform_1(%arg0: i32) -> (i32, i32, i32) {
    %c0_i32 = arith.constant 0 : i32
    %c0_i32_0 = arith.constant 0 : i32
    %c0_i32_1 = arith.constant 0 : i32
    return %arg0, %c0_i32, %c0_i32_0 : i32, i32, i32
  }
  func.func @transform_2(%arg0: i32) -> (i32, i32, i32) {
    %c0_i32 = arith.constant 0 : i32
    %c0_i32_0 = arith.constant 0 : i32
    %c0_i32_1 = arith.constant 0 : i32
    return %arg0, %c0_i32, %c0_i32_0 : i32, i32, i32
  }
  func.func @transform_3(%arg0: i32) -> (i32, i32) {
    %c0_i32 = arith.constant 0 : i32
    %c0_i32_0 = arith.constant 0 : i32
    %c0_i32_1 = arith.constant 0 : i32
    return %c0_i32, %c0_i32_0 : i32, i32
  }
  func.func @transform_4(%arg0: i32) -> (i32, i32) {
    %c0_i32 = arith.constant 0 : i32
    %c0_i32_0 = arith.constant 0 : i32
    %c0_i32_1 = arith.constant 0 : i32
    return %c0_i32, %c0_i32_0 : i32, i32
  }
  func.func @transform_5(%arg0: i32) -> (i32, i32, i32) {
    %c0_i32 = arith.constant 0 : i32
    %c0_i32_0 = arith.constant 0 : i32
    %c0_i32_1 = arith.constant 0 : i32
    return %arg0, %c0_i32, %c0_i32_0 : i32, i32, i32
  }
}

module attributes {stable_mosaic.version = 11 : i64} {
  func.func @_mm_bias_kernel(%arg0: i32, %arg1: i32, %arg2: memref<8x256xbf16, #tpu.memory_space<vmem>>, %arg3: memref<256x1024xbf16, #tpu.memory_space<vmem>>, %arg4: memref<1x1024xf32, #tpu.memory_space<vmem>>, %arg5: memref<8x1024xf32, #tpu.memory_space<vmem>>, %arg6: memref<8x1024xf32, #tpu.memory_space<vmem>>) attributes {dimension_semantics = [#tpu.dimension_semantics<parallel>, #tpu.dimension_semantics<arbitrary>], iteration_bounds = array<i64: 1, 1>, scalar_prefetch = 0 : i64, scratch_operands = 1 : i64, tpu.core_type = #tpu.core_type<tc>, window_params = [{transform_indices = @transform_0, window_bounds = array<i64: 8, 256>}, {transform_indices = @transform_1, window_bounds = array<i64: 256, 1024>}, {pipeline_mode = #tpu.pipeline_mode<synchronous>, transform_indices = @transform_2, window_bounds = array<i64: 1, 1024>}, {transform_indices = @transform_3, window_bounds = array<i64: 8, 1024>}]} {
    %c0_i32 = arith.constant 0 : i32
    %0 = arith.cmpi eq, %arg1, %c0_i32 : i32
    %1 = arith.extui %0 : i1 to i32
    %c0_i32_0 = arith.constant 0 : i32
    %2 = arith.cmpi ne, %1, %c0_i32_0 : i32
    scf.if %2 {
      %cst_10 = arith.constant 0.000000e+00 : f32
      %12 = vector.broadcast %cst_10 : f32 to vector<8x1024xf32>
      %c0_11 = arith.constant 0 : index
      %c0_12 = arith.constant 0 : index
      %13 = vector.load %arg6[%c0_11, %c0_12] : memref<8x1024xf32, #tpu.memory_space<vmem>>, vector<8x1024xf32>
      tpu.vector_store %arg6[%c0_11, %c0_12], %12 {strides = array<i32>} : memref<8x1024xf32, #tpu.memory_space<vmem>>, vector<8x1024xf32>,
    } else {
    }
    %c0 = arith.constant 0 : index
    %c0_1 = arith.constant 0 : index
    %3 = vector.load %arg6[%c0, %c0_1] : memref<8x1024xf32, #tpu.memory_space<vmem>>, vector<8x1024xf32>
    %c0_2 = arith.constant 0 : index
    %c0_3 = arith.constant 0 : index
    %4 = vector.load %arg2[%c0_2, %c0_3] : memref<8x256xbf16, #tpu.memory_space<vmem>>, vector<8x256xbf16>
    %c0_4 = arith.constant 0 : index
    %c0_5 = arith.constant 0 : index
    %5 = vector.load %arg3[%c0_4, %c0_5] : memref<256x1024xbf16, #tpu.memory_space<vmem>>, vector<256x1024xbf16>
    %cst = arith.constant dense<0.000000e+00> : vector<8x1024xf32>
    %6 = tpu.matmul %4, %5, %cst {dimension_numbers = #tpu.dot_dimension_numbers<[1], [0], [0], [1], [0, 0, 1, 1], [], []>} : vector<8x256xbf16>, vector<256x1024xbf16>, vector<8x1024xf32> -> vector<8x1024xf32>
    %7 = arith.addf %3, %6 : vector<8x1024xf32>
    %c0_6 = arith.constant 0 : index
    %c0_7 = arith.constant 0 : index
    %8 = vector.load %arg6[%c0_6, %c0_7] : memref<8x1024xf32, #tpu.memory_space<vmem>>, vector<8x1024xf32>
    tpu.vector_store %arg6[%c0_6, %c0_7], %7 {strides = array<i32>} : memref<8x1024xf32, #tpu.memory_space<vmem>>, vector<8x1024xf32>,
    %c0_i32_8 = arith.constant 0 : i32
    %9 = arith.cmpi eq, %arg1, %c0_i32_8 : i32
    %10 = arith.extui %9 : i1 to i32
    %c0_i32_9 = arith.constant 0 : i32
    %11 = arith.cmpi ne, %10, %c0_i32_9 : i32
    scf.if %11 {
      %c0_10 = arith.constant 0 : index
      %c0_11 = arith.constant 0 : index
      %12 = vector.load %arg6[%c0_10, %c0_11] : memref<8x1024xf32, #tpu.memory_space<vmem>>, vector<8x1024xf32>
      %c0_12 = arith.constant 0 : index
      %c0_13 = arith.constant 0 : index
      %13 = vector.load %arg4[%c0_12, %c0_13] : memref<1x1024xf32, #tpu.memory_space<vmem>>, vector<1x1024xf32>
      %14 = vector.broadcast %13 : vector<1x1024xf32> to vector<8x1024xf32>
      %15 = arith.addf %12, %14 : vector<8x1024xf32>
      %c0_14 = arith.constant 0 : index
      %c0_15 = arith.constant 0 : index
      %16 = vector.load %arg5[%c0_14, %c0_15] : memref<8x1024xf32, #tpu.memory_space<vmem>>, vector<8x1024xf32>
      tpu.vector_store %arg5[%c0_14, %c0_15], %15 {strides = array<i32>} : memref<8x1024xf32, #tpu.memory_space<vmem>>, vector<8x1024xf32>,
    } else {
    }
    return
  }
  func.func @transform_0(%arg0: i32, %arg1: i32) -> (i32, i32) {
    %c0_i32 = arith.constant 0 : i32
    return %arg0, %arg1 : i32, i32
  }
  func.func @transform_1(%arg0: i32, %arg1: i32) -> (i32, i32) {
    %c0_i32 = arith.constant 0 : i32
    %c0_i32_0 = arith.constant 0 : i32
    return %arg1, %c0_i32 : i32, i32
  }
  func.func @transform_2(%arg0: i32, %arg1: i32) -> (i32, i32) {
    %c0_i32 = arith.constant 0 : i32
    %c0_i32_0 = arith.constant 0 : i32
    %c0_i32_1 = arith.constant 0 : i32
    return %c0_i32, %c0_i32_0 : i32, i32
  }
  func.func @transform_3(%arg0: i32, %arg1: i32) -> (i32, i32) {
    %c0_i32 = arith.constant 0 : i32
    %c0_i32_0 = arith.constant 0 : i32
    return %arg0, %c0_i32 : i32, i32
  }
}

module attributes {stable_mosaic.version = 11 : i64} {
  func.func @_mm_bias_kernel(%arg0: i32, %arg1: i32, %arg2: memref<8x512xbf16, #tpu.memory_space<vmem>>, %arg3: memref<512x128xbf16, #tpu.memory_space<vmem>>, %arg4: memref<1x128xf32, #tpu.memory_space<vmem>>, %arg5: memref<8x128xf32, #tpu.memory_space<vmem>>, %arg6: memref<8x128xf32, #tpu.memory_space<vmem>>) attributes {dimension_semantics = [#tpu.dimension_semantics<parallel>, #tpu.dimension_semantics<arbitrary>], iteration_bounds = array<i64: 1, 2>, scalar_prefetch = 0 : i64, scratch_operands = 1 : i64, tpu.core_type = #tpu.core_type<tc>, window_params = [{transform_indices = @transform_0, window_bounds = array<i64: 8, 512>}, {transform_indices = @transform_1, window_bounds = array<i64: 512, 128>}, {pipeline_mode = #tpu.pipeline_mode<synchronous>, transform_indices = @transform_2, window_bounds = array<i64: 1, 128>}, {transform_indices = @transform_3, window_bounds = array<i64: 8, 128>}]} {
    %c0_i32 = arith.constant 0 : i32
    %0 = arith.cmpi eq, %arg1, %c0_i32 : i32
    %1 = arith.extui %0 : i1 to i32
    %c0_i32_0 = arith.constant 0 : i32
    %2 = arith.cmpi ne, %1, %c0_i32_0 : i32
    scf.if %2 {
      %cst_9 = arith.constant 0.000000e+00 : f32
      %12 = vector.broadcast %cst_9 : f32 to vector<8x128xf32>
      %c0_10 = arith.constant 0 : index
      %c0_11 = arith.constant 0 : index
      %13 = vector.load %arg6[%c0_10, %c0_11] : memref<8x128xf32, #tpu.memory_space<vmem>>, vector<8x128xf32>
      tpu.vector_store %arg6[%c0_10, %c0_11], %12 {strides = array<i32>} : memref<8x128xf32, #tpu.memory_space<vmem>>, vector<8x128xf32>,
    } else {
    }
    %c0 = arith.constant 0 : index
    %c0_1 = arith.constant 0 : index
    %3 = vector.load %arg6[%c0, %c0_1] : memref<8x128xf32, #tpu.memory_space<vmem>>, vector<8x128xf32>
    %c0_2 = arith.constant 0 : index
    %c0_3 = arith.constant 0 : index
    %4 = vector.load %arg2[%c0_2, %c0_3] : memref<8x512xbf16, #tpu.memory_space<vmem>>, vector<8x512xbf16>
    %c0_4 = arith.constant 0 : index
    %c0_5 = arith.constant 0 : index
    %5 = vector.load %arg3[%c0_4, %c0_5] : memref<512x128xbf16, #tpu.memory_space<vmem>>, vector<512x128xbf16>
    %cst = arith.constant dense<0.000000e+00> : vector<8x128xf32>
    %6 = tpu.matmul %4, %5, %cst {dimension_numbers = #tpu.dot_dimension_numbers<[1], [0], [0], [1], [0, 0, 1, 1], [], []>} : vector<8x512xbf16>, vector<512x128xbf16>, vector<8x128xf32> -> vector<8x128xf32>
    %7 = arith.addf %3, %6 : vector<8x128xf32>
    %c0_6 = arith.constant 0 : index
    %c0_7 = arith.constant 0 : index
    %8 = vector.load %arg6[%c0_6, %c0_7] : memref<8x128xf32, #tpu.memory_space<vmem>>, vector<8x128xf32>
    tpu.vector_store %arg6[%c0_6, %c0_7], %7 {strides = array<i32>} : memref<8x128xf32, #tpu.memory_space<vmem>>, vector<8x128xf32>,
    %c1_i32 = arith.constant 1 : i32
    %9 = arith.cmpi eq, %arg1, %c1_i32 : i32
    %10 = arith.extui %9 : i1 to i32
    %c0_i32_8 = arith.constant 0 : i32
    %11 = arith.cmpi ne, %10, %c0_i32_8 : i32
    scf.if %11 {
      %c0_9 = arith.constant 0 : index
      %c0_10 = arith.constant 0 : index
      %12 = vector.load %arg6[%c0_9, %c0_10] : memref<8x128xf32, #tpu.memory_space<vmem>>, vector<8x128xf32>
      %c0_11 = arith.constant 0 : index
      %c0_12 = arith.constant 0 : index
      %13 = vector.load %arg4[%c0_11, %c0_12] : memref<1x128xf32, #tpu.memory_space<vmem>>, vector<1x128xf32>
      %14 = vector.broadcast %13 : vector<1x128xf32> to vector<8x128xf32>
      %15 = arith.addf %12, %14 : vector<8x128xf32>
      %c0_13 = arith.constant 0 : index
      %c0_14 = arith.constant 0 : index
      %16 = vector.load %arg5[%c0_13, %c0_14] : memref<8x128xf32, #tpu.memory_space<vmem>>, vector<8x128xf32>
      tpu.vector_store %arg5[%c0_13, %c0_14], %15 {strides = array<i32>} : memref<8x128xf32, #tpu.memory_space<vmem>>, vector<8x128xf32>,
    } else {
    }
    return
  }
  func.func @transform_0(%arg0: i32, %arg1: i32) -> (i32, i32) {
    %c0_i32 = arith.constant 0 : i32
    return %arg0, %arg1 : i32, i32
  }
  func.func @transform_1(%arg0: i32, %arg1: i32) -> (i32, i32) {
    %c0_i32 = arith.constant 0 : i32
    %c0_i32_0 = arith.constant 0 : i32
    return %arg1, %c0_i32 : i32, i32
  }
  func.func @transform_2(%arg0: i32, %arg1: i32) -> (i32, i32) {
    %c0_i32 = arith.constant 0 : i32
    %c0_i32_0 = arith.constant 0 : i32
    %c0_i32_1 = arith.constant 0 : i32
    return %c0_i32, %c0_i32_0 : i32, i32
  }
  func.func @transform_3(%arg0: i32, %arg1: i32) -> (i32, i32) {
    %c0_i32 = arith.constant 0 : i32
    %c0_i32_0 = arith.constant 0 : i32
    return %arg0, %c0_i32 : i32, i32
  }
}

</mosaic_0001>

<bundles_post_ra>
// kernel: _lambda_.59
= control target key start
LH: loop header
LB: loop body
LE: loop exit
PB: predicated region body
PF: predicated region fallthrough
CT: control target
= control target key end

     0   :  { %s1735_s12 = smov 0   ;;  %s1737_s13 = smov 0   ;;  %s1965_s0 = inlined_call_operand.vmem [shape: bf16[2048,128], index: 0, kind: input, shape index: {}]   ;;  %s1966_s1 = inlined_call_operand.vmem [shape: bf16[128,128], index: 1, kind: input, shape index: {}]   ;;  %s1967_s2 = inlined_call_operand.vmem [shape: f32[1,128], index: 2, kind: input, shape index: {}]   ;;  %s1968_s3 = inlined_call_operand.vmem [shape: f32[2048,128], index: 3, kind: output, shape index: {}]  }
   0x1   :  { %s1739_s14 = smov 0  }
   0x2 LB: > { %s25_s15 = sadd.s32 1, %s1709_s13  ;;  %p1443_p0 = scmp.ge.s32.totalorder %s1713_s14, 1  ;;  %s1713_s14 = sphi %s1739_s14, %s13_s14   ;;  %s1709_s13 = sphi %s1737_s13, %s1970_s13   ;;  %s1705_s12 = sphi %s1735_s12, %s1969_s12  }
   0x3   : > { %p27_p1 = scmp.ge.s32.totalorder %s25_s15, 4  ;;  %p166_p2 = scmp.lt.s32.totalorder %s1713_s14, 5 }
   0x5   : > { %s1972_s15 = smov (%p27_p1, %s25_s15), 0  ;;  %p167_p3 = pnand %p1443_p0, %p166_p2 }
   0x6   : > { %v1651_v0 = vld [vmem:[%s1966_s1] sm:$0xff] (!%p167_p3)   ;;  %s1444_s18 = sshll.u32 (!%p167_p3), %s1705_s12, 6  ;;  %v1652_v1 = vld [vmem:[%s1966_s1 + $0x8] sm:$0xff] (!%p167_p3)   ;;  %v1653_v2 = vld [vmem:[%s1966_s1 + $0x10] sm:$0xff] (!%p167_p3)  }
   0x7   : > { %170 = sbr.rel (%p167_p3) target bundleno = 315 (0x13b), region = 32  ;;  %p199_p4 = scmp.lt.s32.totalorder (!%p167_p3), %s1444_s18, 255  ;;  %1531 = vmatprep.subr.bf16.mxu0 (!%p167_p3), %v1651_v0  ;;  %1611 = vmatprep.subr.bf16.mxu1 (!%p167_p3), %v1651_v0  ;;  %v1654_v3 = vld [vmem:[%s1966_s1 + $0x18] sm:$0xff] (!%p167_p3)   ;;  %v1655_v6 = vld [vmem:[%s1966_s1 + $0x20] sm:$0xff] (!%p167_p3)   ;;  %v1656_v7 = vld [vmem:[%s1966_s1 + $0x28] sm:$0xff] (!%p167_p3)  }
   0x8   : > { %1532 = vmatpush3.bf16.msra.mxu0 (!%p167_p3), %v1651_v0  ;;  %1619 = vmatpush3.bf16.msra.mxu1 (!%p167_p3), %v1651_v0  ;;  %v1657_v8 = vld [vmem:[%s1966_s1 + $0x30] sm:$0xff] (!%p167_p3)   ;;  %v1658_v9 = vld [vmem:[%s1966_s1 + $0x38] sm:$0xff] (!%p167_p3)   ;;  %v1820_v40 = vld [vmem:[%s1967_s2] ss:$0 sm:$0xff] (!%p167_p3) }
   0x9   : > { %1533 = vmatprep.subr.bf16.mxu0 (!%p167_p3), %v1652_v1  ;;  %1612 = vmatprep.subr.bf16.mxu1 (!%p167_p3), %v1652_v1 }
   0xc   : > { %1534 = vmatpush3.bf16.msra.mxu0 (!%p167_p3), %v1652_v1  ;;  %1620 = vmatpush3.bf16.msra.mxu1 (!%p167_p3), %v1652_v1 }
   0xd   : > { %1535 = vmatprep.subr.bf16.mxu0 (!%p167_p3), %v1653_v2  ;;  %1613 = vmatprep.subr.bf16.mxu1 (!%p167_p3), %v1653_v2 }
   0xe   : > { %s1974_s18 = smov (!%p199_p4, %s1444_s18), 255 }
   0xf   : > { %s1445_s23 = sshll.u32 %s1974_s18, 2  ;;  %s1447_s12 = sshll.u32 %s1974_s18, 3 }
  0x10   : > { %s1768_s26 = scalar_lea.vmem %s1965_s0, %s1445_s23  ;;  %1536 = vmatpush3.bf16.msra.mxu0 %v1653_v2  ;;  %1621 = vmatpush3.bf16.msra.mxu1 %v1653_v2  ;;  %s1828_s19 = scalar_lea.vmem %s1968_s3, %s1447_s12 }
  0x11   : > { %v1659_v4 = vld [vmem:[%s1768_s26] sm:$0xff]   ;;  %1537 = vmatprep.subr.bf16.mxu0 %v1654_v3  ;;  %1614 = vmatprep.subr.bf16.mxu1 %v1654_v3  ;;  %v1661_v10 = vld [vmem:[%s1768_s26 + $0x8] sm:$0xff]   ;;  %v1663_v12 = vld [vmem:[%s1768_s26 + $0x10] sm:$0xff]  }
  0x12   : > { %v1660_v5 = vld [vmem:[%s1768_s26 + $0x80] sm:$0xff]   ;;  %1547 = vmatprep.mubr.bf16.mxu0 %v1659_v4  ;;  %v1662_v11 = vld [vmem:[%s1768_s26 + $0x88] sm:$0xff]   ;;  %v1664_v13 = vld [vmem:[%s1768_s26 + $0x90] sm:$0xff]  }
  0x13   : > { %1579 = vmatprep.mubr.bf16.mxu1 %v1660_v5  ;;  %v1665_v14 = vld [vmem:[%s1768_s26 + $0x18] sm:$0xff]   ;;  %v1667_v16 = vld [vmem:[%s1768_s26 + $0x20] sm:$0xff]   ;;  %v1669_v18 = vld [vmem:[%s1768_s26 + $0x28] sm:$0xff]  }
  0x14   : > { %1538 = vmatpush3.bf16.msra.mxu0 %v1654_v3  ;;  %1622 = vmatpush3.bf16.msra.mxu1 %v1654_v3  ;;  %v1666_v15 = vld [vmem:[%s1768_s26 + $0x98] sm:$0xff]   ;;  %v1668_v17 = vld [vmem:[%s1768_s26 + $0xa0] sm:$0xff]   ;;  %v1670_v19 = vld [vmem:[%s1768_s26 + $0xa8] sm:$0xff]  }
  0x15   : > { %1539 = vmatprep.subr.bf16.mxu0 %v1655_v6  ;;  %1615 = vmatprep.subr.bf16.mxu1 %v1655_v6  ;;  %v1671_v20 = vld [vmem:[%s1768_s26 + $0x30] sm:$0xff]   ;;  %v1673_v22 = vld [vmem:[%s1768_s26 + $0x38] sm:$0xff]   ;;  %v1675_v24 = vld [vmem:[%s1768_s26 + $0x40] sm:$0xff]  }
  0x16   : > { %v1672_v21 = vld [vmem:[%s1768_s26 + $0xb0] sm:$0xff]   ;;  %v1674_v23 = vld [vmem:[%s1768_s26 + $0xb8] sm:$0xff]   ;;  %v1676_v25 = vld [vmem:[%s1768_s26 + $0xc0] sm:$0xff]  }
  0x17   : > { %v1677_v26 = vld [vmem:[%s1768_s26 + $0x48] sm:$0xff]   ;;  %v1679_v28 = vld [vmem:[%s1768_s26 + $0x50] sm:$0xff]   ;;  %v1681_v30 = vld [vmem:[%s1768_s26 + $0x58] sm:$0xff]  }
  0x18   : > { %1540 = vmatpush3.bf16.msra.mxu0 %v1655_v6  ;;  %1623 = vmatpush3.bf16.msra.mxu1 %v1655_v6  ;;  %v1678_v27 = vld [vmem:[%s1768_s26 + $0xc8] sm:$0xff]   ;;  %v1680_v29 = vld [vmem:[%s1768_s26 + $0xd0] sm:$0xff]   ;;  %v1682_v31 = vld [vmem:[%s1768_s26 + $0xd8] sm:$0xff]  }
  0x19   : > { %1541 = vmatprep.subr.bf16.mxu0 %v1656_v7  ;;  %1616 = vmatprep.subr.bf16.mxu1 %v1656_v7  ;;  %v1683_v32 = vld [vmem:[%s1768_s26 + $0x60] sm:$0xff]   ;;  %v1685_v34 = vld [vmem:[%s1768_s26 + $0x68] sm:$0xff]   ;;  %v1687_v36 = vld [vmem:[%s1768_s26 + $0x70] sm:$0xff]  }
  0x1a   : > { %v1684_v33 = vld [vmem:[%s1768_s26 + $0xe0] sm:$0xff]   ;;  %v1686_v35 = vld [vmem:[%s1768_s26 + $0xe8] sm:$0xff]   ;;  %v1688_v37 = vld [vmem:[%s1768_s26 + $0xf0] sm:$0xff]  }
  0x1b   : > { %v1689_v38 = vld [vmem:[%s1768_s26 + $0x78] sm:$0xff]  }
  0x1c   : > { %1542 = vmatpush3.bf16.msra.mxu0 %v1656_v7  ;;  %1624 = vmatpush3.bf16.msra.mxu1 %v1656_v7  ;;  %v1690_v39 = vld [vmem:[%s1768_s26 + $0xf8] sm:$0xff]  }
  0x1d   : > { %1543 = vmatprep.subr.bf16.mxu0 %v1657_v8  ;;  %1617 = vmatprep.subr.bf16.mxu1 %v1657_v8 }
  0x20   : > { %1544 = vmatpush3.bf16.msra.mxu0 %v1657_v8  ;;  %1625 = vmatpush3.bf16.msra.mxu1 %v1657_v8 }
  0x21   : > { %1545 = vmatprep.subr.bf16.mxu0 %v1658_v9  ;;  %1618 = vmatprep.subr.bf16.mxu1 %v1658_v9 }
  0x24   : > { %1546 = vmatpush3.bf16.msra.mxu0 %v1658_v9  ;;  %1626 = vmatpush3.bf16.msra.mxu1 %v1658_v9 }
  0x27   : > { %1548 = vmatmul.mubr.bf16.vlgmr.msra.gmra.mrb[0].mxu0 %v1661_v10  ;;  %1580 = vmatmul.mubr.bf16.vlgmr.msra.gmra.mrb[0].mxu1 %v1662_v11 }
  0x28   : > { %1551 = vmatprep.mubr.bf16.mxu0 %v1663_v12  ;;  %1583 = vmatprep.mubr.bf16.mxu1 %v1664_v13 }
  0x2f   : > { %1552 = vmatmul.mubr.bf16.gmra.mrb[4].mxu0 %v1665_v14  ;;  %1584 = vmatmul.mubr.bf16.gmra.mrb[4].mxu1 %v1666_v15 }
  0x30   : > { %1555 = vmatprep.mubr.bf16.mxu0 %v1667_v16  ;;  %1587 = vmatprep.mubr.bf16.mxu1 %v1668_v17 }
  0x37   : > { %1556 = vmatmul.mubr.bf16.gmra.mrb[8].mxu0 %v1669_v18  ;;  %1588 = vmatmul.mubr.bf16.gmra.mrb[8].mxu1 %v1670_v19 }
  0x38   : > { %1559 = vmatprep.mubr.bf16.mxu0 %v1671_v20  ;;  %1591 = vmatprep.mubr.bf16.mxu1 %v1672_v21 }
  0x3f   : > { %1560 = vmatmul.mubr.bf16.gmra.mrb[12].mxu0 %v1673_v22  ;;  %1592 = vmatmul.mubr.bf16.gmra.mrb[12].mxu1 %v1674_v23 }
  0x40   : > { %1563 = vmatprep.mubr.bf16.mxu0 %v1675_v24  ;;  %1595 = vmatprep.mubr.bf16.mxu1 %v1676_v25 }
  0x47   : > { %1564 = vmatmul.mubr.bf16.gmra.mrb[16].mxu0 %v1677_v26  ;;  %1596 = vmatmul.mubr.bf16.gmra.mrb[16].mxu1 %v1678_v27 }
  0x48   : > { %1567 = vmatprep.mubr.bf16.mxu0 %v1679_v28  ;;  %1599 = vmatprep.mubr.bf16.mxu1 %v1680_v29 }
  0x4f   : > { %1568 = vmatmul.mubr.bf16.gmra.mrb[20].mxu0 %v1681_v30  ;;  %1600 = vmatmul.mubr.bf16.gmra.mrb[20].mxu1 %v1682_v31 }
  0x50   : > { %1571 = vmatprep.mubr.bf16.mxu0 %v1683_v32  ;;  %1603 = vmatprep.mubr.bf16.mxu1 %v1684_v33 }
  0x57   : > { %1572 = vmatmul.mubr.bf16.gmra.mrb[24].mxu0 %v1685_v34  ;;  %1604 = vmatmul.mubr.bf16.gmra.mrb[24].mxu1 %v1686_v35 }
  0x58   : > { %1575 = vmatprep.mubr.bf16.mxu0 %v1687_v36  ;;  %1607 = vmatprep.mubr.bf16.mxu1 %v1688_v37 }
  0x5f   : > { %1576 = vmatmul.mubr.bf16.gmra.mrb[28].mxu0 %v1689_v38  ;;  %1608 = vmatmul.mubr.bf16.gmra.mrb[28].mxu1 %v1690_v39 }
  0xfa   : > { %v1549_v41 = vpop.f32.mrb[0].mxu0  ;;  %v1581_v42 = vpop.f32.mrb[0].mxu1 }
  0xfb   : > { %v1165_v43 = vadd.f32 %v1549_v41, %v1820_v40  ;;  %v1197_v44 = vadd.f32 %v1581_v42, %v1820_v40  ;;  %v706_v45 = vpop.f32.mrb[1].mxu0  ;;  %v834_v46 = vpop.f32.mrb[1].mxu1 }
  0xfc   : > { %v1163_v47 = vadd.f32 %v1820_v40, %v706_v45  ;;  %v1195_v48 = vadd.f32 %v1820_v40, %v834_v46  ;;  %v1550_v49 = vpop.f32.mrb[2].mxu0  ;;  %v1582_v50 = vpop.f32.mrb[2].mxu1 }
  0xfd   : > { %v1229_v51 = vmax.f32 %v1165_v43, 0.0  ;;  %v1261_v52 = vmax.f32 %v1197_v44, 0.0  ;;  %v1166_v53 = vadd.f32 %v1550_v49, %v1820_v40  ;;  %v1198_v54 = vadd.f32 %v1582_v50, %v1820_v40  ;;  %v709_v55 = vpop.f32.mrb[3].mxu0  ;;  %v837_v56 = vpop.f32.mrb[3].mxu1 }
  0xfe   : > { %v1227_v57 = vmax.f32 %v1163_v47, 0.0  ;;  %v1259_v58 = vmax.f32 %v1195_v48, 0.0  ;;  %v1164_v59 = vadd.f32 %v1820_v40, %v709_v55  ;;  %v1196_v60 = vadd.f32 %v1820_v40, %v837_v56 }
  0xff   : > { %1293 = vst [vmem:[%s1828_s19 + $0x10] sm:$0xff] %v1229_v51  ;;  %1325 = vst [vmem:[%s1828_s19 + $0x110] sm:$0xff] %v1261_v52  ;;  %v1230_v61 = vmax.f32 %v1166_v53, 0.0  ;;  %v1262_v62 = vmax.f32 %v1198_v54, 0.0 }
 0x100   : > { %1291 = vst [vmem:[%s1828_s19] sm:$0xff] %v1227_v57  ;;  %1323 = vst [vmem:[%s1828_s19 + $0x100] sm:$0xff] %v1259_v58  ;;  %v1228_v63 = vmax.f32 %v1164_v59, 0.0  ;;  %v1260_v0 = vmax.f32 %v1196_v60, 0.0 }
 0x101   : > { %1294 = vst [vmem:[%s1828_s19 + $0x18] sm:$0xff] %v1230_v61  ;;  %1326 = vst [vmem:[%s1828_s19 + $0x118] sm:$0xff] %v1262_v62 }
 0x102   : > { %1292 = vst [vmem:[%s1828_s19 + $0x8] sm:$0xff] %v1228_v63  ;;  %1324 = vst [vmem:[%s1828_s19 + $0x108] sm:$0xff] %v1260_v0  ;;  %v1553_v1 = vpop.f32.mrb[4].mxu0  ;;  %v1585_v2 = vpop.f32.mrb[4].mxu1 }
 0x103   : > { %v1169_v3 = vadd.f32 %v1553_v1, %v1820_v40  ;;  %v1201_v4 = vadd.f32 %v1585_v2, %v1820_v40  ;;  %v722_v5 = vpop.f32.mrb[5].mxu0  ;;  %v850_v6 = vpop.f32.mrb[5].mxu1 }
 0x104   : > { %v1167_v7 = vadd.f32 %v1820_v40, %v722_v5  ;;  %v1199_v8 = vadd.f32 %v1820_v40, %v850_v6  ;;  %v1554_v9 = vpop.f32.mrb[6].mxu0  ;;  %v1586_v10 = vpop.f32.mrb[6].mxu1 }
 0x105   : > { %v1233_v11 = vmax.f32 %v1169_v3, 0.0  ;;  %v1265_v12 = vmax.f32 %v1201_v4, 0.0  ;;  %v1170_v13 = vadd.f32 %v1554_v9, %v1820_v40  ;;  %v1202_v14 = vadd.f32 %v1586_v10, %v1820_v40  ;;  %v725_v15 = vpop.f32.mrb[7].mxu0  ;;  %v853_v16 = vpop.f32.mrb[7].mxu1 }
 0x106   : > { %v1231_v17 = vmax.f32 %v1167_v7, 0.0  ;;  %v1263_v18 = vmax.f32 %v1199_v8, 0.0  ;;  %v1168_v19 = vadd.f32 %v1820_v40, %v725_v15  ;;  %v1200_v20 = vadd.f32 %v1820_v40, %v853_v16 }
 0x107   : > { %1297 = vst [vmem:[%s1828_s19 + $0x30] sm:$0xff] %v1233_v11  ;;  %1329 = vst [vmem:[%s1828_s19 + $0x130] sm:$0xff] %v1265_v12  ;;  %v1234_v21 = vmax.f32 %v1170_v13, 0.0  ;;  %v1266_v22 = vmax.f32 %v1202_v14, 0.0 }
 0x108   : > { %1295 = vst [vmem:[%s1828_s19 + $0x20] sm:$0xff] %v1231_v17  ;;  %1327 = vst [vmem:[%s1828_s19 + $0x120] sm:$0xff] %v1263_v18  ;;  %v1232_v23 = vmax.f32 %v1168_v19, 0.0  ;;  %v1264_v24 = vmax.f32 %v1200_v20, 0.0 }
 0x109   : > { %1298 = vst [vmem:[%s1828_s19 + $0x38] sm:$0xff] %v1234_v21  ;;  %1330 = vst [vmem:[%s1828_s19 + $0x138] sm:$0xff] %v1266_v22 }
 0x10a   : > { %1296 = vst [vmem:[%s1828_s19 + $0x28] sm:$0xff] %v1232_v23  ;;  %1328 = vst [vmem:[%s1828_s19 + $0x128] sm:$0xff] %v1264_v24  ;;  %v1557_v25 = vpop.f32.mrb[8].mxu0  ;;  %v1589_v26 = vpop.f32.mrb[8].mxu1 }
 0x10b   : > { %v1173_v27 = vadd.f32 %v1557_v25, %v1820_v40  ;;  %v1205_v28 = vadd.f32 %v1589_v26, %v1820_v40  ;;  %v738_v29 = vpop.f32.mrb[9].mxu0  ;;  %v866_v30 = vpop.f32.mrb[9].mxu1 }
 0x10c   : > { %v1171_v31 = vadd.f32 %v1820_v40, %v738_v29  ;;  %v1203_v32 = vadd.f32 %v1820_v40, %v866_v30  ;;  %v1558_v33 = vpop.f32.mrb[10].mxu0  ;;  %v1590_v34 = vpop.f32.mrb[10].mxu1 }
 0x10d   : > { %v1237_v35 = vmax.f32 %v1173_v27, 0.0  ;;  %v1269_v36 = vmax.f32 %v1205_v28, 0.0  ;;  %v1174_v37 = vadd.f32 %v1558_v33, %v1820_v40  ;;  %v1206_v38 = vadd.f32 %v1590_v34, %v1820_v40  ;;  %v741_v39 = vpop.f32.mrb[11].mxu0  ;;  %v869_v41 = vpop.f32.mrb[11].mxu1 }
 0x10e   : > { %v1235_v42 = vmax.f32 %v1171_v31, 0.0  ;;  %v1267_v43 = vmax.f32 %v1203_v32, 0.0  ;;  %v1172_v44 = vadd.f32 %v1820_v40, %v741_v39  ;;  %v1204_v45 = vadd.f32 %v1820_v40, %v869_v41 }
 0x10f   : > { %1301 = vst [vmem:[%s1828_s19 + $0x50] sm:$0xff] %v1237_v35  ;;  %1333 = vst [vmem:[%s1828_s19 + $0x150] sm:$0xff] %v1269_v36  ;;  %v1238_v46 = vmax.f32 %v1174_v37, 0.0  ;;  %v1270_v47 = vmax.f32 %v1206_v38, 0.0 }
 0x110   : > { %1299 = vst [vmem:[%s1828_s19 + $0x40] sm:$0xff] %v1235_v42  ;;  %1331 = vst [vmem:[%s1828_s19 + $0x140] sm:$0xff] %v1267_v43  ;;  %v1236_v48 = vmax.f32 %v1172_v44, 0.0  ;;  %v1268_v49 = vmax.f32 %v1204_v45, 0.0 }
 0x111   : > { %1302 = vst [vmem:[%s1828_s19 + $0x58] sm:$0xff] %v1238_v46  ;;  %1334 = vst [vmem:[%s1828_s19 + $0x158] sm:$0xff] %v1270_v47 }
 0x112   : > { %1300 = vst [vmem:[%s1828_s19 + $0x48] sm:$0xff] %v1236_v48  ;;  %1332 = vst [vmem:[%s1828_s19 + $0x148] sm:$0xff] %v1268_v49  ;;  %v1561_v50 = vpop.f32.mrb[12].mxu0  ;;  %v1593_v51 = vpop.f32.mrb[12].mxu1 }
 0x113   : > { %v1177_v52 = vadd.f32 %v1561_v50, %v1820_v40  ;;  %v1209_v53 = vadd.f32 %v1593_v51, %v1820_v40  ;;  %v754_v54 = vpop.f32.mrb[13].mxu0  ;;  %v882_v55 = vpop.f32.mrb[13].mxu1 }
 0x114   : > { %v1175_v56 = vadd.f32 %v1820_v40, %v754_v54  ;;  %v1207_v57 = vadd.f32 %v1820_v40, %v882_v55  ;;  %v1562_v58 = vpop.f32.mrb[14].mxu0  ;;  %v1594_v59 = vpop.f32.mrb[14].mxu1 }
 0x115   : > { %v1241_v60 = vmax.f32 %v1177_v52, 0.0  ;;  %v1273_v61 = vmax.f32 %v1209_v53, 0.0  ;;  %v1178_v62 = vadd.f32 %v1562_v58, %v1820_v40  ;;  %v1210_v63 = vadd.f32 %v1594_v59, %v1820_v40  ;;  %v757_v0 = vpop.f32.mrb[15].mxu0  ;;  %v885_v1 = vpop.f32.mrb[15].mxu1 }
 0x116   : > { %v1239_v2 = vmax.f32 %v1175_v56, 0.0  ;;  %v1271_v3 = vmax.f32 %v1207_v57, 0.0  ;;  %v1176_v4 = vadd.f32 %v1820_v40, %v757_v0  ;;  %v1208_v5 = vadd.f32 %v1820_v40, %v885_v1 }
 0x117   : > { %1305 = vst [vmem:[%s1828_s19 + $0x70] sm:$0xff] %v1241_v60  ;;  %1337 = vst [vmem:[%s1828_s19 + $0x170] sm:$0xff] %v1273_v61  ;;  %v1242_v6 = vmax.f32 %v1178_v62, 0.0  ;;  %v1274_v7 = vmax.f32 %v1210_v63, 0.0 }
 0x118   : > { %1303 = vst [vmem:[%s1828_s19 + $0x60] sm:$0xff] %v1239_v2  ;;  %1335 = vst [vmem:[%s1828_s19 + $0x160] sm:$0xff] %v1271_v3  ;;  %v1240_v8 = vmax.f32 %v1176_v4, 0.0  ;;  %v1272_v9 = vmax.f32 %v1208_v5, 0.0 }
 0x119   : > { %1306 = vst [vmem:[%s1828_s19 + $0x78] sm:$0xff] %v1242_v6  ;;  %1338 = vst [vmem:[%s1828_s19 + $0x178] sm:$0xff] %v1274_v7 }
 0x11a   : > { %1304 = vst [vmem:[%s1828_s19 + $0x68] sm:$0xff] %v1240_v8  ;;  %1336 = vst [vmem:[%s1828_s19 + $0x168] sm:$0xff] %v1272_v9  ;;  %v1565_v10 = vpop.f32.mrb[16].mxu0  ;;  %v1597_v11 = vpop.f32.mrb[16].mxu1 }
 0x11b   : > { %v1181_v12 = vadd.f32 %v1565_v10, %v1820_v40  ;;  %v1213_v13 = vadd.f32 %v1597_v11, %v1820_v40  ;;  %v770_v14 = vpop.f32.mrb[17].mxu0  ;;  %v898_v15 = vpop.f32.mrb[17].mxu1 }
 0x11c   : > { %v1179_v16 = vadd.f32 %v1820_v40, %v770_v14  ;;  %v1211_v17 = vadd.f32 %v1820_v40, %v898_v15  ;;  %v1566_v18 = vpop.f32.mrb[18].mxu0  ;;  %v1598_v19 = vpop.f32.mrb[18].mxu1 }
 0x11d   : > { %v1245_v20 = vmax.f32 %v1181_v12, 0.0  ;;  %v1277_v21 = vmax.f32 %v1213_v13, 0.0  ;;  %v1182_v22 = vadd.f32 %v1566_v18, %v1820_v40  ;;  %v1214_v23 = vadd.f32 %v1598_v19, %v1820_v40  ;;  %v773_v24 = vpop.f32.mrb[19].mxu0  ;;  %v901_v25 = vpop.f32.mrb[19].mxu1 }
 0x11e   : > { %v1243_v26 = vmax.f32 %v1179_v16, 0.0  ;;  %v1275_v27 = vmax.f32 %v1211_v17, 0.0  ;;  %v1180_v28 = vadd.f32 %v1820_v40, %v773_v24  ;;  %v1212_v29 = vadd.f32 %v1820_v40, %v901_v25 }
 0x11f   : > { %1309 = vst [vmem:[%s1828_s19 + $0x90] sm:$0xff] %v1245_v20  ;;  %1341 = vst [vmem:[%s1828_s19 + $0x190] sm:$0xff] %v1277_v21  ;;  %v1246_v30 = vmax.f32 %v1182_v22, 0.0  ;;  %v1278_v31 = vmax.f32 %v1214_v23, 0.0 }
 0x120   : > { %1307 = vst [vmem:[%s1828_s19 + $0x80] sm:$0xff] %v1243_v26  ;;  %1339 = vst [vmem:[%s1828_s19 + $0x180] sm:$0xff] %v1275_v27  ;;  %v1244_v32 = vmax.f32 %v1180_v28, 0.0  ;;  %v1276_v33 = vmax.f32 %v1212_v29, 0.0 }
 0x121   : > { %1310 = vst [vmem:[%s1828_s19 + $0x98] sm:$0xff] %v1246_v30  ;;  %1342 = vst [vmem:[%s1828_s19 + $0x198] sm:$0xff] %v1278_v31 }
 0x122   : > { %1308 = vst [vmem:[%s1828_s19 + $0x88] sm:$0xff] %v1244_v32  ;;  %1340 = vst [vmem:[%s1828_s19 + $0x188] sm:$0xff] %v1276_v33  ;;  %v1569_v34 = vpop.f32.mrb[20].mxu0  ;;  %v1601_v35 = vpop.f32.mrb[20].mxu1 }
 0x123   : > { %v1185_v36 = vadd.f32 %v1569_v34, %v1820_v40  ;;  %v1217_v37 = vadd.f32 %v1601_v35, %v1820_v40  ;;  %v786_v38 = vpop.f32.mrb[21].mxu0  ;;  %v914_v39 = vpop.f32.mrb[21].mxu1 }
 0x124   : > { %v1183_v41 = vadd.f32 %v1820_v40, %v786_v38  ;;  %v1215_v42 = vadd.f32 %v1820_v40, %v914_v39  ;;  %v1570_v43 = vpop.f32.mrb[22].mxu0  ;;  %v1602_v44 = vpop.f32.mrb[22].mxu1 }
 0x125   : > { %v1249_v45 = vmax.f32 %v1185_v36, 0.0  ;;  %v1281_v46 = vmax.f32 %v1217_v37, 0.0  ;;  %v1186_v47 = vadd.f32 %v1570_v43, %v1820_v40  ;;  %v1218_v48 = vadd.f32 %v1602_v44, %v1820_v40  ;;  %v789_v49 = vpop.f32.mrb[23].mxu0  ;;  %v917_v50 = vpop.f32.mrb[23].mxu1 }
 0x126   : > { %v1247_v51 = vmax.f32 %v1183_v41, 0.0  ;;  %v1279_v52 = vmax.f32 %v1215_v42, 0.0  ;;  %v1184_v53 = vadd.f32 %v1820_v40, %v789_v49  ;;  %v1216_v54 = vadd.f32 %v1820_v40, %v917_v50 }
 0x127   : > { %1313 = vst [vmem:[%s1828_s19 + $0xb0] sm:$0xff] %v1249_v45  ;;  %1345 = vst [vmem:[%s1828_s19 + $0x1b0] sm:$0xff] %v1281_v46  ;;  %v1250_v55 = vmax.f32 %v1186_v47, 0.0  ;;  %v1282_v56 = vmax.f32 %v1218_v48, 0.0 }
 0x128   : > { %1311 = vst [vmem:[%s1828_s19 + $0xa0] sm:$0xff] %v1247_v51  ;;  %1343 = vst [vmem:[%s1828_s19 + $0x1a0] sm:$0xff] %v1279_v52  ;;  %v1248_v57 = vmax.f32 %v1184_v53, 0.0  ;;  %v1280_v58 = vmax.f32 %v1216_v54, 0.0 }
 0x129   : > { %1314 = vst [vmem:[%s1828_s19 + $0xb8] sm:$0xff] %v1250_v55  ;;  %1346 = vst [vmem:[%s1828_s19 + $0x1b8] sm:$0xff] %v1282_v56 }
 0x12a   : > { %1312 = vst [vmem:[%s1828_s19 + $0xa8] sm:$0xff] %v1248_v57  ;;  %1344 = vst [vmem:[%s1828_s19 + $0x1a8] sm:$0xff] %v1280_v58  ;;  %v1573_v59 = vpop.f32.mrb[24].mxu0  ;;  %v1605_v60 = vpop.f32.mrb[24].mxu1 }
 0x12b   : > { %v1189_v61 = vadd.f32 %v1573_v59, %v1820_v40  ;;  %v1221_v62 = vadd.f32 %v1605_v60, %v1820_v40  ;;  %v802_v63 = vpop.f32.mrb[25].mxu0  ;;  %v930_v0 = vpop.f32.mrb[25].mxu1 }
 0x12c   : > { %v1187_v1 = vadd.f32 %v1820_v40, %v802_v63  ;;  %v1219_v2 = vadd.f32 %v1820_v40, %v930_v0  ;;  %v1574_v3 = vpop.f32.mrb[26].mxu0  ;;  %v1606_v4 = vpop.f32.mrb[26].mxu1 }
 0x12d   : > { %v1253_v5 = vmax.f32 %v1189_v61, 0.0  ;;  %v1285_v6 = vmax.f32 %v1221_v62, 0.0  ;;  %v1190_v7 = vadd.f32 %v1574_v3, %v1820_v40  ;;  %v1222_v8 = vadd.f32 %v1606_v4, %v1820_v40  ;;  %v805_v9 = vpop.f32.mrb[27].mxu0  ;;  %v933_v10 = vpop.f32.mrb[27].mxu1 }
 0x12e   : > { %v1251_v11 = vmax.f32 %v1187_v1, 0.0  ;;  %v1283_v12 = vmax.f32 %v1219_v2, 0.0  ;;  %v1188_v13 = vadd.f32 %v1820_v40, %v805_v9  ;;  %v1220_v14 = vadd.f32 %v1820_v40, %v933_v10 }
 0x12f   : > { %1317 = vst [vmem:[%s1828_s19 + $0xd0] sm:$0xff] %v1253_v5  ;;  %1349 = vst [vmem:[%s1828_s19 + $0x1d0] sm:$0xff] %v1285_v6  ;;  %v1254_v15 = vmax.f32 %v1190_v7, 0.0  ;;  %v1286_v16 = vmax.f32 %v1222_v8, 0.0 }
 0x130   : > { %1315 = vst [vmem:[%s1828_s19 + $0xc0] sm:$0xff] %v1251_v11  ;;  %1347 = vst [vmem:[%s1828_s19 + $0x1c0] sm:$0xff] %v1283_v12  ;;  %v1252_v17 = vmax.f32 %v1188_v13, 0.0  ;;  %v1284_v18 = vmax.f32 %v1220_v14, 0.0 }
 0x131   : > { %1318 = vst [vmem:[%s1828_s19 + $0xd8] sm:$0xff] %v1254_v15  ;;  %1350 = vst [vmem:[%s1828_s19 + $0x1d8] sm:$0xff] %v1286_v16 }
 0x132   : > { %1316 = vst [vmem:[%s1828_s19 + $0xc8] sm:$0xff] %v1252_v17  ;;  %1348 = vst [vmem:[%s1828_s19 + $0x1c8] sm:$0xff] %v1284_v18  ;;  %v1577_v19 = vpop.f32.mrb[28].mxu0  ;;  %v1609_v20 = vpop.f32.mrb[28].mxu1 }
 0x133   : > { %v1193_v21 = vadd.f32 %v1577_v19, %v1820_v40  ;;  %v1225_v22 = vadd.f32 %v1609_v20, %v1820_v40  ;;  %v818_v23 = vpop.f32.mrb[29].mxu0  ;;  %v946_v24 = vpop.f32.mrb[29].mxu1 }
 0x134   : > { %v1191_v25 = vadd.f32 %v1820_v40, %v818_v23  ;;  %v1223_v26 = vadd.f32 %v1820_v40, %v946_v24  ;;  %v1578_v27 = vpop.f32.mrb[30].mxu0  ;;  %v1610_v28 = vpop.f32.mrb[30].mxu1 }
 0x135   : > { %v1257_v29 = vmax.f32 %v1193_v21, 0.0  ;;  %v1289_v30 = vmax.f32 %v1225_v22, 0.0  ;;  %v1194_v31 = vadd.f32 %v1578_v27, %v1820_v40  ;;  %v1226_v32 = vadd.f32 %v1610_v28, %v1820_v40  ;;  %v821_v33 = vpop.f32.mrb[31].mxu0  ;;  %v949_v34 = vpop.f32.mrb[31].mxu1 }
 0x136   : > { %v1255_v35 = vmax.f32 %v1191_v25, 0.0  ;;  %v1287_v36 = vmax.f32 %v1223_v26, 0.0  ;;  %v1192_v37 = vadd.f32 %v1820_v40, %v821_v33  ;;  %v1224_v38 = vadd.f32 %v1820_v40, %v949_v34 }
 0x137   : > { %1321 = vst [vmem:[%s1828_s19 + $0xf0] sm:$0xff] %v1257_v29  ;;  %1353 = vst [vmem:[%s1828_s19 + $0x1f0] sm:$0xff] %v1289_v30  ;;  %v1258_v39 = vmax.f32 %v1194_v31, 0.0  ;;  %v1290_v41 = vmax.f32 %v1226_v32, 0.0 }
 0x138   : > { %1319 = vst [vmem:[%s1828_s19 + $0xe0] sm:$0xff] %v1255_v35  ;;  %1351 = vst [vmem:[%s1828_s19 + $0x1e0] sm:$0xff] %v1287_v36  ;;  %v1256_v42 = vmax.f32 %v1192_v37, 0.0  ;;  %v1288_v43 = vmax.f32 %v1224_v38, 0.0 }
 0x139   : > { %1322 = vst [vmem:[%s1828_s19 + $0xf8] sm:$0xff] %v1258_v39  ;;  %1354 = vst [vmem:[%s1828_s19 + $0x1f8] sm:$0xff] %v1290_v41 }
 0x13a   : > { %1320 = vst [vmem:[%s1828_s19 + $0xe8] sm:$0xff] %v1256_v42  ;;  %1352 = vst [vmem:[%s1828_s19 + $0x1e8] sm:$0xff] %v1288_v43 }
 0x13b PF: > { %s13_s14 = sadd.s32 1, %s1713_s14   ;;  %s1969_s12 = smov %s1709_s13 }
 0x13c   : > { %p10_p5 = scmp.ge.s32.totalorder %s13_s14, 6   ;;  %s1970_s13 = smov %s1972_s15 }
 0x13e   :  { %12 = sbr.rel (!%p10_p5) target bundleno = 2 (0x2), region = 73 }

// kernel: _lambda_.62
= control target key start
LH: loop header
LB: loop body
LE: loop exit
PB: predicated region body
PF: predicated region fallthrough
CT: control target
= control target key end

     0   :  { %s1772_s1 = inlined_call_operand.vmem [shape: bf16[128,128], index: 1, kind: input, shape index: {}]   ;;  %s1773_s0 = inlined_call_operand.vmem [shape: bf16[512,128], index: 0, kind: input, shape index: {}]   ;;  %s1774_s2 = inlined_call_operand.vmem [shape: f32[1,128], index: 2, kind: input, shape index: {}]   ;;  %s1775_s3 = inlined_call_operand.vmem [shape: f32[512,128], index: 3, kind: output, shape index: {}]  }
   0x1   :  { %v1331_v0 = vld [vmem:[%s1772_s1] sm:$0xff]   ;;  %v1332_v1 = vld [vmem:[%s1772_s1 + $0x8] sm:$0xff]   ;;  %v1333_v2 = vld [vmem:[%s1772_s1 + $0x10] sm:$0xff]  }
   0x2   :  { %1235 = vmatprep.subr.bf16.mxu0 %v1331_v0  ;;  %1315 = vmatprep.subr.bf16.mxu1 %v1331_v0  ;;  %v1334_v3 = vld [vmem:[%s1772_s1 + $0x18] sm:$0xff]   ;;  %v1339_v4 = vld [vmem:[%s1773_s0] sm:$0xff]   ;;  %v1336_v7 = vld [vmem:[%s1772_s1 + $0x28] sm:$0xff]  }
   0x3   :  { %1236 = vmatpush3.bf16.msra.mxu0 %v1331_v0  ;;  %1323 = vmatpush3.bf16.msra.mxu1 %v1331_v0  ;;  %v1340_v5 = vld [vmem:[%s1773_s0 + $0x80] sm:$0xff]   ;;  %v1337_v8 = vld [vmem:[%s1772_s1 + $0x30] sm:$0xff]   ;;  %v1338_v9 = vld [vmem:[%s1772_s1 + $0x38] sm:$0xff]  }
   0x4   :  { %1237 = vmatprep.subr.bf16.mxu0 %v1332_v1  ;;  %1316 = vmatprep.subr.bf16.mxu1 %v1332_v1  ;;  %v1335_v6 = vld [vmem:[%s1772_s1 + $0x20] sm:$0xff]   ;;  %v1341_v10 = vld [vmem:[%s1773_s0 + $0x8] sm:$0xff]   ;;  %v1343_v12 = vld [vmem:[%s1773_s0 + $0x10] sm:$0xff]  }
   0x5   :  { %1251 = vmatprep.mubr.bf16.mxu0 %v1339_v4  ;;  %1283 = vmatprep.mubr.bf16.mxu1 %v1340_v5  ;;  %v1342_v11 = vld [vmem:[%s1773_s0 + $0x88] sm:$0xff]   ;;  %v1344_v13 = vld [vmem:[%s1773_s0 + $0x90] sm:$0xff]   ;;  %v1345_v14 = vld [vmem:[%s1773_s0 + $0x18] sm:$0xff]  }
   0x6   :  { %v1346_v15 = vld [vmem:[%s1773_s0 + $0x98] sm:$0xff]   ;;  %v1347_v16 = vld [vmem:[%s1773_s0 + $0x20] sm:$0xff]   ;;  %v1349_v18 = vld [vmem:[%s1773_s0 + $0x28] sm:$0xff]  }
   0x7   :  { %1238 = vmatpush3.bf16.msra.mxu0 %v1332_v1  ;;  %1324 = vmatpush3.bf16.msra.mxu1 %v1332_v1  ;;  %v1348_v17 = vld [vmem:[%s1773_s0 + $0xa0] sm:$0xff]   ;;  %v1350_v19 = vld [vmem:[%s1773_s0 + $0xa8] sm:$0xff]   ;;  %v1351_v20 = vld [vmem:[%s1773_s0 + $0x30] sm:$0xff]  }
   0x8   :  { %1239 = vmatprep.subr.bf16.mxu0 %v1333_v2  ;;  %1317 = vmatprep.subr.bf16.mxu1 %v1333_v2  ;;  %v1352_v21 = vld [vmem:[%s1773_s0 + $0xb0] sm:$0xff]   ;;  %v1353_v22 = vld [vmem:[%s1773_s0 + $0x38] sm:$0xff]   ;;  %v1355_v24 = vld [vmem:[%s1773_s0 + $0x40] sm:$0xff]  }
   0x9   :  { %v1354_v23 = vld [vmem:[%s1773_s0 + $0xb8] sm:$0xff]   ;;  %v1356_v25 = vld [vmem:[%s1773_s0 + $0xc0] sm:$0xff]   ;;  %v1357_v26 = vld [vmem:[%s1773_s0 + $0x48] sm:$0xff]  }
   0xa   :  { %v1358_v27 = vld [vmem:[%s1773_s0 + $0xc8] sm:$0xff]   ;;  %v1359_v28 = vld [vmem:[%s1773_s0 + $0x50] sm:$0xff]   ;;  %v1361_v30 = vld [vmem:[%s1773_s0 + $0x58] sm:$0xff]  }
   0xb   :  { %1240 = vmatpush3.bf16.msra.mxu0 %v1333_v2  ;;  %1325 = vmatpush3.bf16.msra.mxu1 %v1333_v2  ;;  %v1360_v29 = vld [vmem:[%s1773_s0 + $0xd0] sm:$0xff]   ;;  %v1362_v31 = vld [vmem:[%s1773_s0 + $0xd8] sm:$0xff]   ;;  %v1363_v32 = vld [vmem:[%s1773_s0 + $0x60] sm:$0xff]  }
   0xc   :  { %1241 = vmatprep.subr.bf16.mxu0 %v1334_v3  ;;  %1318 = vmatprep.subr.bf16.mxu1 %v1334_v3  ;;  %v1364_v33 = vld [vmem:[%s1773_s0 + $0xe0] sm:$0xff]   ;;  %v1365_v34 = vld [vmem:[%s1773_s0 + $0x68] sm:$0xff]   ;;  %v1367_v36 = vld [vmem:[%s1773_s0 + $0x70] sm:$0xff]  }
   0xd   :  { %v1366_v35 = vld [vmem:[%s1773_s0 + $0xe8] sm:$0xff]   ;;  %v1368_v37 = vld [vmem:[%s1773_s0 + $0xf0] sm:$0xff]   ;;  %v1369_v38 = vld [vmem:[%s1773_s0 + $0x78] sm:$0xff]  }
   0xe   :  { %v1370_v39 = vld [vmem:[%s1773_s0 + $0xf8] sm:$0xff]   ;;  %v1514_v40 = vld [vmem:[%s1774_s2] ss:$0 sm:$0xff] }
   0xf   :  { %1242 = vmatpush3.bf16.msra.mxu0 %v1334_v3  ;;  %1326 = vmatpush3.bf16.msra.mxu1 %v1334_v3 }
  0x10   :  { %1243 = vmatprep.subr.bf16.mxu0 %v1335_v6  ;;  %1319 = vmatprep.subr.bf16.mxu1 %v1335_v6 }
  0x13   :  { %1244 = vmatpush3.bf16.msra.mxu0 %v1335_v6  ;;  %1327 = vmatpush3.bf16.msra.mxu1 %v1335_v6 }
  0x14   :  { %1245 = vmatprep.subr.bf16.mxu0 %v1336_v7  ;;  %1320 = vmatprep.subr.bf16.mxu1 %v1336_v7 }
  0x17   :  { %1246 = vmatpush3.bf16.msra.mxu0 %v1336_v7  ;;  %1328 = vmatpush3.bf16.msra.mxu1 %v1336_v7 }
  0x18   :  { %1247 = vmatprep.subr.bf16.mxu0 %v1337_v8  ;;  %1321 = vmatprep.subr.bf16.mxu1 %v1337_v8 }
  0x1b   :  { %1248 = vmatpush3.bf16.msra.mxu0 %v1337_v8  ;;  %1329 = vmatpush3.bf16.msra.mxu1 %v1337_v8 }
  0x1c   :  { %1249 = vmatprep.subr.bf16.mxu0 %v1338_v9  ;;  %1322 = vmatprep.subr.bf16.mxu1 %v1338_v9 }
  0x1f   :  { %1250 = vmatpush3.bf16.msra.mxu0 %v1338_v9  ;;  %1330 = vmatpush3.bf16.msra.mxu1 %v1338_v9 }
  0x22   :  { %1252 = vmatmul.mubr.bf16.vlgmr.msra.gmra.mrb[0].mxu0 %v1341_v10  ;;  %1284 = vmatmul.mubr.bf16.vlgmr.msra.gmra.mrb[0].mxu1 %v1342_v11 }
  0x23   :  { %1255 = vmatprep.mubr.bf16.mxu0 %v1343_v12  ;;  %1287 = vmatprep.mubr.bf16.mxu1 %v1344_v13 }
  0x2a   :  { %1256 = vmatmul.mubr.bf16.gmra.mrb[4].mxu0 %v1345_v14  ;;  %1288 = vmatmul.mubr.bf16.gmra.mrb[4].mxu1 %v1346_v15 }
  0x2b   :  { %1259 = vmatprep.mubr.bf16.mxu0 %v1347_v16  ;;  %1291 = vmatprep.mubr.bf16.mxu1 %v1348_v17 }
  0x32   :  { %1260 = vmatmul.mubr.bf16.gmra.mrb[8].mxu0 %v1349_v18  ;;  %1292 = vmatmul.mubr.bf16.gmra.mrb[8].mxu1 %v1350_v19 }
  0x33   :  { %1263 = vmatprep.mubr.bf16.mxu0 %v1351_v20  ;;  %1295 = vmatprep.mubr.bf16.mxu1 %v1352_v21 }
  0x3a   :  { %1264 = vmatmul.mubr.bf16.gmra.mrb[12].mxu0 %v1353_v22  ;;  %1296 = vmatmul.mubr.bf16.gmra.mrb[12].mxu1 %v1354_v23 }
  0x3b   :  { %1267 = vmatprep.mubr.bf16.mxu0 %v1355_v24  ;;  %1299 = vmatprep.mubr.bf16.mxu1 %v1356_v25 }
  0x42   :  { %1268 = vmatmul.mubr.bf16.gmra.mrb[16].mxu0 %v1357_v26  ;;  %1300 = vmatmul.mubr.bf16.gmra.mrb[16].mxu1 %v1358_v27 }
  0x43   :  { %1271 = vmatprep.mubr.bf16.mxu0 %v1359_v28  ;;  %1303 = vmatprep.mubr.bf16.mxu1 %v1360_v29 }
  0x4a   :  { %1272 = vmatmul.mubr.bf16.gmra.mrb[20].mxu0 %v1361_v30  ;;  %1304 = vmatmul.mubr.bf16.gmra.mrb[20].mxu1 %v1362_v31 }
  0x4b   :  { %1275 = vmatprep.mubr.bf16.mxu0 %v1363_v32  ;;  %1307 = vmatprep.mubr.bf16.mxu1 %v1364_v33 }
  0x52   :  { %1276 = vmatmul.mubr.bf16.gmra.mrb[24].mxu0 %v1365_v34  ;;  %1308 = vmatmul.mubr.bf16.gmra.mrb[24].mxu1 %v1366_v35 }
  0x53   :  { %1279 = vmatprep.mubr.bf16.mxu0 %v1367_v36  ;;  %1311 = vmatprep.mubr.bf16.mxu1 %v1368_v37 }
  0x5a   :  { %1280 = vmatmul.mubr.bf16.gmra.mrb[28].mxu0 %v1369_v38  ;;  %1312 = vmatmul.mubr.bf16.gmra.mrb[28].mxu1 %v1370_v39 }
  0xf5   :  { %v1253_v41 = vpop.f32.mrb[0].mxu0  ;;  %v1285_v42 = vpop.f32.mrb[0].mxu1 }
  0xf6   :  { %v960_v43 = vadd.f32 %v1253_v41, %v1514_v40  ;;  %v992_v44 = vadd.f32 %v1285_v42, %v1514_v40  ;;  %v501_v45 = vpop.f32.mrb[1].mxu0  ;;  %v629_v46 = vpop.f32.mrb[1].mxu1 }
  0xf7   :  { %v958_v47 = vadd.f32 %v1514_v40, %v501_v45  ;;  %v990_v48 = vadd.f32 %v1514_v40, %v629_v46  ;;  %v1254_v49 = vpop.f32.mrb[2].mxu0  ;;  %v1286_v50 = vpop.f32.mrb[2].mxu1 }
  0xf8   :  { %v1024_v51 = vmax.f32 %v960_v43, 0.0  ;;  %v1056_v52 = vmax.f32 %v992_v44, 0.0  ;;  %v961_v53 = vadd.f32 %v1254_v49, %v1514_v40  ;;  %v993_v54 = vadd.f32 %v1286_v50, %v1514_v40  ;;  %v504_v55 = vpop.f32.mrb[3].mxu0  ;;  %v632_v56 = vpop.f32.mrb[3].mxu1 }
  0xf9   :  { %v1022_v57 = vmax.f32 %v958_v47, 0.0  ;;  %v1054_v58 = vmax.f32 %v990_v48, 0.0  ;;  %v959_v59 = vadd.f32 %v1514_v40, %v504_v55  ;;  %v991_v60 = vadd.f32 %v1514_v40, %v632_v56 }
  0xfa   :  { %1088 = vst [vmem:[%s1775_s3 + $0x10] sm:$0xff] %v1024_v51  ;;  %1120 = vst [vmem:[%s1775_s3 + $0x110] sm:$0xff] %v1056_v52  ;;  %v1025_v61 = vmax.f32 %v961_v53, 0.0  ;;  %v1057_v62 = vmax.f32 %v993_v54, 0.0 }
  0xfb   :  { %1086 = vst [vmem:[%s1775_s3] sm:$0xff] %v1022_v57  ;;  %1118 = vst [vmem:[%s1775_s3 + $0x100] sm:$0xff] %v1054_v58  ;;  %v1023_v63 = vmax.f32 %v959_v59, 0.0  ;;  %v1055_v0 = vmax.f32 %v991_v60, 0.0 }
  0xfc   :  { %1089 = vst [vmem:[%s1775_s3 + $0x18] sm:$0xff] %v1025_v61  ;;  %1121 = vst [vmem:[%s1775_s3 + $0x118] sm:$0xff] %v1057_v62 }
  0xfd   :  { %1087 = vst [vmem:[%s1775_s3 + $0x8] sm:$0xff] %v1023_v63  ;;  %1119 = vst [vmem:[%s1775_s3 + $0x108] sm:$0xff] %v1055_v0  ;;  %v1257_v1 = vpop.f32.mrb[4].mxu0  ;;  %v1289_v2 = vpop.f32.mrb[4].mxu1 }
  0xfe   :  { %v964_v3 = vadd.f32 %v1257_v1, %v1514_v40  ;;  %v996_v4 = vadd.f32 %v1289_v2, %v1514_v40  ;;  %v517_v5 = vpop.f32.mrb[5].mxu0  ;;  %v645_v6 = vpop.f32.mrb[5].mxu1 }
  0xff   :  { %v962_v7 = vadd.f32 %v1514_v40, %v517_v5  ;;  %v994_v8 = vadd.f32 %v1514_v40, %v645_v6  ;;  %v1258_v9 = vpop.f32.mrb[6].mxu0  ;;  %v1290_v10 = vpop.f32.mrb[6].mxu1 }
 0x100   :  { %v1028_v11 = vmax.f32 %v964_v3, 0.0  ;;  %v1060_v12 = vmax.f32 %v996_v4, 0.0  ;;  %v965_v13 = vadd.f32 %v1258_v9, %v1514_v40  ;;  %v997_v14 = vadd.f32 %v1290_v10, %v1514_v40  ;;  %v520_v15 = vpop.f32.mrb[7].mxu0  ;;  %v648_v16 = vpop.f32.mrb[7].mxu1 }
 0x101   :  { %v1026_v17 = vmax.f32 %v962_v7, 0.0  ;;  %v1058_v18 = vmax.f32 %v994_v8, 0.0  ;;  %v963_v19 = vadd.f32 %v1514_v40, %v520_v15  ;;  %v995_v20 = vadd.f32 %v1514_v40, %v648_v16 }
 0x102   :  { %1092 = vst [vmem:[%s1775_s3 + $0x30] sm:$0xff] %v1028_v11  ;;  %1124 = vst [vmem:[%s1775_s3 + $0x130] sm:$0xff] %v1060_v12  ;;  %v1029_v21 = vmax.f32 %v965_v13, 0.0  ;;  %v1061_v22 = vmax.f32 %v997_v14, 0.0 }
 0x103   :  { %1090 = vst [vmem:[%s1775_s3 + $0x20] sm:$0xff] %v1026_v17  ;;  %1122 = vst [vmem:[%s1775_s3 + $0x120] sm:$0xff] %v1058_v18  ;;  %v1027_v23 = vmax.f32 %v963_v19, 0.0  ;;  %v1059_v24 = vmax.f32 %v995_v20, 0.0 }
 0x104   :  { %1093 = vst [vmem:[%s1775_s3 + $0x38] sm:$0xff] %v1029_v21  ;;  %1125 = vst [vmem:[%s1775_s3 + $0x138] sm:$0xff] %v1061_v22 }
 0x105   :  { %1091 = vst [vmem:[%s1775_s3 + $0x28] sm:$0xff] %v1027_v23  ;;  %1123 = vst [vmem:[%s1775_s3 + $0x128] sm:$0xff] %v1059_v24  ;;  %v1261_v25 = vpop.f32.mrb[8].mxu0  ;;  %v1293_v26 = vpop.f32.mrb[8].mxu1 }
 0x106   :  { %v968_v27 = vadd.f32 %v1261_v25, %v1514_v40  ;;  %v1000_v28 = vadd.f32 %v1293_v26, %v1514_v40  ;;  %v533_v29 = vpop.f32.mrb[9].mxu0  ;;  %v661_v30 = vpop.f32.mrb[9].mxu1 }
 0x107   :  { %v966_v31 = vadd.f32 %v1514_v40, %v533_v29  ;;  %v998_v32 = vadd.f32 %v1514_v40, %v661_v30  ;;  %v1262_v33 = vpop.f32.mrb[10].mxu0  ;;  %v1294_v34 = vpop.f32.mrb[10].mxu1 }
 0x108   :  { %v1032_v35 = vmax.f32 %v968_v27, 0.0  ;;  %v1064_v36 = vmax.f32 %v1000_v28, 0.0  ;;  %v969_v37 = vadd.f32 %v1262_v33, %v1514_v40  ;;  %v1001_v38 = vadd.f32 %v1294_v34, %v1514_v40  ;;  %v536_v39 = vpop.f32.mrb[11].mxu0  ;;  %v664_v41 = vpop.f32.mrb[11].mxu1 }
 0x109   :  { %v1030_v42 = vmax.f32 %v966_v31, 0.0  ;;  %v1062_v43 = vmax.f32 %v998_v32, 0.0  ;;  %v967_v44 = vadd.f32 %v1514_v40, %v536_v39  ;;  %v999_v45 = vadd.f32 %v1514_v40, %v664_v41 }
 0x10a   :  { %1096 = vst [vmem:[%s1775_s3 + $0x50] sm:$0xff] %v1032_v35  ;;  %1128 = vst [vmem:[%s1775_s3 + $0x150] sm:$0xff] %v1064_v36  ;;  %v1033_v46 = vmax.f32 %v969_v37, 0.0  ;;  %v1065_v47 = vmax.f32 %v1001_v38, 0.0 }
 0x10b   :  { %1094 = vst [vmem:[%s1775_s3 + $0x40] sm:$0xff] %v1030_v42  ;;  %1126 = vst [vmem:[%s1775_s3 + $0x140] sm:$0xff] %v1062_v43  ;;  %v1031_v48 = vmax.f32 %v967_v44, 0.0  ;;  %v1063_v49 = vmax.f32 %v999_v45, 0.0 }
 0x10c   :  { %1097 = vst [vmem:[%s1775_s3 + $0x58] sm:$0xff] %v1033_v46  ;;  %1129 = vst [vmem:[%s1775_s3 + $0x158] sm:$0xff] %v1065_v47 }
 0x10d   :  { %1095 = vst [vmem:[%s1775_s3 + $0x48] sm:$0xff] %v1031_v48  ;;  %1127 = vst [vmem:[%s1775_s3 + $0x148] sm:$0xff] %v1063_v49  ;;  %v1265_v50 = vpop.f32.mrb[12].mxu0  ;;  %v1297_v51 = vpop.f32.mrb[12].mxu1 }
 0x10e   :  { %v972_v52 = vadd.f32 %v1265_v50, %v1514_v40  ;;  %v1004_v53 = vadd.f32 %v1297_v51, %v1514_v40  ;;  %v549_v54 = vpop.f32.mrb[13].mxu0  ;;  %v677_v55 = vpop.f32.mrb[13].mxu1 }
 0x10f   :  { %v970_v56 = vadd.f32 %v1514_v40, %v549_v54  ;;  %v1002_v57 = vadd.f32 %v1514_v40, %v677_v55  ;;  %v1266_v58 = vpop.f32.mrb[14].mxu0  ;;  %v1298_v59 = vpop.f32.mrb[14].mxu1 }
 0x110   :  { %v1036_v60 = vmax.f32 %v972_v52, 0.0  ;;  %v1068_v61 = vmax.f32 %v1004_v53, 0.0  ;;  %v973_v62 = vadd.f32 %v1266_v58, %v1514_v40  ;;  %v1005_v63 = vadd.f32 %v1298_v59, %v1514_v40  ;;  %v552_v0 = vpop.f32.mrb[15].mxu0  ;;  %v680_v1 = vpop.f32.mrb[15].mxu1 }
 0x111   :  { %v1034_v2 = vmax.f32 %v970_v56, 0.0  ;;  %v1066_v3 = vmax.f32 %v1002_v57, 0.0  ;;  %v971_v4 = vadd.f32 %v1514_v40, %v552_v0  ;;  %v1003_v5 = vadd.f32 %v1514_v40, %v680_v1 }
 0x112   :  { %1100 = vst [vmem:[%s1775_s3 + $0x70] sm:$0xff] %v1036_v60  ;;  %1132 = vst [vmem:[%s1775_s3 + $0x170] sm:$0xff] %v1068_v61  ;;  %v1037_v6 = vmax.f32 %v973_v62, 0.0  ;;  %v1069_v7 = vmax.f32 %v1005_v63, 0.0 }
 0x113   :  { %1098 = vst [vmem:[%s1775_s3 + $0x60] sm:$0xff] %v1034_v2  ;;  %1130 = vst [vmem:[%s1775_s3 + $0x160] sm:$0xff] %v1066_v3  ;;  %v1035_v8 = vmax.f32 %v971_v4, 0.0  ;;  %v1067_v9 = vmax.f32 %v1003_v5, 0.0 }
 0x114   :  { %1101 = vst [vmem:[%s1775_s3 + $0x78] sm:$0xff] %v1037_v6  ;;  %1133 = vst [vmem:[%s1775_s3 + $0x178] sm:$0xff] %v1069_v7 }
 0x115   :  { %1099 = vst [vmem:[%s1775_s3 + $0x68] sm:$0xff] %v1035_v8  ;;  %1131 = vst [vmem:[%s1775_s3 + $0x168] sm:$0xff] %v1067_v9  ;;  %v1269_v10 = vpop.f32.mrb[16].mxu0  ;;  %v1301_v11 = vpop.f32.mrb[16].mxu1 }
 0x116   :  { %v976_v12 = vadd.f32 %v1269_v10, %v1514_v40  ;;  %v1008_v13 = vadd.f32 %v1301_v11, %v1514_v40  ;;  %v565_v14 = vpop.f32.mrb[17].mxu0  ;;  %v693_v15 = vpop.f32.mrb[17].mxu1 }
 0x117   :  { %v974_v16 = vadd.f32 %v1514_v40, %v565_v14  ;;  %v1006_v17 = vadd.f32 %v1514_v40, %v693_v15  ;;  %v1270_v18 = vpop.f32.mrb[18].mxu0  ;;  %v1302_v19 = vpop.f32.mrb[18].mxu1 }
 0x118   :  { %v1040_v20 = vmax.f32 %v976_v12, 0.0  ;;  %v1072_v21 = vmax.f32 %v1008_v13, 0.0  ;;  %v977_v22 = vadd.f32 %v1270_v18, %v1514_v40  ;;  %v1009_v23 = vadd.f32 %v1302_v19, %v1514_v40  ;;  %v568_v24 = vpop.f32.mrb[19].mxu0  ;;  %v696_v25 = vpop.f32.mrb[19].mxu1 }
 0x119   :  { %v1038_v26 = vmax.f32 %v974_v16, 0.0  ;;  %v1070_v27 = vmax.f32 %v1006_v17, 0.0  ;;  %v975_v28 = vadd.f32 %v1514_v40, %v568_v24  ;;  %v1007_v29 = vadd.f32 %v1514_v40, %v696_v25 }
 0x11a   :  { %1104 = vst [vmem:[%s1775_s3 + $0x90] sm:$0xff] %v1040_v20  ;;  %1136 = vst [vmem:[%s1775_s3 + $0x190] sm:$0xff] %v1072_v21  ;;  %v1041_v30 = vmax.f32 %v977_v22, 0.0  ;;  %v1073_v31 = vmax.f32 %v1009_v23, 0.0 }
 0x11b   :  { %1102 = vst [vmem:[%s1775_s3 + $0x80] sm:$0xff] %v1038_v26  ;;  %1134 = vst [vmem:[%s1775_s3 + $0x180] sm:$0xff] %v1070_v27  ;;  %v1039_v32 = vmax.f32 %v975_v28, 0.0  ;;  %v1071_v33 = vmax.f32 %v1007_v29, 0.0 }
 0x11c   :  { %1105 = vst [vmem:[%s1775_s3 + $0x98] sm:$0xff] %v1041_v30  ;;  %1137 = vst [vmem:[%s1775_s3 + $0x198] sm:$0xff] %v1073_v31 }
 0x11d   :  { %1103 = vst [vmem:[%s1775_s3 + $0x88] sm:$0xff] %v1039_v32  ;;  %1135 = vst [vmem:[%s1775_s3 + $0x188] sm:$0xff] %v1071_v33  ;;  %v1273_v34 = vpop.f32.mrb[20].mxu0  ;;  %v1305_v35 = vpop.f32.mrb[20].mxu1 }
 0x11e   :  { %v980_v36 = vadd.f32 %v1273_v34, %v1514_v40  ;;  %v1012_v37 = vadd.f32 %v1305_v35, %v1514_v40  ;;  %v581_v38 = vpop.f32.mrb[21].mxu0  ;;  %v709_v39 = vpop.f32.mrb[21].mxu1 }
 0x11f   :  { %v978_v41 = vadd.f32 %v1514_v40, %v581_v38  ;;  %v1010_v42 = vadd.f32 %v1514_v40, %v709_v39  ;;  %v1274_v43 = vpop.f32.mrb[22].mxu0  ;;  %v1306_v44 = vpop.f32.mrb[22].mxu1 }
 0x120   :  { %v1044_v45 = vmax.f32 %v980_v36, 0.0  ;;  %v1076_v46 = vmax.f32 %v1012_v37, 0.0  ;;  %v981_v47 = vadd.f32 %v1274_v43, %v1514_v40  ;;  %v1013_v48 = vadd.f32 %v1306_v44, %v1514_v40  ;;  %v584_v49 = vpop.f32.mrb[23].mxu0  ;;  %v712_v50 = vpop.f32.mrb[23].mxu1 }
 0x121   :  { %v1042_v51 = vmax.f32 %v978_v41, 0.0  ;;  %v1074_v52 = vmax.f32 %v1010_v42, 0.0  ;;  %v979_v53 = vadd.f32 %v1514_v40, %v584_v49  ;;  %v1011_v54 = vadd.f32 %v1514_v40, %v712_v50 }
 0x122   :  { %1108 = vst [vmem:[%s1775_s3 + $0xb0] sm:$0xff] %v1044_v45  ;;  %1140 = vst [vmem:[%s1775_s3 + $0x1b0] sm:$0xff] %v1076_v46  ;;  %v1045_v55 = vmax.f32 %v981_v47, 0.0  ;;  %v1077_v56 = vmax.f32 %v1013_v48, 0.0 }
 0x123   :  { %1106 = vst [vmem:[%s1775_s3 + $0xa0] sm:$0xff] %v1042_v51  ;;  %1138 = vst [vmem:[%s1775_s3 + $0x1a0] sm:$0xff] %v1074_v52  ;;  %v1043_v57 = vmax.f32 %v979_v53, 0.0  ;;  %v1075_v58 = vmax.f32 %v1011_v54, 0.0 }
 0x124   :  { %1109 = vst [vmem:[%s1775_s3 + $0xb8] sm:$0xff] %v1045_v55  ;;  %1141 = vst [vmem:[%s1775_s3 + $0x1b8] sm:$0xff] %v1077_v56 }
 0x125   :  { %1107 = vst [vmem:[%s1775_s3 + $0xa8] sm:$0xff] %v1043_v57  ;;  %1139 = vst [vmem:[%s1775_s3 + $0x1a8] sm:$0xff] %v1075_v58  ;;  %v1277_v59 = vpop.f32.mrb[24].mxu0  ;;  %v1309_v60 = vpop.f32.mrb[24].mxu1 }
 0x126   :  { %v984_v61 = vadd.f32 %v1277_v59, %v1514_v40  ;;  %v1016_v62 = vadd.f32 %v1309_v60, %v1514_v40  ;;  %v597_v63 = vpop.f32.mrb[25].mxu0  ;;  %v725_v0 = vpop.f32.mrb[25].mxu1 }
 0x127   :  { %v982_v1 = vadd.f32 %v1514_v40, %v597_v63  ;;  %v1014_v2 = vadd.f32 %v1514_v40, %v725_v0  ;;  %v1278_v3 = vpop.f32.mrb[26].mxu0  ;;  %v1310_v4 = vpop.f32.mrb[26].mxu1 }
 0x128   :  { %v1048_v5 = vmax.f32 %v984_v61, 0.0  ;;  %v1080_v6 = vmax.f32 %v1016_v62, 0.0  ;;  %v985_v7 = vadd.f32 %v1278_v3, %v1514_v40  ;;  %v1017_v8 = vadd.f32 %v1310_v4, %v1514_v40  ;;  %v600_v9 = vpop.f32.mrb[27].mxu0  ;;  %v728_v10 = vpop.f32.mrb[27].mxu1 }
 0x129   :  { %v1046_v11 = vmax.f32 %v982_v1, 0.0  ;;  %v1078_v12 = vmax.f32 %v1014_v2, 0.0  ;;  %v983_v13 = vadd.f32 %v1514_v40, %v600_v9  ;;  %v1015_v14 = vadd.f32 %v1514_v40, %v728_v10 }
 0x12a   :  { %1112 = vst [vmem:[%s1775_s3 + $0xd0] sm:$0xff] %v1048_v5  ;;  %1144 = vst [vmem:[%s1775_s3 + $0x1d0] sm:$0xff] %v1080_v6  ;;  %v1049_v15 = vmax.f32 %v985_v7, 0.0  ;;  %v1081_v16 = vmax.f32 %v1017_v8, 0.0 }
 0x12b   :  { %1110 = vst [vmem:[%s1775_s3 + $0xc0] sm:$0xff] %v1046_v11  ;;  %1142 = vst [vmem:[%s1775_s3 + $0x1c0] sm:$0xff] %v1078_v12  ;;  %v1047_v17 = vmax.f32 %v983_v13, 0.0  ;;  %v1079_v18 = vmax.f32 %v1015_v14, 0.0 }
 0x12c   :  { %1113 = vst [vmem:[%s1775_s3 + $0xd8] sm:$0xff] %v1049_v15  ;;  %1145 = vst [vmem:[%s1775_s3 + $0x1d8] sm:$0xff] %v1081_v16 }
 0x12d   :  { %1111 = vst [vmem:[%s1775_s3 + $0xc8] sm:$0xff] %v1047_v17  ;;  %1143 = vst [vmem:[%s1775_s3 + $0x1c8] sm:$0xff] %v1079_v18  ;;  %v1281_v19 = vpop.f32.mrb[28].mxu0  ;;  %v1313_v20 = vpop.f32.mrb[28].mxu1 }
 0x12e   :  { %v988_v21 = vadd.f32 %v1281_v19, %v1514_v40  ;;  %v1020_v22 = vadd.f32 %v1313_v20, %v1514_v40  ;;  %v613_v23 = vpop.f32.mrb[29].mxu0  ;;  %v741_v24 = vpop.f32.mrb[29].mxu1 }
 0x12f   :  { %v986_v25 = vadd.f32 %v1514_v40, %v613_v23  ;;  %v1018_v26 = vadd.f32 %v1514_v40, %v741_v24  ;;  %v1282_v27 = vpop.f32.mrb[30].mxu0  ;;  %v1314_v28 = vpop.f32.mrb[30].mxu1 }
 0x130   :  { %v1052_v29 = vmax.f32 %v988_v21, 0.0  ;;  %v1084_v30 = vmax.f32 %v1020_v22, 0.0  ;;  %v989_v31 = vadd.f32 %v1282_v27, %v1514_v40  ;;  %v1021_v32 = vadd.f32 %v1314_v28, %v1514_v40  ;;  %v616_v33 = vpop.f32.mrb[31].mxu0  ;;  %v744_v34 = vpop.f32.mrb[31].mxu1 }
 0x131   :  { %v1050_v35 = vmax.f32 %v986_v25, 0.0  ;;  %v1082_v36 = vmax.f32 %v1018_v26, 0.0  ;;  %v987_v37 = vadd.f32 %v1514_v40, %v616_v33  ;;  %v1019_v38 = vadd.f32 %v1514_v40, %v744_v34 }
 0x132   :  { %1116 = vst [vmem:[%s1775_s3 + $0xf0] sm:$0xff] %v1052_v29  ;;  %1148 = vst [vmem:[%s1775_s3 + $0x1f0] sm:$0xff] %v1084_v30  ;;  %v1053_v39 = vmax.f32 %v989_v31, 0.0  ;;  %v1085_v41 = vmax.f32 %v1021_v32, 0.0 }
 0x133   :  { %1114 = vst [vmem:[%s1775_s3 + $0xe0] sm:$0xff] %v1050_v35  ;;  %1146 = vst [vmem:[%s1775_s3 + $0x1e0] sm:$0xff] %v1082_v36  ;;  %v1051_v42 = vmax.f32 %v987_v37, 0.0  ;;  %v1083_v40 = vmax.f32 %v1019_v38, 0.0 }
 0x134   :  { %1117 = vst [vmem:[%s1775_s3 + $0xf8] sm:$0xff] %v1053_v39  ;;  %1149 = vst [vmem:[%s1775_s3 + $0x1f8] sm:$0xff] %v1085_v41 }
 0x135   :  { %1115 = vst [vmem:[%s1775_s3 + $0xe8] sm:$0xff] %v1051_v42  ;;  %1147 = vst [vmem:[%s1775_s3 + $0x1e8] sm:$0xff] %v1083_v40 }

// kernel: _lambda_.64
= control target key start
LH: loop header
LB: loop body
LE: loop exit
PB: predicated region body
PF: predicated region fallthrough
CT: control target
= control target key end

     0   :  { %s1708_s1 = inlined_call_operand.vmem [shape: bf16[128,128], index: 1, kind: input, shape index: {}]   ;;  %s1709_s0 = inlined_call_operand.vmem [shape: bf16[512,128], index: 0, kind: input, shape index: {}]   ;;  %s1710_s2 = inlined_call_operand.vmem [shape: f32[1,128], index: 2, kind: input, shape index: {}]   ;;  %s1711_s3 = inlined_call_operand.vmem [shape: f32[512,128], index: 3, kind: output, shape index: {}]  }
   0x1   :  { %v1267_v0 = vld [vmem:[%s1708_s1] sm:$0xff]   ;;  %v1268_v1 = vld [vmem:[%s1708_s1 + $0x8] sm:$0xff]   ;;  %v1269_v2 = vld [vmem:[%s1708_s1 + $0x10] sm:$0xff]  }
   0x2   :  { %1171 = vmatprep.subr.bf16.mxu0 %v1267_v0  ;;  %1251 = vmatprep.subr.bf16.mxu1 %v1267_v0  ;;  %v1270_v3 = vld [vmem:[%s1708_s1 + $0x18] sm:$0xff]   ;;  %v1275_v4 = vld [vmem:[%s1709_s0] sm:$0xff]   ;;  %v1272_v7 = vld [vmem:[%s1708_s1 + $0x28] sm:$0xff]  }
   0x3   :  { %1172 = vmatpush3.bf16.msra.mxu0 %v1267_v0  ;;  %1259 = vmatpush3.bf16.msra.mxu1 %v1267_v0  ;;  %v1276_v5 = vld [vmem:[%s1709_s0 + $0x80] sm:$0xff]   ;;  %v1273_v8 = vld [vmem:[%s1708_s1 + $0x30] sm:$0xff]   ;;  %v1274_v9 = vld [vmem:[%s1708_s1 + $0x38] sm:$0xff]  }
   0x4   :  { %1173 = vmatprep.subr.bf16.mxu0 %v1268_v1  ;;  %1252 = vmatprep.subr.bf16.mxu1 %v1268_v1  ;;  %v1271_v6 = vld [vmem:[%s1708_s1 + $0x20] sm:$0xff]   ;;  %v1277_v10 = vld [vmem:[%s1709_s0 + $0x8] sm:$0xff]   ;;  %v1279_v12 = vld [vmem:[%s1709_s0 + $0x10] sm:$0xff]  }
   0x5   :  { %1187 = vmatprep.mubr.bf16.mxu0 %v1275_v4  ;;  %1219 = vmatprep.mubr.bf16.mxu1 %v1276_v5  ;;  %v1278_v11 = vld [vmem:[%s1709_s0 + $0x88] sm:$0xff]   ;;  %v1280_v13 = vld [vmem:[%s1709_s0 + $0x90] sm:$0xff]   ;;  %v1281_v14 = vld [vmem:[%s1709_s0 + $0x18] sm:$0xff]  }
   0x6   :  { %v1282_v15 = vld [vmem:[%s1709_s0 + $0x98] sm:$0xff]   ;;  %v1283_v16 = vld [vmem:[%s1709_s0 + $0x20] sm:$0xff]   ;;  %v1285_v18 = vld [vmem:[%s1709_s0 + $0x28] sm:$0xff]  }
   0x7   :  { %1174 = vmatpush3.bf16.msra.mxu0 %v1268_v1  ;;  %1260 = vmatpush3.bf16.msra.mxu1 %v1268_v1  ;;  %v1284_v17 = vld [vmem:[%s1709_s0 + $0xa0] sm:$0xff]   ;;  %v1286_v19 = vld [vmem:[%s1709_s0 + $0xa8] sm:$0xff]   ;;  %v1287_v20 = vld [vmem:[%s1709_s0 + $0x30] sm:$0xff]  }
   0x8   :  { %1175 = vmatprep.subr.bf16.mxu0 %v1269_v2  ;;  %1253 = vmatprep.subr.bf16.mxu1 %v1269_v2  ;;  %v1288_v21 = vld [vmem:[%s1709_s0 + $0xb0] sm:$0xff]   ;;  %v1289_v22 = vld [vmem:[%s1709_s0 + $0x38] sm:$0xff]   ;;  %v1291_v24 = vld [vmem:[%s1709_s0 + $0x40] sm:$0xff]  }
   0x9   :  { %v1290_v23 = vld [vmem:[%s1709_s0 + $0xb8] sm:$0xff]   ;;  %v1292_v25 = vld [vmem:[%s1709_s0 + $0xc0] sm:$0xff]   ;;  %v1293_v26 = vld [vmem:[%s1709_s0 + $0x48] sm:$0xff]  }
   0xa   :  { %v1294_v27 = vld [vmem:[%s1709_s0 + $0xc8] sm:$0xff]   ;;  %v1295_v28 = vld [vmem:[%s1709_s0 + $0x50] sm:$0xff]   ;;  %v1297_v30 = vld [vmem:[%s1709_s0 + $0x58] sm:$0xff]  }
   0xb   :  { %1176 = vmatpush3.bf16.msra.mxu0 %v1269_v2  ;;  %1261 = vmatpush3.bf16.msra.mxu1 %v1269_v2  ;;  %v1296_v29 = vld [vmem:[%s1709_s0 + $0xd0] sm:$0xff]   ;;  %v1298_v31 = vld [vmem:[%s1709_s0 + $0xd8] sm:$0xff]   ;;  %v1299_v32 = vld [vmem:[%s1709_s0 + $0x60] sm:$0xff]  }
   0xc   :  { %1177 = vmatprep.subr.bf16.mxu0 %v1270_v3  ;;  %1254 = vmatprep.subr.bf16.mxu1 %v1270_v3  ;;  %v1300_v33 = vld [vmem:[%s1709_s0 + $0xe0] sm:$0xff]   ;;  %v1301_v34 = vld [vmem:[%s1709_s0 + $0x68] sm:$0xff]   ;;  %v1303_v36 = vld [vmem:[%s1709_s0 + $0x70] sm:$0xff]  }
   0xd   :  { %v1302_v35 = vld [vmem:[%s1709_s0 + $0xe8] sm:$0xff]   ;;  %v1304_v37 = vld [vmem:[%s1709_s0 + $0xf0] sm:$0xff]   ;;  %v1305_v38 = vld [vmem:[%s1709_s0 + $0x78] sm:$0xff]  }
   0xe   :  { %v1306_v39 = vld [vmem:[%s1709_s0 + $0xf8] sm:$0xff]   ;;  %v1450_v40 = vld [vmem:[%s1710_s2] ss:$0 sm:$0xff] }
   0xf   :  { %1178 = vmatpush3.bf16.msra.mxu0 %v1270_v3  ;;  %1262 = vmatpush3.bf16.msra.mxu1 %v1270_v3 }
  0x10   :  { %1179 = vmatprep.subr.bf16.mxu0 %v1271_v6  ;;  %1255 = vmatprep.subr.bf16.mxu1 %v1271_v6 }
  0x13   :  { %1180 = vmatpush3.bf16.msra.mxu0 %v1271_v6  ;;  %1263 = vmatpush3.bf16.msra.mxu1 %v1271_v6 }
  0x14   :  { %1181 = vmatprep.subr.bf16.mxu0 %v1272_v7  ;;  %1256 = vmatprep.subr.bf16.mxu1 %v1272_v7 }
  0x17   :  { %1182 = vmatpush3.bf16.msra.mxu0 %v1272_v7  ;;  %1264 = vmatpush3.bf16.msra.mxu1 %v1272_v7 }
  0x18   :  { %1183 = vmatprep.subr.bf16.mxu0 %v1273_v8  ;;  %1257 = vmatprep.subr.bf16.mxu1 %v1273_v8 }
  0x1b   :  { %1184 = vmatpush3.bf16.msra.mxu0 %v1273_v8  ;;  %1265 = vmatpush3.bf16.msra.mxu1 %v1273_v8 }
  0x1c   :  { %1185 = vmatprep.subr.bf16.mxu0 %v1274_v9  ;;  %1258 = vmatprep.subr.bf16.mxu1 %v1274_v9 }
  0x1f   :  { %1186 = vmatpush3.bf16.msra.mxu0 %v1274_v9  ;;  %1266 = vmatpush3.bf16.msra.mxu1 %v1274_v9 }
  0x22   :  { %1188 = vmatmul.mubr.bf16.vlgmr.msra.gmra.mrb[0].mxu0 %v1277_v10  ;;  %1220 = vmatmul.mubr.bf16.vlgmr.msra.gmra.mrb[0].mxu1 %v1278_v11 }
  0x23   :  { %1191 = vmatprep.mubr.bf16.mxu0 %v1279_v12  ;;  %1223 = vmatprep.mubr.bf16.mxu1 %v1280_v13 }
  0x2a   :  { %1192 = vmatmul.mubr.bf16.gmra.mrb[4].mxu0 %v1281_v14  ;;  %1224 = vmatmul.mubr.bf16.gmra.mrb[4].mxu1 %v1282_v15 }
  0x2b   :  { %1195 = vmatprep.mubr.bf16.mxu0 %v1283_v16  ;;  %1227 = vmatprep.mubr.bf16.mxu1 %v1284_v17 }
  0x32   :  { %1196 = vmatmul.mubr.bf16.gmra.mrb[8].mxu0 %v1285_v18  ;;  %1228 = vmatmul.mubr.bf16.gmra.mrb[8].mxu1 %v1286_v19 }
  0x33   :  { %1199 = vmatprep.mubr.bf16.mxu0 %v1287_v20  ;;  %1231 = vmatprep.mubr.bf16.mxu1 %v1288_v21 }
  0x3a   :  { %1200 = vmatmul.mubr.bf16.gmra.mrb[12].mxu0 %v1289_v22  ;;  %1232 = vmatmul.mubr.bf16.gmra.mrb[12].mxu1 %v1290_v23 }
  0x3b   :  { %1203 = vmatprep.mubr.bf16.mxu0 %v1291_v24  ;;  %1235 = vmatprep.mubr.bf16.mxu1 %v1292_v25 }
  0x42   :  { %1204 = vmatmul.mubr.bf16.gmra.mrb[16].mxu0 %v1293_v26  ;;  %1236 = vmatmul.mubr.bf16.gmra.mrb[16].mxu1 %v1294_v27 }
  0x43   :  { %1207 = vmatprep.mubr.bf16.mxu0 %v1295_v28  ;;  %1239 = vmatprep.mubr.bf16.mxu1 %v1296_v29 }
  0x4a   :  { %1208 = vmatmul.mubr.bf16.gmra.mrb[20].mxu0 %v1297_v30  ;;  %1240 = vmatmul.mubr.bf16.gmra.mrb[20].mxu1 %v1298_v31 }
  0x4b   :  { %1211 = vmatprep.mubr.bf16.mxu0 %v1299_v32  ;;  %1243 = vmatprep.mubr.bf16.mxu1 %v1300_v33 }
  0x52   :  { %1212 = vmatmul.mubr.bf16.gmra.mrb[24].mxu0 %v1301_v34  ;;  %1244 = vmatmul.mubr.bf16.gmra.mrb[24].mxu1 %v1302_v35 }
  0x53   :  { %1215 = vmatprep.mubr.bf16.mxu0 %v1303_v36  ;;  %1247 = vmatprep.mubr.bf16.mxu1 %v1304_v37 }
  0x5a   :  { %1216 = vmatmul.mubr.bf16.gmra.mrb[28].mxu0 %v1305_v38  ;;  %1248 = vmatmul.mubr.bf16.gmra.mrb[28].mxu1 %v1306_v39 }
  0xf5   :  { %v1189_v41 = vpop.f32.mrb[0].mxu0  ;;  %v1221_v42 = vpop.f32.mrb[0].mxu1 }
  0xf6   :  { %v960_v43 = vadd.f32 %v1189_v41, %v1450_v40  ;;  %v992_v44 = vadd.f32 %v1221_v42, %v1450_v40  ;;  %v501_v45 = vpop.f32.mrb[1].mxu0  ;;  %v629_v46 = vpop.f32.mrb[1].mxu1 }
  0xf7   :  { %v958_v47 = vadd.f32 %v1450_v40, %v501_v45  ;;  %v990_v48 = vadd.f32 %v1450_v40, %v629_v46  ;;  %v1190_v49 = vpop.f32.mrb[2].mxu0  ;;  %v1222_v50 = vpop.f32.mrb[2].mxu1 }
  0xf8   :  { %1024 = vst [vmem:[%s1711_s3 + $0x10] sm:$0xff] %v960_v43  ;;  %1056 = vst [vmem:[%s1711_s3 + $0x110] sm:$0xff] %v992_v44  ;;  %v961_v51 = vadd.f32 %v1190_v49, %v1450_v40  ;;  %v993_v52 = vadd.f32 %v1222_v50, %v1450_v40  ;;  %v504_v53 = vpop.f32.mrb[3].mxu0  ;;  %v632_v54 = vpop.f32.mrb[3].mxu1 }
  0xf9   :  { %1022 = vst [vmem:[%s1711_s3] sm:$0xff] %v958_v47  ;;  %1054 = vst [vmem:[%s1711_s3 + $0x100] sm:$0xff] %v990_v48  ;;  %v959_v55 = vadd.f32 %v1450_v40, %v504_v53  ;;  %v991_v56 = vadd.f32 %v1450_v40, %v632_v54 }
  0xfa   :  { %1025 = vst [vmem:[%s1711_s3 + $0x18] sm:$0xff] %v961_v51  ;;  %1057 = vst [vmem:[%s1711_s3 + $0x118] sm:$0xff] %v993_v52 }
  0xfb   :  { %1023 = vst [vmem:[%s1711_s3 + $0x8] sm:$0xff] %v959_v55  ;;  %1055 = vst [vmem:[%s1711_s3 + $0x108] sm:$0xff] %v991_v56 }
  0xfd   :  { %v1193_v57 = vpop.f32.mrb[4].mxu0  ;;  %v1225_v58 = vpop.f32.mrb[4].mxu1 }
  0xfe   :  { %v964_v59 = vadd.f32 %v1193_v57, %v1450_v40  ;;  %v996_v60 = vadd.f32 %v1225_v58, %v1450_v40  ;;  %v517_v61 = vpop.f32.mrb[5].mxu0  ;;  %v645_v62 = vpop.f32.mrb[5].mxu1 }
  0xff   :  { %v962_v63 = vadd.f32 %v1450_v40, %v517_v61  ;;  %v994_v0 = vadd.f32 %v1450_v40, %v645_v62  ;;  %v1194_v1 = vpop.f32.mrb[6].mxu0  ;;  %v1226_v2 = vpop.f32.mrb[6].mxu1 }
 0x100   :  { %1028 = vst [vmem:[%s1711_s3 + $0x30] sm:$0xff] %v964_v59  ;;  %1060 = vst [vmem:[%s1711_s3 + $0x130] sm:$0xff] %v996_v60  ;;  %v965_v3 = vadd.f32 %v1194_v1, %v1450_v40  ;;  %v997_v4 = vadd.f32 %v1226_v2, %v1450_v40  ;;  %v520_v5 = vpop.f32.mrb[7].mxu0  ;;  %v648_v6 = vpop.f32.mrb[7].mxu1 }
 0x101   :  { %1026 = vst [vmem:[%s1711_s3 + $0x20] sm:$0xff] %v962_v63  ;;  %1058 = vst [vmem:[%s1711_s3 + $0x120] sm:$0xff] %v994_v0  ;;  %v963_v7 = vadd.f32 %v1450_v40, %v520_v5  ;;  %v995_v8 = vadd.f32 %v1450_v40, %v648_v6 }
 0x102   :  { %1029 = vst [vmem:[%s1711_s3 + $0x38] sm:$0xff] %v965_v3  ;;  %1061 = vst [vmem:[%s1711_s3 + $0x138] sm:$0xff] %v997_v4 }
 0x103   :  { %1027 = vst [vmem:[%s1711_s3 + $0x28] sm:$0xff] %v963_v7  ;;  %1059 = vst [vmem:[%s1711_s3 + $0x128] sm:$0xff] %v995_v8 }
 0x105   :  { %v1197_v9 = vpop.f32.mrb[8].mxu0  ;;  %v1229_v10 = vpop.f32.mrb[8].mxu1 }
 0x106   :  { %v968_v11 = vadd.f32 %v1197_v9, %v1450_v40  ;;  %v1000_v12 = vadd.f32 %v1229_v10, %v1450_v40  ;;  %v533_v13 = vpop.f32.mrb[9].mxu0  ;;  %v661_v14 = vpop.f32.mrb[9].mxu1 }
 0x107   :  { %v966_v15 = vadd.f32 %v1450_v40, %v533_v13  ;;  %v998_v16 = vadd.f32 %v1450_v40, %v661_v14  ;;  %v1198_v17 = vpop.f32.mrb[10].mxu0  ;;  %v1230_v18 = vpop.f32.mrb[10].mxu1 }
 0x108   :  { %1032 = vst [vmem:[%s1711_s3 + $0x50] sm:$0xff] %v968_v11  ;;  %1064 = vst [vmem:[%s1711_s3 + $0x150] sm:$0xff] %v1000_v12  ;;  %v969_v19 = vadd.f32 %v1198_v17, %v1450_v40  ;;  %v1001_v20 = vadd.f32 %v1230_v18, %v1450_v40  ;;  %v536_v21 = vpop.f32.mrb[11].mxu0  ;;  %v664_v22 = vpop.f32.mrb[11].mxu1 }
 0x109   :  { %1030 = vst [vmem:[%s1711_s3 + $0x40] sm:$0xff] %v966_v15  ;;  %1062 = vst [vmem:[%s1711_s3 + $0x140] sm:$0xff] %v998_v16  ;;  %v967_v23 = vadd.f32 %v1450_v40, %v536_v21  ;;  %v999_v24 = vadd.f32 %v1450_v40, %v664_v22 }
 0x10a   :  { %1033 = vst [vmem:[%s1711_s3 + $0x58] sm:$0xff] %v969_v19  ;;  %1065 = vst [vmem:[%s1711_s3 + $0x158] sm:$0xff] %v1001_v20 }
 0x10b   :  { %1031 = vst [vmem:[%s1711_s3 + $0x48] sm:$0xff] %v967_v23  ;;  %1063 = vst [vmem:[%s1711_s3 + $0x148] sm:$0xff] %v999_v24 }
 0x10d   :  { %v1201_v25 = vpop.f32.mrb[12].mxu0  ;;  %v1233_v26 = vpop.f32.mrb[12].mxu1 }
 0x10e   :  { %v972_v27 = vadd.f32 %v1201_v25, %v1450_v40  ;;  %v1004_v28 = vadd.f32 %v1233_v26, %v1450_v40  ;;  %v549_v29 = vpop.f32.mrb[13].mxu0  ;;  %v677_v30 = vpop.f32.mrb[13].mxu1 }
 0x10f   :  { %v970_v31 = vadd.f32 %v1450_v40, %v549_v29  ;;  %v1002_v32 = vadd.f32 %v1450_v40, %v677_v30  ;;  %v1202_v33 = vpop.f32.mrb[14].mxu0  ;;  %v1234_v34 = vpop.f32.mrb[14].mxu1 }
 0x110   :  { %1036 = vst [vmem:[%s1711_s3 + $0x70] sm:$0xff] %v972_v27  ;;  %1068 = vst [vmem:[%s1711_s3 + $0x170] sm:$0xff] %v1004_v28  ;;  %v973_v35 = vadd.f32 %v1202_v33, %v1450_v40  ;;  %v1005_v36 = vadd.f32 %v1234_v34, %v1450_v40  ;;  %v552_v37 = vpop.f32.mrb[15].mxu0  ;;  %v680_v38 = vpop.f32.mrb[15].mxu1 }
 0x111   :  { %1034 = vst [vmem:[%s1711_s3 + $0x60] sm:$0xff] %v970_v31  ;;  %1066 = vst [vmem:[%s1711_s3 + $0x160] sm:$0xff] %v1002_v32  ;;  %v971_v39 = vadd.f32 %v1450_v40, %v552_v37  ;;  %v1003_v41 = vadd.f32 %v1450_v40, %v680_v38 }
 0x112   :  { %1037 = vst [vmem:[%s1711_s3 + $0x78] sm:$0xff] %v973_v35  ;;  %1069 = vst [vmem:[%s1711_s3 + $0x178] sm:$0xff] %v1005_v36 }
 0x113   :  { %1035 = vst [vmem:[%s1711_s3 + $0x68] sm:$0xff] %v971_v39  ;;  %1067 = vst [vmem:[%s1711_s3 + $0x168] sm:$0xff] %v1003_v41 }
 0x115   :  { %v1205_v42 = vpop.f32.mrb[16].mxu0  ;;  %v1237_v43 = vpop.f32.mrb[16].mxu1 }
 0x116   :  { %v976_v44 = vadd.f32 %v1205_v42, %v1450_v40  ;;  %v1008_v45 = vadd.f32 %v1237_v43, %v1450_v40  ;;  %v565_v46 = vpop.f32.mrb[17].mxu0  ;;  %v693_v47 = vpop.f32.mrb[17].mxu1 }
 0x117   :  { %v974_v48 = vadd.f32 %v1450_v40, %v565_v46  ;;  %v1006_v49 = vadd.f32 %v1450_v40, %v693_v47  ;;  %v1206_v50 = vpop.f32.mrb[18].mxu0  ;;  %v1238_v51 = vpop.f32.mrb[18].mxu1 }
 0x118   :  { %1040 = vst [vmem:[%s1711_s3 + $0x90] sm:$0xff] %v976_v44  ;;  %1072 = vst [vmem:[%s1711_s3 + $0x190] sm:$0xff] %v1008_v45  ;;  %v977_v52 = vadd.f32 %v1206_v50, %v1450_v40  ;;  %v1009_v53 = vadd.f32 %v1238_v51, %v1450_v40  ;;  %v568_v54 = vpop.f32.mrb[19].mxu0  ;;  %v696_v55 = vpop.f32.mrb[19].mxu1 }
 0x119   :  { %1038 = vst [vmem:[%s1711_s3 + $0x80] sm:$0xff] %v974_v48  ;;  %1070 = vst [vmem:[%s1711_s3 + $0x180] sm:$0xff] %v1006_v49  ;;  %v975_v56 = vadd.f32 %v1450_v40, %v568_v54  ;;  %v1007_v57 = vadd.f32 %v1450_v40, %v696_v55 }
 0x11a   :  { %1041 = vst [vmem:[%s1711_s3 + $0x98] sm:$0xff] %v977_v52  ;;  %1073 = vst [vmem:[%s1711_s3 + $0x198] sm:$0xff] %v1009_v53 }
 0x11b   :  { %1039 = vst [vmem:[%s1711_s3 + $0x88] sm:$0xff] %v975_v56  ;;  %1071 = vst [vmem:[%s1711_s3 + $0x188] sm:$0xff] %v1007_v57 }
 0x11d   :  { %v1209_v58 = vpop.f32.mrb[20].mxu0  ;;  %v1241_v59 = vpop.f32.mrb[20].mxu1 }
 0x11e   :  { %v980_v60 = vadd.f32 %v1209_v58, %v1450_v40  ;;  %v1012_v61 = vadd.f32 %v1241_v59, %v1450_v40  ;;  %v581_v62 = vpop.f32.mrb[21].mxu0  ;;  %v709_v63 = vpop.f32.mrb[21].mxu1 }
 0x11f   :  { %v978_v0 = vadd.f32 %v1450_v40, %v581_v62  ;;  %v1010_v1 = vadd.f32 %v1450_v40, %v709_v63  ;;  %v1210_v2 = vpop.f32.mrb[22].mxu0  ;;  %v1242_v3 = vpop.f32.mrb[22].mxu1 }
 0x120   :  { %1044 = vst [vmem:[%s1711_s3 + $0xb0] sm:$0xff] %v980_v60  ;;  %1076 = vst [vmem:[%s1711_s3 + $0x1b0] sm:$0xff] %v1012_v61  ;;  %v981_v4 = vadd.f32 %v1210_v2, %v1450_v40  ;;  %v1013_v5 = vadd.f32 %v1242_v3, %v1450_v40  ;;  %v584_v6 = vpop.f32.mrb[23].mxu0  ;;  %v712_v7 = vpop.f32.mrb[23].mxu1 }
 0x121   :  { %1042 = vst [vmem:[%s1711_s3 + $0xa0] sm:$0xff] %v978_v0  ;;  %1074 = vst [vmem:[%s1711_s3 + $0x1a0] sm:$0xff] %v1010_v1  ;;  %v979_v8 = vadd.f32 %v1450_v40, %v584_v6  ;;  %v1011_v9 = vadd.f32 %v1450_v40, %v712_v7 }
 0x122   :  { %1045 = vst [vmem:[%s1711_s3 + $0xb8] sm:$0xff] %v981_v4  ;;  %1077 = vst [vmem:[%s1711_s3 + $0x1b8] sm:$0xff] %v1013_v5 }
 0x123   :  { %1043 = vst [vmem:[%s1711_s3 + $0xa8] sm:$0xff] %v979_v8  ;;  %1075 = vst [vmem:[%s1711_s3 + $0x1a8] sm:$0xff] %v1011_v9 }
 0x125   :  { %v1213_v10 = vpop.f32.mrb[24].mxu0  ;;  %v1245_v11 = vpop.f32.mrb[24].mxu1 }
 0x126   :  { %v984_v12 = vadd.f32 %v1213_v10, %v1450_v40  ;;  %v1016_v13 = vadd.f32 %v1245_v11, %v1450_v40  ;;  %v597_v14 = vpop.f32.mrb[25].mxu0  ;;  %v725_v15 = vpop.f32.mrb[25].mxu1 }
 0x127   :  { %v982_v16 = vadd.f32 %v1450_v40, %v597_v14  ;;  %v1014_v17 = vadd.f32 %v1450_v40, %v725_v15  ;;  %v1214_v18 = vpop.f32.mrb[26].mxu0  ;;  %v1246_v19 = vpop.f32.mrb[26].mxu1 }
 0x128   :  { %1048 = vst [vmem:[%s1711_s3 + $0xd0] sm:$0xff] %v984_v12  ;;  %1080 = vst [vmem:[%s1711_s3 + $0x1d0] sm:$0xff] %v1016_v13  ;;  %v985_v20 = vadd.f32 %v1214_v18, %v1450_v40  ;;  %v1017_v21 = vadd.f32 %v1246_v19, %v1450_v40  ;;  %v600_v22 = vpop.f32.mrb[27].mxu0  ;;  %v728_v23 = vpop.f32.mrb[27].mxu1 }
 0x129   :  { %1046 = vst [vmem:[%s1711_s3 + $0xc0] sm:$0xff] %v982_v16  ;;  %1078 = vst [vmem:[%s1711_s3 + $0x1c0] sm:$0xff] %v1014_v17  ;;  %v983_v24 = vadd.f32 %v1450_v40, %v600_v22  ;;  %v1015_v25 = vadd.f32 %v1450_v40, %v728_v23 }
 0x12a   :  { %1049 = vst [vmem:[%s1711_s3 + $0xd8] sm:$0xff] %v985_v20  ;;  %1081 = vst [vmem:[%s1711_s3 + $0x1d8] sm:$0xff] %v1017_v21 }
 0x12b   :  { %1047 = vst [vmem:[%s1711_s3 + $0xc8] sm:$0xff] %v983_v24  ;;  %1079 = vst [vmem:[%s1711_s3 + $0x1c8] sm:$0xff] %v1015_v25 }
 0x12d   :  { %v1217_v26 = vpop.f32.mrb[28].mxu0  ;;  %v1249_v27 = vpop.f32.mrb[28].mxu1 }
 0x12e   :  { %v988_v28 = vadd.f32 %v1217_v26, %v1450_v40  ;;  %v1020_v29 = vadd.f32 %v1249_v27, %v1450_v40  ;;  %v613_v30 = vpop.f32.mrb[29].mxu0  ;;  %v741_v31 = vpop.f32.mrb[29].mxu1 }
 0x12f   :  { %v986_v32 = vadd.f32 %v1450_v40, %v613_v30  ;;  %v1018_v33 = vadd.f32 %v1450_v40, %v741_v31  ;;  %v1218_v34 = vpop.f32.mrb[30].mxu0  ;;  %v1250_v35 = vpop.f32.mrb[30].mxu1 }
 0x130   :  { %1052 = vst [vmem:[%s1711_s3 + $0xf0] sm:$0xff] %v988_v28  ;;  %1084 = vst [vmem:[%s1711_s3 + $0x1f0] sm:$0xff] %v1020_v29  ;;  %v989_v36 = vadd.f32 %v1218_v34, %v1450_v40  ;;  %v1021_v37 = vadd.f32 %v1250_v35, %v1450_v40  ;;  %v616_v38 = vpop.f32.mrb[31].mxu0  ;;  %v744_v39 = vpop.f32.mrb[31].mxu1 }
 0x131   :  { %1050 = vst [vmem:[%s1711_s3 + $0xe0] sm:$0xff] %v986_v32  ;;  %1082 = vst [vmem:[%s1711_s3 + $0x1e0] sm:$0xff] %v1018_v33  ;;  %v987_v41 = vadd.f32 %v1450_v40, %v616_v38  ;;  %v1019_v42 = vadd.f32 %v1450_v40, %v744_v39 }
 0x132   :  { %1053 = vst [vmem:[%s1711_s3 + $0xf8] sm:$0xff] %v989_v36  ;;  %1085 = vst [vmem:[%s1711_s3 + $0x1f8] sm:$0xff] %v1021_v37 }
 0x133   :  { %1051 = vst [vmem:[%s1711_s3 + $0xe8] sm:$0xff] %v987_v41  ;;  %1083 = vst [vmem:[%s1711_s3 + $0x1e8] sm:$0xff] %v1019_v42 }

// kernel: _lambda_.74
= control target key start
LH: loop header
LB: loop body
LE: loop exit
PB: predicated region body
PF: predicated region fallthrough
CT: control target
= control target key end

     0   :  { %s586_s1 = inlined_call_operand.vmem [shape: bf16[128,128], index: 1, kind: input, shape index: {}]   ;;  %s587_s0 = inlined_call_operand.vmem [shape: bf16[128,128], index: 0, kind: input, shape index: {}]   ;;  %s588_s2 = inlined_call_operand.vmem [shape: f32[1,128], index: 2, kind: input, shape index: {}]   ;;  %s589_s3 = inlined_call_operand.vmem [shape: f32[128,128], index: 3, kind: output, shape index: {}]  }
   0x1   :  { %v451_v0 = vld [vmem:[%s586_s1] sm:$0xff]   ;;  %v452_v1 = vld [vmem:[%s586_s1 + $0x8] sm:$0xff]   ;;  %v453_v2 = vld [vmem:[%s586_s1 + $0x10] sm:$0xff]  }
   0x2   :  { %403 = vmatprep.subr.bf16.mxu0 %v451_v0  ;;  %435 = vmatprep.subr.bf16.mxu1 %v451_v0  ;;  %v454_v3 = vld [vmem:[%s586_s1 + $0x18] sm:$0xff]   ;;  %v459_v4 = vld [vmem:[%s587_s0] sm:$0xff]   ;;  %v456_v7 = vld [vmem:[%s586_s1 + $0x28] sm:$0xff]  }
   0x3   :  { %404 = vmatpush3.bf16.msra.mxu0 %v451_v0  ;;  %443 = vmatpush3.bf16.msra.mxu1 %v451_v0  ;;  %v460_v5 = vld [vmem:[%s587_s0 + $0x20] sm:$0xff]   ;;  %v457_v8 = vld [vmem:[%s586_s1 + $0x30] sm:$0xff]   ;;  %v458_v9 = vld [vmem:[%s586_s1 + $0x38] sm:$0xff]  }
   0x4   :  { %405 = vmatprep.subr.bf16.mxu0 %v452_v1  ;;  %436 = vmatprep.subr.bf16.mxu1 %v452_v1  ;;  %v455_v6 = vld [vmem:[%s586_s1 + $0x20] sm:$0xff]   ;;  %v461_v10 = vld [vmem:[%s587_s0 + $0x8] sm:$0xff]   ;;  %v463_v12 = vld [vmem:[%s587_s0 + $0x10] sm:$0xff]  }
   0x5   :  { %419 = vmatprep.mubr.bf16.mxu0 %v459_v4  ;;  %427 = vmatprep.mubr.bf16.mxu1 %v460_v5  ;;  %v462_v11 = vld [vmem:[%s587_s0 + $0x28] sm:$0xff]   ;;  %v464_v13 = vld [vmem:[%s587_s0 + $0x30] sm:$0xff]   ;;  %v465_v14 = vld [vmem:[%s587_s0 + $0x18] sm:$0xff]  }
   0x6   :  { %v466_v15 = vld [vmem:[%s587_s0 + $0x38] sm:$0xff]   ;;  %v386_v16 = vld [vmem:[%s588_s2] ss:$0 sm:$0xff] }
   0x7   :  { %406 = vmatpush3.bf16.msra.mxu0 %v452_v1  ;;  %444 = vmatpush3.bf16.msra.mxu1 %v452_v1 }
   0x8   :  { %407 = vmatprep.subr.bf16.mxu0 %v453_v2  ;;  %437 = vmatprep.subr.bf16.mxu1 %v453_v2 }
   0xb   :  { %408 = vmatpush3.bf16.msra.mxu0 %v453_v2  ;;  %445 = vmatpush3.bf16.msra.mxu1 %v453_v2 }
   0xc   :  { %409 = vmatprep.subr.bf16.mxu0 %v454_v3  ;;  %438 = vmatprep.subr.bf16.mxu1 %v454_v3 }
   0xf   :  { %410 = vmatpush3.bf16.msra.mxu0 %v454_v3  ;;  %446 = vmatpush3.bf16.msra.mxu1 %v454_v3 }
  0x10   :  { %411 = vmatprep.subr.bf16.mxu0 %v455_v6  ;;  %439 = vmatprep.subr.bf16.mxu1 %v455_v6 }
  0x13   :  { %412 = vmatpush3.bf16.msra.mxu0 %v455_v6  ;;  %447 = vmatpush3.bf16.msra.mxu1 %v455_v6 }
  0x14   :  { %413 = vmatprep.subr.bf16.mxu0 %v456_v7  ;;  %440 = vmatprep.subr.bf16.mxu1 %v456_v7 }
  0x17   :  { %414 = vmatpush3.bf16.msra.mxu0 %v456_v7  ;;  %448 = vmatpush3.bf16.msra.mxu1 %v456_v7 }
  0x18   :  { %415 = vmatprep.subr.bf16.mxu0 %v457_v8  ;;  %441 = vmatprep.subr.bf16.mxu1 %v457_v8 }
  0x1b   :  { %416 = vmatpush3.bf16.msra.mxu0 %v457_v8  ;;  %449 = vmatpush3.bf16.msra.mxu1 %v457_v8 }
  0x1c   :  { %417 = vmatprep.subr.bf16.mxu0 %v458_v9  ;;  %442 = vmatprep.subr.bf16.mxu1 %v458_v9 }
  0x1f   :  { %418 = vmatpush3.bf16.msra.mxu0 %v458_v9  ;;  %450 = vmatpush3.bf16.msra.mxu1 %v458_v9 }
  0x22   :  { %420 = vmatmul.mubr.bf16.vlgmr.msra.gmra.mrb[0].mxu0 %v461_v10  ;;  %428 = vmatmul.mubr.bf16.vlgmr.msra.gmra.mrb[0].mxu1 %v462_v11 }
  0x23   :  { %423 = vmatprep.mubr.bf16.mxu0 %v463_v12  ;;  %431 = vmatprep.mubr.bf16.mxu1 %v464_v13 }
  0x2a   :  { %424 = vmatmul.mubr.bf16.gmra.mrb[4].mxu0 %v465_v14  ;;  %432 = vmatmul.mubr.bf16.gmra.mrb[4].mxu1 %v466_v15 }
  0xf5   :  { %v421_v17 = vpop.f32.mrb[0].mxu0  ;;  %v429_v18 = vpop.f32.mrb[0].mxu1 }
  0xf6   :  { %v336_v19 = vadd.f32 %v421_v17, %v386_v16  ;;  %v344_v20 = vadd.f32 %v429_v18, %v386_v16  ;;  %v213_v21 = vpop.f32.mrb[1].mxu0  ;;  %v245_v22 = vpop.f32.mrb[1].mxu1 }
  0xf7   :  { %v334_v23 = vadd.f32 %v386_v16, %v213_v21  ;;  %v342_v24 = vadd.f32 %v386_v16, %v245_v22  ;;  %v422_v25 = vpop.f32.mrb[2].mxu0  ;;  %v430_v26 = vpop.f32.mrb[2].mxu1 }
  0xf8   :  { %352 = vst [vmem:[%s589_s3 + $0x10] sm:$0xff] %v336_v19  ;;  %360 = vst [vmem:[%s589_s3 + $0x50] sm:$0xff] %v344_v20  ;;  %v337_v27 = vadd.f32 %v422_v25, %v386_v16  ;;  %v345_v28 = vadd.f32 %v430_v26, %v386_v16  ;;  %v216_v29 = vpop.f32.mrb[3].mxu0  ;;  %v248_v30 = vpop.f32.mrb[3].mxu1 }
  0xf9   :  { %350 = vst [vmem:[%s589_s3] sm:$0xff] %v334_v23  ;;  %358 = vst [vmem:[%s589_s3 + $0x40] sm:$0xff] %v342_v24  ;;  %v335_v31 = vadd.f32 %v386_v16, %v216_v29  ;;  %v343_v32 = vadd.f32 %v386_v16, %v248_v30 }
  0xfa   :  { %353 = vst [vmem:[%s589_s3 + $0x18] sm:$0xff] %v337_v27  ;;  %361 = vst [vmem:[%s589_s3 + $0x58] sm:$0xff] %v345_v28 }
  0xfb   :  { %351 = vst [vmem:[%s589_s3 + $0x8] sm:$0xff] %v335_v31  ;;  %359 = vst [vmem:[%s589_s3 + $0x48] sm:$0xff] %v343_v32 }
  0xfd   :  { %v425_v33 = vpop.f32.mrb[4].mxu0  ;;  %v433_v34 = vpop.f32.mrb[4].mxu1 }
  0xfe   :  { %v340_v35 = vadd.f32 %v425_v33, %v386_v16  ;;  %v348_v36 = vadd.f32 %v433_v34, %v386_v16  ;;  %v229_v37 = vpop.f32.mrb[5].mxu0  ;;  %v261_v38 = vpop.f32.mrb[5].mxu1 }
  0xff   :  { %v338_v39 = vadd.f32 %v386_v16, %v229_v37  ;;  %v346_v40 = vadd.f32 %v386_v16, %v261_v38  ;;  %v426_v41 = vpop.f32.mrb[6].mxu0  ;;  %v434_v42 = vpop.f32.mrb[6].mxu1 }
 0x100   :  { %356 = vst [vmem:[%s589_s3 + $0x30] sm:$0xff] %v340_v35  ;;  %364 = vst [vmem:[%s589_s3 + $0x70] sm:$0xff] %v348_v36  ;;  %v341_v43 = vadd.f32 %v426_v41, %v386_v16  ;;  %v349_v44 = vadd.f32 %v434_v42, %v386_v16  ;;  %v232_v45 = vpop.f32.mrb[7].mxu0  ;;  %v264_v46 = vpop.f32.mrb[7].mxu1 }
 0x101   :  { %354 = vst [vmem:[%s589_s3 + $0x20] sm:$0xff] %v338_v39  ;;  %362 = vst [vmem:[%s589_s3 + $0x60] sm:$0xff] %v346_v40  ;;  %v339_v47 = vadd.f32 %v386_v16, %v232_v45  ;;  %v347_v48 = vadd.f32 %v386_v16, %v264_v46 }
 0x102   :  { %357 = vst [vmem:[%s589_s3 + $0x38] sm:$0xff] %v341_v43  ;;  %365 = vst [vmem:[%s589_s3 + $0x78] sm:$0xff] %v349_v44 }
 0x103   :  { %355 = vst [vmem:[%s589_s3 + $0x28] sm:$0xff] %v339_v47  ;;  %363 = vst [vmem:[%s589_s3 + $0x68] sm:$0xff] %v347_v48 }

// kernel: _lambda_.73
= control target key start
LH: loop header
LB: loop body
LE: loop exit
PB: predicated region body
PF: predicated region fallthrough
CT: control target
= control target key end

     0   :  { %v1572_v0 = vmov 0   ;;  %s2126_s1 = inlined_call_operand.vmem [shape: bf16[256,128], index: 1, kind: input, shape index: {}]   ;;  %s2127_s0 = inlined_call_operand.vmem [shape: bf16[512,256], index: 0, kind: input, shape index: {}]   ;;  %s2128_s2 = inlined_call_operand.vmem [shape: f32[1,128], index: 2, kind: input, shape index: {}]   ;;  %s2129_s3 = inlined_call_operand.vmem [shape: f32[512,128], index: 3, kind: output, shape index: {}]  }
   0x1   :  { %659 = vmatprep.subr.bf16.mxu0 %v1572_v0  ;;  %1427 = vmatprep.subr.bf16.mxu1 %v1572_v0  ;;  %v1460_v1 = vld [vmem:[%s2126_s1] sm:$0xff]   ;;  %v1461_v2 = vld [vmem:[%s2126_s1 + $0x8] sm:$0xff]   ;;  %v1462_v3 = vld [vmem:[%s2126_s1 + $0x10] sm:$0xff]  }
   0x2   :  { %660 = vmatpush1.bf16.msra.mxu0 %v1460_v1  ;;  %1443 = vmatpush1.bf16.msra.mxu1 %v1460_v1  ;;  %v1463_v4 = vld [vmem:[%s2126_s1 + $0x18] sm:$0xff]   ;;  %v1464_v5 = vld [vmem:[%s2126_s1 + $0x20] sm:$0xff]   ;;  %v1465_v7 = vld [vmem:[%s2126_s1 + $0x28] sm:$0xff]  }
   0x3   :  { %661 = vmatprep.subr.bf16.mxu0 %v1572_v0  ;;  %1428 = vmatprep.subr.bf16.mxu1 %v1572_v0  ;;  %v1478_v6 = vld [vmem:[%s2127_s0 + $0x4] ss:$8 sps:$4 sm:$0xff]   ;;  %v1466_v9 = vld [vmem:[%s2126_s1 + $0x30] sm:$0xff]   ;;  %v1467_v10 = vld [vmem:[%s2126_s1 + $0x38] sm:$0xff]  }
   0x4   :  { %v1481_v8 = vld [vmem:[%s2127_s0 + $0x104] ss:$8 sps:$4 sm:$0xff]   ;;  %691 = vmatprep.mubr.bf16.mxu0 %v1478_v6  ;;  %v1470_v13 = vld [vmem:[%s2126_s1 + $0x50] sm:$0xff]   ;;  %v1471_v14 = vld [vmem:[%s2126_s1 + $0x58] sm:$0xff]  }
   0x5   :  { %819 = vmatprep.mubr.bf16.mxu1 %v1481_v8  ;;  %v1468_v11 = vld [vmem:[%s2126_s1 + $0x40] sm:$0xff]   ;;  %v1469_v12 = vld [vmem:[%s2126_s1 + $0x48] sm:$0xff]   ;;  %v1474_v17 = vld [vmem:[%s2126_s1 + $0x70] sm:$0xff]  }
   0x6   :  { %662 = vmatpush1.bf16.msra.mxu0 %v1461_v2  ;;  %1444 = vmatpush1.bf16.msra.mxu1 %v1461_v2  ;;  %v1472_v15 = vld [vmem:[%s2126_s1 + $0x60] sm:$0xff]   ;;  %v1473_v16 = vld [vmem:[%s2126_s1 + $0x68] sm:$0xff]   ;;  %v1475_v18 = vld [vmem:[%s2126_s1 + $0x78] sm:$0xff]  }
   0x7   :  { %663 = vmatprep.subr.bf16.mxu0 %v1572_v0  ;;  %1429 = vmatprep.subr.bf16.mxu1 %v1572_v0  ;;  %v1476_v19 = vld [vmem:[%s2127_s0] ss:$8 sps:$4 sm:$0xff]   ;;  %v1482_v21 = vld [vmem:[%s2127_s0 + $0x14] ss:$8 sps:$4 sm:$0xff]   ;;  %v1486_v23 = vld [vmem:[%s2127_s0 + $0x10] ss:$8 sps:$4 sm:$0xff]  }
   0x8   :  { %v1479_v20 = vld [vmem:[%s2127_s0 + $0x100] ss:$8 sps:$4 sm:$0xff]   ;;  %v1484_v22 = vld [vmem:[%s2127_s0 + $0x114] ss:$8 sps:$4 sm:$0xff]   ;;  %v1487_v24 = vld [vmem:[%s2127_s0 + $0x110] ss:$8 sps:$4 sm:$0xff]  }
   0x9   :  { %v1488_v25 = vld [vmem:[%s2127_s0 + $0x24] ss:$8 sps:$4 sm:$0xff]   ;;  %v1492_v27 = vld [vmem:[%s2127_s0 + $0x20] ss:$8 sps:$4 sm:$0xff]   ;;  %v1494_v29 = vld [vmem:[%s2127_s0 + $0x34] ss:$8 sps:$4 sm:$0xff]  }
   0xa   :  { %664 = vmatpush1.bf16.msra.mxu0 %v1462_v3  ;;  %1445 = vmatpush1.bf16.msra.mxu1 %v1462_v3  ;;  %v1490_v26 = vld [vmem:[%s2127_s0 + $0x124] ss:$8 sps:$4 sm:$0xff]   ;;  %v1493_v28 = vld [vmem:[%s2127_s0 + $0x120] ss:$8 sps:$4 sm:$0xff]   ;;  %v1496_v30 = vld [vmem:[%s2127_s0 + $0x134] ss:$8 sps:$4 sm:$0xff]  }
   0xb   :  { %665 = vmatprep.subr.bf16.mxu0 %v1572_v0  ;;  %1430 = vmatprep.subr.bf16.mxu1 %v1572_v0  ;;  %v1498_v31 = vld [vmem:[%s2127_s0 + $0x30] ss:$8 sps:$4 sm:$0xff]   ;;  %v1500_v33 = vld [vmem:[%s2127_s0 + $0x44] ss:$8 sps:$4 sm:$0xff]   ;;  %v1504_v35 = vld [vmem:[%s2127_s0 + $0x40] ss:$8 sps:$4 sm:$0xff]  }
   0xc   :  { %v1499_v32 = vld [vmem:[%s2127_s0 + $0x130] ss:$8 sps:$4 sm:$0xff]   ;;  %v1502_v34 = vld [vmem:[%s2127_s0 + $0x144] ss:$8 sps:$4 sm:$0xff]   ;;  %v1505_v36 = vld [vmem:[%s2127_s0 + $0x140] ss:$8 sps:$4 sm:$0xff]  }
   0xd   :  { %v1506_v37 = vld [vmem:[%s2127_s0 + $0x54] ss:$8 sps:$4 sm:$0xff]   ;;  %v1510_v39 = vld [vmem:[%s2127_s0 + $0x50] ss:$8 sps:$4 sm:$0xff]   ;;  %v1512_v41 = vld [vmem:[%s2127_s0 + $0x64] ss:$8 sps:$4 sm:$0xff]  }
   0xe   :  { %666 = vmatpush1.bf16.msra.mxu0 %v1463_v4  ;;  %1446 = vmatpush1.bf16.msra.mxu1 %v1463_v4  ;;  %v1508_v38 = vld [vmem:[%s2127_s0 + $0x154] ss:$8 sps:$4 sm:$0xff]   ;;  %v1511_v40 = vld [vmem:[%s2127_s0 + $0x150] ss:$8 sps:$4 sm:$0xff]   ;;  %v1514_v42 = vld [vmem:[%s2127_s0 + $0x164] ss:$8 sps:$4 sm:$0xff]  }
   0xf   :  { %667 = vmatprep.subr.bf16.mxu0 %v1572_v0  ;;  %1431 = vmatprep.subr.bf16.mxu1 %v1572_v0  ;;  %v1516_v43 = vld [vmem:[%s2127_s0 + $0x60] ss:$8 sps:$4 sm:$0xff]   ;;  %v1518_v45 = vld [vmem:[%s2127_s0 + $0x74] ss:$8 sps:$4 sm:$0xff]   ;;  %v1522_v47 = vld [vmem:[%s2127_s0 + $0x70] ss:$8 sps:$4 sm:$0xff]  }
  0x10   :  { %v1517_v44 = vld [vmem:[%s2127_s0 + $0x160] ss:$8 sps:$4 sm:$0xff]   ;;  %v1520_v46 = vld [vmem:[%s2127_s0 + $0x174] ss:$8 sps:$4 sm:$0xff]   ;;  %v1523_v48 = vld [vmem:[%s2127_s0 + $0x170] ss:$8 sps:$4 sm:$0xff]  }
  0x11   :  { %v1524_v49 = vld [vmem:[%s2127_s0 + $0x84] ss:$8 sps:$4 sm:$0xff]   ;;  %v1528_v51 = vld [vmem:[%s2127_s0 + $0x80] ss:$8 sps:$4 sm:$0xff]   ;;  %v1530_v53 = vld [vmem:[%s2127_s0 + $0x94] ss:$8 sps:$4 sm:$0xff]  }
  0x12   :  { %668 = vmatpush1.bf16.msra.mxu0 %v1464_v5  ;;  %1447 = vmatpush1.bf16.msra.mxu1 %v1464_v5  ;;  %v1526_v50 = vld [vmem:[%s2127_s0 + $0x184] ss:$8 sps:$4 sm:$0xff]   ;;  %v1529_v52 = vld [vmem:[%s2127_s0 + $0x180] ss:$8 sps:$4 sm:$0xff]   ;;  %v1532_v54 = vld [vmem:[%s2127_s0 + $0x194] ss:$8 sps:$4 sm:$0xff]  }
  0x13   :  { %669 = vmatprep.subr.bf16.mxu0 %v1572_v0  ;;  %1432 = vmatprep.subr.bf16.mxu1 %v1572_v0  ;;  %v1534_v55 = vld [vmem:[%s2127_s0 + $0x90] ss:$8 sps:$4 sm:$0xff]   ;;  %v1536_v57 = vld [vmem:[%s2127_s0 + $0xa4] ss:$8 sps:$4 sm:$0xff]   ;;  %v1540_v59 = vld [vmem:[%s2127_s0 + $0xa0] ss:$8 sps:$4 sm:$0xff]  }
  0x14   :  { %v1535_v56 = vld [vmem:[%s2127_s0 + $0x190] ss:$8 sps:$4 sm:$0xff]   ;;  %v1538_v58 = vld [vmem:[%s2127_s0 + $0x1a4] ss:$8 sps:$4 sm:$0xff]   ;;  %v1541_v60 = vld [vmem:[%s2127_s0 + $0x1a0] ss:$8 sps:$4 sm:$0xff]  }
  0x15   :  { %v1542_v61 = vld [vmem:[%s2127_s0 + $0xb4] ss:$8 sps:$4 sm:$0xff]   ;;  %v1546_v63 = vld [vmem:[%s2127_s0 + $0xb0] ss:$8 sps:$4 sm:$0xff]   ;;  %v1548_v1 = vld [vmem:[%s2127_s0 + $0xc4] ss:$8 sps:$4 sm:$0xff]  }
  0x16   :  { %670 = vmatpush1.bf16.msra.mxu0 %v1465_v7  ;;  %1448 = vmatpush1.bf16.msra.mxu1 %v1465_v7  ;;  %v1544_v62 = vld [vmem:[%s2127_s0 + $0x1b4] ss:$8 sps:$4 sm:$0xff]   ;;  %v1550_v2 = vld [vmem:[%s2127_s0 + $0x1c4] ss:$8 sps:$4 sm:$0xff]   ;;  %v1552_v3 = vld [vmem:[%s2127_s0 + $0xc0] ss:$8 sps:$4 sm:$0xff]  }
  0x17   :  { %671 = vmatprep.subr.bf16.mxu0 %v1572_v0  ;;  %1433 = vmatprep.subr.bf16.mxu1 %v1572_v0  ;;  %v1553_v4 = vld [vmem:[%s2127_s0 + $0x1c0] ss:$8 sps:$4 sm:$0xff]   ;;  %v1554_v5 = vld [vmem:[%s2127_s0 + $0xd4] ss:$8 sps:$4 sm:$0xff]   ;;  %v1558_v7 = vld [vmem:[%s2127_s0 + $0xd0] ss:$8 sps:$4 sm:$0xff]  }
  0x18   :  { %v1556_v6 = vld [vmem:[%s2127_s0 + $0x1d4] ss:$8 sps:$4 sm:$0xff]   ;;  %v1559_v8 = vld [vmem:[%s2127_s0 + $0x1d0] ss:$8 sps:$4 sm:$0xff]  }
  0x1a   :  { %672 = vmatpush1.bf16.msra.mxu0 %v1466_v9  ;;  %1449 = vmatpush1.bf16.msra.mxu1 %v1466_v9  ;;  %v1560_v9 = vld [vmem:[%s2127_s0 + $0xe4] ss:$8 sps:$4 sm:$0xff]  }
  0x1b   :  { %673 = vmatprep.subr.bf16.mxu0 %v1572_v0  ;;  %1434 = vmatprep.subr.bf16.mxu1 %v1572_v0 }
  0x1e   :  { %674 = vmatpush1.bf16.msra.mxu0 %v1467_v10  ;;  %1450 = vmatpush1.bf16.msra.mxu1 %v1467_v10  ;;  %v1562_v10 = vld [vmem:[%s2127_s0 + $0x1e4] ss:$8 sps:$4 sm:$0xff]  }
  0x1f   :  { %675 = vmatprep.subr.bf16.mxu0 %v1572_v0  ;;  %1435 = vmatprep.subr.bf16.mxu1 %v1572_v0 }
  0x22   :  { %676 = vmatpush1.bf16.msra.mxu0 %v1468_v11  ;;  %1451 = vmatpush1.bf16.msra.mxu1 %v1468_v11  ;;  %v1564_v11 = vld [vmem:[%s2127_s0 + $0xe0] ss:$8 sps:$4 sm:$0xff]  }
  0x23   :  { %677 = vmatprep.subr.bf16.mxu0 %v1572_v0  ;;  %1436 = vmatprep.subr.bf16.mxu1 %v1572_v0 }
  0x26   :  { %678 = vmatpush1.bf16.msra.mxu0 %v1469_v12  ;;  %1452 = vmatpush1.bf16.msra.mxu1 %v1469_v12  ;;  %v1565_v12 = vld [vmem:[%s2127_s0 + $0x1e0] ss:$8 sps:$4 sm:$0xff]  }
  0x27   :  { %679 = vmatprep.subr.bf16.mxu0 %v1572_v0  ;;  %1437 = vmatprep.subr.bf16.mxu1 %v1572_v0 }
  0x2a   :  { %680 = vmatpush1.bf16.msra.mxu0 %v1470_v13  ;;  %1453 = vmatpush1.bf16.msra.mxu1 %v1470_v13  ;;  %v1566_v13 = vld [vmem:[%s2127_s0 + $0xf4] ss:$8 sps:$4 sm:$0xff]  }
  0x2b   :  { %681 = vmatprep.subr.bf16.mxu0 %v1572_v0  ;;  %1438 = vmatprep.subr.bf16.mxu1 %v1572_v0 }
  0x2e   :  { %682 = vmatpush1.bf16.msra.mxu0 %v1471_v14  ;;  %1454 = vmatpush1.bf16.msra.mxu1 %v1471_v14  ;;  %v1568_v14 = vld [vmem:[%s2127_s0 + $0x1f4] ss:$8 sps:$4 sm:$0xff]  }
  0x2f   :  { %683 = vmatprep.subr.bf16.mxu0 %v1572_v0  ;;  %1439 = vmatprep.subr.bf16.mxu1 %v1572_v0 }
  0x32   :  { %684 = vmatpush1.bf16.msra.mxu0 %v1472_v15  ;;  %1455 = vmatpush1.bf16.msra.mxu1 %v1472_v15  ;;  %v1570_v15 = vld [vmem:[%s2127_s0 + $0xf0] ss:$8 sps:$4 sm:$0xff]  }
  0x33   :  { %685 = vmatprep.subr.bf16.mxu0 %v1572_v0  ;;  %1440 = vmatprep.subr.bf16.mxu1 %v1572_v0 }
  0x36   :  { %686 = vmatpush1.bf16.msra.mxu0 %v1473_v16  ;;  %1456 = vmatpush1.bf16.msra.mxu1 %v1473_v16  ;;  %v1571_v16 = vld [vmem:[%s2127_s0 + $0x1f0] ss:$8 sps:$4 sm:$0xff]  }
  0x37   :  { %687 = vmatprep.subr.bf16.mxu0 %v1572_v0  ;;  %1441 = vmatprep.subr.bf16.mxu1 %v1572_v0 }
  0x3a   :  { %688 = vmatpush1.bf16.msra.mxu0 %v1474_v17  ;;  %1457 = vmatpush1.bf16.msra.mxu1 %v1474_v17  ;;  %v1868_v17 = vld [vmem:[%s2128_s2] ss:$0 sm:$0xff] }
  0x3b   :  { %689 = vmatprep.subr.bf16.mxu0 %v1572_v0  ;;  %1442 = vmatprep.subr.bf16.mxu1 %v1572_v0  ;;  %v1547_v0 = vld [vmem:[%s2127_s0 + $0x1b0] ss:$8 sps:$4 sm:$0xff]  }
  0x3e   :  { %690 = vmatpush1.bf16.msra.mxu0 %v1475_v18  ;;  %1458 = vmatpush1.bf16.msra.mxu1 %v1475_v18 }
  0x41   :  { %692 = vmatmul.mubr.bf16.vlgmr.msra.gmra.mrb[0].mxu0 %v1476_v19  ;;  %820 = vmatmul.mubr.bf16.vlgmr.msra.gmra.mrb[0].mxu1 %v1479_v20 }
  0x42   :  { %699 = vmatprep.mubr.bf16.mxu0 %v1482_v21  ;;  %827 = vmatprep.mubr.bf16.mxu1 %v1484_v22 }
  0x49   :  { %700 = vmatmul.mubr.bf16.gmra.mrb[4].mxu0 %v1486_v23  ;;  %828 = vmatmul.mubr.bf16.gmra.mrb[4].mxu1 %v1487_v24 }
  0x4a   :  { %707 = vmatprep.mubr.bf16.mxu0 %v1488_v25  ;;  %835 = vmatprep.mubr.bf16.mxu1 %v1490_v26 }
  0x51   :  { %708 = vmatmul.mubr.bf16.gmra.mrb[8].mxu0 %v1492_v27  ;;  %836 = vmatmul.mubr.bf16.gmra.mrb[8].mxu1 %v1493_v28 }
  0x52   :  { %715 = vmatprep.mubr.bf16.mxu0 %v1494_v29  ;;  %843 = vmatprep.mubr.bf16.mxu1 %v1496_v30 }
  0x59   :  { %716 = vmatmul.mubr.bf16.gmra.mrb[12].mxu0 %v1498_v31  ;;  %844 = vmatmul.mubr.bf16.gmra.mrb[12].mxu1 %v1499_v32 }
  0x5a   :  { %723 = vmatprep.mubr.bf16.mxu0 %v1500_v33  ;;  %851 = vmatprep.mubr.bf16.mxu1 %v1502_v34 }
  0x61   :  { %724 = vmatmul.mubr.bf16.gmra.mrb[16].mxu0 %v1504_v35  ;;  %852 = vmatmul.mubr.bf16.gmra.mrb[16].mxu1 %v1505_v36 }
  0x62   :  { %731 = vmatprep.mubr.bf16.mxu0 %v1506_v37  ;;  %859 = vmatprep.mubr.bf16.mxu1 %v1508_v38 }
  0x69   :  { %732 = vmatmul.mubr.bf16.gmra.mrb[20].mxu0 %v1510_v39  ;;  %860 = vmatmul.mubr.bf16.gmra.mrb[20].mxu1 %v1511_v40 }
  0x6a   :  { %739 = vmatprep.mubr.bf16.mxu0 %v1512_v41  ;;  %867 = vmatprep.mubr.bf16.mxu1 %v1514_v42 }
  0x71   :  { %740 = vmatmul.mubr.bf16.gmra.mrb[24].mxu0 %v1516_v43  ;;  %868 = vmatmul.mubr.bf16.gmra.mrb[24].mxu1 %v1517_v44 }
  0x72   :  { %747 = vmatprep.mubr.bf16.mxu0 %v1518_v45  ;;  %875 = vmatprep.mubr.bf16.mxu1 %v1520_v46 }
  0x79   :  { %748 = vmatmul.mubr.bf16.gmra.mrb[28].mxu0 %v1522_v47  ;;  %876 = vmatmul.mubr.bf16.gmra.mrb[28].mxu1 %v1523_v48 }
  0x7a   :  { %755 = vmatprep.mubr.bf16.mxu0 %v1524_v49  ;;  %883 = vmatprep.mubr.bf16.mxu1 %v1526_v50 }
  0x81   :  { %756 = vmatmul.mubr.bf16.gmra.mrb[32].mxu0 %v1528_v51  ;;  %884 = vmatmul.mubr.bf16.gmra.mrb[32].mxu1 %v1529_v52 }
  0x82   :  { %763 = vmatprep.mubr.bf16.mxu0 %v1530_v53  ;;  %891 = vmatprep.mubr.bf16.mxu1 %v1532_v54 }
  0x89   :  { %764 = vmatmul.mubr.bf16.gmra.mrb[36].mxu0 %v1534_v55  ;;  %892 = vmatmul.mubr.bf16.gmra.mrb[36].mxu1 %v1535_v56 }
  0x8a   :  { %771 = vmatprep.mubr.bf16.mxu0 %v1536_v57  ;;  %899 = vmatprep.mubr.bf16.mxu1 %v1538_v58 }
  0x91   :  { %772 = vmatmul.mubr.bf16.gmra.mrb[40].mxu0 %v1540_v59  ;;  %900 = vmatmul.mubr.bf16.gmra.mrb[40].mxu1 %v1541_v60 }
  0x92   :  { %779 = vmatprep.mubr.bf16.mxu0 %v1542_v61  ;;  %907 = vmatprep.mubr.bf16.mxu1 %v1544_v62 }
  0x99   :  { %780 = vmatmul.mubr.bf16.gmra.mrb[44].mxu0 %v1546_v63  ;;  %908 = vmatmul.mubr.bf16.gmra.mrb[44].mxu1 %v1547_v0 }
  0x9a   :  { %787 = vmatprep.mubr.bf16.mxu0 %v1548_v1  ;;  %915 = vmatprep.mubr.bf16.mxu1 %v1550_v2 }
  0xa1   :  { %788 = vmatmul.mubr.bf16.gmra.mrb[48].mxu0 %v1552_v3  ;;  %916 = vmatmul.mubr.bf16.gmra.mrb[48].mxu1 %v1553_v4 }
  0xa2   :  { %795 = vmatprep.mubr.bf16.mxu0 %v1554_v5  ;;  %923 = vmatprep.mubr.bf16.mxu1 %v1556_v6 }
  0xa9   :  { %796 = vmatmul.mubr.bf16.gmra.mrb[52].mxu0 %v1558_v7  ;;  %924 = vmatmul.mubr.bf16.gmra.mrb[52].mxu1 %v1559_v8 }
  0xaa   :  { %803 = vmatprep.mubr.bf16.mxu0 %v1560_v9  ;;  %931 = vmatprep.mubr.bf16.mxu1 %v1562_v10 }
  0xb1   :  { %804 = vmatmul.mubr.bf16.gmra.mrb[56].mxu0 %v1564_v11  ;;  %932 = vmatmul.mubr.bf16.gmra.mrb[56].mxu1 %v1565_v12 }
  0xb2   :  { %811 = vmatprep.mubr.bf16.mxu0 %v1566_v13  ;;  %939 = vmatprep.mubr.bf16.mxu1 %v1568_v14 }
  0xb9   :  { %812 = vmatmul.mubr.bf16.gmra.mrb[60].mxu0 %v1570_v15  ;;  %940 = vmatmul.mubr.bf16.gmra.mrb[60].mxu1 %v1571_v16 }
 0x114   :  { %v693_v18 = vpop.f32.mrb[0].mxu0  ;;  %v821_v19 = vpop.f32.mrb[0].mxu1 }
 0x115   :  { %v1150_v20 = vadd.f32 %v1868_v17, %v693_v18  ;;  %v1182_v21 = vadd.f32 %v1868_v17, %v821_v19  ;;  %v695_v22 = vpop.f32.mrb[1].mxu0  ;;  %v823_v23 = vpop.f32.mrb[1].mxu1 }
 0x116   :  { %v696_v24 = vpop.f32.mrb[2].mxu0  ;;  %v824_v25 = vpop.f32.mrb[2].mxu1 }
 0x117   :  { %v1214_v26 = vmax.f32 %v1150_v20, 0.0  ;;  %v1246_v27 = vmax.f32 %v1182_v21, 0.0  ;;  %v1151_v28 = vadd.f32 %v1868_v17, %v696_v24  ;;  %v1183_v29 = vadd.f32 %v1868_v17, %v824_v25  ;;  %v698_v30 = vpop.f32.mrb[3].mxu0  ;;  %v826_v31 = vpop.f32.mrb[3].mxu1 }
 0x119   :  { %1278 = vst [vmem:[%s2129_s3] sm:$0xff] %v1214_v26  ;;  %1310 = vst [vmem:[%s2129_s3 + $0x100] sm:$0xff] %v1246_v27  ;;  %v1215_v32 = vmax.f32 %v1151_v28, 0.0  ;;  %v1247_v33 = vmax.f32 %v1183_v29, 0.0 }
 0x11b   :  { %1279 = vst [vmem:[%s2129_s3 + $0x8] sm:$0xff] %v1215_v32  ;;  %1311 = vst [vmem:[%s2129_s3 + $0x108] sm:$0xff] %v1247_v33 }
 0x11c   :  { %v701_v34 = vpop.f32.mrb[4].mxu0  ;;  %v829_v35 = vpop.f32.mrb[4].mxu1 }
 0x11d   :  { %v1152_v36 = vadd.f32 %v1868_v17, %v701_v34  ;;  %v1184_v37 = vadd.f32 %v1868_v17, %v829_v35  ;;  %v703_v38 = vpop.f32.mrb[5].mxu0  ;;  %v831_v39 = vpop.f32.mrb[5].mxu1 }
 0x11e   :  { %v704_v40 = vpop.f32.mrb[6].mxu0  ;;  %v832_v41 = vpop.f32.mrb[6].mxu1 }
 0x11f   :  { %v1216_v42 = vmax.f32 %v1152_v36, 0.0  ;;  %v1248_v43 = vmax.f32 %v1184_v37, 0.0  ;;  %v1153_v44 = vadd.f32 %v1868_v17, %v704_v40  ;;  %v1185_v45 = vadd.f32 %v1868_v17, %v832_v41  ;;  %v706_v46 = vpop.f32.mrb[7].mxu0  ;;  %v834_v47 = vpop.f32.mrb[7].mxu1 }
 0x121   :  { %1280 = vst [vmem:[%s2129_s3 + $0x10] sm:$0xff] %v1216_v42  ;;  %1312 = vst [vmem:[%s2129_s3 + $0x110] sm:$0xff] %v1248_v43  ;;  %v1217_v48 = vmax.f32 %v1153_v44, 0.0  ;;  %v1249_v49 = vmax.f32 %v1185_v45, 0.0 }
 0x123   :  { %1281 = vst [vmem:[%s2129_s3 + $0x18] sm:$0xff] %v1217_v48  ;;  %1313 = vst [vmem:[%s2129_s3 + $0x118] sm:$0xff] %v1249_v49 }
 0x124   :  { %v709_v50 = vpop.f32.mrb[8].mxu0  ;;  %v837_v51 = vpop.f32.mrb[8].mxu1 }
 0x125   :  { %v1154_v52 = vadd.f32 %v1868_v17, %v709_v50  ;;  %v1186_v53 = vadd.f32 %v1868_v17, %v837_v51  ;;  %v711_v54 = vpop.f32.mrb[9].mxu0  ;;  %v839_v55 = vpop.f32.mrb[9].mxu1 }
 0x126   :  { %v712_v56 = vpop.f32.mrb[10].mxu0  ;;  %v840_v57 = vpop.f32.mrb[10].mxu1 }
 0x127   :  { %v1218_v58 = vmax.f32 %v1154_v52, 0.0  ;;  %v1250_v59 = vmax.f32 %v1186_v53, 0.0  ;;  %v1155_v60 = vadd.f32 %v1868_v17, %v712_v56  ;;  %v1187_v61 = vadd.f32 %v1868_v17, %v840_v57  ;;  %v714_v62 = vpop.f32.mrb[11].mxu0  ;;  %v842_v63 = vpop.f32.mrb[11].mxu1 }
 0x129   :  { %1282 = vst [vmem:[%s2129_s3 + $0x20] sm:$0xff] %v1218_v58  ;;  %1314 = vst [vmem:[%s2129_s3 + $0x120] sm:$0xff] %v1250_v59  ;;  %v1219_v0 = vmax.f32 %v1155_v60, 0.0  ;;  %v1251_v1 = vmax.f32 %v1187_v61, 0.0 }
 0x12b   :  { %1283 = vst [vmem:[%s2129_s3 + $0x28] sm:$0xff] %v1219_v0  ;;  %1315 = vst [vmem:[%s2129_s3 + $0x128] sm:$0xff] %v1251_v1 }
 0x12c   :  { %v717_v2 = vpop.f32.mrb[12].mxu0  ;;  %v845_v3 = vpop.f32.mrb[12].mxu1 }
 0x12d   :  { %v1156_v4 = vadd.f32 %v1868_v17, %v717_v2  ;;  %v1188_v5 = vadd.f32 %v1868_v17, %v845_v3  ;;  %v719_v6 = vpop.f32.mrb[13].mxu0  ;;  %v847_v7 = vpop.f32.mrb[13].mxu1 }
 0x12e   :  { %v720_v8 = vpop.f32.mrb[14].mxu0  ;;  %v848_v9 = vpop.f32.mrb[14].mxu1 }
 0x12f   :  { %v1220_v10 = vmax.f32 %v1156_v4, 0.0  ;;  %v1252_v11 = vmax.f32 %v1188_v5, 0.0  ;;  %v1157_v12 = vadd.f32 %v1868_v17, %v720_v8  ;;  %v1189_v13 = vadd.f32 %v1868_v17, %v848_v9  ;;  %v722_v14 = vpop.f32.mrb[15].mxu0  ;;  %v850_v15 = vpop.f32.mrb[15].mxu1 }
 0x131   :  { %1284 = vst [vmem:[%s2129_s3 + $0x30] sm:$0xff] %v1220_v10  ;;  %1316 = vst [vmem:[%s2129_s3 + $0x130] sm:$0xff] %v1252_v11  ;;  %v1221_v16 = vmax.f32 %v1157_v12, 0.0  ;;  %v1253_v18 = vmax.f32 %v1189_v13, 0.0 }
 0x133   :  { %1285 = vst [vmem:[%s2129_s3 + $0x38] sm:$0xff] %v1221_v16  ;;  %1317 = vst [vmem:[%s2129_s3 + $0x138] sm:$0xff] %v1253_v18 }
 0x134   :  { %v725_v19 = vpop.f32.mrb[16].mxu0  ;;  %v853_v20 = vpop.f32.mrb[16].mxu1 }
 0x135   :  { %v1158_v21 = vadd.f32 %v1868_v17, %v725_v19  ;;  %v1190_v22 = vadd.f32 %v1868_v17, %v853_v20  ;;  %v727_v23 = vpop.f32.mrb[17].mxu0  ;;  %v855_v24 = vpop.f32.mrb[17].mxu1 }
 0x136   :  { %v728_v25 = vpop.f32.mrb[18].mxu0  ;;  %v856_v26 = vpop.f32.mrb[18].mxu1 }
 0x137   :  { %v1222_v27 = vmax.f32 %v1158_v21, 0.0  ;;  %v1254_v28 = vmax.f32 %v1190_v22, 0.0  ;;  %v1159_v29 = vadd.f32 %v1868_v17, %v728_v25  ;;  %v1191_v30 = vadd.f32 %v1868_v17, %v856_v26  ;;  %v730_v31 = vpop.f32.mrb[19].mxu0  ;;  %v858_v32 = vpop.f32.mrb[19].mxu1 }
 0x139   :  { %1286 = vst [vmem:[%s2129_s3 + $0x40] sm:$0xff] %v1222_v27  ;;  %1318 = vst [vmem:[%s2129_s3 + $0x140] sm:$0xff] %v1254_v28  ;;  %v1223_v33 = vmax.f32 %v1159_v29, 0.0  ;;  %v1255_v34 = vmax.f32 %v1191_v30, 0.0 }
 0x13b   :  { %1287 = vst [vmem:[%s2129_s3 + $0x48] sm:$0xff] %v1223_v33  ;;  %1319 = vst [vmem:[%s2129_s3 + $0x148] sm:$0xff] %v1255_v34 }
 0x13c   :  { %v733_v35 = vpop.f32.mrb[20].mxu0  ;;  %v861_v36 = vpop.f32.mrb[20].mxu1 }
 0x13d   :  { %v1160_v37 = vadd.f32 %v1868_v17, %v733_v35  ;;  %v1192_v38 = vadd.f32 %v1868_v17, %v861_v36  ;;  %v735_v39 = vpop.f32.mrb[21].mxu0  ;;  %v863_v40 = vpop.f32.mrb[21].mxu1 }
 0x13e   :  { %v736_v41 = vpop.f32.mrb[22].mxu0  ;;  %v864_v42 = vpop.f32.mrb[22].mxu1 }
 0x13f   :  { %v1224_v43 = vmax.f32 %v1160_v37, 0.0  ;;  %v1256_v44 = vmax.f32 %v1192_v38, 0.0  ;;  %v1161_v45 = vadd.f32 %v1868_v17, %v736_v41  ;;  %v1193_v46 = vadd.f32 %v1868_v17, %v864_v42  ;;  %v738_v47 = vpop.f32.mrb[23].mxu0  ;;  %v866_v48 = vpop.f32.mrb[23].mxu1 }
 0x141   :  { %1288 = vst [vmem:[%s2129_s3 + $0x50] sm:$0xff] %v1224_v43  ;;  %1320 = vst [vmem:[%s2129_s3 + $0x150] sm:$0xff] %v1256_v44  ;;  %v1225_v49 = vmax.f32 %v1161_v45, 0.0  ;;  %v1257_v50 = vmax.f32 %v1193_v46, 0.0 }
 0x143   :  { %1289 = vst [vmem:[%s2129_s3 + $0x58] sm:$0xff] %v1225_v49  ;;  %1321 = vst [vmem:[%s2129_s3 + $0x158] sm:$0xff] %v1257_v50 }
 0x144   :  { %v741_v51 = vpop.f32.mrb[24].mxu0  ;;  %v869_v52 = vpop.f32.mrb[24].mxu1 }
 0x145   :  { %v1162_v53 = vadd.f32 %v1868_v17, %v741_v51  ;;  %v1194_v54 = vadd.f32 %v1868_v17, %v869_v52  ;;  %v743_v55 = vpop.f32.mrb[25].mxu0  ;;  %v871_v56 = vpop.f32.mrb[25].mxu1 }
 0x146   :  { %v744_v57 = vpop.f32.mrb[26].mxu0  ;;  %v872_v58 = vpop.f32.mrb[26].mxu1 }
 0x147   :  { %v1226_v59 = vmax.f32 %v1162_v53, 0.0  ;;  %v1258_v60 = vmax.f32 %v1194_v54, 0.0  ;;  %v1163_v61 = vadd.f32 %v1868_v17, %v744_v57  ;;  %v1195_v62 = vadd.f32 %v1868_v17, %v872_v58  ;;  %v746_v63 = vpop.f32.mrb[27].mxu0  ;;  %v874_v0 = vpop.f32.mrb[27].mxu1 }
 0x149   :  { %1290 = vst [vmem:[%s2129_s3 + $0x60] sm:$0xff] %v1226_v59  ;;  %1322 = vst [vmem:[%s2129_s3 + $0x160] sm:$0xff] %v1258_v60  ;;  %v1227_v1 = vmax.f32 %v1163_v61, 0.0  ;;  %v1259_v2 = vmax.f32 %v1195_v62, 0.0 }
 0x14b   :  { %1291 = vst [vmem:[%s2129_s3 + $0x68] sm:$0xff] %v1227_v1  ;;  %1323 = vst [vmem:[%s2129_s3 + $0x168] sm:$0xff] %v1259_v2 }
 0x14c   :  { %v749_v3 = vpop.f32.mrb[28].mxu0  ;;  %v877_v4 = vpop.f32.mrb[28].mxu1 }
 0x14d   :  { %v1164_v5 = vadd.f32 %v1868_v17, %v749_v3  ;;  %v1196_v6 = vadd.f32 %v1868_v17, %v877_v4  ;;  %v751_v7 = vpop.f32.mrb[29].mxu0  ;;  %v879_v8 = vpop.f32.mrb[29].mxu1 }
 0x14e   :  { %v752_v9 = vpop.f32.mrb[30].mxu0  ;;  %v880_v10 = vpop.f32.mrb[30].mxu1 }
 0x14f   :  { %v1228_v11 = vmax.f32 %v1164_v5, 0.0  ;;  %v1260_v12 = vmax.f32 %v1196_v6, 0.0  ;;  %v1165_v13 = vadd.f32 %v1868_v17, %v752_v9  ;;  %v1197_v14 = vadd.f32 %v1868_v17, %v880_v10  ;;  %v754_v15 = vpop.f32.mrb[31].mxu0  ;;  %v882_v16 = vpop.f32.mrb[31].mxu1 }
 0x151   :  { %1292 = vst [vmem:[%s2129_s3 + $0x70] sm:$0xff] %v1228_v11  ;;  %1324 = vst [vmem:[%s2129_s3 + $0x170] sm:$0xff] %v1260_v12  ;;  %v1229_v18 = vmax.f32 %v1165_v13, 0.0  ;;  %v1261_v19 = vmax.f32 %v1197_v14, 0.0 }
 0x153   :  { %1293 = vst [vmem:[%s2129_s3 + $0x78] sm:$0xff] %v1229_v18  ;;  %1325 = vst [vmem:[%s2129_s3 + $0x178] sm:$0xff] %v1261_v19 }
 0x154   :  { %v757_v20 = vpop.f32.mrb[32].mxu0  ;;  %v885_v21 = vpop.f32.mrb[32].mxu1 }
 0x155   :  { %v1166_v22 = vadd.f32 %v1868_v17, %v757_v20  ;;  %v1198_v23 = vadd.f32 %v1868_v17, %v885_v21  ;;  %v759_v24 = vpop.f32.mrb[33].mxu0  ;;  %v887_v25 = vpop.f32.mrb[33].mxu1 }
 0x156   :  { %v760_v26 = vpop.f32.mrb[34].mxu0  ;;  %v888_v27 = vpop.f32.mrb[34].mxu1 }
 0x157   :  { %v1230_v28 = vmax.f32 %v1166_v22, 0.0  ;;  %v1262_v29 = vmax.f32 %v1198_v23, 0.0  ;;  %v1167_v30 = vadd.f32 %v1868_v17, %v760_v26  ;;  %v1199_v31 = vadd.f32 %v1868_v17, %v888_v27  ;;  %v762_v32 = vpop.f32.mrb[35].mxu0  ;;  %v890_v33 = vpop.f32.mrb[35].mxu1 }
 0x159   :  { %1294 = vst [vmem:[%s2129_s3 + $0x80] sm:$0xff] %v1230_v28  ;;  %1326 = vst [vmem:[%s2129_s3 + $0x180] sm:$0xff] %v1262_v29  ;;  %v1231_v34 = vmax.f32 %v1167_v30, 0.0  ;;  %v1263_v35 = vmax.f32 %v1199_v31, 0.0 }
 0x15b   :  { %1295 = vst [vmem:[%s2129_s3 + $0x88] sm:$0xff] %v1231_v34  ;;  %1327 = vst [vmem:[%s2129_s3 + $0x188] sm:$0xff] %v1263_v35 }
 0x15c   :  { %v765_v36 = vpop.f32.mrb[36].mxu0  ;;  %v893_v37 = vpop.f32.mrb[36].mxu1 }
 0x15d   :  { %v1168_v38 = vadd.f32 %v1868_v17, %v765_v36  ;;  %v1200_v39 = vadd.f32 %v1868_v17, %v893_v37  ;;  %v767_v40 = vpop.f32.mrb[37].mxu0  ;;  %v895_v41 = vpop.f32.mrb[37].mxu1 }
 0x15e   :  { %v768_v42 = vpop.f32.mrb[38].mxu0  ;;  %v896_v43 = vpop.f32.mrb[38].mxu1 }
 0x15f   :  { %v1232_v44 = vmax.f32 %v1168_v38, 0.0  ;;  %v1264_v45 = vmax.f32 %v1200_v39, 0.0  ;;  %v1169_v46 = vadd.f32 %v1868_v17, %v768_v42  ;;  %v1201_v47 = vadd.f32 %v1868_v17, %v896_v43  ;;  %v770_v48 = vpop.f32.mrb[39].mxu0  ;;  %v898_v49 = vpop.f32.mrb[39].mxu1 }
 0x161   :  { %1296 = vst [vmem:[%s2129_s3 + $0x90] sm:$0xff] %v1232_v44  ;;  %1328 = vst [vmem:[%s2129_s3 + $0x190] sm:$0xff] %v1264_v45  ;;  %v1233_v50 = vmax.f32 %v1169_v46, 0.0  ;;  %v1265_v51 = vmax.f32 %v1201_v47, 0.0 }
 0x163   :  { %1297 = vst [vmem:[%s2129_s3 + $0x98] sm:$0xff] %v1233_v50  ;;  %1329 = vst [vmem:[%s2129_s3 + $0x198] sm:$0xff] %v1265_v51 }
 0x164   :  { %v773_v52 = vpop.f32.mrb[40].mxu0  ;;  %v901_v53 = vpop.f32.mrb[40].mxu1 }
 0x165   :  { %v1170_v54 = vadd.f32 %v1868_v17, %v773_v52  ;;  %v1202_v55 = vadd.f32 %v1868_v17, %v901_v53  ;;  %v775_v56 = vpop.f32.mrb[41].mxu0  ;;  %v903_v57 = vpop.f32.mrb[41].mxu1 }
 0x166   :  { %v776_v58 = vpop.f32.mrb[42].mxu0  ;;  %v904_v59 = vpop.f32.mrb[42].mxu1 }
 0x167   :  { %v1234_v60 = vmax.f32 %v1170_v54, 0.0  ;;  %v1266_v61 = vmax.f32 %v1202_v55, 0.0  ;;  %v1171_v62 = vadd.f32 %v1868_v17, %v776_v58  ;;  %v1203_v63 = vadd.f32 %v1868_v17, %v904_v59  ;;  %v778_v0 = vpop.f32.mrb[43].mxu0  ;;  %v906_v1 = vpop.f32.mrb[43].mxu1 }
 0x169   :  { %1298 = vst [vmem:[%s2129_s3 + $0xa0] sm:$0xff] %v1234_v60  ;;  %1330 = vst [vmem:[%s2129_s3 + $0x1a0] sm:$0xff] %v1266_v61  ;;  %v1235_v2 = vmax.f32 %v1171_v62, 0.0  ;;  %v1267_v3 = vmax.f32 %v1203_v63, 0.0 }
 0x16b   :  { %1299 = vst [vmem:[%s2129_s3 + $0xa8] sm:$0xff] %v1235_v2  ;;  %1331 = vst [vmem:[%s2129_s3 + $0x1a8] sm:$0xff] %v1267_v3 }
 0x16c   :  { %v781_v4 = vpop.f32.mrb[44].mxu0  ;;  %v909_v5 = vpop.f32.mrb[44].mxu1 }
 0x16d   :  { %v1172_v6 = vadd.f32 %v1868_v17, %v781_v4  ;;  %v1204_v7 = vadd.f32 %v1868_v17, %v909_v5  ;;  %v783_v8 = vpop.f32.mrb[45].mxu0  ;;  %v911_v9 = vpop.f32.mrb[45].mxu1 }
 0x16e   :  { %v784_v10 = vpop.f32.mrb[46].mxu0  ;;  %v912_v11 = vpop.f32.mrb[46].mxu1 }
 0x16f   :  { %v1236_v12 = vmax.f32 %v1172_v6, 0.0  ;;  %v1268_v13 = vmax.f32 %v1204_v7, 0.0  ;;  %v1173_v14 = vadd.f32 %v1868_v17, %v784_v10  ;;  %v1205_v15 = vadd.f32 %v1868_v17, %v912_v11  ;;  %v786_v16 = vpop.f32.mrb[47].mxu0  ;;  %v914_v18 = vpop.f32.mrb[47].mxu1 }
 0x171   :  { %1300 = vst [vmem:[%s2129_s3 + $0xb0] sm:$0xff] %v1236_v12  ;;  %1332 = vst [vmem:[%s2129_s3 + $0x1b0] sm:$0xff] %v1268_v13  ;;  %v1237_v19 = vmax.f32 %v1173_v14, 0.0  ;;  %v1269_v20 = vmax.f32 %v1205_v15, 0.0 }
 0x173   :  { %1301 = vst [vmem:[%s2129_s3 + $0xb8] sm:$0xff] %v1237_v19  ;;  %1333 = vst [vmem:[%s2129_s3 + $0x1b8] sm:$0xff] %v1269_v20 }
 0x174   :  { %v789_v21 = vpop.f32.mrb[48].mxu0  ;;  %v917_v22 = vpop.f32.mrb[48].mxu1 }
 0x175   :  { %v1174_v23 = vadd.f32 %v1868_v17, %v789_v21  ;;  %v1206_v24 = vadd.f32 %v1868_v17, %v917_v22  ;;  %v791_v25 = vpop.f32.mrb[49].mxu0  ;;  %v919_v26 = vpop.f32.mrb[49].mxu1 }
 0x176   :  { %v792_v27 = vpop.f32.mrb[50].mxu0  ;;  %v920_v28 = vpop.f32.mrb[50].mxu1 }
 0x177   :  { %v1238_v29 = vmax.f32 %v1174_v23, 0.0  ;;  %v1270_v30 = vmax.f32 %v1206_v24, 0.0  ;;  %v1175_v31 = vadd.f32 %v1868_v17, %v792_v27  ;;  %v1207_v32 = vadd.f32 %v1868_v17, %v920_v28  ;;  %v794_v33 = vpop.f32.mrb[51].mxu0  ;;  %v922_v34 = vpop.f32.mrb[51].mxu1 }
 0x179   :  { %1302 = vst [vmem:[%s2129_s3 + $0xc0] sm:$0xff] %v1238_v29  ;;  %1334 = vst [vmem:[%s2129_s3 + $0x1c0] sm:$0xff] %v1270_v30  ;;  %v1239_v35 = vmax.f32 %v1175_v31, 0.0  ;;  %v1271_v36 = vmax.f32 %v1207_v32, 0.0 }
 0x17b   :  { %1303 = vst [vmem:[%s2129_s3 + $0xc8] sm:$0xff] %v1239_v35  ;;  %1335 = vst [vmem:[%s2129_s3 + $0x1c8] sm:$0xff] %v1271_v36 }
 0x17c   :  { %v797_v37 = vpop.f32.mrb[52].mxu0  ;;  %v925_v38 = vpop.f32.mrb[52].mxu1 }
 0x17d   :  { %v1176_v39 = vadd.f32 %v1868_v17, %v797_v37  ;;  %v1208_v40 = vadd.f32 %v1868_v17, %v925_v38  ;;  %v799_v41 = vpop.f32.mrb[53].mxu0  ;;  %v927_v42 = vpop.f32.mrb[53].mxu1 }
 0x17e   :  { %v800_v43 = vpop.f32.mrb[54].mxu0  ;;  %v928_v44 = vpop.f32.mrb[54].mxu1 }
 0x17f   :  { %v1240_v45 = vmax.f32 %v1176_v39, 0.0  ;;  %v1272_v46 = vmax.f32 %v1208_v40, 0.0  ;;  %v1177_v47 = vadd.f32 %v1868_v17, %v800_v43  ;;  %v1209_v48 = vadd.f32 %v1868_v17, %v928_v44  ;;  %v802_v49 = vpop.f32.mrb[55].mxu0  ;;  %v930_v50 = vpop.f32.mrb[55].mxu1 }
 0x181   :  { %1304 = vst [vmem:[%s2129_s3 + $0xd0] sm:$0xff] %v1240_v45  ;;  %1336 = vst [vmem:[%s2129_s3 + $0x1d0] sm:$0xff] %v1272_v46  ;;  %v1241_v51 = vmax.f32 %v1177_v47, 0.0  ;;  %v1273_v52 = vmax.f32 %v1209_v48, 0.0 }
 0x183   :  { %1305 = vst [vmem:[%s2129_s3 + $0xd8] sm:$0xff] %v1241_v51  ;;  %1337 = vst [vmem:[%s2129_s3 + $0x1d8] sm:$0xff] %v1273_v52 }
 0x184   :  { %v805_v53 = vpop.f32.mrb[56].mxu0  ;;  %v933_v54 = vpop.f32.mrb[56].mxu1 }
 0x185   :  { %v1178_v55 = vadd.f32 %v1868_v17, %v805_v53  ;;  %v1210_v56 = vadd.f32 %v1868_v17, %v933_v54  ;;  %v807_v57 = vpop.f32.mrb[57].mxu0  ;;  %v935_v58 = vpop.f32.mrb[57].mxu1 }
 0x186   :  { %v808_v59 = vpop.f32.mrb[58].mxu0  ;;  %v936_v60 = vpop.f32.mrb[58].mxu1 }
 0x187   :  { %v1242_v61 = vmax.f32 %v1178_v55, 0.0  ;;  %v1274_v62 = vmax.f32 %v1210_v56, 0.0  ;;  %v1179_v63 = vadd.f32 %v1868_v17, %v808_v59  ;;  %v1211_v0 = vadd.f32 %v1868_v17, %v936_v60  ;;  %v810_v1 = vpop.f32.mrb[59].mxu0  ;;  %v938_v2 = vpop.f32.mrb[59].mxu1 }
 0x189   :  { %1306 = vst [vmem:[%s2129_s3 + $0xe0] sm:$0xff] %v1242_v61  ;;  %1338 = vst [vmem:[%s2129_s3 + $0x1e0] sm:$0xff] %v1274_v62  ;;  %v1243_v3 = vmax.f32 %v1179_v63, 0.0  ;;  %v1275_v4 = vmax.f32 %v1211_v0, 0.0 }
 0x18b   :  { %1307 = vst [vmem:[%s2129_s3 + $0xe8] sm:$0xff] %v1243_v3  ;;  %1339 = vst [vmem:[%s2129_s3 + $0x1e8] sm:$0xff] %v1275_v4 }
 0x18c   :  { %v813_v5 = vpop.f32.mrb[60].mxu0  ;;  %v941_v6 = vpop.f32.mrb[60].mxu1 }
 0x18d   :  { %v1180_v7 = vadd.f32 %v1868_v17, %v813_v5  ;;  %v1212_v8 = vadd.f32 %v1868_v17, %v941_v6  ;;  %v815_v9 = vpop.f32.mrb[61].mxu0  ;;  %v943_v10 = vpop.f32.mrb[61].mxu1 }
 0x18e   :  { %v816_v11 = vpop.f32.mrb[62].mxu0  ;;  %v944_v12 = vpop.f32.mrb[62].mxu1 }
 0x18f   :  { %v1244_v13 = vmax.f32 %v1180_v7, 0.0  ;;  %v1276_v14 = vmax.f32 %v1212_v8, 0.0  ;;  %v1181_v15 = vadd.f32 %v1868_v17, %v816_v11  ;;  %v1213_v16 = vadd.f32 %v1868_v17, %v944_v12  ;;  %v818_v18 = vpop.f32.mrb[63].mxu0  ;;  %v946_v19 = vpop.f32.mrb[63].mxu1 }
 0x191   :  { %1308 = vst [vmem:[%s2129_s3 + $0xf0] sm:$0xff] %v1244_v13  ;;  %1340 = vst [vmem:[%s2129_s3 + $0x1f0] sm:$0xff] %v1276_v14  ;;  %v1245_v20 = vmax.f32 %v1181_v15, 0.0  ;;  %v1277_v21 = vmax.f32 %v1213_v16, 0.0 }
 0x193   :  { %1309 = vst [vmem:[%s2129_s3 + $0xf8] sm:$0xff] %v1245_v20  ;;  %1341 = vst [vmem:[%s2129_s3 + $0x1f8] sm:$0xff] %v1277_v21 }

// kernel: _lambda_.76
= control target key start
LH: loop header
LB: loop body
LE: loop exit
PB: predicated region body
PF: predicated region fallthrough
CT: control target
= control target key end

     0   :  { %s602_s1 = inlined_call_operand.vmem [shape: bf16[128,128], index: 1, kind: input, shape index: {}]   ;;  %s603_s0 = inlined_call_operand.vmem [shape: bf16[128,128], index: 0, kind: input, shape index: {}]   ;;  %s604_s2 = inlined_call_operand.vmem [shape: f32[1,128], index: 2, kind: input, shape index: {}]   ;;  %s605_s3 = inlined_call_operand.vmem [shape: f32[128,128], index: 3, kind: output, shape index: {}]  }
   0x1   :  { %v467_v0 = vld [vmem:[%s602_s1] sm:$0xff]   ;;  %v468_v1 = vld [vmem:[%s602_s1 + $0x8] sm:$0xff]   ;;  %v469_v2 = vld [vmem:[%s602_s1 + $0x10] sm:$0xff]  }
   0x2   :  { %419 = vmatprep.subr.bf16.mxu0 %v467_v0  ;;  %451 = vmatprep.subr.bf16.mxu1 %v467_v0  ;;  %v470_v3 = vld [vmem:[%s602_s1 + $0x18] sm:$0xff]   ;;  %v475_v4 = vld [vmem:[%s603_s0] sm:$0xff]   ;;  %v472_v7 = vld [vmem:[%s602_s1 + $0x28] sm:$0xff]  }
   0x3   :  { %420 = vmatpush3.bf16.msra.mxu0 %v467_v0  ;;  %459 = vmatpush3.bf16.msra.mxu1 %v467_v0  ;;  %v476_v5 = vld [vmem:[%s603_s0 + $0x20] sm:$0xff]   ;;  %v473_v8 = vld [vmem:[%s602_s1 + $0x30] sm:$0xff]   ;;  %v474_v9 = vld [vmem:[%s602_s1 + $0x38] sm:$0xff]  }
   0x4   :  { %421 = vmatprep.subr.bf16.mxu0 %v468_v1  ;;  %452 = vmatprep.subr.bf16.mxu1 %v468_v1  ;;  %v471_v6 = vld [vmem:[%s602_s1 + $0x20] sm:$0xff]   ;;  %v477_v10 = vld [vmem:[%s603_s0 + $0x8] sm:$0xff]   ;;  %v479_v12 = vld [vmem:[%s603_s0 + $0x10] sm:$0xff]  }
   0x5   :  { %435 = vmatprep.mubr.bf16.mxu0 %v475_v4  ;;  %443 = vmatprep.mubr.bf16.mxu1 %v476_v5  ;;  %v478_v11 = vld [vmem:[%s603_s0 + $0x28] sm:$0xff]   ;;  %v480_v13 = vld [vmem:[%s603_s0 + $0x30] sm:$0xff]   ;;  %v481_v14 = vld [vmem:[%s603_s0 + $0x18] sm:$0xff]  }
   0x6   :  { %v482_v15 = vld [vmem:[%s603_s0 + $0x38] sm:$0xff]   ;;  %v402_v16 = vld [vmem:[%s604_s2] ss:$0 sm:$0xff] }
   0x7   :  { %422 = vmatpush3.bf16.msra.mxu0 %v468_v1  ;;  %460 = vmatpush3.bf16.msra.mxu1 %v468_v1 }
   0x8   :  { %423 = vmatprep.subr.bf16.mxu0 %v469_v2  ;;  %453 = vmatprep.subr.bf16.mxu1 %v469_v2 }
   0xb   :  { %424 = vmatpush3.bf16.msra.mxu0 %v469_v2  ;;  %461 = vmatpush3.bf16.msra.mxu1 %v469_v2 }
   0xc   :  { %425 = vmatprep.subr.bf16.mxu0 %v470_v3  ;;  %454 = vmatprep.subr.bf16.mxu1 %v470_v3 }
   0xf   :  { %426 = vmatpush3.bf16.msra.mxu0 %v470_v3  ;;  %462 = vmatpush3.bf16.msra.mxu1 %v470_v3 }
  0x10   :  { %427 = vmatprep.subr.bf16.mxu0 %v471_v6  ;;  %455 = vmatprep.subr.bf16.mxu1 %v471_v6 }
  0x13   :  { %428 = vmatpush3.bf16.msra.mxu0 %v471_v6  ;;  %463 = vmatpush3.bf16.msra.mxu1 %v471_v6 }
  0x14   :  { %429 = vmatprep.subr.bf16.mxu0 %v472_v7  ;;  %456 = vmatprep.subr.bf16.mxu1 %v472_v7 }
  0x17   :  { %430 = vmatpush3.bf16.msra.mxu0 %v472_v7  ;;  %464 = vmatpush3.bf16.msra.mxu1 %v472_v7 }
  0x18   :  { %431 = vmatprep.subr.bf16.mxu0 %v473_v8  ;;  %457 = vmatprep.subr.bf16.mxu1 %v473_v8 }
  0x1b   :  { %432 = vmatpush3.bf16.msra.mxu0 %v473_v8  ;;  %465 = vmatpush3.bf16.msra.mxu1 %v473_v8 }
  0x1c   :  { %433 = vmatprep.subr.bf16.mxu0 %v474_v9  ;;  %458 = vmatprep.subr.bf16.mxu1 %v474_v9 }
  0x1f   :  { %434 = vmatpush3.bf16.msra.mxu0 %v474_v9  ;;  %466 = vmatpush3.bf16.msra.mxu1 %v474_v9 }
  0x22   :  { %436 = vmatmul.mubr.bf16.vlgmr.msra.gmra.mrb[0].mxu0 %v477_v10  ;;  %444 = vmatmul.mubr.bf16.vlgmr.msra.gmra.mrb[0].mxu1 %v478_v11 }
  0x23   :  { %439 = vmatprep.mubr.bf16.mxu0 %v479_v12  ;;  %447 = vmatprep.mubr.bf16.mxu1 %v480_v13 }
  0x2a   :  { %440 = vmatmul.mubr.bf16.gmra.mrb[4].mxu0 %v481_v14  ;;  %448 = vmatmul.mubr.bf16.gmra.mrb[4].mxu1 %v482_v15 }
  0xf5   :  { %v437_v17 = vpop.f32.mrb[0].mxu0  ;;  %v445_v18 = vpop.f32.mrb[0].mxu1 }
  0xf6   :  { %v336_v19 = vadd.f32 %v437_v17, %v402_v16  ;;  %v344_v20 = vadd.f32 %v445_v18, %v402_v16  ;;  %v213_v21 = vpop.f32.mrb[1].mxu0  ;;  %v245_v22 = vpop.f32.mrb[1].mxu1 }
  0xf7   :  { %v334_v23 = vadd.f32 %v402_v16, %v213_v21  ;;  %v342_v24 = vadd.f32 %v402_v16, %v245_v22  ;;  %v438_v25 = vpop.f32.mrb[2].mxu0  ;;  %v446_v26 = vpop.f32.mrb[2].mxu1 }
  0xf8   :  { %v352_v27 = vmax.f32 %v336_v19, 0.0  ;;  %v360_v28 = vmax.f32 %v344_v20, 0.0  ;;  %v337_v29 = vadd.f32 %v438_v25, %v402_v16  ;;  %v345_v30 = vadd.f32 %v446_v26, %v402_v16  ;;  %v216_v31 = vpop.f32.mrb[3].mxu0  ;;  %v248_v32 = vpop.f32.mrb[3].mxu1 }
  0xf9   :  { %v350_v33 = vmax.f32 %v334_v23, 0.0  ;;  %v358_v34 = vmax.f32 %v342_v24, 0.0  ;;  %v335_v35 = vadd.f32 %v402_v16, %v216_v31  ;;  %v343_v36 = vadd.f32 %v402_v16, %v248_v32 }
  0xfa   :  { %368 = vst [vmem:[%s605_s3 + $0x10] sm:$0xff] %v352_v27  ;;  %376 = vst [vmem:[%s605_s3 + $0x50] sm:$0xff] %v360_v28  ;;  %v353_v37 = vmax.f32 %v337_v29, 0.0  ;;  %v361_v38 = vmax.f32 %v345_v30, 0.0 }
  0xfb   :  { %366 = vst [vmem:[%s605_s3] sm:$0xff] %v350_v33  ;;  %374 = vst [vmem:[%s605_s3 + $0x40] sm:$0xff] %v358_v34  ;;  %v351_v39 = vmax.f32 %v335_v35, 0.0  ;;  %v359_v40 = vmax.f32 %v343_v36, 0.0 }
  0xfc   :  { %369 = vst [vmem:[%s605_s3 + $0x18] sm:$0xff] %v353_v37  ;;  %377 = vst [vmem:[%s605_s3 + $0x58] sm:$0xff] %v361_v38 }
  0xfd   :  { %367 = vst [vmem:[%s605_s3 + $0x8] sm:$0xff] %v351_v39  ;;  %375 = vst [vmem:[%s605_s3 + $0x48] sm:$0xff] %v359_v40  ;;  %v441_v41 = vpop.f32.mrb[4].mxu0  ;;  %v449_v42 = vpop.f32.mrb[4].mxu1 }
  0xfe   :  { %v340_v43 = vadd.f32 %v441_v41, %v402_v16  ;;  %v348_v44 = vadd.f32 %v449_v42, %v402_v16  ;;  %v229_v45 = vpop.f32.mrb[5].mxu0  ;;  %v261_v46 = vpop.f32.mrb[5].mxu1 }
  0xff   :  { %v338_v47 = vadd.f32 %v402_v16, %v229_v45  ;;  %v346_v48 = vadd.f32 %v402_v16, %v261_v46  ;;  %v442_v49 = vpop.f32.mrb[6].mxu0  ;;  %v450_v50 = vpop.f32.mrb[6].mxu1 }
 0x100   :  { %v356_v51 = vmax.f32 %v340_v43, 0.0  ;;  %v364_v52 = vmax.f32 %v348_v44, 0.0  ;;  %v341_v53 = vadd.f32 %v442_v49, %v402_v16  ;;  %v349_v54 = vadd.f32 %v450_v50, %v402_v16  ;;  %v232_v55 = vpop.f32.mrb[7].mxu0  ;;  %v264_v56 = vpop.f32.mrb[7].mxu1 }
 0x101   :  { %v354_v57 = vmax.f32 %v338_v47, 0.0  ;;  %v362_v58 = vmax.f32 %v346_v48, 0.0  ;;  %v339_v59 = vadd.f32 %v402_v16, %v232_v55  ;;  %v347_v60 = vadd.f32 %v402_v16, %v264_v56 }
 0x102   :  { %372 = vst [vmem:[%s605_s3 + $0x30] sm:$0xff] %v356_v51  ;;  %380 = vst [vmem:[%s605_s3 + $0x70] sm:$0xff] %v364_v52  ;;  %v357_v61 = vmax.f32 %v341_v53, 0.0  ;;  %v365_v62 = vmax.f32 %v349_v54, 0.0 }
 0x103   :  { %370 = vst [vmem:[%s605_s3 + $0x20] sm:$0xff] %v354_v57  ;;  %378 = vst [vmem:[%s605_s3 + $0x60] sm:$0xff] %v362_v58  ;;  %v355_v63 = vmax.f32 %v339_v59, 0.0  ;;  %v363_v0 = vmax.f32 %v347_v60, 0.0 }
 0x104   :  { %373 = vst [vmem:[%s605_s3 + $0x38] sm:$0xff] %v357_v61  ;;  %381 = vst [vmem:[%s605_s3 + $0x78] sm:$0xff] %v365_v62 }
 0x105   :  { %371 = vst [vmem:[%s605_s3 + $0x28] sm:$0xff] %v355_v63  ;;  %379 = vst [vmem:[%s605_s3 + $0x68] sm:$0xff] %v363_v0 }

// kernel: _lambda_.77
= control target key start
LH: loop header
LB: loop body
LE: loop exit
PB: predicated region body
PF: predicated region fallthrough
CT: control target
= control target key end

     0   :  { %s820_s1 = inlined_call_operand.vmem [shape: bf16[256,128], index: 1, kind: input, shape index: {}]   ;;  %s821_s0 = inlined_call_operand.vmem [shape: bf16[128,256], index: 0, kind: input, shape index: {}]   ;;  %s822_s2 = inlined_call_operand.vmem [shape: f32[1,128], index: 2, kind: input, shape index: {}]   ;;  %s823_s3 = inlined_call_operand.vmem [shape: f32[128,128], index: 3, kind: output, shape index: {}]  }
   0x1   :  { %v595_v0 = vld [vmem:[%s820_s1 + $0x40] sm:$0xff]   ;;  %v597_v2 = vld [vmem:[%s820_s1 + $0x48] sm:$0xff]   ;;  %v599_v4 = vld [vmem:[%s820_s1 + $0x50] sm:$0xff]  }
   0x2   :  { %v596_v1 = vld [vmem:[%s820_s1] sm:$0xff]   ;;  %515 = vmatprep.subr.bf16.mxu0 %v595_v0  ;;  %579 = vmatprep.subr.bf16.mxu1 %v595_v0  ;;  %v598_v3 = vld [vmem:[%s820_s1 + $0x8] sm:$0xff]   ;;  %v600_v5 = vld [vmem:[%s820_s1 + $0x10] sm:$0xff]  }
   0x3   :  { %516 = vmatpush3.bf16.msra.mxu0 %v596_v1  ;;  %587 = vmatpush3.bf16.msra.mxu1 %v596_v1  ;;  %v601_v6 = vld [vmem:[%s820_s1 + $0x58] sm:$0xff]   ;;  %v603_v8 = vld [vmem:[%s820_s1 + $0x60] sm:$0xff]   ;;  %v605_v10 = vld [vmem:[%s820_s1 + $0x68] sm:$0xff]  }
   0x4   :  { %517 = vmatprep.subr.bf16.mxu0 %v597_v2  ;;  %580 = vmatprep.subr.bf16.mxu1 %v597_v2  ;;  %v602_v7 = vld [vmem:[%s820_s1 + $0x18] sm:$0xff]   ;;  %v604_v9 = vld [vmem:[%s820_s1 + $0x20] sm:$0xff]   ;;  %v606_v13 = vld [vmem:[%s820_s1 + $0x28] sm:$0xff]  }
   0x5   :  { %v613_v11 = vld [vmem:[%s821_s0 + $0x4] ss:$8 sps:$4 sm:$0xff]   ;;  %v607_v14 = vld [vmem:[%s820_s1 + $0x70] sm:$0xff]   ;;  %v609_v16 = vld [vmem:[%s820_s1 + $0x78] sm:$0xff]  }
   0x6   :  { %v616_v12 = vld [vmem:[%s821_s0 + $0x44] ss:$8 sps:$4 sm:$0xff]   ;;  %307 = vmatprep.mubr.bf16.mxu0 %v613_v11  ;;  %v608_v15 = vld [vmem:[%s820_s1 + $0x30] sm:$0xff]   ;;  %v610_v17 = vld [vmem:[%s820_s1 + $0x38] sm:$0xff]  }
   0x7   :  { %518 = vmatpush3.bf16.msra.mxu0 %v598_v3  ;;  %588 = vmatpush3.bf16.msra.mxu1 %v598_v3  ;;  %v611_v18 = vld [vmem:[%s821_s0] ss:$8 sps:$4 sm:$0xff]   ;;  %v617_v20 = vld [vmem:[%s821_s0 + $0x14] ss:$8 sps:$4 sm:$0xff]   ;;  %v621_v22 = vld [vmem:[%s821_s0 + $0x10] ss:$8 sps:$4 sm:$0xff]  }
   0x8   :  { %519 = vmatprep.subr.bf16.mxu0 %v599_v4  ;;  %581 = vmatprep.subr.bf16.mxu1 %v599_v4  ;;  %v614_v19 = vld [vmem:[%s821_s0 + $0x40] ss:$8 sps:$4 sm:$0xff]   ;;  %v619_v21 = vld [vmem:[%s821_s0 + $0x54] ss:$8 sps:$4 sm:$0xff]   ;;  %v622_v23 = vld [vmem:[%s821_s0 + $0x50] ss:$8 sps:$4 sm:$0xff]  }
   0x9   :  { %339 = vmatprep.mubr.bf16.mxu1 %v616_v12  ;;  %v623_v24 = vld [vmem:[%s821_s0 + $0x24] ss:$8 sps:$4 sm:$0xff]   ;;  %v627_v26 = vld [vmem:[%s821_s0 + $0x20] ss:$8 sps:$4 sm:$0xff]   ;;  %v629_v28 = vld [vmem:[%s821_s0 + $0x34] ss:$8 sps:$4 sm:$0xff]  }
   0xa   :  { %v625_v25 = vld [vmem:[%s821_s0 + $0x64] ss:$8 sps:$4 sm:$0xff]   ;;  %v628_v27 = vld [vmem:[%s821_s0 + $0x60] ss:$8 sps:$4 sm:$0xff]   ;;  %v631_v29 = vld [vmem:[%s821_s0 + $0x74] ss:$8 sps:$4 sm:$0xff]  }
   0xb   :  { %520 = vmatpush3.bf16.msra.mxu0 %v600_v5  ;;  %589 = vmatpush3.bf16.msra.mxu1 %v600_v5  ;;  %v633_v30 = vld [vmem:[%s821_s0 + $0x30] ss:$8 sps:$4 sm:$0xff]   ;;  %v754_v35 = vld [vmem:[%s822_s2] ss:$0 sm:$0xff] }
   0xc   :  { %521 = vmatprep.subr.bf16.mxu0 %v601_v6  ;;  %582 = vmatprep.subr.bf16.mxu1 %v601_v6  ;;  %v634_v31 = vld [vmem:[%s821_s0 + $0x70] ss:$8 sps:$4 sm:$0xff]  }
   0xf   :  { %522 = vmatpush3.bf16.msra.mxu0 %v602_v7  ;;  %590 = vmatpush3.bf16.msra.mxu1 %v602_v7 }
  0x10   :  { %523 = vmatprep.subr.bf16.mxu0 %v603_v8  ;;  %583 = vmatprep.subr.bf16.mxu1 %v603_v8 }
  0x13   :  { %524 = vmatpush3.bf16.msra.mxu0 %v604_v9  ;;  %591 = vmatpush3.bf16.msra.mxu1 %v604_v9 }
  0x14   :  { %525 = vmatprep.subr.bf16.mxu0 %v605_v10  ;;  %584 = vmatprep.subr.bf16.mxu1 %v605_v10 }
  0x17   :  { %526 = vmatpush3.bf16.msra.mxu0 %v606_v13  ;;  %592 = vmatpush3.bf16.msra.mxu1 %v606_v13 }
  0x18   :  { %527 = vmatprep.subr.bf16.mxu0 %v607_v14  ;;  %585 = vmatprep.subr.bf16.mxu1 %v607_v14 }
  0x1b   :  { %528 = vmatpush3.bf16.msra.mxu0 %v608_v15  ;;  %593 = vmatpush3.bf16.msra.mxu1 %v608_v15 }
  0x1c   :  { %529 = vmatprep.subr.bf16.mxu0 %v609_v16  ;;  %586 = vmatprep.subr.bf16.mxu1 %v609_v16 }
  0x1f   :  { %530 = vmatpush3.bf16.msra.mxu0 %v610_v17  ;;  %594 = vmatpush3.bf16.msra.mxu1 %v610_v17 }
  0x22   :  { %308 = vmatmul.mubr.bf16.vlgmr.msra.gmra.mrb[0].mxu0 %v611_v18  ;;  %340 = vmatmul.mubr.bf16.vlgmr.msra.gmra.mrb[0].mxu1 %v614_v19 }
  0x23   :  { %315 = vmatprep.mubr.bf16.mxu0 %v617_v20  ;;  %347 = vmatprep.mubr.bf16.mxu1 %v619_v21 }
  0x2a   :  { %316 = vmatmul.mubr.bf16.gmra.mrb[4].mxu0 %v621_v22  ;;  %348 = vmatmul.mubr.bf16.gmra.mrb[4].mxu1 %v622_v23 }
  0x2b   :  { %323 = vmatprep.mubr.bf16.mxu0 %v623_v24  ;;  %355 = vmatprep.mubr.bf16.mxu1 %v625_v25 }
  0x32   :  { %324 = vmatmul.mubr.bf16.gmra.mrb[8].mxu0 %v627_v26  ;;  %356 = vmatmul.mubr.bf16.gmra.mrb[8].mxu1 %v628_v27 }
  0x33   :  { %331 = vmatprep.mubr.bf16.mxu0 %v629_v28  ;;  %363 = vmatprep.mubr.bf16.mxu1 %v631_v29 }
  0x3a   :  { %332 = vmatmul.mubr.bf16.gmra.mrb[12].mxu0 %v633_v30  ;;  %364 = vmatmul.mubr.bf16.gmra.mrb[12].mxu1 %v634_v31 }
  0xf5   :  { %v531_v32 = vpop.f32.mrb[0].mxu0  ;;  %v555_v33 = vpop.f32.mrb[0].mxu1 }
  0xf6   :  { %v532_v34 = vpop.f32.mrb[1].mxu0  ;;  %v556_v36 = vpop.f32.mrb[1].mxu1 }
  0xf7   :  { %v533_v37 = vadd.f32 %v532_v34, %v531_v32  ;;  %v557_v38 = vadd.f32 %v556_v36, %v555_v33  ;;  %v534_v39 = vpop.f32.mrb[2].mxu0  ;;  %v558_v40 = vpop.f32.mrb[2].mxu1 }
  0xf8   :  { %v535_v41 = vpop.f32.mrb[3].mxu0  ;;  %v559_v42 = vpop.f32.mrb[3].mxu1 }
  0xf9   :  { %v430_v43 = vadd.f32 %v533_v37, %v754_v35  ;;  %v438_v44 = vadd.f32 %v557_v38, %v754_v35  ;;  %v536_v45 = vadd.f32 %v535_v41, %v534_v39  ;;  %v560_v46 = vadd.f32 %v559_v42, %v558_v40 }
  0xfb   :  { %v446_v47 = vmax.f32 %v430_v43, 0.0  ;;  %v454_v48 = vmax.f32 %v438_v44, 0.0  ;;  %v431_v49 = vadd.f32 %v536_v45, %v754_v35  ;;  %v439_v50 = vadd.f32 %v560_v46, %v754_v35 }
  0xfd   :  { %462 = vst [vmem:[%s823_s3] sm:$0xff] %v446_v47  ;;  %470 = vst [vmem:[%s823_s3 + $0x40] sm:$0xff] %v454_v48  ;;  %v447_v51 = vmax.f32 %v431_v49, 0.0  ;;  %v455_v52 = vmax.f32 %v439_v50, 0.0  ;;  %v537_v53 = vpop.f32.mrb[4].mxu0  ;;  %v561_v54 = vpop.f32.mrb[4].mxu1 }
  0xfe   :  { %v538_v55 = vpop.f32.mrb[5].mxu0  ;;  %v562_v56 = vpop.f32.mrb[5].mxu1 }
  0xff   :  { %463 = vst [vmem:[%s823_s3 + $0x8] sm:$0xff] %v447_v51  ;;  %471 = vst [vmem:[%s823_s3 + $0x48] sm:$0xff] %v455_v52  ;;  %v539_v57 = vadd.f32 %v538_v55, %v537_v53  ;;  %v563_v58 = vadd.f32 %v562_v56, %v561_v54  ;;  %v540_v59 = vpop.f32.mrb[6].mxu0  ;;  %v564_v60 = vpop.f32.mrb[6].mxu1 }
 0x100   :  { %v541_v61 = vpop.f32.mrb[7].mxu0  ;;  %v565_v62 = vpop.f32.mrb[7].mxu1 }
 0x101   :  { %v432_v63 = vadd.f32 %v539_v57, %v754_v35  ;;  %v440_v0 = vadd.f32 %v563_v58, %v754_v35  ;;  %v542_v1 = vadd.f32 %v541_v61, %v540_v59  ;;  %v566_v2 = vadd.f32 %v565_v62, %v564_v60 }
 0x103   :  { %v448_v3 = vmax.f32 %v432_v63, 0.0  ;;  %v456_v4 = vmax.f32 %v440_v0, 0.0  ;;  %v433_v5 = vadd.f32 %v542_v1, %v754_v35  ;;  %v441_v6 = vadd.f32 %v566_v2, %v754_v35 }
 0x105   :  { %464 = vst [vmem:[%s823_s3 + $0x10] sm:$0xff] %v448_v3  ;;  %472 = vst [vmem:[%s823_s3 + $0x50] sm:$0xff] %v456_v4  ;;  %v449_v7 = vmax.f32 %v433_v5, 0.0  ;;  %v457_v8 = vmax.f32 %v441_v6, 0.0  ;;  %v543_v9 = vpop.f32.mrb[8].mxu0  ;;  %v567_v10 = vpop.f32.mrb[8].mxu1 }
 0x106   :  { %v544_v11 = vpop.f32.mrb[9].mxu0  ;;  %v568_v12 = vpop.f32.mrb[9].mxu1 }
 0x107   :  { %465 = vst [vmem:[%s823_s3 + $0x18] sm:$0xff] %v449_v7  ;;  %473 = vst [vmem:[%s823_s3 + $0x58] sm:$0xff] %v457_v8  ;;  %v545_v13 = vadd.f32 %v544_v11, %v543_v9  ;;  %v569_v14 = vadd.f32 %v568_v12, %v567_v10  ;;  %v546_v15 = vpop.f32.mrb[10].mxu0  ;;  %v570_v16 = vpop.f32.mrb[10].mxu1 }
 0x108   :  { %v547_v17 = vpop.f32.mrb[11].mxu0  ;;  %v571_v18 = vpop.f32.mrb[11].mxu1 }
 0x109   :  { %v434_v19 = vadd.f32 %v545_v13, %v754_v35  ;;  %v442_v20 = vadd.f32 %v569_v14, %v754_v35  ;;  %v548_v21 = vadd.f32 %v547_v17, %v546_v15  ;;  %v572_v22 = vadd.f32 %v571_v18, %v570_v16 }
 0x10b   :  { %v450_v23 = vmax.f32 %v434_v19, 0.0  ;;  %v458_v24 = vmax.f32 %v442_v20, 0.0  ;;  %v435_v25 = vadd.f32 %v548_v21, %v754_v35  ;;  %v443_v26 = vadd.f32 %v572_v22, %v754_v35 }
 0x10d   :  { %466 = vst [vmem:[%s823_s3 + $0x20] sm:$0xff] %v450_v23  ;;  %474 = vst [vmem:[%s823_s3 + $0x60] sm:$0xff] %v458_v24  ;;  %v451_v27 = vmax.f32 %v435_v25, 0.0  ;;  %v459_v28 = vmax.f32 %v443_v26, 0.0  ;;  %v549_v29 = vpop.f32.mrb[12].mxu0  ;;  %v573_v30 = vpop.f32.mrb[12].mxu1 }
 0x10e   :  { %v550_v31 = vpop.f32.mrb[13].mxu0  ;;  %v574_v32 = vpop.f32.mrb[13].mxu1 }
 0x10f   :  { %467 = vst [vmem:[%s823_s3 + $0x28] sm:$0xff] %v451_v27  ;;  %475 = vst [vmem:[%s823_s3 + $0x68] sm:$0xff] %v459_v28  ;;  %v551_v33 = vadd.f32 %v550_v31, %v549_v29  ;;  %v575_v34 = vadd.f32 %v574_v32, %v573_v30  ;;  %v552_v36 = vpop.f32.mrb[14].mxu0  ;;  %v576_v37 = vpop.f32.mrb[14].mxu1 }
 0x110   :  { %v553_v38 = vpop.f32.mrb[15].mxu0  ;;  %v577_v39 = vpop.f32.mrb[15].mxu1 }
 0x111   :  { %v436_v40 = vadd.f32 %v551_v33, %v754_v35  ;;  %v444_v41 = vadd.f32 %v575_v34, %v754_v35  ;;  %v554_v42 = vadd.f32 %v553_v38, %v552_v36  ;;  %v578_v43 = vadd.f32 %v577_v39, %v576_v37 }
 0x113   :  { %v452_v44 = vmax.f32 %v436_v40, 0.0  ;;  %v460_v45 = vmax.f32 %v444_v41, 0.0  ;;  %v437_v46 = vadd.f32 %v554_v42, %v754_v35  ;;  %v445_v47 = vadd.f32 %v578_v43, %v754_v35 }
 0x115   :  { %468 = vst [vmem:[%s823_s3 + $0x30] sm:$0xff] %v452_v44  ;;  %476 = vst [vmem:[%s823_s3 + $0x70] sm:$0xff] %v460_v45  ;;  %v453_v48 = vmax.f32 %v437_v46, 0.0  ;;  %v461_v49 = vmax.f32 %v445_v47, 0.0 }
 0x117   :  { %469 = vst [vmem:[%s823_s3 + $0x38] sm:$0xff] %v453_v48  ;;  %477 = vst [vmem:[%s823_s3 + $0x78] sm:$0xff] %v461_v49 }

// kernel: _lambda_.86
= control target key start
LH: loop header
LB: loop body
LE: loop exit
PB: predicated region body
PF: predicated region fallthrough
CT: control target
= control target key end

     0   :  { %s1157_s1 = inlined_call_operand.vmem [shape: bf16[384,128], index: 1, kind: input, shape index: {}]   ;;  %s1158_s0 = inlined_call_operand.vmem [shape: bf16[128,384], index: 0, kind: input, shape index: {}]   ;;  %s1159_s2 = inlined_call_operand.vmem [shape: f32[1,128], index: 2, kind: input, shape index: {}]   ;;  %s1160_s3 = inlined_call_operand.vmem [shape: f32[128,128], index: 3, kind: output, shape index: {}]  }
   0x1   :  { %v868_v0 = vld [vmem:[%s1157_s1 + $0x40] sm:$0xff]   ;;  %v871_v3 = vld [vmem:[%s1157_s1 + $0x48] sm:$0xff]   ;;  %v874_v6 = vld [vmem:[%s1157_s1 + $0x50] sm:$0xff]  }
   0x2   :  { %v869_v1 = vld [vmem:[%s1157_s1] sm:$0xff]   ;;  %756 = vmatprep.subr.bf16.mxu0 %v868_v0  ;;  %v872_v4 = vld [vmem:[%s1157_s1 + $0x8] sm:$0xff]   ;;  %v875_v7 = vld [vmem:[%s1157_s1 + $0x10] sm:$0xff]  }
   0x3   :  { %v870_v2 = vld [vmem:[%s1157_s1 + $0x80] sm:$0xff]   ;;  %757 = vmatpush3.bf16.msra.mxu0 %v869_v1  ;;  %v873_v5 = vld [vmem:[%s1157_s1 + $0x88] sm:$0xff]   ;;  %v876_v8 = vld [vmem:[%s1157_s1 + $0x90] sm:$0xff]  }
   0x4   :  { %836 = vmatprep.subr.bf16.mxu1 %v870_v2  ;;  %758 = vmatprep.subr.bf16.mxu0 %v871_v3  ;;  %v877_v9 = vld [vmem:[%s1157_s1 + $0x58] sm:$0xff]   ;;  %v880_v12 = vld [vmem:[%s1157_s1 + $0x60] sm:$0xff]   ;;  %v883_v15 = vld [vmem:[%s1157_s1 + $0x68] sm:$0xff]  }
   0x5   :  { %837 = vmatpush3.bf16.msra.mxu1 %v870_v2  ;;  %v878_v10 = vld [vmem:[%s1157_s1 + $0x18] sm:$0xff]   ;;  %v882_v13 = vld [vmem:[%s1157_s1 + $0xa0] sm:$0xff]   ;;  %v885_v16 = vld [vmem:[%s1157_s1 + $0xa8] sm:$0xff]  }
   0x6   :  { %838 = vmatprep.subr.bf16.mxu1 %v873_v5  ;;  %v879_v11 = vld [vmem:[%s1157_s1 + $0x98] sm:$0xff]   ;;  %v881_v14 = vld [vmem:[%s1157_s1 + $0x20] sm:$0xff]   ;;  %v884_v17 = vld [vmem:[%s1157_s1 + $0x28] sm:$0xff]  }
   0x7   :  { %759 = vmatpush3.bf16.msra.mxu0 %v872_v4  ;;  %v886_v18 = vld [vmem:[%s1157_s1 + $0x70] sm:$0xff]   ;;  %v889_v21 = vld [vmem:[%s1157_s1 + $0x78] sm:$0xff]   ;;  %v892_v26 = vld [vmem:[%s1158_s0] ss:$12 sps:$4 sm:$0xff]  }
   0x8   :  { %760 = vmatprep.subr.bf16.mxu0 %v874_v6  ;;  %v887_v19 = vld [vmem:[%s1157_s1 + $0x30] sm:$0xff]   ;;  %v891_v22 = vld [vmem:[%s1157_s1 + $0xb8] sm:$0xff]   ;;  %v896_v28 = vld [vmem:[%s1158_s0 + $0x20] ss:$12 sps:$4 sm:$0xff]  }
   0x9   :  { %839 = vmatpush3.bf16.msra.mxu1 %v873_v5  ;;  %v888_v20 = vld [vmem:[%s1157_s1 + $0xb0] sm:$0xff]   ;;  %v890_v25 = vld [vmem:[%s1157_s1 + $0x38] sm:$0xff]   ;;  %v912_v36 = vld [vmem:[%s1158_s0 + $0x80] ss:$12 sps:$4 sm:$0xff]  }
   0xa   :  { %840 = vmatprep.subr.bf16.mxu1 %v876_v8  ;;  %v894_v23 = vld [vmem:[%s1158_s0 + $0x4] ss:$12 sps:$4 sm:$0xff]   ;;  %v895_v24 = vld [vmem:[%s1158_s0 + $0x8] ss:$12 sps:$4 sm:$0xff]   ;;  %v905_v35 = vld [vmem:[%s1158_s0 + $0x4c] ss:$12 sps:$4 sm:$0xff]  }
   0xb   :  { %761 = vmatpush3.bf16.msra.mxu0 %v875_v7  ;;  %435 = vmatprep.mubr.bf16.mxu0 %v894_v23  ;;  %v897_v27 = vld [vmem:[%s1158_s0 + $0x1c] ss:$12 sps:$4 sm:$0xff]   ;;  %v903_v29 = vld [vmem:[%s1158_s0 + $0x38] ss:$12 sps:$4 sm:$0xff]   ;;  %v900_v31 = vld [vmem:[%s1158_s0 + $0x34] ss:$12 sps:$4 sm:$0xff]  }
   0xc   :  { %762 = vmatprep.subr.bf16.mxu0 %v877_v9  ;;  %852 = vmatprep.mubr.bf16.mxu1 %v895_v24  ;;  %v899_v30 = vld [vmem:[%s1158_s0 + $0x18] ss:$12 sps:$4 sm:$0xff]   ;;  %v904_v32 = vld [vmem:[%s1158_s0 + $0x50] ss:$12 sps:$4 sm:$0xff]   ;;  %v911_v33 = vld [vmem:[%s1158_s0 + $0x68] ss:$12 sps:$4 sm:$0xff]  }
   0xd   :  { %841 = vmatpush3.bf16.msra.mxu1 %v876_v8  ;;  %v902_v34 = vld [vmem:[%s1158_s0 + $0x30] ss:$12 sps:$4 sm:$0xff]   ;;  %v919_v37 = vld [vmem:[%s1158_s0 + $0x98] ss:$12 sps:$4 sm:$0xff]   ;;  %v907_v38 = vld [vmem:[%s1158_s0 + $0x48] ss:$12 sps:$4 sm:$0xff]  }
   0xe   :  { %842 = vmatprep.subr.bf16.mxu1 %v879_v11  ;;  %v908_v39 = vld [vmem:[%s1158_s0 + $0x64] ss:$12 sps:$4 sm:$0xff]   ;;  %v910_v41 = vld [vmem:[%s1158_s0 + $0x60] ss:$12 sps:$4 sm:$0xff]   ;;  %v913_v42 = vld [vmem:[%s1158_s0 + $0x7c] ss:$12 sps:$4 sm:$0xff]  }
   0xf   :  { %763 = vmatpush3.bf16.msra.mxu0 %v878_v10  ;;  %v920_v40 = vld [vmem:[%s1158_s0 + $0xb0] ss:$12 sps:$4 sm:$0xff]   ;;  %v915_v43 = vld [vmem:[%s1158_s0 + $0x78] ss:$12 sps:$4 sm:$0xff]   ;;  %v916_v44 = vld [vmem:[%s1158_s0 + $0x94] ss:$12 sps:$4 sm:$0xff]  }
  0x10   :  { %764 = vmatprep.subr.bf16.mxu0 %v880_v12  ;;  %v918_v45 = vld [vmem:[%s1158_s0 + $0x90] ss:$12 sps:$4 sm:$0xff]   ;;  %v921_v46 = vld [vmem:[%s1158_s0 + $0xac] ss:$12 sps:$4 sm:$0xff]   ;;  %v923_v47 = vld [vmem:[%s1158_s0 + $0xa8] ss:$12 sps:$4 sm:$0xff]  }
  0x11   :  { %843 = vmatpush3.bf16.msra.mxu1 %v879_v11  ;;  %v1091_v55 = vld [vmem:[%s1159_s2] ss:$0 sm:$0xff] }
  0x12   :  { %844 = vmatprep.subr.bf16.mxu1 %v882_v13 }
  0x13   :  { %765 = vmatpush3.bf16.msra.mxu0 %v881_v14 }
  0x14   :  { %766 = vmatprep.subr.bf16.mxu0 %v883_v15 }
  0x15   :  { %845 = vmatpush3.bf16.msra.mxu1 %v882_v13 }
  0x16   :  { %846 = vmatprep.subr.bf16.mxu1 %v885_v16 }
  0x17   :  { %767 = vmatpush3.bf16.msra.mxu0 %v884_v17 }
  0x18   :  { %768 = vmatprep.subr.bf16.mxu0 %v886_v18 }
  0x19   :  { %847 = vmatpush3.bf16.msra.mxu1 %v885_v16 }
  0x1a   :  { %848 = vmatprep.subr.bf16.mxu1 %v888_v20 }
  0x1b   :  { %769 = vmatpush3.bf16.msra.mxu0 %v887_v19 }
  0x1c   :  { %770 = vmatprep.subr.bf16.mxu0 %v889_v21 }
  0x1d   :  { %849 = vmatpush3.bf16.msra.mxu1 %v888_v20 }
  0x1e   :  { %850 = vmatprep.subr.bf16.mxu1 %v891_v22 }
  0x1f   :  { %771 = vmatpush3.bf16.msra.mxu0 %v890_v25 }
  0x21   :  { %851 = vmatpush3.bf16.msra.mxu1 %v891_v22 }
  0x22   :  { %436 = vmatmul.mubr.bf16.vlgmr.msra.gmra.mrb[0].mxu0 %v892_v26 }
  0x23   :  { %443 = vmatprep.mubr.bf16.mxu0 %v897_v27 }
  0x24   :  { %853 = vmatmul.mubr.bf16.vlgmr.msra.gmra.mrb[0].mxu1 %v896_v28 }
  0x25   :  { %856 = vmatprep.mubr.bf16.mxu1 %v903_v29 }
  0x2a   :  { %444 = vmatmul.mubr.bf16.gmra.mrb[4].mxu0 %v899_v30 }
  0x2b   :  { %451 = vmatprep.mubr.bf16.mxu0 %v900_v31 }
  0x2c   :  { %857 = vmatmul.mubr.bf16.gmra.mrb[4].mxu1 %v904_v32 }
  0x2d   :  { %860 = vmatprep.mubr.bf16.mxu1 %v911_v33 }
  0x32   :  { %452 = vmatmul.mubr.bf16.gmra.mrb[8].mxu0 %v902_v34 }
  0x33   :  { %459 = vmatprep.mubr.bf16.mxu0 %v905_v35 }
  0x34   :  { %861 = vmatmul.mubr.bf16.gmra.mrb[8].mxu1 %v912_v36 }
  0x35   :  { %864 = vmatprep.mubr.bf16.mxu1 %v919_v37 }
  0x3a   :  { %460 = vmatmul.mubr.bf16.gmra.mrb[12].mxu0 %v907_v38 }
  0x3b   :  { %467 = vmatprep.mubr.bf16.mxu0 %v908_v39 }
  0x3c   :  { %865 = vmatmul.mubr.bf16.gmra.mrb[12].mxu1 %v920_v40 }
  0x42   :  { %468 = vmatmul.mubr.bf16.gmra.mrb[16].mxu0 %v910_v41 }
  0x43   :  { %475 = vmatprep.mubr.bf16.mxu0 %v913_v42 }
  0x4a   :  { %476 = vmatmul.mubr.bf16.gmra.mrb[20].mxu0 %v915_v43 }
  0x4b   :  { %483 = vmatprep.mubr.bf16.mxu0 %v916_v44 }
  0x52   :  { %484 = vmatmul.mubr.bf16.gmra.mrb[24].mxu0 %v918_v45 }
  0x53   :  { %491 = vmatprep.mubr.bf16.mxu0 %v921_v46 }
  0x5a   :  { %492 = vmatmul.mubr.bf16.gmra.mrb[28].mxu0 %v923_v47 }
  0xf5   :  { %v772_v48 = vpop.f32.mrb[0].mxu0 }
  0xf6   :  { %v773_v49 = vpop.f32.mrb[1].mxu0 }
  0xf7   :  { %v774_v50 = vadd.f32 %v773_v49, %v772_v48  ;;  %v775_v51 = vpop.f32.mrb[2].mxu0  ;;  %v854_v52 = vpop.f32.mrb[0].mxu1 }
  0xf8   :  { %v776_v53 = vpop.f32.mrb[3].mxu0  ;;  %v534_v54 = vpop.f32.mrb[1].mxu1 }
  0xf9   :  { %v777_v56 = vadd.f32 %v776_v53, %v775_v51  ;;  %v535_v57 = vadd.f32 %v774_v50, %v534_v54  ;;  %v855_v58 = vpop.f32.mrb[2].mxu1 }
  0xfa   :  { %v537_v59 = vpop.f32.mrb[3].mxu1 }
  0xfb   :  { %v655_v60 = vadd.f32 %v1091_v55, %v535_v57  ;;  %v538_v61 = vadd.f32 %v777_v56, %v537_v59 }
  0xfd   :  { %v671_v62 = vmax.f32 %v655_v60, 0.0  ;;  %v656_v63 = vadd.f32 %v1091_v55, %v538_v61  ;;  %v778_v0 = vpop.f32.mrb[4].mxu0 }
  0xfe   :  { %v779_v1 = vpop.f32.mrb[5].mxu0 }
  0xff   :  { %687 = vst [vmem:[%s1160_s3] sm:$0xff] %v671_v62  ;;  %v672_v2 = vmax.f32 %v656_v63, 0.0  ;;  %v780_v3 = vadd.f32 %v779_v1, %v778_v0  ;;  %v781_v4 = vpop.f32.mrb[6].mxu0  ;;  %v858_v5 = vpop.f32.mrb[4].mxu1 }
 0x100   :  { %v782_v6 = vpop.f32.mrb[7].mxu0  ;;  %v550_v7 = vpop.f32.mrb[5].mxu1 }
 0x101   :  { %688 = vst [vmem:[%s1160_s3 + $0x8] sm:$0xff] %v672_v2  ;;  %v543_v8 = vadd.f32 %v854_v52, %v780_v3  ;;  %v783_v9 = vadd.f32 %v782_v6, %v781_v4  ;;  %v859_v10 = vpop.f32.mrb[6].mxu1 }
 0x102   :  { %v553_v11 = vpop.f32.mrb[7].mxu1 }
 0x103   :  { %v657_v12 = vadd.f32 %v1091_v55, %v543_v8  ;;  %v546_v13 = vadd.f32 %v855_v58, %v783_v9 }
 0x105   :  { %v673_v14 = vmax.f32 %v657_v12, 0.0  ;;  %v658_v15 = vadd.f32 %v1091_v55, %v546_v13  ;;  %v784_v16 = vpop.f32.mrb[8].mxu0 }
 0x106   :  { %v785_v17 = vpop.f32.mrb[9].mxu0 }
 0x107   :  { %689 = vst [vmem:[%s1160_s3 + $0x10] sm:$0xff] %v673_v14  ;;  %v674_v18 = vmax.f32 %v658_v15, 0.0  ;;  %v786_v19 = vadd.f32 %v785_v17, %v784_v16  ;;  %v787_v20 = vpop.f32.mrb[10].mxu0  ;;  %v862_v21 = vpop.f32.mrb[8].mxu1 }
 0x108   :  { %v788_v22 = vpop.f32.mrb[11].mxu0  ;;  %v566_v23 = vpop.f32.mrb[9].mxu1 }
 0x109   :  { %690 = vst [vmem:[%s1160_s3 + $0x18] sm:$0xff] %v674_v18  ;;  %v789_v24 = vadd.f32 %v788_v22, %v787_v20  ;;  %v551_v25 = vadd.f32 %v786_v19, %v550_v7  ;;  %v863_v26 = vpop.f32.mrb[10].mxu1 }
 0x10a   :  { %v569_v27 = vpop.f32.mrb[11].mxu1 }
 0x10b   :  { %v659_v28 = vadd.f32 %v1091_v55, %v551_v25  ;;  %v554_v29 = vadd.f32 %v789_v24, %v553_v11 }
 0x10d   :  { %v675_v30 = vmax.f32 %v659_v28, 0.0  ;;  %v660_v31 = vadd.f32 %v1091_v55, %v554_v29  ;;  %v790_v32 = vpop.f32.mrb[12].mxu0 }
 0x10e   :  { %v791_v33 = vpop.f32.mrb[13].mxu0 }
 0x10f   :  { %691 = vst [vmem:[%s1160_s3 + $0x20] sm:$0xff] %v675_v30  ;;  %v676_v34 = vmax.f32 %v660_v31, 0.0  ;;  %v792_v35 = vadd.f32 %v791_v33, %v790_v32  ;;  %v793_v36 = vpop.f32.mrb[14].mxu0  ;;  %v866_v37 = vpop.f32.mrb[12].mxu1 }
 0x110   :  { %v794_v38 = vpop.f32.mrb[15].mxu0  ;;  %v582_v39 = vpop.f32.mrb[13].mxu1 }
 0x111   :  { %692 = vst [vmem:[%s1160_s3 + $0x28] sm:$0xff] %v676_v34  ;;  %v559_v40 = vadd.f32 %v858_v5, %v792_v35  ;;  %v795_v41 = vadd.f32 %v794_v38, %v793_v36  ;;  %v867_v42 = vpop.f32.mrb[14].mxu1 }
 0x112   :  { %v585_v43 = vpop.f32.mrb[15].mxu1 }
 0x113   :  { %v661_v44 = vadd.f32 %v1091_v55, %v559_v40  ;;  %v562_v45 = vadd.f32 %v859_v10, %v795_v41 }
 0x115   :  { %v677_v46 = vmax.f32 %v661_v44, 0.0  ;;  %v662_v47 = vadd.f32 %v1091_v55, %v562_v45  ;;  %v796_v48 = vpop.f32.mrb[16].mxu0 }
 0x116   :  { %v797_v49 = vpop.f32.mrb[17].mxu0 }
 0x117   :  { %693 = vst [vmem:[%s1160_s3 + $0x30] sm:$0xff] %v677_v46  ;;  %v678_v50 = vmax.f32 %v662_v47, 0.0  ;;  %v798_v51 = vadd.f32 %v797_v49, %v796_v48  ;;  %v799_v52 = vpop.f32.mrb[18].mxu0 }
 0x118   :  { %v800_v53 = vpop.f32.mrb[19].mxu0 }
 0x119   :  { %694 = vst [vmem:[%s1160_s3 + $0x38] sm:$0xff] %v678_v50  ;;  %v801_v54 = vadd.f32 %v800_v53, %v799_v52  ;;  %v567_v56 = vadd.f32 %v798_v51, %v566_v23 }
 0x11b   :  { %v663_v57 = vadd.f32 %v1091_v55, %v567_v56  ;;  %v570_v58 = vadd.f32 %v801_v54, %v569_v27 }
 0x11d   :  { %v679_v59 = vmax.f32 %v663_v57, 0.0  ;;  %v664_v60 = vadd.f32 %v1091_v55, %v570_v58  ;;  %v802_v61 = vpop.f32.mrb[20].mxu0 }
 0x11e   :  { %v803_v62 = vpop.f32.mrb[21].mxu0 }
 0x11f   :  { %695 = vst [vmem:[%s1160_s3 + $0x40] sm:$0xff] %v679_v59  ;;  %v680_v63 = vmax.f32 %v664_v60, 0.0  ;;  %v804_v0 = vadd.f32 %v803_v62, %v802_v61  ;;  %v805_v1 = vpop.f32.mrb[22].mxu0 }
 0x120   :  { %v806_v2 = vpop.f32.mrb[23].mxu0 }
 0x121   :  { %696 = vst [vmem:[%s1160_s3 + $0x48] sm:$0xff] %v680_v63  ;;  %v575_v3 = vadd.f32 %v862_v21, %v804_v0  ;;  %v807_v4 = vadd.f32 %v806_v2, %v805_v1 }
 0x123   :  { %v665_v5 = vadd.f32 %v1091_v55, %v575_v3  ;;  %v578_v6 = vadd.f32 %v863_v26, %v807_v4 }
 0x125   :  { %v681_v7 = vmax.f32 %v665_v5, 0.0  ;;  %v666_v8 = vadd.f32 %v1091_v55, %v578_v6  ;;  %v808_v9 = vpop.f32.mrb[24].mxu0 }
 0x126   :  { %v809_v10 = vpop.f32.mrb[25].mxu0 }
 0x127   :  { %697 = vst [vmem:[%s1160_s3 + $0x50] sm:$0xff] %v681_v7  ;;  %v682_v11 = vmax.f32 %v666_v8, 0.0  ;;  %v810_v12 = vadd.f32 %v809_v10, %v808_v9  ;;  %v811_v13 = vpop.f32.mrb[26].mxu0 }
 0x128   :  { %v812_v14 = vpop.f32.mrb[27].mxu0 }
 0x129   :  { %698 = vst [vmem:[%s1160_s3 + $0x58] sm:$0xff] %v682_v11  ;;  %v813_v15 = vadd.f32 %v812_v14, %v811_v13  ;;  %v583_v16 = vadd.f32 %v810_v12, %v582_v39 }
 0x12b   :  { %v667_v17 = vadd.f32 %v1091_v55, %v583_v16  ;;  %v586_v18 = vadd.f32 %v813_v15, %v585_v43 }
 0x12d   :  { %v683_v19 = vmax.f32 %v667_v17, 0.0  ;;  %v668_v20 = vadd.f32 %v1091_v55, %v586_v18  ;;  %v814_v21 = vpop.f32.mrb[28].mxu0 }
 0x12e   :  { %v815_v22 = vpop.f32.mrb[29].mxu0 }
 0x12f   :  { %699 = vst [vmem:[%s1160_s3 + $0x60] sm:$0xff] %v683_v19  ;;  %v684_v23 = vmax.f32 %v668_v20, 0.0  ;;  %v816_v24 = vadd.f32 %v815_v22, %v814_v21  ;;  %v817_v25 = vpop.f32.mrb[30].mxu0 }
 0x130   :  { %v818_v26 = vpop.f32.mrb[31].mxu0 }
 0x131   :  { %700 = vst [vmem:[%s1160_s3 + $0x68] sm:$0xff] %v684_v23  ;;  %v591_v27 = vadd.f32 %v866_v37, %v816_v24  ;;  %v819_v28 = vadd.f32 %v818_v26, %v817_v25 }
 0x133   :  { %v669_v29 = vadd.f32 %v1091_v55, %v591_v27  ;;  %v594_v30 = vadd.f32 %v867_v42, %v819_v28 }
 0x135   :  { %v685_v31 = vmax.f32 %v669_v29, 0.0  ;;  %v670_v32 = vadd.f32 %v1091_v55, %v594_v30 }
 0x137   :  { %701 = vst [vmem:[%s1160_s3 + $0x70] sm:$0xff] %v685_v31  ;;  %v686_v33 = vmax.f32 %v670_v32, 0.0 }
 0x139   :  { %702 = vst [vmem:[%s1160_s3 + $0x78] sm:$0xff] %v686_v33 }

// kernel: _lambda_.87
= control target key start
LH: loop header
LB: loop body
LE: loop exit
PB: predicated region body
PF: predicated region fallthrough
CT: control target
= control target key end

     0   :  { %s306_s1 = inlined_call_operand.vmem [shape: bf16[128,128], index: 1, kind: input, shape index: {}]   ;;  %s307_s0 = inlined_call_operand.vmem [shape: bf16[32,128], index: 0, kind: input, shape index: {}]   ;;  %s308_s2 = inlined_call_operand.vmem [shape: f32[1,128], index: 2, kind: input, shape index: {}]   ;;  %s309_s3 = inlined_call_operand.vmem [shape: f32[32,128], index: 3, kind: output, shape index: {}]  }
   0x1   :  { %v231_v0 = vld [vmem:[%s306_s1] sm:$0xff]   ;;  %v232_v1 = vld [vmem:[%s306_s1 + $0x8] sm:$0xff]   ;;  %v233_v2 = vld [vmem:[%s306_s1 + $0x10] sm:$0xff]  }
   0x2   :  { %211 = vmatprep.subr.bf16.mxu0 %v231_v0  ;;  %v234_v3 = vld [vmem:[%s306_s1 + $0x18] sm:$0xff]   ;;  %v239_v4 = vld [vmem:[%s307_s0] sm:$0xff]   ;;  %v236_v6 = vld [vmem:[%s306_s1 + $0x28] sm:$0xff]  }
   0x3   :  { %212 = vmatpush3.bf16.msra.mxu0 %v231_v0  ;;  %227 = vmatprep.mubr.bf16.mxu0 %v239_v4  ;;  %v235_v5 = vld [vmem:[%s306_s1 + $0x20] sm:$0xff]   ;;  %v237_v7 = vld [vmem:[%s306_s1 + $0x30] sm:$0xff]   ;;  %v238_v8 = vld [vmem:[%s306_s1 + $0x38] sm:$0xff]  }
   0x4   :  { %213 = vmatprep.subr.bf16.mxu0 %v232_v1  ;;  %v240_v9 = vld [vmem:[%s307_s0 + $0x8] sm:$0xff]   ;;  %v200_v10 = vld [vmem:[%s308_s2] ss:$0 sm:$0xff] }
   0x7   :  { %214 = vmatpush3.bf16.msra.mxu0 %v232_v1 }
   0x8   :  { %215 = vmatprep.subr.bf16.mxu0 %v233_v2 }
   0xb   :  { %216 = vmatpush3.bf16.msra.mxu0 %v233_v2 }
   0xc   :  { %217 = vmatprep.subr.bf16.mxu0 %v234_v3 }
   0xf   :  { %218 = vmatpush3.bf16.msra.mxu0 %v234_v3 }
  0x10   :  { %219 = vmatprep.subr.bf16.mxu0 %v235_v5 }
  0x13   :  { %220 = vmatpush3.bf16.msra.mxu0 %v235_v5 }
  0x14   :  { %221 = vmatprep.subr.bf16.mxu0 %v236_v6 }
  0x17   :  { %222 = vmatpush3.bf16.msra.mxu0 %v236_v6 }
  0x18   :  { %223 = vmatprep.subr.bf16.mxu0 %v237_v7 }
  0x1b   :  { %224 = vmatpush3.bf16.msra.mxu0 %v237_v7 }
  0x1c   :  { %225 = vmatprep.subr.bf16.mxu0 %v238_v8 }
  0x1f   :  { %226 = vmatpush3.bf16.msra.mxu0 %v238_v8 }
  0x22   :  { %228 = vmatmul.mubr.bf16.vlgmr.msra.gmra.mrb[0].mxu0 %v240_v9 }
  0xf5   :  { %v229_v11 = vpop.f32.mrb[0].mxu0 }
  0xf6   :  { %v180_v12 = vadd.f32 %v229_v11, %v200_v10  ;;  %v141_v13 = vpop.f32.mrb[1].mxu0 }
  0xf7   :  { %v178_v14 = vadd.f32 %v200_v10, %v141_v13  ;;  %v230_v15 = vpop.f32.mrb[2].mxu0 }
  0xf8   :  { %184 = vst [vmem:[%s309_s3 + $0x10] sm:$0xff] %v180_v12  ;;  %v181_v16 = vadd.f32 %v230_v15, %v200_v10  ;;  %v144_v17 = vpop.f32.mrb[3].mxu0 }
  0xf9   :  { %182 = vst [vmem:[%s309_s3] sm:$0xff] %v178_v14  ;;  %v179_v18 = vadd.f32 %v200_v10, %v144_v17 }
  0xfa   :  { %185 = vst [vmem:[%s309_s3 + $0x18] sm:$0xff] %v181_v16 }
  0xfb   :  { %183 = vst [vmem:[%s309_s3 + $0x8] sm:$0xff] %v179_v18 }

// kernel: _lambda_.89
= control target key start
LH: loop header
LB: loop body
LE: loop exit
PB: predicated region body
PF: predicated region fallthrough
CT: control target
= control target key end

     0   :  { %s310_s1 = inlined_call_operand.vmem [shape: bf16[128,128], index: 1, kind: input, shape index: {}]   ;;  %s311_s0 = inlined_call_operand.vmem [shape: bf16[32,128], index: 0, kind: input, shape index: {}]   ;;  %s312_s2 = inlined_call_operand.vmem [shape: f32[1,128], index: 2, kind: input, shape index: {}]   ;;  %s313_s3 = inlined_call_operand.vmem [shape: f32[32,128], index: 3, kind: output, shape index: {}]  }
   0x1   :  { %v235_v0 = vld [vmem:[%s310_s1] sm:$0xff]   ;;  %v236_v1 = vld [vmem:[%s310_s1 + $0x8] sm:$0xff]   ;;  %v237_v2 = vld [vmem:[%s310_s1 + $0x10] sm:$0xff]  }
   0x2   :  { %215 = vmatprep.subr.bf16.mxu0 %v235_v0  ;;  %v238_v3 = vld [vmem:[%s310_s1 + $0x18] sm:$0xff]   ;;  %v243_v4 = vld [vmem:[%s311_s0] sm:$0xff]   ;;  %v240_v6 = vld [vmem:[%s310_s1 + $0x28] sm:$0xff]  }
   0x3   :  { %216 = vmatpush3.bf16.msra.mxu0 %v235_v0  ;;  %231 = vmatprep.mubr.bf16.mxu0 %v243_v4  ;;  %v239_v5 = vld [vmem:[%s310_s1 + $0x20] sm:$0xff]   ;;  %v241_v7 = vld [vmem:[%s310_s1 + $0x30] sm:$0xff]   ;;  %v242_v8 = vld [vmem:[%s310_s1 + $0x38] sm:$0xff]  }
   0x4   :  { %217 = vmatprep.subr.bf16.mxu0 %v236_v1  ;;  %v244_v9 = vld [vmem:[%s311_s0 + $0x8] sm:$0xff]   ;;  %v204_v10 = vld [vmem:[%s312_s2] ss:$0 sm:$0xff] }
   0x7   :  { %218 = vmatpush3.bf16.msra.mxu0 %v236_v1 }
   0x8   :  { %219 = vmatprep.subr.bf16.mxu0 %v237_v2 }
   0xb   :  { %220 = vmatpush3.bf16.msra.mxu0 %v237_v2 }
   0xc   :  { %221 = vmatprep.subr.bf16.mxu0 %v238_v3 }
   0xf   :  { %222 = vmatpush3.bf16.msra.mxu0 %v238_v3 }
  0x10   :  { %223 = vmatprep.subr.bf16.mxu0 %v239_v5 }
  0x13   :  { %224 = vmatpush3.bf16.msra.mxu0 %v239_v5 }
  0x14   :  { %225 = vmatprep.subr.bf16.mxu0 %v240_v6 }
  0x17   :  { %226 = vmatpush3.bf16.msra.mxu0 %v240_v6 }
  0x18   :  { %227 = vmatprep.subr.bf16.mxu0 %v241_v7 }
  0x1b   :  { %228 = vmatpush3.bf16.msra.mxu0 %v241_v7 }
  0x1c   :  { %229 = vmatprep.subr.bf16.mxu0 %v242_v8 }
  0x1f   :  { %230 = vmatpush3.bf16.msra.mxu0 %v242_v8 }
  0x22   :  { %232 = vmatmul.mubr.bf16.vlgmr.msra.gmra.mrb[0].mxu0 %v244_v9 }
  0xf5   :  { %v233_v11 = vpop.f32.mrb[0].mxu0 }
  0xf6   :  { %v180_v12 = vadd.f32 %v233_v11, %v204_v10  ;;  %v141_v13 = vpop.f32.mrb[1].mxu0 }
  0xf7   :  { %v178_v14 = vadd.f32 %v204_v10, %v141_v13  ;;  %v234_v15 = vpop.f32.mrb[2].mxu0 }
  0xf8   :  { %v184_v16 = vmax.f32 %v180_v12, 0.0  ;;  %v181_v17 = vadd.f32 %v234_v15, %v204_v10  ;;  %v144_v18 = vpop.f32.mrb[3].mxu0 }
  0xf9   :  { %v182_v19 = vmax.f32 %v178_v14, 0.0  ;;  %v179_v20 = vadd.f32 %v204_v10, %v144_v18 }
  0xfa   :  { %188 = vst [vmem:[%s313_s3 + $0x10] sm:$0xff] %v184_v16  ;;  %v185_v21 = vmax.f32 %v181_v17, 0.0 }
  0xfb   :  { %186 = vst [vmem:[%s313_s3] sm:$0xff] %v182_v19  ;;  %v183_v22 = vmax.f32 %v179_v20, 0.0 }
  0xfc   :  { %189 = vst [vmem:[%s313_s3 + $0x18] sm:$0xff] %v185_v21 }
  0xfd   :  { %187 = vst [vmem:[%s313_s3 + $0x8] sm:$0xff] %v183_v22 }

// kernel: _lambda_.90
= control target key start
LH: loop header
LB: loop body
LE: loop exit
PB: predicated region body
PF: predicated region fallthrough
CT: control target
= control target key end

     0   :  { %s641_s1 = inlined_call_operand.vmem [shape: bf16[384,128], index: 1, kind: input, shape index: {}]   ;;  %s642_s0 = inlined_call_operand.vmem [shape: bf16[32,384], index: 0, kind: input, shape index: {}]   ;;  %s643_s2 = inlined_call_operand.vmem [shape: f32[1,128], index: 2, kind: input, shape index: {}]   ;;  %s644_s3 = inlined_call_operand.vmem [shape: f32[32,128], index: 3, kind: output, shape index: {}]  }
   0x1   :  { %v484_v0 = vld [vmem:[%s641_s1 + $0x40] sm:$0xff]   ;;  %v487_v3 = vld [vmem:[%s641_s1 + $0x48] sm:$0xff]   ;;  %v490_v6 = vld [vmem:[%s641_s1 + $0x50] sm:$0xff]  }
   0x2   :  { %v485_v1 = vld [vmem:[%s641_s1] sm:$0xff]   ;;  %426 = vmatprep.subr.bf16.mxu0 %v484_v0  ;;  %v488_v4 = vld [vmem:[%s641_s1 + $0x8] sm:$0xff]   ;;  %v491_v7 = vld [vmem:[%s641_s1 + $0x10] sm:$0xff]  }
   0x3   :  { %v486_v2 = vld [vmem:[%s641_s1 + $0x80] sm:$0xff]   ;;  %427 = vmatpush3.bf16.msra.mxu0 %v485_v1  ;;  %v489_v5 = vld [vmem:[%s641_s1 + $0x88] sm:$0xff]   ;;  %v492_v8 = vld [vmem:[%s641_s1 + $0x90] sm:$0xff]  }
   0x4   :  { %464 = vmatprep.subr.bf16.mxu1 %v486_v2  ;;  %428 = vmatprep.subr.bf16.mxu0 %v487_v3  ;;  %v493_v9 = vld [vmem:[%s641_s1 + $0x58] sm:$0xff]   ;;  %v496_v12 = vld [vmem:[%s641_s1 + $0x60] sm:$0xff]   ;;  %v499_v15 = vld [vmem:[%s641_s1 + $0x68] sm:$0xff]  }
   0x5   :  { %465 = vmatpush3.bf16.msra.mxu1 %v486_v2  ;;  %v494_v10 = vld [vmem:[%s641_s1 + $0x18] sm:$0xff]   ;;  %v498_v13 = vld [vmem:[%s641_s1 + $0xa0] sm:$0xff]   ;;  %v501_v16 = vld [vmem:[%s641_s1 + $0xa8] sm:$0xff]  }
   0x6   :  { %466 = vmatprep.subr.bf16.mxu1 %v489_v5  ;;  %v495_v11 = vld [vmem:[%s641_s1 + $0x98] sm:$0xff]   ;;  %v497_v14 = vld [vmem:[%s641_s1 + $0x20] sm:$0xff]   ;;  %v500_v17 = vld [vmem:[%s641_s1 + $0x28] sm:$0xff]  }
   0x7   :  { %429 = vmatpush3.bf16.msra.mxu0 %v488_v4  ;;  %v502_v18 = vld [vmem:[%s641_s1 + $0x70] sm:$0xff]   ;;  %v505_v21 = vld [vmem:[%s641_s1 + $0x78] sm:$0xff]   ;;  %v508_v26 = vld [vmem:[%s642_s0] ss:$12 sps:$4 sm:$0xff]  }
   0x8   :  { %430 = vmatprep.subr.bf16.mxu0 %v490_v6  ;;  %v503_v19 = vld [vmem:[%s641_s1 + $0x30] sm:$0xff]   ;;  %v507_v22 = vld [vmem:[%s641_s1 + $0xb8] sm:$0xff]   ;;  %v512_v28 = vld [vmem:[%s642_s0 + $0x20] ss:$12 sps:$4 sm:$0xff]  }
   0x9   :  { %467 = vmatpush3.bf16.msra.mxu1 %v489_v5  ;;  %v504_v20 = vld [vmem:[%s641_s1 + $0xb0] sm:$0xff]   ;;  %v506_v25 = vld [vmem:[%s641_s1 + $0x38] sm:$0xff]   ;;  %v425_v37 = vld [vmem:[%s643_s2] ss:$0 sm:$0xff] }
   0xa   :  { %468 = vmatprep.subr.bf16.mxu1 %v492_v8  ;;  %v510_v23 = vld [vmem:[%s642_s0 + $0x4] ss:$12 sps:$4 sm:$0xff]   ;;  %v511_v24 = vld [vmem:[%s642_s0 + $0x8] ss:$12 sps:$4 sm:$0xff]  }
   0xb   :  { %431 = vmatpush3.bf16.msra.mxu0 %v491_v7  ;;  %291 = vmatprep.mubr.bf16.mxu0 %v510_v23  ;;  %v513_v27 = vld [vmem:[%s642_s0 + $0x1c] ss:$12 sps:$4 sm:$0xff]   ;;  %v515_v29 = vld [vmem:[%s642_s0 + $0x18] ss:$12 sps:$4 sm:$0xff]  }
   0xc   :  { %432 = vmatprep.subr.bf16.mxu0 %v493_v9  ;;  %480 = vmatprep.mubr.bf16.mxu1 %v511_v24 }
   0xd   :  { %469 = vmatpush3.bf16.msra.mxu1 %v492_v8 }
   0xe   :  { %470 = vmatprep.subr.bf16.mxu1 %v495_v11 }
   0xf   :  { %433 = vmatpush3.bf16.msra.mxu0 %v494_v10 }
  0x10   :  { %434 = vmatprep.subr.bf16.mxu0 %v496_v12 }
  0x11   :  { %471 = vmatpush3.bf16.msra.mxu1 %v495_v11 }
  0x12   :  { %472 = vmatprep.subr.bf16.mxu1 %v498_v13 }
  0x13   :  { %435 = vmatpush3.bf16.msra.mxu0 %v497_v14 }
  0x14   :  { %436 = vmatprep.subr.bf16.mxu0 %v499_v15 }
  0x15   :  { %473 = vmatpush3.bf16.msra.mxu1 %v498_v13 }
  0x16   :  { %474 = vmatprep.subr.bf16.mxu1 %v501_v16 }
  0x17   :  { %437 = vmatpush3.bf16.msra.mxu0 %v500_v17 }
  0x18   :  { %438 = vmatprep.subr.bf16.mxu0 %v502_v18 }
  0x19   :  { %475 = vmatpush3.bf16.msra.mxu1 %v501_v16 }
  0x1a   :  { %476 = vmatprep.subr.bf16.mxu1 %v504_v20 }
  0x1b   :  { %439 = vmatpush3.bf16.msra.mxu0 %v503_v19 }
  0x1c   :  { %440 = vmatprep.subr.bf16.mxu0 %v505_v21 }
  0x1d   :  { %477 = vmatpush3.bf16.msra.mxu1 %v504_v20 }
  0x1e   :  { %478 = vmatprep.subr.bf16.mxu1 %v507_v22 }
  0x1f   :  { %441 = vmatpush3.bf16.msra.mxu0 %v506_v25 }
  0x21   :  { %479 = vmatpush3.bf16.msra.mxu1 %v507_v22 }
  0x22   :  { %292 = vmatmul.mubr.bf16.vlgmr.msra.gmra.mrb[0].mxu0 %v508_v26 }
  0x23   :  { %299 = vmatprep.mubr.bf16.mxu0 %v513_v27 }
  0x24   :  { %481 = vmatmul.mubr.bf16.vlgmr.msra.gmra.mrb[0].mxu1 %v512_v28 }
  0x2a   :  { %300 = vmatmul.mubr.bf16.gmra.mrb[4].mxu0 %v515_v29 }
  0xf5   :  { %v442_v30 = vpop.f32.mrb[0].mxu0 }
  0xf6   :  { %v443_v31 = vpop.f32.mrb[1].mxu0 }
  0xf7   :  { %v444_v32 = vadd.f32 %v443_v31, %v442_v30  ;;  %v445_v33 = vpop.f32.mrb[2].mxu0  ;;  %v482_v34 = vpop.f32.mrb[0].mxu1 }
  0xf8   :  { %v446_v35 = vpop.f32.mrb[3].mxu0  ;;  %v342_v36 = vpop.f32.mrb[1].mxu1 }
  0xf9   :  { %v447_v38 = vadd.f32 %v446_v35, %v445_v33  ;;  %v343_v39 = vadd.f32 %v444_v32, %v342_v36  ;;  %v483_v40 = vpop.f32.mrb[2].mxu1 }
  0xfa   :  { %v345_v41 = vpop.f32.mrb[3].mxu1 }
  0xfb   :  { %v379_v42 = vadd.f32 %v425_v37, %v343_v39  ;;  %v346_v43 = vadd.f32 %v447_v38, %v345_v41 }
  0xfd   :  { %v383_v44 = vmax.f32 %v379_v42, 0.0  ;;  %v380_v45 = vadd.f32 %v425_v37, %v346_v43  ;;  %v448_v46 = vpop.f32.mrb[4].mxu0 }
  0xfe   :  { %v449_v47 = vpop.f32.mrb[5].mxu0 }
  0xff   :  { %387 = vst [vmem:[%s644_s3] sm:$0xff] %v383_v44  ;;  %v384_v48 = vmax.f32 %v380_v45, 0.0  ;;  %v450_v49 = vadd.f32 %v449_v47, %v448_v46  ;;  %v451_v50 = vpop.f32.mrb[6].mxu0 }
 0x100   :  { %v452_v51 = vpop.f32.mrb[7].mxu0 }
 0x101   :  { %388 = vst [vmem:[%s644_s3 + $0x8] sm:$0xff] %v384_v48  ;;  %v351_v52 = vadd.f32 %v482_v34, %v450_v49  ;;  %v453_v53 = vadd.f32 %v452_v51, %v451_v50 }
 0x103   :  { %v381_v54 = vadd.f32 %v425_v37, %v351_v52  ;;  %v354_v55 = vadd.f32 %v483_v40, %v453_v53 }
 0x105   :  { %v385_v56 = vmax.f32 %v381_v54, 0.0  ;;  %v382_v57 = vadd.f32 %v425_v37, %v354_v55 }
 0x107   :  { %389 = vst [vmem:[%s644_s3 + $0x10] sm:$0xff] %v385_v56  ;;  %v386_v58 = vmax.f32 %v382_v57, 0.0 }
 0x109   :  { %390 = vst [vmem:[%s644_s3 + $0x18] sm:$0xff] %v386_v58 }

// kernel: _lambda_.105
= control target key start
LH: loop header
LB: loop body
LE: loop exit
PB: predicated region body
PF: predicated region fallthrough
CT: control target
= control target key end

     0   :  { %s1040_s12 = smov 0   ;;  %s1042_s13 = smov 0   ;;  %s1166_s0 = inlined_call_operand.vmem [shape: bf16[32,1024], index: 0, kind: input, shape index: {}]   ;;  %s1167_s1 = inlined_call_operand.vmem [shape: bf16[1024,128], index: 1, kind: input, shape index: {}]   ;;  %s1168_s2 = inlined_call_operand.vmem [shape: f32[1,128], index: 2, kind: input, shape index: {}]   ;;  %s1169_s3 = inlined_call_operand.vmem [shape: f32[32,128], index: 3, kind: output, shape index: {}]  }
   0x1   :  { %s1044_s14 = smov 0   ;;  %s1046_s15 = smov 0  }
   0x2   :  { %s1048_s16 = smov 0  }
   0x3 LB: > { %s22_s17 = sadd.s32 1, %s1013_s15  ;;  %p41_p1 = scmp.ne.s32.totalorder %s1005_s13, %s1001_s12  ;;  %s1017_s16 = sphi %s1048_s16, %s13_s16   ;;  %s1013_s15 = sphi %s1046_s15, %s1173_s15   ;;  %s1009_s14 = sphi %s1044_s14, %s1172_s14   ;;  %s1005_s13 = sphi %s1042_s13, %s1171_s13   ;;  %s1001_s12 = sphi %s1040_s12, %s1170_s12  }
   0x4   : > { %p23_p0 = scmp.ge.s32.totalorder %s22_s17, 2  ;;  %p42_p2 = scmp.eq.s32.totalorder %s1017_s16, 0 }
   0x5   : > { %s34_s19 = sadd.s32 1, %s1005_s13  ;;  %p782_p5 = scmp.ge.s32.totalorder %s1017_s16, 2 }
   0x6   : > { %s1175_s17 = smov (%p23_p0, %s22_s17), 0  ;;  %p43_p3 = por %p42_p2, %p41_p1 }
   0x7   : > { %s30_s18 = ssub.s32 %s1013_s15, %s1175_s17  ;;  %143 = sbr.rel (%p782_p5) target bundleno = 22 (0x16), region = 20 }
   0x8   : > { %p32_p4 = scmp.eq.s32.totalorder %s30_s18, 0 }
   0xa   : > { %s1075_s20 = scalar_select %p32_p4, %s1005_s13, %s34_s19  }
   0xe   : > { %146 = sbr.rel (!%p43_p3) target bundleno = 22 (0x16), region = 24  ;;  %s148_s21 = sand.u32 (%p43_p3), 1, %s1005_s13  }
   0xf   : > { %s837_s22 = sshll.u32 (%p43_p3), %s1013_s15, 4  ;;  %s783_s23 = sshll.u32 (%p43_p3), %s148_s21, 6 }
  0x10   : > { %s156_s26 = scalar_lea.vmem (%p43_p3), %s1166_s0, %s837_s22  ;;  %s150_s27 = scalar_lea.vmem (%p43_p3), [#allocation3], %s783_s23 }
  0x11   : > { %v169_v0 = vld [vmem:[%s156_s26] sm:$0xff] (%p43_p3)  ;;  %v171_v1 = vld [vmem:[%s156_s26 + $0x8] sm:$0xff] (%p43_p3) }
  0x12   : > { %v173_v2 = vld [vmem:[%s156_s26 + $0x20] sm:$0xff] (%p43_p3)  ;;  %170 = vst [vmem:[%s150_s27] sm:$0xff] (%p43_p3), %v169_v0  ;;  %172 = vst [vmem:[%s150_s27 + $0x8] sm:$0xff] (%p43_p3), %v171_v1  ;;  %v175_v3 = vld [vmem:[%s156_s26 + $0x28] sm:$0xff] (%p43_p3) }
  0x13   : > { %174 = vst [vmem:[%s150_s27 + $0x10] sm:$0xff] (%p43_p3), %v173_v2  ;;  %v177_v4 = vld [vmem:[%s156_s26 + $0x40] sm:$0xff] (%p43_p3)  ;;  %v179_v5 = vld [vmem:[%s156_s26 + $0x48] sm:$0xff] (%p43_p3)  ;;  %176 = vst [vmem:[%s150_s27 + $0x18] sm:$0xff] (%p43_p3), %v175_v3 }
  0x14   : > { %178 = vst [vmem:[%s150_s27 + $0x20] sm:$0xff] (%p43_p3), %v177_v4  ;;  %180 = vst [vmem:[%s150_s27 + $0x28] sm:$0xff] (%p43_p3), %v179_v5  ;;  %v181_v6 = vld [vmem:[%s156_s26 + $0x60] sm:$0xff] (%p43_p3)  ;;  %v183_v7 = vld [vmem:[%s156_s26 + $0x68] sm:$0xff] (%p43_p3) }
  0x15   : > { %182 = vst [vmem:[%s150_s27 + $0x30] sm:$0xff] %v181_v6  ;;  %184 = vst [vmem:[%s150_s27 + $0x38] sm:$0xff] %v183_v7 }
  0x16 PF: > { %p786_p6 = scmp.ge.s32.totalorder %s1017_s16, 1  ;;  %p198_p7 = scmp.lt.s32.totalorder %s1017_s16, 3 }
  0x18   : > { %p199_p8 = pnand %p786_p6, %p198_p7 }
  0x19   : > { %s205_s28 = sand.u32 (!%p199_p8), 1, %s1001_s12   ;;  %s788_s29 = sshll.u32 (!%p199_p8), %s1009_s14, 6 }
  0x1a   : > { %202 = sbr.rel (%p199_p8) target bundleno = 317 (0x13d), region = 51  ;;  %s787_s30 = sshll.u32 (!%p199_p8), %s205_s28, 6 }
  0x1b   : > { %p236_p9 = scmp.lt.s32.totalorder (!%p199_p8), %s788_s29, 127  ;;  %s1092_s8 = scalar_lea.vmem (!%p199_p8), [#allocation3], %s787_s30 }
  0x1c   : > { %p790_p10 = scmp.ne.s32.totalorder (!%p199_p8), %s1009_s14, 0 }
  0x21   : > { %s1177_s29 = smov (!%p236_p9, %s788_s29), 127  ;;  %251 = sbr.rel (%p790_p10) target bundleno = 40 (0x28), region = 59 }
  0x22   : > { %s789_s4 = sshll.u32 %s1177_s29, 2  ;;  %v1019_v8 = vmov (!%p790_p10), 0.0  }
  0x23   : > { %s1090_s7 = scalar_lea.vmem %s1167_s1, %s789_s4  ;;  %252 = vst [vmem:[#allocation2] sm:$0xff] (!%p790_p10), %v1019_v8  ;;  %253 = vst [vmem:[#allocation2 + $0x8] sm:$0xff] (!%p790_p10), %v1019_v8 }
  0x24   : > { %254 = vst [vmem:[#allocation2 + $0x10] sm:$0xff] (!%p790_p10), %v1019_v8  ;;  %255 = vst [vmem:[#allocation2 + $0x18] sm:$0xff] (!%p790_p10), %v1019_v8 }
  0x28 PF: > { %v935_v9 = vld [vmem:[%s1090_s7 + $0x40] sm:$0xff]   ;;  %v939_v13 = vld [vmem:[%s1090_s7 + $0x48] sm:$0xff]   ;;  %v943_v17 = vld [vmem:[%s1090_s7 + $0x50] sm:$0xff]   ;;  %p831_p11 = scmp.ne.s32.totalorder %s1009_s14, 1 }
  0x29   : > { %v936_v10 = vld [vmem:[%s1090_s7 + $0xc0] sm:$0xff]   ;;  %838 = vmatprep.subr.bf16.mxu0 %v935_v9  ;;  %v940_v14 = vld [vmem:[%s1090_s7 + $0xc8] sm:$0xff]   ;;  %v944_v18 = vld [vmem:[%s1090_s7 + $0xd0] sm:$0xff]  }
  0x2a   : > { %v937_v11 = vld [vmem:[%s1090_s7] sm:$0xff]   ;;  %866 = vmatprep.subr.bf16.mxu1 %v936_v10  ;;  %v941_v15 = vld [vmem:[%s1090_s7 + $0x8] sm:$0xff]   ;;  %v945_v19 = vld [vmem:[%s1090_s7 + $0x10] sm:$0xff]  }
  0x2b   : > { %v938_v12 = vld [vmem:[%s1090_s7 + $0x80] sm:$0xff]   ;;  %839 = vmatpush3.bf16.msra.mxu0 %v937_v11  ;;  %v942_v16 = vld [vmem:[%s1090_s7 + $0x88] sm:$0xff]   ;;  %v946_v20 = vld [vmem:[%s1090_s7 + $0x90] sm:$0xff]  }
  0x2c   : > { %867 = vmatpush3.bf16.msra.mxu1 %v938_v12  ;;  %840 = vmatprep.subr.bf16.mxu0 %v939_v13  ;;  %v947_v21 = vld [vmem:[%s1090_s7 + $0x58] sm:$0xff]   ;;  %v951_v25 = vld [vmem:[%s1090_s7 + $0x60] sm:$0xff]   ;;  %v955_v29 = vld [vmem:[%s1090_s7 + $0x68] sm:$0xff]  }
  0x2d   : > { %868 = vmatprep.subr.bf16.mxu1 %v940_v14  ;;  %v948_v22 = vld [vmem:[%s1090_s7 + $0xd8] sm:$0xff]   ;;  %v952_v26 = vld [vmem:[%s1090_s7 + $0xe0] sm:$0xff]   ;;  %v956_v30 = vld [vmem:[%s1090_s7 + $0xe8] sm:$0xff]  }
  0x2e   : > { %v949_v23 = vld [vmem:[%s1090_s7 + $0x18] sm:$0xff]   ;;  %v953_v27 = vld [vmem:[%s1090_s7 + $0x20] sm:$0xff]   ;;  %v957_v31 = vld [vmem:[%s1090_s7 + $0x28] sm:$0xff]  }
  0x2f   : > { %841 = vmatpush3.bf16.msra.mxu0 %v941_v15  ;;  %v950_v24 = vld [vmem:[%s1090_s7 + $0x98] sm:$0xff]   ;;  %v954_v28 = vld [vmem:[%s1090_s7 + $0xa0] sm:$0xff]   ;;  %v958_v32 = vld [vmem:[%s1090_s7 + $0xa8] sm:$0xff]  }
  0x30   : > { %869 = vmatpush3.bf16.msra.mxu1 %v942_v16  ;;  %842 = vmatprep.subr.bf16.mxu0 %v943_v17  ;;  %v959_v33 = vld [vmem:[%s1090_s7 + $0x70] sm:$0xff]   ;;  %v963_v37 = vld [vmem:[%s1090_s7 + $0x78] sm:$0xff]   ;;  %v256_v58 = vld [vmem:[#allocation2] sm:$0xff] }
  0x31   : > { %870 = vmatprep.subr.bf16.mxu1 %v944_v18  ;;  %v960_v34 = vld [vmem:[%s1090_s7 + $0xf0] sm:$0xff]   ;;  %v964_v38 = vld [vmem:[%s1090_s7 + $0xf8] sm:$0xff]   ;;  %v257_v63 = vld [vmem:[#allocation2 + $0x8] sm:$0xff] }
  0x32   : > { %v961_v35 = vld [vmem:[%s1090_s7 + $0x30] sm:$0xff]   ;;  %v965_v39 = vld [vmem:[%s1090_s7 + $0x38] sm:$0xff]  }
  0x33   : > { %843 = vmatpush3.bf16.msra.mxu0 %v945_v19  ;;  %v962_v36 = vld [vmem:[%s1090_s7 + $0xb0] sm:$0xff]   ;;  %v966_v40 = vld [vmem:[%s1090_s7 + $0xb8] sm:$0xff]  }
  0x34   : > { %871 = vmatpush3.bf16.msra.mxu1 %v946_v20  ;;  %844 = vmatprep.subr.bf16.mxu0 %v947_v21  ;;  %v967_v41 = vld [vmem:[%s1092_s8] ss:$16 sps:$4 sm:$0xff]   ;;  %v969_v42 = vld [vmem:[%s1092_s8 + $0x4] ss:$16 sps:$4 sm:$0xff]   ;;  %v970_v43 = vld [vmem:[%s1092_s8 + $0x8] ss:$16 sps:$4 sm:$0xff]  }
  0x35   : > { %872 = vmatprep.subr.bf16.mxu1 %v948_v22  ;;  %v972_v44 = vld [vmem:[%s1092_s8 + $0xc] ss:$16 sps:$4 sm:$0xff]   ;;  %596 = vmatprep.mubr.bf16.mxu0 %v969_v42  ;;  %v973_v45 = vld [vmem:[%s1092_s8 + $0x24] ss:$16 sps:$4 sm:$0xff]   ;;  %v977_v47 = vld [vmem:[%s1092_s8 + $0x20] ss:$16 sps:$4 sm:$0xff]  }
  0x36   : > { %645 = vmatprep.mubr.bf16.mxu1 %v972_v44  ;;  %v975_v46 = vld [vmem:[%s1092_s8 + $0x2c] ss:$16 sps:$4 sm:$0xff]   ;;  %v978_v48 = vld [vmem:[%s1092_s8 + $0x28] ss:$16 sps:$4 sm:$0xff]   ;;  %v258_v12 = vld [vmem:[#allocation2 + $0x10] sm:$0xff] }
  0x37   : > { %845 = vmatpush3.bf16.msra.mxu0 %v949_v23  ;;  %v259_v17 = vld [vmem:[#allocation2 + $0x18] sm:$0xff]  ;;  %v832_v22 = vld [vmem:[%s1168_s2] ss:$0 sm:$0xff] (!%p831_p11) }
  0x38   : > { %873 = vmatpush3.bf16.msra.mxu1 %v950_v24  ;;  %846 = vmatprep.subr.bf16.mxu0 %v951_v25 }
  0x39   : > { %874 = vmatprep.subr.bf16.mxu1 %v952_v26 }
  0x3b   : > { %847 = vmatpush3.bf16.msra.mxu0 %v953_v27 }
  0x3c   : > { %875 = vmatpush3.bf16.msra.mxu1 %v954_v28  ;;  %848 = vmatprep.subr.bf16.mxu0 %v955_v29 }
  0x3d   : > { %876 = vmatprep.subr.bf16.mxu1 %v956_v30 }
  0x3f   : > { %849 = vmatpush3.bf16.msra.mxu0 %v957_v31 }
  0x40   : > { %877 = vmatpush3.bf16.msra.mxu1 %v958_v32  ;;  %850 = vmatprep.subr.bf16.mxu0 %v959_v33 }
  0x41   : > { %878 = vmatprep.subr.bf16.mxu1 %v960_v34 }
  0x43   : > { %851 = vmatpush3.bf16.msra.mxu0 %v961_v35 }
  0x44   : > { %879 = vmatpush3.bf16.msra.mxu1 %v962_v36  ;;  %852 = vmatprep.subr.bf16.mxu0 %v963_v37 }
  0x45   : > { %880 = vmatprep.subr.bf16.mxu1 %v964_v38 }
  0x47   : > { %853 = vmatpush3.bf16.msra.mxu0 %v965_v39 }
  0x48   : > { %881 = vmatpush3.bf16.msra.mxu1 %v966_v40 }
  0x4a   : > { %597 = vmatmul.mubr.bf16.vlgmr.msra.gmra.mrb[0].mxu0 %v967_v41 }
  0x4b   : > { %646 = vmatmul.mubr.bf16.vlgmr.msra.gmra.mrb[0].mxu1 %v970_v43  ;;  %604 = vmatprep.mubr.bf16.mxu0 %v973_v45 }
  0x4c   : > { %653 = vmatprep.mubr.bf16.mxu1 %v975_v46 }
  0x52   : > { %605 = vmatmul.mubr.bf16.gmra.mrb[4].mxu0 %v977_v47 }
  0x53   : > { %654 = vmatmul.mubr.bf16.gmra.mrb[4].mxu1 %v978_v48 }
 0x11d   : > { %v854_v49 = vpop.f32.mrb[0].mxu0 }
 0x11e   : > { %v882_v50 = vpop.f32.mrb[0].mxu1  ;;  %v855_v51 = vpop.f32.mrb[1].mxu0 }
 0x11f   : > { %v856_v52 = vadd.f32 %v855_v51, %v854_v49  ;;  %v883_v53 = vpop.f32.mrb[1].mxu1  ;;  %v857_v54 = vpop.f32.mrb[2].mxu0 }
 0x120   : > { %v884_v55 = vadd.f32 %v883_v53, %v882_v50  ;;  %v885_v56 = vpop.f32.mrb[2].mxu1  ;;  %v858_v57 = vpop.f32.mrb[3].mxu0 }
 0x121   : > { %v859_v59 = vadd.f32 %v858_v57, %v857_v54  ;;  %v886_v60 = vpop.f32.mrb[3].mxu1 }
 0x122   : > { %v648_v61 = vadd.f32 %v884_v55, %v856_v52  ;;  %v887_v62 = vadd.f32 %v886_v60, %v885_v56 }
 0x124   : > { %v662_v0 = vadd.f32 %v648_v61, %v256_v58  ;;  %v651_v1 = vadd.f32 %v887_v62, %v859_v59 }
 0x125   : > { %v860_v2 = vpop.f32.mrb[4].mxu0 }
 0x126   : > { %666 = vst [vmem:[#allocation2] sm:$0xff] %v662_v0  ;;  %v663_v3 = vadd.f32 %v651_v1, %v257_v63  ;;  %v888_v4 = vpop.f32.mrb[4].mxu1  ;;  %v861_v5 = vpop.f32.mrb[5].mxu0 }
 0x127   : > { %v862_v6 = vadd.f32 %v861_v5, %v860_v2  ;;  %v889_v7 = vpop.f32.mrb[5].mxu1  ;;  %v863_v8 = vpop.f32.mrb[6].mxu0 }
 0x128   : > { %667 = vst [vmem:[#allocation2 + $0x8] sm:$0xff] %v663_v3  ;;  %v890_v9 = vadd.f32 %v889_v7, %v888_v4  ;;  %v891_v10 = vpop.f32.mrb[6].mxu1  ;;  %v864_v11 = vpop.f32.mrb[7].mxu0 }
 0x129   : > { %v865_v13 = vadd.f32 %v864_v11, %v863_v8  ;;  %v892_v14 = vpop.f32.mrb[7].mxu1 }
 0x12a   : > { %v656_v15 = vadd.f32 %v890_v9, %v862_v6  ;;  %v893_v16 = vadd.f32 %v892_v14, %v891_v10  ;;  %673 = sbr.rel (%p831_p11) target bundleno = 317 (0x13d), region = 63 }
 0x12c   : > { %v664_v18 = vadd.f32 %v656_v15, %v258_v12  ;;  %v659_v19 = vadd.f32 %v893_v16, %v865_v13 }
 0x12d   : > { %v674_v21 = vld [vmem:[#allocation2] sm:$0xff] (!%p831_p11) }
 0x12e   : > { %668 = vst [vmem:[#allocation2 + $0x10] sm:$0xff] %v664_v18  ;;  %v665_v20 = vadd.f32 %v659_v19, %v259_v17  ;;  %v685_v24 = vadd.f32 (!%p831_p11), %v832_v22, %v674_v21 }
 0x12f   : > { %v675_v23 = vld [vmem:[#allocation2 + $0x8] sm:$0xff] (!%p831_p11) }
 0x130   : > { %669 = vst [vmem:[#allocation2 + $0x18] sm:$0xff] %v665_v20  ;;  %v686_v25 = vadd.f32 (!%p831_p11), %v832_v22, %v675_v23  ;;  %v689_v30 = vmax.f32 (!%p831_p11), %v685_v24, 0.0 }
 0x132   : > { %v690_v31 = vmax.f32 %v686_v25, 0.0  ;;  %693 = vst [vmem:[%s1169_s3] sm:$0xff] %v689_v30 }
 0x134   : > { %694 = vst [vmem:[%s1169_s3 + $0x8] sm:$0xff] %v690_v31 }
 0x135   : > { %v676_v26 = vld [vmem:[#allocation2 + $0x10] sm:$0xff] }
 0x136   : > { %v687_v28 = vadd.f32 %v832_v22, %v676_v26 }
 0x137   : > { %v677_v27 = vld [vmem:[#allocation2 + $0x18] sm:$0xff] }
 0x138   : > { %v688_v29 = vadd.f32 %v832_v22, %v677_v27  ;;  %v691_v32 = vmax.f32 %v687_v28, 0.0 }
 0x13a   : > { %v692_v33 = vmax.f32 %v688_v29, 0.0  ;;  %695 = vst [vmem:[%s1169_s3 + $0x10] sm:$0xff] %v691_v32 }
 0x13c   : > { %696 = vst [vmem:[%s1169_s3 + $0x18] sm:$0xff] %v692_v33 }
 0x13d PF: > { %s13_s16 = sadd.s32 1, %s1017_s16   ;;  %s1170_s12 = smov %s1005_s13 }
 0x13e   : > { %p10_p12 = scmp.ge.s32.totalorder %s13_s16, 4   ;;  %s1171_s13 = smov %s1075_s20 }
 0x13f   : > { %s1172_s14 = smov %s1013_s15  ;;  %s1173_s15 = smov %s1175_s17 }
 0x140   :  { %12 = sbr.rel (!%p10_p12) target bundleno = 3 (0x3), region = 101 }

// kernel: _lambda_.106
= control target key start
LH: loop header
LB: loop body
LE: loop exit
PB: predicated region body
PF: predicated region fallthrough
CT: control target
= control target key end

     0   :  { %v231_v1 = vmov 0   ;;  %v172_v18 = vlaneseq  ;;  %s312_s1 = inlined_call_operand.vmem [shape: bf16[128,256], index: 1, kind: input, shape index: {}]   ;;  %s313_s0 = inlined_call_operand.vmem [shape: bf16[8,128], index: 0, kind: input, shape index: {}]   ;;  %s314_s2 = inlined_call_operand.vmem [shape: f32[1,256], index: 2, kind: input, shape index: {}]   ;;  %s315_s3 = inlined_call_operand.vmem [shape: f32[8,256], index: 3, kind: output, shape index: {}]  }
   0x1   :  { %v207_v0 = vld [vmem:[%s312_s1 + $0x4] ss:$8 sps:$4 sm:$0xff]   ;;  %152 = vmatprep.mubr.bf16.mxu0 %v231_v1  ;;  %v209_v2 = vld [vmem:[%s312_s1] ss:$8 sps:$4 sm:$0xff]   ;;  %v210_v3 = vld [vmem:[%s312_s1 + $0x14] ss:$8 sps:$4 sm:$0xff]  }
   0x2   :  { %120 = vmatprep.subr.bf16.mxu0 %v207_v0  ;;  %v212_v4 = vld [vmem:[%s312_s1 + $0x10] ss:$8 sps:$4 sm:$0xff]   ;;  %v213_v5 = vld [vmem:[%s312_s1 + $0x24] ss:$8 sps:$4 sm:$0xff]   ;;  %v215_v6 = vld [vmem:[%s312_s1 + $0x20] ss:$8 sps:$4 sm:$0xff]  }
   0x3   :  { %121 = vmatpush1.bf16.msra.mxu0 %v209_v2  ;;  %v216_v7 = vld [vmem:[%s312_s1 + $0x34] ss:$8 sps:$4 sm:$0xff]   ;;  %v218_v8 = vld [vmem:[%s312_s1 + $0x30] ss:$8 sps:$4 sm:$0xff]   ;;  %v219_v9 = vld [vmem:[%s312_s1 + $0x44] ss:$8 sps:$4 sm:$0xff]  }
   0x4   :  { %122 = vmatprep.subr.bf16.mxu0 %v210_v3  ;;  %v221_v10 = vld [vmem:[%s312_s1 + $0x40] ss:$8 sps:$4 sm:$0xff]   ;;  %v222_v11 = vld [vmem:[%s312_s1 + $0x54] ss:$8 sps:$4 sm:$0xff]   ;;  %v224_v12 = vld [vmem:[%s312_s1 + $0x50] ss:$8 sps:$4 sm:$0xff]  }
   0x5   :  { %v225_v13 = vld [vmem:[%s312_s1 + $0x64] ss:$8 sps:$4 sm:$0xff]   ;;  %v227_v14 = vld [vmem:[%s312_s1 + $0x60] ss:$8 sps:$4 sm:$0xff]   ;;  %v228_v15 = vld [vmem:[%s312_s1 + $0x74] ss:$8 sps:$4 sm:$0xff]  }
   0x6   :  { %v230_v16 = vld [vmem:[%s312_s1 + $0x70] ss:$8 sps:$4 sm:$0xff]   ;;  %v23_v17 = vld [vmem:[%s313_s0] sm:$0xf]  ;;  %v173_v19 = vshrl.u32 %v172_v18, 7 }
   0x7   :  { %123 = vmatpush1.bf16.msra.mxu0 %v212_v4  ;;  %v170_v21 = vld [vmem:[%s314_s2] sm:$0x3] }
   0x8   :  { %124 = vmatprep.subr.bf16.mxu0 %v213_v5  ;;  %v174_v20 = vsub.s32 0, %v173_v19  ;;  %v178_v22 = vsub.s32 1, %v173_v19 }
   0xa   :  { %v175_v23 = vrot.slane %v170_v21, %v174_v20  ;;  %v179_v24 = vrot.slane %v170_v21, %v178_v22 }
   0xb   :  { %125 = vmatpush1.bf16.msra.mxu0 %v215_v6 }
   0xc   :  { %126 = vmatprep.subr.bf16.mxu0 %v216_v7 }
   0xf   :  { %127 = vmatpush1.bf16.msra.mxu0 %v218_v8 }
  0x10   :  { %128 = vmatprep.subr.bf16.mxu0 %v219_v9 }
  0x13   :  { %129 = vmatpush1.bf16.msra.mxu0 %v221_v10 }
  0x14   :  { %130 = vmatprep.subr.bf16.mxu0 %v222_v11 }
  0x17   :  { %131 = vmatpush1.bf16.msra.mxu0 %v224_v12 }
  0x18   :  { %132 = vmatprep.subr.bf16.mxu0 %v225_v13 }
  0x1b   :  { %133 = vmatpush1.bf16.msra.mxu0 %v227_v14 }
  0x1c   :  { %134 = vmatprep.subr.bf16.mxu0 %v228_v15 }
  0x1f   :  { %135 = vmatpush1.bf16.msra.mxu0 %v230_v16 }
  0x22   :  { %153 = vmatmul.mubr.bf16.vlgmr.msra.gmra.mrb[0].mxu0 %v23_v17 }
  0xf5   :  { %v154_v25 = vpop.f32.mrb[0].mxu0 }
  0xf6   :  { %v182_v26 = vadd.f32 %v175_v23, %v154_v25  ;;  %v156_v27 = vpop.f32.mrb[1].mxu0 }
  0xf7   :  { %v183_v28 = vadd.f32 %v179_v24, %v156_v27  ;;  %v158_v29 = vpop.f32.mrb[2].mxu0 }
  0xf8   :  { %184 = vst [vmem:[%s315_s3] sm:$0xff] %v182_v26  ;;  %v159_v30 = vpop.f32.mrb[3].mxu0 }
  0xf9   :  { %185 = vst [vmem:[%s315_s3 + $0x8] sm:$0xff] %v183_v28 }

// kernel: _lambda_.109
= control target key start
LH: loop header
LB: loop body
LE: loop exit
PB: predicated region body
PF: predicated region fallthrough
CT: control target
= control target key end

     0   :  { %s872_s12 = smov 0   ;;  %s874_s13 = smov 0   ;;  %s955_s0 = inlined_call_operand.vmem [shape: bf16[8,1024], index: 0, kind: input, shape index: {}]   ;;  %s956_s1 = inlined_call_operand.vmem [shape: bf16[1024,128], index: 1, kind: input, shape index: {}]   ;;  %s957_s2 = inlined_call_operand.vmem [shape: f32[1,128], index: 2, kind: input, shape index: {}]   ;;  %s958_s3 = inlined_call_operand.vmem [shape: f32[8,128], index: 3, kind: output, shape index: {}]  }
   0x1   :  { %s876_s14 = smov 0  }
   0x2 LB: > { %s22_s15 = sadd.s32 1, %s845_s13  ;;  %p675_p0 = scmp.ge.s32.totalorder %s849_s14, 1  ;;  %s849_s14 = sphi %s876_s14, %s13_s14   ;;  %s845_s13 = sphi %s874_s13, %s960_s13   ;;  %s841_s12 = sphi %s872_s12, %s959_s12  }
   0x3   : > { %p23_p1 = scmp.ge.s32.totalorder %s22_s15, 2  ;;  %p167_p2 = scmp.lt.s32.totalorder %s849_s14, 3 }
   0x5   : > { %s962_s15 = smov (%p23_p1, %s22_s15), 0  ;;  %p168_p3 = pnand %p675_p0, %p167_p2 }
   0x6   : > { %s676_s16 = sshll.u32 (!%p168_p3), %s841_s12, 2  ;;  %s678_s17 = sshll.u32 (!%p168_p3), %s841_s12, 6 }
   0x7   : > { %171 = sbr.rel (%p168_p3) target bundleno = 291 (0x123), region = 32  ;;  %p202_p4 = scmp.lt.s32.totalorder (!%p168_p3), %s676_s16, 7 }
   0x8   : > { %p210_p5 = scmp.lt.s32.totalorder (!%p168_p3), %s678_s17, 127  ;;  %p680_p6 = scmp.ne.s32.totalorder (!%p168_p3), %s841_s12, 0 }
   0xe   : > { %s964_s16 = smov (!%p202_p4, %s676_s16), 7  ;;  %s966_s17 = smov (!%p210_p5, %s678_s17), 127 }
   0xf   : > { %s677_s18 = sshll.u32 %s964_s16, 2  ;;  %s679_s22 = sshll.u32 %s966_s17, 2  ;;  %v851_v0 = vmov (!%p680_p6), 0.0  }
  0x10   : > { %s897_s21 = scalar_lea.vmem %s955_s0, %s677_s18  ;;  %s902_s25 = scalar_lea.vmem %s956_s1, %s679_s22  ;;  %224 = vst [vmem:[#allocation2] sm:$0xff] (!%p680_p6), %v851_v0 }
  0x11   : > { %223 = sbr.rel (%p680_p6) target bundleno = 24 (0x18), region = 36 }
  0x18 PF: > { %v791_v1 = vld [vmem:[%s902_s25 + $0x40] sm:$0xff]   ;;  %v795_v5 = vld [vmem:[%s902_s25 + $0x48] sm:$0xff]   ;;  %v799_v9 = vld [vmem:[%s902_s25 + $0x50] sm:$0xff]   ;;  %p717_p7 = scmp.ne.s32.totalorder %s841_s12, 1 }
  0x19   : > { %v792_v2 = vld [vmem:[%s902_s25 + $0xc0] sm:$0xff]   ;;  %722 = vmatprep.subr.bf16.mxu0 %v791_v1  ;;  %v796_v6 = vld [vmem:[%s902_s25 + $0xc8] sm:$0xff]   ;;  %v800_v10 = vld [vmem:[%s902_s25 + $0xd0] sm:$0xff]  }
  0x1a   : > { %v793_v3 = vld [vmem:[%s902_s25] sm:$0xff]   ;;  %744 = vmatprep.subr.bf16.mxu1 %v792_v2  ;;  %v797_v7 = vld [vmem:[%s902_s25 + $0x8] sm:$0xff]   ;;  %v801_v11 = vld [vmem:[%s902_s25 + $0x10] sm:$0xff]  }
  0x1b   : > { %v794_v4 = vld [vmem:[%s902_s25 + $0x80] sm:$0xff]   ;;  %723 = vmatpush3.bf16.msra.mxu0 %v793_v3  ;;  %v798_v8 = vld [vmem:[%s902_s25 + $0x88] sm:$0xff]   ;;  %v802_v12 = vld [vmem:[%s902_s25 + $0x90] sm:$0xff]  }
  0x1c   : > { %745 = vmatpush3.bf16.msra.mxu1 %v794_v4  ;;  %724 = vmatprep.subr.bf16.mxu0 %v795_v5  ;;  %v803_v13 = vld [vmem:[%s902_s25 + $0x58] sm:$0xff]   ;;  %v807_v17 = vld [vmem:[%s902_s25 + $0x60] sm:$0xff]   ;;  %v811_v21 = vld [vmem:[%s902_s25 + $0x68] sm:$0xff]  }
  0x1d   : > { %746 = vmatprep.subr.bf16.mxu1 %v796_v6  ;;  %v804_v14 = vld [vmem:[%s902_s25 + $0xd8] sm:$0xff]   ;;  %v808_v18 = vld [vmem:[%s902_s25 + $0xe0] sm:$0xff]   ;;  %v812_v22 = vld [vmem:[%s902_s25 + $0xe8] sm:$0xff]  }
  0x1e   : > { %v805_v15 = vld [vmem:[%s902_s25 + $0x18] sm:$0xff]   ;;  %v809_v19 = vld [vmem:[%s902_s25 + $0x20] sm:$0xff]   ;;  %v813_v23 = vld [vmem:[%s902_s25 + $0x28] sm:$0xff]  }
  0x1f   : > { %725 = vmatpush3.bf16.msra.mxu0 %v797_v7  ;;  %v806_v16 = vld [vmem:[%s902_s25 + $0x98] sm:$0xff]   ;;  %v810_v20 = vld [vmem:[%s902_s25 + $0xa0] sm:$0xff]   ;;  %v814_v24 = vld [vmem:[%s902_s25 + $0xa8] sm:$0xff]  }
  0x20   : > { %747 = vmatpush3.bf16.msra.mxu1 %v798_v8  ;;  %726 = vmatprep.subr.bf16.mxu0 %v799_v9  ;;  %v815_v25 = vld [vmem:[%s902_s25 + $0x70] sm:$0xff]   ;;  %v819_v29 = vld [vmem:[%s902_s25 + $0x78] sm:$0xff]   ;;  %v226_v33 = vld [vmem:[%s897_s21] sm:$0xff] }
  0x21   : > { %748 = vmatprep.subr.bf16.mxu1 %v800_v10  ;;  %v816_v26 = vld [vmem:[%s902_s25 + $0xf0] sm:$0xff]   ;;  %v820_v30 = vld [vmem:[%s902_s25 + $0xf8] sm:$0xff]   ;;  %v227_v34 = vld [vmem:[%s897_s21 + $0x8] sm:$0xff]  ;;  %v681_v35 = vcombine.low %v226_v33, %v226_v33  ;;  %v682_v36 = vcombine.high %v226_v33, %v226_v33 }
  0x22   : > { %v817_v27 = vld [vmem:[%s902_s25 + $0x30] sm:$0xff]   ;;  %v821_v31 = vld [vmem:[%s902_s25 + $0x38] sm:$0xff]   ;;  %v683_v37 = vcombine.low %v227_v34, %v227_v34  ;;  %v684_v38 = vcombine.high %v227_v34, %v227_v34  ;;  %v225_v47 = vld [vmem:[#allocation2] sm:$0xff] }
  0x23   : > { %727 = vmatpush3.bf16.msra.mxu0 %v801_v11  ;;  %v818_v28 = vld [vmem:[%s902_s25 + $0xb0] sm:$0xff]   ;;  %v822_v32 = vld [vmem:[%s902_s25 + $0xb8] sm:$0xff]   ;;  %530 = vmatprep.mubr.bf16.mxu0 %v682_v36  ;;  %v718_v53 = vld [vmem:[%s957_s2] ss:$0 sm:$0xff] (!%p717_p7) }
  0x24   : > { %749 = vmatpush3.bf16.msra.mxu1 %v802_v12  ;;  %728 = vmatprep.subr.bf16.mxu0 %v803_v13 }
  0x25   : > { %750 = vmatprep.subr.bf16.mxu1 %v804_v14  ;;  %570 = vmatprep.mubr.bf16.mxu1 %v684_v38 }
  0x27   : > { %729 = vmatpush3.bf16.msra.mxu0 %v805_v15 }
  0x28   : > { %751 = vmatpush3.bf16.msra.mxu1 %v806_v16  ;;  %730 = vmatprep.subr.bf16.mxu0 %v807_v17 }
  0x29   : > { %752 = vmatprep.subr.bf16.mxu1 %v808_v18 }
  0x2b   : > { %731 = vmatpush3.bf16.msra.mxu0 %v809_v19 }
  0x2c   : > { %753 = vmatpush3.bf16.msra.mxu1 %v810_v20  ;;  %732 = vmatprep.subr.bf16.mxu0 %v811_v21 }
  0x2d   : > { %754 = vmatprep.subr.bf16.mxu1 %v812_v22 }
  0x2f   : > { %733 = vmatpush3.bf16.msra.mxu0 %v813_v23 }
  0x30   : > { %755 = vmatpush3.bf16.msra.mxu1 %v814_v24  ;;  %734 = vmatprep.subr.bf16.mxu0 %v815_v25 }
  0x31   : > { %756 = vmatprep.subr.bf16.mxu1 %v816_v26 }
  0x33   : > { %735 = vmatpush3.bf16.msra.mxu0 %v817_v27 }
  0x34   : > { %757 = vmatpush3.bf16.msra.mxu1 %v818_v28  ;;  %736 = vmatprep.subr.bf16.mxu0 %v819_v29 }
  0x35   : > { %758 = vmatprep.subr.bf16.mxu1 %v820_v30 }
  0x37   : > { %737 = vmatpush3.bf16.msra.mxu0 %v821_v31 }
  0x38   : > { %759 = vmatpush3.bf16.msra.mxu1 %v822_v32 }
  0x3a   : > { %531 = vmatmul.mubr.bf16.vlgmr.msra.gmra.mrb[0].mxu0 %v681_v35 }
  0x3b   : > { %571 = vmatmul.mubr.bf16.vlgmr.msra.gmra.mrb[0].mxu1 %v683_v37 }
 0x10d   : > { %v738_v39 = vpop.f32.mrb[0].mxu0 }
 0x10e   : > { %v760_v40 = vpop.f32.mrb[0].mxu1  ;;  %v739_v41 = vpop.f32.mrb[1].mxu0 }
 0x10f   : > { %v761_v42 = vpop.f32.mrb[1].mxu1  ;;  %v740_v43 = vadd.f32 %v739_v41, %v738_v39  ;;  %v741_v45 = vpop.f32.mrb[2].mxu0 }
 0x110   : > { %v762_v44 = vadd.f32 %v761_v42, %v760_v40  ;;  %v763_v46 = vpop.f32.mrb[2].mxu1  ;;  %v742_v48 = vpop.f32.mrb[3].mxu0  ;;  %583 = sbr.rel (%p717_p7) target bundleno = 291 (0x123), region = 40 }
 0x111   : > { %v764_v49 = vpop.f32.mrb[3].mxu1 }
 0x112   : > { %v573_v50 = vadd.f32 %v762_v44, %v740_v43 }
 0x114   : > { %v578_v51 = vadd.f32 %v573_v50, %v225_v47 }
 0x116   : > { %579 = vst [vmem:[#allocation2] sm:$0xff] %v578_v51 }
 0x11d   : > { %v584_v52 = vld [vmem:[#allocation2] sm:$0xff] }
 0x11e   : > { %v592_v54 = vadd.f32 %v718_v53, %v584_v52 }
 0x120   : > { %v593_v55 = vmax.f32 %v592_v54, 0.0 }
 0x122   : > { %594 = vst [vmem:[%s958_s3] sm:$0xff] %v593_v55 }
 0x123 PF: > { %s13_s14 = sadd.s32 1, %s849_s14   ;;  %s959_s12 = smov %s845_s13 }
 0x124   : > { %p10_p8 = scmp.ge.s32.totalorder %s13_s14, 4   ;;  %s960_s13 = smov %s962_s15 }
 0x126   :  { %12 = sbr.rel (!%p10_p8) target bundleno = 2 (0x2), region = 73 }

// kernel: _lambda_.108
= control target key start
LH: loop header
LB: loop body
LE: loop exit
PB: predicated region body
PF: predicated region fallthrough
CT: control target
= control target key end

     0   :  { %s353_s1 = inlined_call_operand.vmem [shape: bf16[256,128], index: 1, kind: input, shape index: {}]   ;;  %s354_s0 = inlined_call_operand.vmem [shape: bf16[8,256], index: 0, kind: input, shape index: {}]   ;;  %s355_s2 = inlined_call_operand.vmem [shape: f32[1,128], index: 2, kind: input, shape index: {}]   ;;  %s356_s3 = inlined_call_operand.vmem [shape: f32[8,128], index: 3, kind: output, shape index: {}]  }
   0x1   :  { %v258_v0 = vld [vmem:[%s353_s1 + $0x40] sm:$0xff]   ;;  %v260_v2 = vld [vmem:[%s353_s1 + $0x48] sm:$0xff]   ;;  %v262_v4 = vld [vmem:[%s353_s1 + $0x50] sm:$0xff]  }
   0x2   :  { %v259_v1 = vld [vmem:[%s353_s1] sm:$0xff]   ;;  %236 = vmatprep.subr.bf16.mxu0 %v258_v0  ;;  %v261_v3 = vld [vmem:[%s353_s1 + $0x8] sm:$0xff]   ;;  %v263_v5 = vld [vmem:[%s353_s1 + $0x10] sm:$0xff]  }
   0x3   :  { %237 = vmatpush3.bf16.msra.mxu0 %v259_v1  ;;  %v264_v6 = vld [vmem:[%s353_s1 + $0x58] sm:$0xff]   ;;  %v266_v8 = vld [vmem:[%s353_s1 + $0x60] sm:$0xff]   ;;  %v268_v10 = vld [vmem:[%s353_s1 + $0x68] sm:$0xff]  }
   0x4   :  { %238 = vmatprep.subr.bf16.mxu0 %v260_v2  ;;  %v265_v7 = vld [vmem:[%s353_s1 + $0x18] sm:$0xff]   ;;  %v267_v9 = vld [vmem:[%s353_s1 + $0x20] sm:$0xff]   ;;  %v269_v13 = vld [vmem:[%s353_s1 + $0x28] sm:$0xff]  }
   0x5   :  { %v21_v11 = vld [vmem:[%s354_s0] sm:$0xff]  ;;  %v270_v14 = vld [vmem:[%s353_s1 + $0x70] sm:$0xff]   ;;  %v272_v16 = vld [vmem:[%s353_s1 + $0x78] sm:$0xff]  }
   0x6   :  { %v218_v12 = vcombine.high %v21_v11, %v21_v11  ;;  %v271_v15 = vld [vmem:[%s353_s1 + $0x30] sm:$0xff]   ;;  %v273_v17 = vld [vmem:[%s353_s1 + $0x38] sm:$0xff]   ;;  %v217_v18 = vcombine.low %v21_v11, %v21_v11  ;;  %v235_v21 = vld [vmem:[%s355_s2] ss:$0 sm:$0xff] }
   0x7   :  { %239 = vmatpush3.bf16.msra.mxu0 %v261_v3 }
   0x8   :  { %240 = vmatprep.subr.bf16.mxu0 %v262_v4  ;;  %189 = vmatprep.mubr.bf16.mxu0 %v218_v12 }
   0xb   :  { %241 = vmatpush3.bf16.msra.mxu0 %v263_v5 }
   0xc   :  { %242 = vmatprep.subr.bf16.mxu0 %v264_v6 }
   0xf   :  { %243 = vmatpush3.bf16.msra.mxu0 %v265_v7 }
  0x10   :  { %244 = vmatprep.subr.bf16.mxu0 %v266_v8 }
  0x13   :  { %245 = vmatpush3.bf16.msra.mxu0 %v267_v9 }
  0x14   :  { %246 = vmatprep.subr.bf16.mxu0 %v268_v10 }
  0x17   :  { %247 = vmatpush3.bf16.msra.mxu0 %v269_v13 }
  0x18   :  { %248 = vmatprep.subr.bf16.mxu0 %v270_v14 }
  0x1b   :  { %249 = vmatpush3.bf16.msra.mxu0 %v271_v15 }
  0x1c   :  { %250 = vmatprep.subr.bf16.mxu0 %v272_v16 }
  0x1f   :  { %251 = vmatpush3.bf16.msra.mxu0 %v273_v17 }
  0x22   :  { %190 = vmatmul.mubr.bf16.vlgmr.msra.gmra.mrb[0].mxu0 %v217_v18 }
  0xf5   :  { %v252_v19 = vpop.f32.mrb[0].mxu0 }
  0xf6   :  { %v253_v20 = vpop.f32.mrb[1].mxu0 }
  0xf7   :  { %v254_v22 = vadd.f32 %v253_v20, %v252_v19  ;;  %v255_v23 = vpop.f32.mrb[2].mxu0 }
  0xf8   :  { %v256_v24 = vpop.f32.mrb[3].mxu0 }
  0xf9   :  { %v210_v25 = vadd.f32 %v254_v22, %v235_v21 }
  0xfb   :  { %v211_v26 = vmax.f32 %v210_v25, 0.0 }
  0xfd   :  { %212 = vst [vmem:[%s356_s3] sm:$0xff] %v211_v26 }

// kernel: _lambda_.114
= control target key start
LH: loop header
LB: loop body
LE: loop exit
PB: predicated region body
PF: predicated region fallthrough
CT: control target
= control target key end

     0   :  { %s1466_s1 = inlined_call_operand.vmem [shape: bf16[256,768], index: 1, kind: input, shape index: {}]   ;;  %s1467_s0 = inlined_call_operand.vmem [shape: bf16[16,256], index: 0, kind: input, shape index: {}]   ;;  %s1468_s2 = inlined_call_operand.vmem [shape: f32[1,768], index: 2, kind: input, shape index: {}]   ;;  %s1469_s3 = inlined_call_operand.vmem [shape: f32[16,768], index: 3, kind: output, shape index: {}]  }
   0x1   :  { %v956_v0 = vld [vmem:[%s1466_s1 + $0x4] ss:$24 sps:$4 sm:$0xff]   ;;  %v958_v1 = vld [vmem:[%s1466_s1] ss:$24 sps:$4 sm:$0xff]   ;;  %v959_v2 = vld [vmem:[%s1466_s1 + $0x34] ss:$24 sps:$4 sm:$0xff]  }
   0x2   :  { %630 = vmatprep.subr.bf16.mxu0 %v956_v0  ;;  %v961_v3 = vld [vmem:[%s1466_s1 + $0x30] ss:$24 sps:$4 sm:$0xff]   ;;  %v962_v4 = vld [vmem:[%s1466_s1 + $0x64] ss:$24 sps:$4 sm:$0xff]   ;;  %v964_v5 = vld [vmem:[%s1466_s1 + $0x60] ss:$24 sps:$4 sm:$0xff]  }
   0x3   :  { %631 = vmatpush1.bf16.msra.mxu0 %v958_v1  ;;  %v965_v6 = vld [vmem:[%s1466_s1 + $0x94] ss:$24 sps:$4 sm:$0xff]   ;;  %v967_v7 = vld [vmem:[%s1466_s1 + $0x90] ss:$24 sps:$4 sm:$0xff]   ;;  %v968_v8 = vld [vmem:[%s1466_s1 + $0xc4] ss:$24 sps:$4 sm:$0xff]  }
   0x4   :  { %632 = vmatprep.subr.bf16.mxu0 %v959_v2  ;;  %v970_v9 = vld [vmem:[%s1466_s1 + $0xc0] ss:$24 sps:$4 sm:$0xff]   ;;  %v971_v10 = vld [vmem:[%s1466_s1 + $0xf4] ss:$24 sps:$4 sm:$0xff]   ;;  %v973_v11 = vld [vmem:[%s1466_s1 + $0xf0] ss:$24 sps:$4 sm:$0xff]  }
   0x5   :  { %v974_v12 = vld [vmem:[%s1466_s1 + $0x124] ss:$24 sps:$4 sm:$0xff]   ;;  %v1006_v14 = vld [vmem:[%s1466_s1 + $0x8] ss:$24 sps:$4 sm:$0xff]   ;;  %v977_v17 = vld [vmem:[%s1466_s1 + $0x154] ss:$24 sps:$4 sm:$0xff]  }
   0x6   :  { %v1004_v13 = vld [vmem:[%s1466_s1 + $0xc] ss:$24 sps:$4 sm:$0xff]   ;;  %v976_v15 = vld [vmem:[%s1466_s1 + $0x120] ss:$24 sps:$4 sm:$0xff]   ;;  %v1013_v18 = vld [vmem:[%s1466_s1 + $0x3c] ss:$24 sps:$4 sm:$0xff]  }
   0x7   :  { %633 = vmatpush1.bf16.msra.mxu0 %v961_v3  ;;  %v1174_v16 = vld [vmem:[%s1467_s0 + $0x4] ss:$8 sps:$4 sm:$0xff]   ;;  %673 = vmatprep.subr.bf16.mxu1 %v1004_v13  ;;  %v1015_v19 = vld [vmem:[%s1466_s1 + $0x38] ss:$24 sps:$4 sm:$0xff]   ;;  %v1021_v23 = vld [vmem:[%s1466_s1 + $0x68] ss:$24 sps:$4 sm:$0xff]  }
   0x8   :  { %634 = vmatprep.subr.bf16.mxu0 %v962_v4  ;;  %674 = vmatpush1.bf16.msra.mxu1 %v1006_v14  ;;  %v979_v20 = vld [vmem:[%s1466_s1 + $0x150] ss:$24 sps:$4 sm:$0xff]   ;;  %v980_v21 = vld [vmem:[%s1466_s1 + $0x184] ss:$24 sps:$4 sm:$0xff]   ;;  %v982_v24 = vld [vmem:[%s1466_s1 + $0x180] ss:$24 sps:$4 sm:$0xff]  }
   0x9   :  { %662 = vmatprep.mubr.bf16.mxu0 %v1174_v16  ;;  %705 = vmatprep.mubr.bf16.mxu1 %v1174_v16  ;;  %v1019_v22 = vld [vmem:[%s1466_s1 + $0x6c] ss:$24 sps:$4 sm:$0xff]   ;;  %v1025_v25 = vld [vmem:[%s1466_s1 + $0x9c] ss:$24 sps:$4 sm:$0xff]   ;;  %v1027_v27 = vld [vmem:[%s1466_s1 + $0x98] ss:$24 sps:$4 sm:$0xff]  }
   0xa   :  { %675 = vmatprep.subr.bf16.mxu1 %v1013_v18  ;;  %v983_v26 = vld [vmem:[%s1466_s1 + $0x1b4] ss:$24 sps:$4 sm:$0xff]   ;;  %v985_v29 = vld [vmem:[%s1466_s1 + $0x1b0] ss:$24 sps:$4 sm:$0xff]   ;;  %v986_v30 = vld [vmem:[%s1466_s1 + $0x1e4] ss:$24 sps:$4 sm:$0xff]  }
   0xb   :  { %635 = vmatpush1.bf16.msra.mxu0 %v964_v5  ;;  %v1031_v28 = vld [vmem:[%s1466_s1 + $0xcc] ss:$24 sps:$4 sm:$0xff]   ;;  %v1033_v31 = vld [vmem:[%s1466_s1 + $0xc8] ss:$24 sps:$4 sm:$0xff]   ;;  %v1037_v32 = vld [vmem:[%s1466_s1 + $0xfc] ss:$24 sps:$4 sm:$0xff]  }
   0xc   :  { %636 = vmatprep.subr.bf16.mxu0 %v965_v6  ;;  %676 = vmatpush1.bf16.msra.mxu1 %v1015_v19  ;;  %v988_v33 = vld [vmem:[%s1466_s1 + $0x1e0] ss:$24 sps:$4 sm:$0xff]   ;;  %v989_v34 = vld [vmem:[%s1466_s1 + $0x214] ss:$24 sps:$4 sm:$0xff]   ;;  %v991_v37 = vld [vmem:[%s1466_s1 + $0x210] ss:$24 sps:$4 sm:$0xff]  }
   0xd   :  { %677 = vmatprep.subr.bf16.mxu1 %v1019_v22  ;;  %v1039_v35 = vld [vmem:[%s1466_s1 + $0xf8] ss:$24 sps:$4 sm:$0xff]   ;;  %v1043_v36 = vld [vmem:[%s1466_s1 + $0x12c] ss:$24 sps:$4 sm:$0xff]   ;;  %v1045_v39 = vld [vmem:[%s1466_s1 + $0x128] ss:$24 sps:$4 sm:$0xff]  }
   0xe   :  { %v992_v38 = vld [vmem:[%s1466_s1 + $0x244] ss:$24 sps:$4 sm:$0xff]   ;;  %v994_v41 = vld [vmem:[%s1466_s1 + $0x240] ss:$24 sps:$4 sm:$0xff]   ;;  %v995_v42 = vld [vmem:[%s1466_s1 + $0x274] ss:$24 sps:$4 sm:$0xff]  }
   0xf   :  { %637 = vmatpush1.bf16.msra.mxu0 %v967_v7  ;;  %v1049_v40 = vld [vmem:[%s1466_s1 + $0x15c] ss:$24 sps:$4 sm:$0xff]   ;;  %v1051_v43 = vld [vmem:[%s1466_s1 + $0x158] ss:$24 sps:$4 sm:$0xff]   ;;  %v1055_v44 = vld [vmem:[%s1466_s1 + $0x18c] ss:$24 sps:$4 sm:$0xff]  }
  0x10   :  { %638 = vmatprep.subr.bf16.mxu0 %v968_v8  ;;  %678 = vmatpush1.bf16.msra.mxu1 %v1021_v23  ;;  %v997_v45 = vld [vmem:[%s1466_s1 + $0x270] ss:$24 sps:$4 sm:$0xff]   ;;  %v998_v46 = vld [vmem:[%s1466_s1 + $0x2a4] ss:$24 sps:$4 sm:$0xff]   ;;  %v1000_v49 = vld [vmem:[%s1466_s1 + $0x2a0] ss:$24 sps:$4 sm:$0xff]  }
  0x11   :  { %679 = vmatprep.subr.bf16.mxu1 %v1025_v25  ;;  %v1057_v47 = vld [vmem:[%s1466_s1 + $0x188] ss:$24 sps:$4 sm:$0xff]   ;;  %v1061_v48 = vld [vmem:[%s1466_s1 + $0x1bc] ss:$24 sps:$4 sm:$0xff]   ;;  %v1063_v51 = vld [vmem:[%s1466_s1 + $0x1b8] ss:$24 sps:$4 sm:$0xff]  }
  0x12   :  { %v1001_v50 = vld [vmem:[%s1466_s1 + $0x2d4] ss:$24 sps:$4 sm:$0xff]   ;;  %v1003_v53 = vld [vmem:[%s1466_s1 + $0x2d0] ss:$24 sps:$4 sm:$0xff]   ;;  %v1018_v59 = vld [vmem:[%s1466_s1 + $0x44] ss:$24 sps:$4 sm:$0xff]  }
  0x13   :  { %639 = vmatpush1.bf16.msra.mxu0 %v970_v9  ;;  %v1067_v52 = vld [vmem:[%s1466_s1 + $0x1ec] ss:$24 sps:$4 sm:$0xff]   ;;  %v1069_v55 = vld [vmem:[%s1466_s1 + $0x1e8] ss:$24 sps:$4 sm:$0xff]   ;;  %v1073_v57 = vld [vmem:[%s1466_s1 + $0x21c] ss:$24 sps:$4 sm:$0xff]  }
  0x14   :  { %640 = vmatprep.subr.bf16.mxu0 %v971_v10  ;;  %680 = vmatpush1.bf16.msra.mxu1 %v1027_v27  ;;  %v1012_v54 = vld [vmem:[%s1466_s1 + $0x14] ss:$24 sps:$4 sm:$0xff]   ;;  %v1298_v56 = vld [vmem:[%s1467_s0] ss:$8 sps:$4 sm:$0xff]   ;;  %v1075_v60 = vld [vmem:[%s1466_s1 + $0x218] ss:$24 sps:$4 sm:$0xff]  }
  0x15   :  { %681 = vmatprep.subr.bf16.mxu1 %v1031_v28  ;;  %v1010_v58 = vld [vmem:[%s1466_s1 + $0x10] ss:$24 sps:$4 sm:$0xff]   ;;  %v1079_v61 = vld [vmem:[%s1466_s1 + $0x24c] ss:$24 sps:$4 sm:$0xff]   ;;  %v1016_v62 = vld [vmem:[%s1466_s1 + $0x40] ss:$24 sps:$4 sm:$0xff]  }
  0x16   :  { %v1024_v63 = vld [vmem:[%s1466_s1 + $0x74] ss:$24 sps:$4 sm:$0xff]   ;;  %v1081_v0 = vld [vmem:[%s1466_s1 + $0x248] ss:$24 sps:$4 sm:$0xff]   ;;  %v1030_v3 = vld [vmem:[%s1466_s1 + $0xa4] ss:$24 sps:$4 sm:$0xff]  }
  0x17   :  { %641 = vmatpush1.bf16.msra.mxu0 %v973_v11  ;;  %v1085_v1 = vld [vmem:[%s1466_s1 + $0x27c] ss:$24 sps:$4 sm:$0xff]   ;;  %v1022_v2 = vld [vmem:[%s1466_s1 + $0x70] ss:$24 sps:$4 sm:$0xff]   ;;  %v1091_v5 = vld [vmem:[%s1466_s1 + $0x2ac] ss:$24 sps:$4 sm:$0xff]  }
  0x18   :  { %642 = vmatprep.subr.bf16.mxu0 %v974_v12  ;;  %682 = vmatpush1.bf16.msra.mxu1 %v1033_v31  ;;  %v1087_v4 = vld [vmem:[%s1466_s1 + $0x278] ss:$24 sps:$4 sm:$0xff]   ;;  %v1036_v7 = vld [vmem:[%s1466_s1 + $0xd4] ss:$24 sps:$4 sm:$0xff]   ;;  %v1093_v8 = vld [vmem:[%s1466_s1 + $0x2a8] ss:$24 sps:$4 sm:$0xff]  }
  0x19   :  { %683 = vmatprep.subr.bf16.mxu1 %v1037_v32  ;;  %v1028_v6 = vld [vmem:[%s1466_s1 + $0xa0] ss:$24 sps:$4 sm:$0xff]   ;;  %v1097_v9 = vld [vmem:[%s1466_s1 + $0x2dc] ss:$24 sps:$4 sm:$0xff]   ;;  %v1034_v10 = vld [vmem:[%s1466_s1 + $0xd0] ss:$24 sps:$4 sm:$0xff]  }
  0x1a   :  { %v1042_v11 = vld [vmem:[%s1466_s1 + $0x104] ss:$24 sps:$4 sm:$0xff]   ;;  %v1099_v12 = vld [vmem:[%s1466_s1 + $0x2d8] ss:$24 sps:$4 sm:$0xff]   ;;  %v1048_v14 = vld [vmem:[%s1466_s1 + $0x134] ss:$24 sps:$4 sm:$0xff]  }
  0x1b   :  { %643 = vmatpush1.bf16.msra.mxu0 %v976_v15  ;;  %v1040_v13 = vld [vmem:[%s1466_s1 + $0x100] ss:$24 sps:$4 sm:$0xff]   ;;  %v1046_v15 = vld [vmem:[%s1466_s1 + $0x130] ss:$24 sps:$4 sm:$0xff]   ;;  %v1060_v18 = vld [vmem:[%s1466_s1 + $0x194] ss:$24 sps:$4 sm:$0xff]  }
  0x1c   :  { %644 = vmatprep.subr.bf16.mxu0 %v977_v17  ;;  %684 = vmatpush1.bf16.msra.mxu1 %v1039_v35  ;;  %v1052_v17 = vld [vmem:[%s1466_s1 + $0x160] ss:$24 sps:$4 sm:$0xff]   ;;  %v1058_v19 = vld [vmem:[%s1466_s1 + $0x190] ss:$24 sps:$4 sm:$0xff]   ;;  %v1072_v22 = vld [vmem:[%s1466_s1 + $0x1f4] ss:$24 sps:$4 sm:$0xff]  }
  0x1d   :  { %685 = vmatprep.subr.bf16.mxu1 %v1043_v36  ;;  %v1070_v23 = vld [vmem:[%s1466_s1 + $0x1f0] ss:$24 sps:$4 sm:$0xff]   ;;  %v1076_v25 = vld [vmem:[%s1466_s1 + $0x220] ss:$24 sps:$4 sm:$0xff]   ;;  %v1090_v28 = vld [vmem:[%s1466_s1 + $0x284] ss:$24 sps:$4 sm:$0xff]  }
  0x1e   :  { %v1082_v27 = vld [vmem:[%s1466_s1 + $0x250] ss:$24 sps:$4 sm:$0xff]   ;;  %v1102_v32 = vld [vmem:[%s1466_s1 + $0x2e4] ss:$24 sps:$4 sm:$0xff]  }
  0x1f   :  { %645 = vmatpush1.bf16.msra.mxu0 %v979_v20  ;;  %v1066_v20 = vld [vmem:[%s1466_s1 + $0x1c4] ss:$24 sps:$4 sm:$0xff]   ;;  %v1094_v31 = vld [vmem:[%s1466_s1 + $0x2b0] ss:$24 sps:$4 sm:$0xff]  }
  0x20   :  { %646 = vmatprep.subr.bf16.mxu0 %v980_v21  ;;  %686 = vmatpush1.bf16.msra.mxu1 %v1045_v39  ;;  %v1064_v21 = vld [vmem:[%s1466_s1 + $0x1c0] ss:$24 sps:$4 sm:$0xff]  }
  0x21   :  { %687 = vmatprep.subr.bf16.mxu1 %v1049_v40 }
  0x23   :  { %647 = vmatpush1.bf16.msra.mxu0 %v982_v24  ;;  %v1078_v24 = vld [vmem:[%s1466_s1 + $0x224] ss:$24 sps:$4 sm:$0xff]  }
  0x24   :  { %648 = vmatprep.subr.bf16.mxu0 %v983_v26  ;;  %688 = vmatpush1.bf16.msra.mxu1 %v1051_v43  ;;  %v1084_v26 = vld [vmem:[%s1466_s1 + $0x254] ss:$24 sps:$4 sm:$0xff]  }
  0x25   :  { %689 = vmatprep.subr.bf16.mxu1 %v1055_v44 }
  0x27   :  { %649 = vmatpush1.bf16.msra.mxu0 %v985_v29  ;;  %v1088_v29 = vld [vmem:[%s1466_s1 + $0x280] ss:$24 sps:$4 sm:$0xff]  }
  0x28   :  { %650 = vmatprep.subr.bf16.mxu0 %v986_v30  ;;  %690 = vmatpush1.bf16.msra.mxu1 %v1057_v47  ;;  %v1096_v30 = vld [vmem:[%s1466_s1 + $0x2b4] ss:$24 sps:$4 sm:$0xff]  }
  0x29   :  { %691 = vmatprep.subr.bf16.mxu1 %v1061_v48 }
  0x2b   :  { %651 = vmatpush1.bf16.msra.mxu0 %v988_v33  ;;  %v1100_v33 = vld [vmem:[%s1466_s1 + $0x2e0] ss:$24 sps:$4 sm:$0xff]  }
  0x2c   :  { %652 = vmatprep.subr.bf16.mxu0 %v989_v34  ;;  %692 = vmatpush1.bf16.msra.mxu1 %v1063_v51  ;;  %v800_v34 = vlaneseq }
  0x2d   :  { %693 = vmatprep.subr.bf16.mxu1 %v1067_v52 }
  0x2e   :  { %v801_v35 = vshrl.u32 %v800_v34, 7 }
  0x2f   :  { %653 = vmatpush1.bf16.msra.mxu0 %v991_v37  ;;  %v798_v37 = vld [vmem:[%s1468_s2] sm:$0x3f] }
  0x30   :  { %654 = vmatprep.subr.bf16.mxu0 %v992_v38  ;;  %694 = vmatpush1.bf16.msra.mxu1 %v1069_v55  ;;  %v818_v36 = vsub.s32 4, %v801_v35  ;;  %v822_v38 = vsub.s32 5, %v801_v35 }
  0x31   :  { %695 = vmatprep.subr.bf16.mxu1 %v1073_v57 }
  0x32   :  { %v819_v39 = vrot.slane %v798_v37, %v818_v36  ;;  %v823_v40 = vrot.slane %v798_v37, %v822_v38 }
  0x33   :  { %655 = vmatpush1.bf16.msra.mxu0 %v994_v41  ;;  %v802_v41 = vsub.s32 0, %v801_v35 }
  0x34   :  { %656 = vmatprep.subr.bf16.mxu0 %v995_v42  ;;  %696 = vmatpush1.bf16.msra.mxu1 %v1075_v60  ;;  %v806_v42 = vsub.s32 1, %v801_v35 }
  0x35   :  { %697 = vmatprep.subr.bf16.mxu1 %v1079_v61  ;;  %v803_v43 = vrot.slane %v798_v37, %v802_v41 }
  0x36   :  { %v807_v44 = vrot.slane %v798_v37, %v806_v42 }
  0x37   :  { %657 = vmatpush1.bf16.msra.mxu0 %v997_v45 }
  0x38   :  { %658 = vmatprep.subr.bf16.mxu0 %v998_v46  ;;  %698 = vmatpush1.bf16.msra.mxu1 %v1081_v0 }
  0x39   :  { %699 = vmatprep.subr.bf16.mxu1 %v1085_v1 }
  0x3b   :  { %659 = vmatpush1.bf16.msra.mxu0 %v1000_v49 }
  0x3c   :  { %660 = vmatprep.subr.bf16.mxu0 %v1001_v50  ;;  %700 = vmatpush1.bf16.msra.mxu1 %v1087_v4 }
  0x3d   :  { %701 = vmatprep.subr.bf16.mxu1 %v1091_v5 }
  0x3f   :  { %661 = vmatpush1.bf16.msra.mxu0 %v1003_v53  ;;  %v810_v53 = vsub.s32 2, %v801_v35 }
  0x40   :  { %716 = vmatprep.subr.bf16.mxu0 %v1012_v54  ;;  %702 = vmatpush1.bf16.msra.mxu1 %v1093_v8  ;;  %v814_v54 = vsub.s32 3, %v801_v35 }
  0x41   :  { %703 = vmatprep.subr.bf16.mxu1 %v1097_v9  ;;  %v811_v55 = vrot.slane %v798_v37, %v810_v53 }
  0x42   :  { %663 = vmatmul.mubr.bf16.vlgmr.msra.gmra.mrb[0].mxu0 %v1298_v56 }
  0x43   :  { %717 = vmatpush1.bf16.msra.mxu0 %v1010_v58  ;;  %748 = vmatprep.mubr.bf16.mxu0 %v1174_v16  ;;  %v1054_v16 = vld [vmem:[%s1466_s1 + $0x164] ss:$24 sps:$4 sm:$0xff]  }
  0x44   :  { %718 = vmatprep.subr.bf16.mxu0 %v1018_v59  ;;  %704 = vmatpush1.bf16.msra.mxu1 %v1099_v12 }
  0x47   :  { %719 = vmatpush1.bf16.msra.mxu0 %v1016_v62  ;;  %706 = vmatmul.mubr.bf16.vlgmr.msra.gmra.mrb[0].mxu1 %v1298_v56 }
  0x48   :  { %720 = vmatprep.subr.bf16.mxu0 %v1024_v63 }
  0x4b   :  { %721 = vmatpush1.bf16.msra.mxu0 %v1022_v2 }
  0x4c   :  { %722 = vmatprep.subr.bf16.mxu0 %v1030_v3 }
  0x4f   :  { %723 = vmatpush1.bf16.msra.mxu0 %v1028_v6 }
  0x50   :  { %724 = vmatprep.subr.bf16.mxu0 %v1036_v7 }
  0x53   :  { %725 = vmatpush1.bf16.msra.mxu0 %v1034_v10 }
  0x54   :  { %726 = vmatprep.subr.bf16.mxu0 %v1042_v11 }
  0x57   :  { %727 = vmatpush1.bf16.msra.mxu0 %v1040_v13 }
  0x58   :  { %728 = vmatprep.subr.bf16.mxu0 %v1048_v14 }
  0x5b   :  { %729 = vmatpush1.bf16.msra.mxu0 %v1046_v15 }
  0x5c   :  { %730 = vmatprep.subr.bf16.mxu0 %v1054_v16 }
  0x5f   :  { %731 = vmatpush1.bf16.msra.mxu0 %v1052_v17 }
  0x60   :  { %732 = vmatprep.subr.bf16.mxu0 %v1060_v18 }
  0x63   :  { %733 = vmatpush1.bf16.msra.mxu0 %v1058_v19 }
  0x64   :  { %734 = vmatprep.subr.bf16.mxu0 %v1066_v20 }
  0x67   :  { %735 = vmatpush1.bf16.msra.mxu0 %v1064_v21 }
  0x68   :  { %736 = vmatprep.subr.bf16.mxu0 %v1072_v22 }
  0x6b   :  { %737 = vmatpush1.bf16.msra.mxu0 %v1070_v23 }
  0x6c   :  { %738 = vmatprep.subr.bf16.mxu0 %v1078_v24 }
  0x6f   :  { %739 = vmatpush1.bf16.msra.mxu0 %v1076_v25 }
  0x70   :  { %740 = vmatprep.subr.bf16.mxu0 %v1084_v26 }
  0x73   :  { %741 = vmatpush1.bf16.msra.mxu0 %v1082_v27 }
  0x74   :  { %742 = vmatprep.subr.bf16.mxu0 %v1090_v28 }
  0x77   :  { %743 = vmatpush1.bf16.msra.mxu0 %v1088_v29 }
  0x78   :  { %744 = vmatprep.subr.bf16.mxu0 %v1096_v30 }
  0x7b   :  { %745 = vmatpush1.bf16.msra.mxu0 %v1094_v31 }
  0x7c   :  { %746 = vmatprep.subr.bf16.mxu0 %v1102_v32 }
  0x7f   :  { %747 = vmatpush1.bf16.msra.mxu0 %v1100_v33 }
  0x82   :  { %749 = vmatmul.mubr.bf16.vlgmr.msra.gmra.mrb[4].mxu0 %v1298_v56  ;;  %v815_v56 = vrot.slane %v798_v37, %v814_v54 }
 0x115   :  { %v664_v45 = vpop.f32.mrb[0].mxu0 }
 0x116   :  { %v830_v46 = vadd.f32 %v803_v43, %v664_v45  ;;  %v666_v47 = vpop.f32.mrb[1].mxu0 }
 0x117   :  { %v831_v48 = vadd.f32 %v807_v44, %v666_v47  ;;  %v668_v49 = vpop.f32.mrb[2].mxu0 }
 0x118   :  { %842 = vst [vmem:[%s1469_s3] sm:$0xff] %v830_v46  ;;  %v836_v50 = vadd.f32 %v803_v43, %v668_v49  ;;  %v670_v51 = vpop.f32.mrb[3].mxu0 }
 0x119   :  { %843 = vst [vmem:[%s1469_s3 + $0x8] sm:$0xff] %v831_v48  ;;  %v837_v52 = vadd.f32 %v807_v44, %v670_v51 }
 0x11a   :  { %848 = vst [vmem:[%s1469_s3 + $0x30] sm:$0xff] %v836_v50  ;;  %v707_v57 = vpop.f32.mrb[0].mxu1 }
 0x11b   :  { %849 = vst [vmem:[%s1469_s3 + $0x38] sm:$0xff] %v837_v52  ;;  %v832_v58 = vadd.f32 %v811_v55, %v707_v57  ;;  %v709_v59 = vpop.f32.mrb[1].mxu1 }
 0x11c   :  { %v833_v60 = vadd.f32 %v815_v56, %v709_v59  ;;  %v711_v61 = vpop.f32.mrb[2].mxu1 }
 0x11d   :  { %844 = vst [vmem:[%s1469_s3 + $0x10] sm:$0xff] %v832_v58  ;;  %v838_v62 = vadd.f32 %v811_v55, %v711_v61  ;;  %v713_v63 = vpop.f32.mrb[3].mxu1 }
 0x11e   :  { %845 = vst [vmem:[%s1469_s3 + $0x18] sm:$0xff] %v833_v60  ;;  %v839_v0 = vadd.f32 %v815_v56, %v713_v63 }
 0x11f   :  { %850 = vst [vmem:[%s1469_s3 + $0x40] sm:$0xff] %v838_v62 }
 0x120   :  { %851 = vst [vmem:[%s1469_s3 + $0x48] sm:$0xff] %v839_v0 }
 0x155   :  { %v750_v1 = vpop.f32.mrb[4].mxu0 }
 0x156   :  { %v834_v2 = vadd.f32 %v819_v39, %v750_v1  ;;  %v752_v3 = vpop.f32.mrb[5].mxu0 }
 0x157   :  { %v835_v4 = vadd.f32 %v823_v40, %v752_v3  ;;  %v754_v5 = vpop.f32.mrb[6].mxu0 }
 0x158   :  { %846 = vst [vmem:[%s1469_s3 + $0x20] sm:$0xff] %v834_v2  ;;  %v840_v6 = vadd.f32 %v819_v39, %v754_v5  ;;  %v756_v7 = vpop.f32.mrb[7].mxu0 }
 0x159   :  { %847 = vst [vmem:[%s1469_s3 + $0x28] sm:$0xff] %v835_v4  ;;  %v841_v8 = vadd.f32 %v823_v40, %v756_v7 }
 0x15a   :  { %852 = vst [vmem:[%s1469_s3 + $0x50] sm:$0xff] %v840_v6 }
 0x15b   :  { %853 = vst [vmem:[%s1469_s3 + $0x58] sm:$0xff] %v841_v8 }

// kernel: _lambda_.115
= control target key start
LH: loop header
LB: loop body
LE: loop exit
PB: predicated region body
PF: predicated region fallthrough
CT: control target
= control target key end

     0   :  { %s741_s18 = smov 0   ;;  %s886_s0 = inlined_call_operand.vmem [shape: f32[2,1,256], index: 0, kind: input, shape index: {}]   ;;  %s887_s1 = inlined_call_operand.vmem [shape: f32[2,5,256], index: 1, kind: input, shape index: {}]   ;;  %s888_s2 = inlined_call_operand.vmem [shape: f32[2,5,256], index: 2, kind: input, shape index: {}]   ;;  %s889_s3 = inlined_call_operand.vmem [shape: f32[256,4], index: 3, kind: input, shape index: {}]   ;;  %s890_s4 = inlined_call_operand.vmem [shape: f32[4,256], index: 4, kind: input, shape index: {}]   ;;  %s891_s5 = inlined_call_operand.vmem [shape: f32[2,1,256], index: 5, kind: output, shape index: {}]  }
   0x1 LB: > { %s601_s19 = sadd.s32 4294967295, %s707_s18   ;;  %p605_p0 = scmp.ge.s32.totalorder %s707_s18, 1  ;;  %s707_s18 = sphi %s741_s18, %s15_s18  }
   0x2   : > { %p206_p1 = scmp.lt.s32.totalorder %s707_s18, 3 }
   0x4   : > { %p207_p2 = pnand %p605_p0, %p206_p1 }
   0x5   : > { %v294_v0 = vld [vmem:[%s889_s3 + $0x80] sm:$0xff] (!%p207_p2)  ;;  %v295_v1 = vld [vmem:[%s889_s3 + $0x88] sm:$0xff] (!%p207_p2)  ;;  %p242_p3 = scmp.lt.s32.totalorder (!%p207_p2), %s601_s19, 1  ;;  %v266_v3 = vlaneseq (!%p207_p2)  ;;  %v296_v6 = vld [vmem:[%s889_s3 + $0x90] sm:$0xff] (!%p207_p2)  ;;  %vm408_vm0 = vcmask (!%p207_p2), 1043456   ;;  %v709_v61 = vmov (!%p207_p2), 0.0  }
   0x6   : > { %210 = sbr.rel (%p207_p2) target bundleno = 546 (0x222), region = 40  ;;  %v278_v2 = vld [vmem:[%s889_s3] sm:$0xff] (!%p207_p2)  ;;  %v654_v4 = vpack.c.bf16 (!%p207_p2), %v295_v1, %v294_v0  ;;  %v279_v5 = vld [vmem:[%s889_s3 + $0x8] sm:$0xff] (!%p207_p2)  ;;  %v297_v7 = vld [vmem:[%s889_s3 + $0x98] sm:$0xff] (!%p207_p2)  ;;  %477 = vmatprep.mubr.f32.mxu1 (!%p207_p2), %v709_v61  ;;  %vm381_vm1 = vcmask (!%p207_p2), 28672   ;;  %vm404_vm2 = vcmask (!%p207_p2), 31744  }
   0x7   : > { %v656_v8 = vpack.c.bf16 (!%p207_p2), %v279_v5, %v278_v2  ;;  %v658_v9 = vpack.c.bf16 (!%p207_p2), %v297_v7, %v296_v6  ;;  %v280_v10 = vld [vmem:[%s889_s3 + $0x10] sm:$0xff] (!%p207_p2)  ;;  %v281_v11 = vld [vmem:[%s889_s3 + $0x18] sm:$0xff] (!%p207_p2)  ;;  %v298_v12 = vld [vmem:[%s889_s3 + $0xa0] sm:$0xff] (!%p207_p2)  ;;  %v782_v14 = vshrl.u32 (!%p207_p2), %v266_v3, 7  ;;  %vm486_vm3 = vcmask (!%p207_p2), 1044480  }
   0x8   : > { %655 = vmatprep.subr.bf16.mxu0 (!%p207_p2), %v654_v4  ;;  %v299_v13 = vld [vmem:[%s889_s3 + $0xa8] sm:$0xff] (!%p207_p2)  ;;  %v660_v15 = vpack.c.bf16 (!%p207_p2), %v281_v11, %v280_v10  ;;  %v282_v17 = vld [vmem:[%s889_s3 + $0x20] sm:$0xff] (!%p207_p2)  ;;  %v300_v19 = vld [vmem:[%s889_s3 + $0xb0] sm:$0xff] (!%p207_p2)  ;;  %vm521_vm4 = vcmp.lt.s32.totalorder (!%p207_p2), %v266_v3, 256 }
   0x9   : > { %657 = vmatpush3.bf16.msra.mxu0 (!%p207_p2), %v656_v8  ;;  %v662_v16 = vpack.c.bf16 (!%p207_p2), %v299_v13, %v298_v12  ;;  %v283_v18 = vld [vmem:[%s889_s3 + $0x28] sm:$0xff] (!%p207_p2)  ;;  %v301_v20 = vld [vmem:[%s889_s3 + $0xb8] sm:$0xff] (!%p207_p2)  ;;  %v272_v21 = vsub.s32 (!%p207_p2), 1, %v782_v14  ;;  %v284_v24 = vld [vmem:[%s889_s3 + $0x30] sm:$0xff] (!%p207_p2)  ;;  %v268_v50 = vsub.s32 (!%p207_p2), 0, %v782_v14 }
   0xa   : > { %659 = vmatprep.subr.bf16.mxu0 (!%p207_p2), %v658_v9  ;;  %v664_v22 = vpack.c.bf16 (!%p207_p2), %v283_v18, %v282_v17  ;;  %v666_v23 = vpack.c.bf16 (!%p207_p2), %v301_v20, %v300_v19  ;;  %v285_v25 = vld [vmem:[%s889_s3 + $0x38] sm:$0xff] (!%p207_p2)  ;;  %v302_v26 = vld [vmem:[%s889_s3 + $0xc0] sm:$0xff] (!%p207_p2)  ;;  %v303_v27 = vld [vmem:[%s889_s3 + $0xc8] sm:$0xff] (!%p207_p2) }
   0xb   : > { %v668_v31 = vpack.c.bf16 (!%p207_p2), %v285_v25, %v284_v24  ;;  %v670_v32 = vpack.c.bf16 (!%p207_p2), %v303_v27, %v302_v26  ;;  %v286_v33 = vld [vmem:[%s889_s3 + $0x40] sm:$0xff] (!%p207_p2)  ;;  %v287_v34 = vld [vmem:[%s889_s3 + $0x48] sm:$0xff] (!%p207_p2)  ;;  %v304_v36 = vld [vmem:[%s889_s3 + $0xd0] sm:$0xff] (!%p207_p2) }
   0xc   : > { %v305_v37 = vld [vmem:[%s889_s3 + $0xd8] sm:$0xff] (!%p207_p2)  ;;  %v672_v38 = vpack.c.bf16 (!%p207_p2), %v287_v34, %v286_v33  ;;  %v288_v40 = vld [vmem:[%s889_s3 + $0x50] sm:$0xff] (!%p207_p2)  ;;  %v306_v42 = vld [vmem:[%s889_s3 + $0xe0] sm:$0xff] (!%p207_p2)  ;;  %v710_v34 = vmov (!%p207_p2), 1966171168  }
   0xd   : > { %s893_s19 = smov (!%p242_p3, %s601_s19), 1  ;;  %661 = vmatpush3.bf16.msra.mxu0 %v660_v15  ;;  %v674_v39 = vpack.c.bf16 %v305_v37, %v304_v36  ;;  %v289_v41 = vld [vmem:[%s889_s3 + $0x58] sm:$0xff]  ;;  %v307_v43 = vld [vmem:[%s889_s3 + $0xe8] sm:$0xff]  ;;  %v290_v46 = vld [vmem:[%s889_s3 + $0x60] sm:$0xff] }
   0xe   : > { %s606_s15 = sshll.u32 %s893_s19, 1  ;;  %s617_s22 = sshll.u32 %s893_s19, 4  ;;  %663 = vmatprep.subr.bf16.mxu0 %v662_v16  ;;  %v676_v44 = vpack.c.bf16 %v289_v41, %v288_v40  ;;  %v678_v45 = vpack.c.bf16 %v307_v43, %v306_v42  ;;  %v291_v47 = vld [vmem:[%s889_s3 + $0x68] sm:$0xff]  ;;  %v308_v48 = vld [vmem:[%s889_s3 + $0xf0] sm:$0xff]  ;;  %v309_v49 = vld [vmem:[%s889_s3 + $0xf8] sm:$0xff] }
   0xf   : > { %s245_s29 = scalar_lea.vmem %s886_s0, %s606_s15  ;;  %s809_s7 = scalar_lea.vmem %s887_s1, %s617_s22  ;;  %v680_v51 = vpack.c.bf16 %v291_v47, %v290_v46  ;;  %v682_v52 = vpack.c.bf16 %v309_v49, %v308_v48  ;;  %v292_v53 = vld [vmem:[%s889_s3 + $0x70] sm:$0xff]  ;;  %v293_v54 = vld [vmem:[%s889_s3 + $0x78] sm:$0xff]  ;;  %v401_v59 = vld [vmem:[%s890_s4] sm:$0xff] }
  0x10   : > { %v260_v28 = vld [vmem:[%s245_s29] sm:$0x3]  ;;  %v262_v29 = vld [vmem:[%s809_s7 + $0x8] sm:$0x1f]  ;;  %v684_v56 = vpack.c.bf16 %v293_v54, %v292_v53  ;;  %v403_v60 = vcombine.high %v401_v59, %v401_v59  ;;  %s255_s6 = scalar_lea.vmem %s888_s2, %s617_s22  ;;  %s259_s9 = scalar_lea.vmem %s891_s5, %s606_s15 }
  0x11   : > { %v273_v30 = vrot.slane %v260_v28, %v272_v21  ;;  %665 = vmatpush3.bf16.msra.mxu0 %v664_v22  ;;  %v269_v55 = vrot.slane %v260_v28, %v268_v50  ;;  %v261_v57 = vld [vmem:[%s809_s7] sm:$0x1f]  ;;  %v264_v24 = vld [vmem:[%s255_s6 + $0x8] sm:$0x1f] }
  0x12   : > { %667 = vmatprep.subr.bf16.mxu0 %v666_v23  ;;  %612 = vmatprep.subr.msk.mxu1 %vm408_vm0, %v403_v60  ;;  %v263_v23 = vld [vmem:[%s255_s6] sm:$0x1f] }
  0x13   : > { %v277_v35 = vmul.f32 %v273_v30, %v262_v29  ;;  %v276_v58 = vmul.f32 %v269_v55, %v261_v57  ;;  %613 = vmatpush1.msk.msra.mxu1 %vm408_vm0, %v401_v59 }
  0x15   : > { %374 = vmatprep.mubr.f32.mxu0 %v277_v35  ;;  %669 = vmatpush3.bf16.msra.mxu0 %v668_v31  ;;  %v505_v35 = vunpack.c.l.s4 %v710_v34 }
  0x16   : > { %671 = vmatprep.subr.bf16.mxu0 %v670_v32 }
  0x17   : > { %v506_v40 = vunpack.c.0.s8 %v505_v35 }
  0x19   : > { %673 = vmatpush3.bf16.msra.mxu0 %v672_v38 }
  0x1a   : > { %675 = vmatprep.subr.bf16.mxu0 %v674_v39 }
  0x1d   : > { %677 = vmatpush3.bf16.msra.mxu0 %v676_v44 }
  0x1e   : > { %679 = vmatprep.subr.bf16.mxu0 %v678_v45  ;;  %v509_v45 = vsub.s32 %v506_v40, %v782_v14 }
  0x21   : > { %681 = vmatpush3.bf16.msra.mxu0 %v680_v51 }
  0x22   : > { %683 = vmatprep.subr.bf16.mxu0 %v682_v52 }
  0x25   : > { %685 = vmatpush3.bf16.msra.mxu0 %v684_v56 }
  0x28   : > { %375 = vmatmul.mubr.f32.vlgmr.msra.gmra.mrb[0].mxu0 %v276_v58 }
  0xfb   : > { %v651_v62 = vpop.f32.mrb[0].mxu0 }
  0xfc   : > { %v652_v63 = vpop.f32.mrb[1].mxu0 }
  0xfd   : > { %v653_v0 = vadd.f32 %v652_v63, %v651_v62 }
  0xff   : > { %v380_v1 = vmul.f32 0.125, %v653_v0 }
 0x101   : > { %v382_v2 = vsel %vm381_vm1, %v380_v1, -inf }
 0x102   : > { %v383_v4 = vrot.slane %v382_v2, 4 }
 0x104   : > { %v384_v5 = vmax.f32 %v382_v2, %v383_v4 }
 0x106   : > { %v385_v6 = vrot.slane %v384_v5, 2 }
 0x108   : > { %v386_v7 = vmax.f32 %v384_v5, %v385_v6 }
 0x10a   : > { %v387_v8 = vrot.slane %v386_v7, 1 }
 0x10c   : > { %v388_v9 = vmax.f32 %v386_v7, %v387_v8 }
 0x10e   : > { %v389_v10 = vsub.f32 %v380_v1, %v388_v9 }
 0x110   : > { %v390_v11 = vmul.f32 1.442695, %v389_v10 }
 0x112   : > { %697 = vpow2.f32 %v390_v11 }
 0x11c   : > { %v698_v12 = vpop.eup %697 }
 0x11d   : > { %v392_v13 = vsel %vm381_vm1, %v698_v12, 0.0 }
 0x11e   : > { %v393_v15 = vrot.slane %v392_v13, 4 }
 0x120   : > { %v394_v16 = vadd.f32 %v393_v15, %v392_v13 }
 0x122   : > { %v395_v17 = vrot.slane %v394_v16, 2 }
 0x124   : > { %v396_v18 = vadd.f32 %v395_v17, %v394_v16 }
 0x126   : > { %v397_v19 = vrot.slane %v396_v18, 1 }
 0x128   : > { %v398_v20 = vadd.f32 %v397_v19, %v396_v18 }
 0x12a   : > { %699 = vrcp.f32 %v398_v20 }
 0x134   : > { %v700_v21 = vpop.eup %699 }
 0x135   : > { %v400_v22 = vmul.f32 %v700_v21, %v698_v12 }
 0x137   : > { %614 = vmatmul.mubr.msk.f32.vlgmr.msra.gmra.mrb[0].mxu1 %vm404_vm2, %v400_v22 }
 0x20a   : > { %v479_v25 = vpop.f32.mrb[0].mxu1 }
 0x20b   : > { %v484_v26 = vmul.f32 %v479_v25, %v263_v23  ;;  %v481_v27 = vpop.f32.mrb[1].mxu1 }
 0x20c   : > { %v485_v28 = vmul.f32 %v481_v27, %v264_v24 }
 0x20d   : > { %v487_v29 = vsel %vm486_vm3, %v484_v26, 0.0 }
 0x20e   : > { %v488_v30 = vrot.slane %v487_v29, 4  ;;  %v494_v31 = vsel %vm486_vm3, %v485_v28, 0.0 }
 0x20f   : > { %v495_v32 = vrot.slane %v494_v31, 4 }
 0x210   : > { %v489_v33 = vadd.f32 %v488_v30, %v487_v29 }
 0x211   : > { %v496_v36 = vadd.f32 %v495_v32, %v494_v31 }
 0x212   : > { %v490_v37 = vrot.slane %v489_v33, 2 }
 0x213   : > { %v497_v38 = vrot.slane %v496_v36, 2 }
 0x214   : > { %v491_v39 = vadd.f32 %v490_v37, %v489_v33 }
 0x215   : > { %v498_v41 = vadd.f32 %v497_v38, %v496_v36 }
 0x216   : > { %v492_v42 = vrot.slane %v491_v39, 1 }
 0x217   : > { %v499_v43 = vrot.slane %v498_v41, 1 }
 0x218   : > { %v493_v44 = vadd.f32 %v492_v42, %v491_v39 }
 0x219   : > { %v500_v46 = vadd.f32 %v499_v43, %v498_v41 }
 0x21b   : > { %v503_v47 = vcombine.low %v493_v44, %v500_v46 }
 0x21d   : > { %v510_v48 = vrot.slane %v503_v47, %v509_v45 }
 0x21f   : > { %v517_v49 = vrot.slane %v510_v48, %v509_v45 }
 0x221   : > { %523 = vst.msk [vmem:[%s259_s9] sm:$0x3] %vm521_vm4, %v517_v49 }
 0x222 PF: > { %s15_s18 = sadd.s32 1, %s707_s18  }
 0x223   : > { %p12_p4 = scmp.ge.s32.totalorder %s15_s18, 4  }
 0x225   :  { %14 = sbr.rel (!%p12_p4) target bundleno = 1 (0x1), region = 76 }

// kernel: _lambda_.117
= control target key start
LH: loop header
LB: loop body
LE: loop exit
PB: predicated region body
PF: predicated region fallthrough
CT: control target
= control target key end

     0   :  { %s871_s12 = smov 0   ;;  %s873_s13 = smov 0   ;;  %s954_s0 = inlined_call_operand.vmem [shape: bf16[8,1024], index: 0, kind: input, shape index: {}]   ;;  %s955_s1 = inlined_call_operand.vmem [shape: bf16[1024,128], index: 1, kind: input, shape index: {}]   ;;  %s956_s2 = inlined_call_operand.vmem [shape: f32[1,128], index: 2, kind: input, shape index: {}]   ;;  %s957_s3 = inlined_call_operand.vmem [shape: f32[8,128], index: 3, kind: output, shape index: {}]  }
   0x1   :  { %s875_s14 = smov 0  }
   0x2 LB: > { %s22_s15 = sadd.s32 1, %s844_s13  ;;  %p674_p0 = scmp.ge.s32.totalorder %s848_s14, 1  ;;  %s848_s14 = sphi %s875_s14, %s13_s14   ;;  %s844_s13 = sphi %s873_s13, %s959_s13   ;;  %s840_s12 = sphi %s871_s12, %s958_s12  }
   0x3   : > { %p23_p1 = scmp.ge.s32.totalorder %s22_s15, 2  ;;  %p167_p2 = scmp.lt.s32.totalorder %s848_s14, 3 }
   0x5   : > { %s961_s15 = smov (%p23_p1, %s22_s15), 0  ;;  %p168_p3 = pnand %p674_p0, %p167_p2 }
   0x6   : > { %s675_s16 = sshll.u32 (!%p168_p3), %s840_s12, 2  ;;  %s677_s17 = sshll.u32 (!%p168_p3), %s840_s12, 6 }
   0x7   : > { %171 = sbr.rel (%p168_p3) target bundleno = 289 (0x121), region = 32  ;;  %p202_p4 = scmp.lt.s32.totalorder (!%p168_p3), %s675_s16, 7 }
   0x8   : > { %p210_p5 = scmp.lt.s32.totalorder (!%p168_p3), %s677_s17, 127  ;;  %p679_p6 = scmp.ne.s32.totalorder (!%p168_p3), %s840_s12, 0 }
   0xe   : > { %s963_s16 = smov (!%p202_p4, %s675_s16), 7  ;;  %s965_s17 = smov (!%p210_p5, %s677_s17), 127 }
   0xf   : > { %s676_s18 = sshll.u32 %s963_s16, 2  ;;  %s678_s22 = sshll.u32 %s965_s17, 2  ;;  %v850_v0 = vmov (!%p679_p6), 0.0  }
  0x10   : > { %s896_s21 = scalar_lea.vmem %s954_s0, %s676_s18  ;;  %s901_s25 = scalar_lea.vmem %s955_s1, %s678_s22  ;;  %224 = vst [vmem:[#allocation2] sm:$0xff] (!%p679_p6), %v850_v0 }
  0x11   : > { %223 = sbr.rel (%p679_p6) target bundleno = 24 (0x18), region = 36 }
  0x18 PF: > { %v790_v1 = vld [vmem:[%s901_s25 + $0x40] sm:$0xff]   ;;  %v794_v5 = vld [vmem:[%s901_s25 + $0x48] sm:$0xff]   ;;  %v798_v9 = vld [vmem:[%s901_s25 + $0x50] sm:$0xff]   ;;  %p716_p7 = scmp.ne.s32.totalorder %s840_s12, 1 }
  0x19   : > { %v791_v2 = vld [vmem:[%s901_s25 + $0xc0] sm:$0xff]   ;;  %721 = vmatprep.subr.bf16.mxu0 %v790_v1  ;;  %v795_v6 = vld [vmem:[%s901_s25 + $0xc8] sm:$0xff]   ;;  %v799_v10 = vld [vmem:[%s901_s25 + $0xd0] sm:$0xff]  }
  0x1a   : > { %v792_v3 = vld [vmem:[%s901_s25] sm:$0xff]   ;;  %743 = vmatprep.subr.bf16.mxu1 %v791_v2  ;;  %v796_v7 = vld [vmem:[%s901_s25 + $0x8] sm:$0xff]   ;;  %v800_v11 = vld [vmem:[%s901_s25 + $0x10] sm:$0xff]  }
  0x1b   : > { %v793_v4 = vld [vmem:[%s901_s25 + $0x80] sm:$0xff]   ;;  %722 = vmatpush3.bf16.msra.mxu0 %v792_v3  ;;  %v797_v8 = vld [vmem:[%s901_s25 + $0x88] sm:$0xff]   ;;  %v801_v12 = vld [vmem:[%s901_s25 + $0x90] sm:$0xff]  }
  0x1c   : > { %744 = vmatpush3.bf16.msra.mxu1 %v793_v4  ;;  %723 = vmatprep.subr.bf16.mxu0 %v794_v5  ;;  %v802_v13 = vld [vmem:[%s901_s25 + $0x58] sm:$0xff]   ;;  %v806_v17 = vld [vmem:[%s901_s25 + $0x60] sm:$0xff]   ;;  %v810_v21 = vld [vmem:[%s901_s25 + $0x68] sm:$0xff]  }
  0x1d   : > { %745 = vmatprep.subr.bf16.mxu1 %v795_v6  ;;  %v803_v14 = vld [vmem:[%s901_s25 + $0xd8] sm:$0xff]   ;;  %v807_v18 = vld [vmem:[%s901_s25 + $0xe0] sm:$0xff]   ;;  %v811_v22 = vld [vmem:[%s901_s25 + $0xe8] sm:$0xff]  }
  0x1e   : > { %v804_v15 = vld [vmem:[%s901_s25 + $0x18] sm:$0xff]   ;;  %v808_v19 = vld [vmem:[%s901_s25 + $0x20] sm:$0xff]   ;;  %v812_v23 = vld [vmem:[%s901_s25 + $0x28] sm:$0xff]  }
  0x1f   : > { %724 = vmatpush3.bf16.msra.mxu0 %v796_v7  ;;  %v805_v16 = vld [vmem:[%s901_s25 + $0x98] sm:$0xff]   ;;  %v809_v20 = vld [vmem:[%s901_s25 + $0xa0] sm:$0xff]   ;;  %v813_v24 = vld [vmem:[%s901_s25 + $0xa8] sm:$0xff]  }
  0x20   : > { %746 = vmatpush3.bf16.msra.mxu1 %v797_v8  ;;  %725 = vmatprep.subr.bf16.mxu0 %v798_v9  ;;  %v814_v25 = vld [vmem:[%s901_s25 + $0x70] sm:$0xff]   ;;  %v818_v29 = vld [vmem:[%s901_s25 + $0x78] sm:$0xff]   ;;  %v226_v33 = vld [vmem:[%s896_s21] sm:$0xff] }
  0x21   : > { %747 = vmatprep.subr.bf16.mxu1 %v799_v10  ;;  %v815_v26 = vld [vmem:[%s901_s25 + $0xf0] sm:$0xff]   ;;  %v819_v30 = vld [vmem:[%s901_s25 + $0xf8] sm:$0xff]   ;;  %v227_v34 = vld [vmem:[%s896_s21 + $0x8] sm:$0xff]  ;;  %v680_v35 = vcombine.low %v226_v33, %v226_v33  ;;  %v681_v36 = vcombine.high %v226_v33, %v226_v33 }
  0x22   : > { %v816_v27 = vld [vmem:[%s901_s25 + $0x30] sm:$0xff]   ;;  %v820_v31 = vld [vmem:[%s901_s25 + $0x38] sm:$0xff]   ;;  %v682_v37 = vcombine.low %v227_v34, %v227_v34  ;;  %v683_v38 = vcombine.high %v227_v34, %v227_v34  ;;  %v225_v47 = vld [vmem:[#allocation2] sm:$0xff] }
  0x23   : > { %726 = vmatpush3.bf16.msra.mxu0 %v800_v11  ;;  %v817_v28 = vld [vmem:[%s901_s25 + $0xb0] sm:$0xff]   ;;  %v821_v32 = vld [vmem:[%s901_s25 + $0xb8] sm:$0xff]   ;;  %530 = vmatprep.mubr.bf16.mxu0 %v681_v36  ;;  %v717_v53 = vld [vmem:[%s956_s2] ss:$0 sm:$0xff] (!%p716_p7) }
  0x24   : > { %748 = vmatpush3.bf16.msra.mxu1 %v801_v12  ;;  %727 = vmatprep.subr.bf16.mxu0 %v802_v13 }
  0x25   : > { %749 = vmatprep.subr.bf16.mxu1 %v803_v14  ;;  %570 = vmatprep.mubr.bf16.mxu1 %v683_v38 }
  0x27   : > { %728 = vmatpush3.bf16.msra.mxu0 %v804_v15 }
  0x28   : > { %750 = vmatpush3.bf16.msra.mxu1 %v805_v16  ;;  %729 = vmatprep.subr.bf16.mxu0 %v806_v17 }
  0x29   : > { %751 = vmatprep.subr.bf16.mxu1 %v807_v18 }
  0x2b   : > { %730 = vmatpush3.bf16.msra.mxu0 %v808_v19 }
  0x2c   : > { %752 = vmatpush3.bf16.msra.mxu1 %v809_v20  ;;  %731 = vmatprep.subr.bf16.mxu0 %v810_v21 }
  0x2d   : > { %753 = vmatprep.subr.bf16.mxu1 %v811_v22 }
  0x2f   : > { %732 = vmatpush3.bf16.msra.mxu0 %v812_v23 }
  0x30   : > { %754 = vmatpush3.bf16.msra.mxu1 %v813_v24  ;;  %733 = vmatprep.subr.bf16.mxu0 %v814_v25 }
  0x31   : > { %755 = vmatprep.subr.bf16.mxu1 %v815_v26 }
  0x33   : > { %734 = vmatpush3.bf16.msra.mxu0 %v816_v27 }
  0x34   : > { %756 = vmatpush3.bf16.msra.mxu1 %v817_v28  ;;  %735 = vmatprep.subr.bf16.mxu0 %v818_v29 }
  0x35   : > { %757 = vmatprep.subr.bf16.mxu1 %v819_v30 }
  0x37   : > { %736 = vmatpush3.bf16.msra.mxu0 %v820_v31 }
  0x38   : > { %758 = vmatpush3.bf16.msra.mxu1 %v821_v32 }
  0x3a   : > { %531 = vmatmul.mubr.bf16.vlgmr.msra.gmra.mrb[0].mxu0 %v680_v35 }
  0x3b   : > { %571 = vmatmul.mubr.bf16.vlgmr.msra.gmra.mrb[0].mxu1 %v682_v37 }
 0x10d   : > { %v737_v39 = vpop.f32.mrb[0].mxu0 }
 0x10e   : > { %v759_v40 = vpop.f32.mrb[0].mxu1  ;;  %v738_v41 = vpop.f32.mrb[1].mxu0 }
 0x10f   : > { %v760_v42 = vpop.f32.mrb[1].mxu1  ;;  %v739_v43 = vadd.f32 %v738_v41, %v737_v39  ;;  %v740_v45 = vpop.f32.mrb[2].mxu0 }
 0x110   : > { %v761_v44 = vadd.f32 %v760_v42, %v759_v40  ;;  %v762_v46 = vpop.f32.mrb[2].mxu1  ;;  %v741_v48 = vpop.f32.mrb[3].mxu0  ;;  %583 = sbr.rel (%p716_p7) target bundleno = 289 (0x121), region = 40 }
 0x111   : > { %v763_v49 = vpop.f32.mrb[3].mxu1 }
 0x112   : > { %v573_v50 = vadd.f32 %v761_v44, %v739_v43 }
 0x114   : > { %v578_v51 = vadd.f32 %v573_v50, %v225_v47 }
 0x116   : > { %579 = vst [vmem:[#allocation2] sm:$0xff] %v578_v51 }
 0x11d   : > { %v584_v52 = vld [vmem:[#allocation2] sm:$0xff] }
 0x11e   : > { %v592_v54 = vadd.f32 %v717_v53, %v584_v52 }
 0x120   : > { %593 = vst [vmem:[%s957_s3] sm:$0xff] %v592_v54 }
 0x121 PF: > { %s13_s14 = sadd.s32 1, %s848_s14   ;;  %s958_s12 = smov %s844_s13 }
 0x122   : > { %p10_p8 = scmp.ge.s32.totalorder %s13_s14, 4   ;;  %s959_s13 = smov %s961_s15 }
 0x124   :  { %12 = sbr.rel (!%p10_p8) target bundleno = 2 (0x2), region = 73 }

// kernel: _lambda_.116
= control target key start
LH: loop header
LB: loop body
LE: loop exit
PB: predicated region body
PF: predicated region fallthrough
CT: control target
= control target key end

     0   :  { %s1647_s1 = inlined_call_operand.vmem [shape: bf16[256,1024], index: 1, kind: input, shape index: {}]   ;;  %s1648_s0 = inlined_call_operand.vmem [shape: bf16[8,256], index: 0, kind: input, shape index: {}]   ;;  %s1649_s2 = inlined_call_operand.vmem [shape: f32[1,1024], index: 2, kind: input, shape index: {}]   ;;  %s1650_s3 = inlined_call_operand.vmem [shape: f32[8,1024], index: 3, kind: output, shape index: {}]  }
   0x1   :  { %v35_v0 = vld [vmem:[%s1647_s1] sm:$0xff]  ;;  %v36_v2 = vld [vmem:[%s1647_s1 + $0x8] sm:$0xff] }
   0x2   :  { %v39_v1 = vld [vmem:[%s1647_s1 + $0x20] sm:$0xff]  ;;  %v40_v4 = vld [vmem:[%s1647_s1 + $0x28] sm:$0xff] }
   0x3   :  { %v1066_v3 = vcombine.high %v35_v0, %v39_v1  ;;  %v1065_v5 = vcombine.low %v35_v0, %v39_v1  ;;  %v43_v6 = vld [vmem:[%s1647_s1 + $0x40] sm:$0xff]  ;;  %v1068_v8 = vcombine.high %v36_v2, %v40_v4  ;;  %v1067_v9 = vcombine.low %v36_v2, %v40_v4  ;;  %v44_v11 = vld [vmem:[%s1647_s1 + $0x48] sm:$0xff] }
   0x4   :  { %v47_v7 = vld [vmem:[%s1647_s1 + $0x60] sm:$0xff]  ;;  %v48_v12 = vld [vmem:[%s1647_s1 + $0x68] sm:$0xff] }
   0x5   :  { %v1074_v10 = vcombine.high %v43_v6, %v47_v7  ;;  %v51_v13 = vld [vmem:[%s1647_s1 + $0x80] sm:$0xff]  ;;  %810 = vmatprep.subr.bf16.mxu0 %v1066_v3  ;;  %v1076_v14 = vcombine.high %v44_v11, %v48_v12  ;;  %v52_v16 = vld [vmem:[%s1647_s1 + $0x88] sm:$0xff]  ;;  %851 = vmatprep.subr.bf16.mxu1 %v1068_v8  ;;  %v1073_v18 = vcombine.low %v43_v6, %v47_v7 }
   0x6   :  { %v55_v15 = vld [vmem:[%s1647_s1 + $0xa0] sm:$0xff]  ;;  %v56_v17 = vld [vmem:[%s1647_s1 + $0xa8] sm:$0xff]  ;;  %811 = vmatpush1.bf16.msra.mxu0 %v1065_v5  ;;  %852 = vmatpush1.bf16.msra.mxu1 %v1067_v9  ;;  %v1075_v19 = vcombine.low %v44_v11, %v48_v12 }
   0x7   :  { %812 = vmatprep.subr.bf16.mxu0 %v1074_v10  ;;  %v1082_v20 = vcombine.high %v51_v13, %v55_v15  ;;  %853 = vmatprep.subr.bf16.mxu1 %v1076_v14  ;;  %v1084_v21 = vcombine.high %v52_v16, %v56_v17  ;;  %v59_v22 = vld [vmem:[%s1647_s1 + $0xc0] sm:$0xff]  ;;  %v60_v24 = vld [vmem:[%s1647_s1 + $0xc8] sm:$0xff]  ;;  %v1081_v26 = vcombine.low %v51_v13, %v55_v15 }
   0x8   :  { %v63_v23 = vld [vmem:[%s1647_s1 + $0xe0] sm:$0xff]  ;;  %v64_v25 = vld [vmem:[%s1647_s1 + $0xe8] sm:$0xff]  ;;  %v1083_v27 = vcombine.low %v52_v16, %v56_v17 }
   0x9   :  { %v1090_v28 = vcombine.high %v59_v22, %v63_v23  ;;  %v1092_v29 = vcombine.high %v60_v24, %v64_v25  ;;  %v67_v30 = vld [vmem:[%s1647_s1 + $0x100] sm:$0xff]  ;;  %v68_v32 = vld [vmem:[%s1647_s1 + $0x108] sm:$0xff]  ;;  %v1089_v34 = vcombine.low %v59_v22, %v63_v23  ;;  %v1091_v35 = vcombine.low %v60_v24, %v64_v25 }
   0xa   :  { %813 = vmatpush1.bf16.msra.mxu0 %v1073_v18  ;;  %854 = vmatpush1.bf16.msra.mxu1 %v1075_v19  ;;  %v71_v31 = vld [vmem:[%s1647_s1 + $0x120] sm:$0xff]  ;;  %v72_v33 = vld [vmem:[%s1647_s1 + $0x128] sm:$0xff] }
   0xb   :  { %814 = vmatprep.subr.bf16.mxu0 %v1082_v20  ;;  %855 = vmatprep.subr.bf16.mxu1 %v1084_v21  ;;  %v1098_v36 = vcombine.high %v67_v30, %v71_v31  ;;  %v1100_v37 = vcombine.high %v68_v32, %v72_v33  ;;  %v75_v38 = vld [vmem:[%s1647_s1 + $0x140] sm:$0xff]  ;;  %v76_v40 = vld [vmem:[%s1647_s1 + $0x148] sm:$0xff]  ;;  %v1097_v42 = vcombine.low %v67_v30, %v71_v31 }
   0xc   :  { %v79_v39 = vld [vmem:[%s1647_s1 + $0x160] sm:$0xff]  ;;  %v80_v41 = vld [vmem:[%s1647_s1 + $0x168] sm:$0xff]  ;;  %v1099_v43 = vcombine.low %v68_v32, %v72_v33 }
   0xd   :  { %v1106_v44 = vcombine.high %v75_v38, %v79_v39  ;;  %v1108_v45 = vcombine.high %v76_v40, %v80_v41  ;;  %v83_v46 = vld [vmem:[%s1647_s1 + $0x180] sm:$0xff]  ;;  %v84_v48 = vld [vmem:[%s1647_s1 + $0x188] sm:$0xff]  ;;  %v1105_v50 = vcombine.low %v75_v38, %v79_v39  ;;  %v1107_v51 = vcombine.low %v76_v40, %v80_v41 }
   0xe   :  { %815 = vmatpush1.bf16.msra.mxu0 %v1081_v26  ;;  %856 = vmatpush1.bf16.msra.mxu1 %v1083_v27  ;;  %v87_v47 = vld [vmem:[%s1647_s1 + $0x1a0] sm:$0xff]  ;;  %v88_v49 = vld [vmem:[%s1647_s1 + $0x1a8] sm:$0xff] }
   0xf   :  { %816 = vmatprep.subr.bf16.mxu0 %v1090_v28  ;;  %857 = vmatprep.subr.bf16.mxu1 %v1092_v29  ;;  %v1114_v52 = vcombine.high %v83_v46, %v87_v47  ;;  %v1302_v53 = vld [vmem:[%s1648_s0] sm:$0xff]  ;;  %v1116_v54 = vcombine.high %v84_v48, %v88_v49  ;;  %v92_v58 = vld [vmem:[%s1647_s1 + $0x1c8] sm:$0xff]  ;;  %v1113_v60 = vcombine.low %v83_v46, %v87_v47 }
  0x10   :  { %v91_v55 = vld [vmem:[%s1647_s1 + $0x1c0] sm:$0xff]  ;;  %v1312_v57 = vcombine.high %v1302_v53, %v1302_v53  ;;  %v96_v59 = vld [vmem:[%s1647_s1 + $0x1e8] sm:$0xff]  ;;  %v1115_v61 = vcombine.low %v84_v48, %v88_v49 }
  0x11   :  { %v95_v56 = vld [vmem:[%s1647_s1 + $0x1e0] sm:$0xff]  ;;  %v1124_v63 = vcombine.high %v92_v58, %v96_v59  ;;  %v100_v2 = vld [vmem:[%s1647_s1 + $0x208] sm:$0xff]  ;;  %v1123_v5 = vcombine.low %v92_v58, %v96_v59 }
  0x12   :  { %817 = vmatpush1.bf16.msra.mxu0 %v1089_v34  ;;  %858 = vmatpush1.bf16.msra.mxu1 %v1091_v35  ;;  %v1122_v62 = vcombine.high %v91_v55, %v95_v56  ;;  %v99_v0 = vld [vmem:[%s1647_s1 + $0x200] sm:$0xff]  ;;  %v104_v3 = vld [vmem:[%s1647_s1 + $0x228] sm:$0xff]  ;;  %v1121_v4 = vcombine.low %v91_v55, %v95_v56 }
  0x13   :  { %818 = vmatprep.subr.bf16.mxu0 %v1098_v36  ;;  %859 = vmatprep.subr.bf16.mxu1 %v1100_v37  ;;  %v103_v1 = vld [vmem:[%s1647_s1 + $0x220] sm:$0xff]  ;;  %v1132_v7 = vcombine.high %v100_v2, %v104_v3  ;;  %v108_v10 = vld [vmem:[%s1647_s1 + $0x248] sm:$0xff]  ;;  %v1131_v13 = vcombine.low %v100_v2, %v104_v3  ;;  %v37_v2 = vld [vmem:[%s1647_s1 + $0x10] sm:$0xff] }
  0x14   :  { %842 = vmatprep.mubr.bf16.mxu0 %v1312_v57  ;;  %883 = vmatprep.mubr.bf16.mxu1 %v1312_v57  ;;  %v1130_v6 = vcombine.high %v99_v0, %v103_v1  ;;  %v107_v8 = vld [vmem:[%s1647_s1 + $0x240] sm:$0xff]  ;;  %v112_v11 = vld [vmem:[%s1647_s1 + $0x268] sm:$0xff]  ;;  %v1129_v12 = vcombine.low %v99_v0, %v103_v1  ;;  %v41_v3 = vld [vmem:[%s1647_s1 + $0x30] sm:$0xff] }
  0x15   :  { %v111_v9 = vld [vmem:[%s1647_s1 + $0x260] sm:$0xff]  ;;  %v1140_v15 = vcombine.high %v108_v10, %v112_v11  ;;  %v116_v18 = vld [vmem:[%s1647_s1 + $0x288] sm:$0xff]  ;;  %v1139_v21 = vcombine.low %v108_v10, %v112_v11  ;;  %v45_v10 = vld [vmem:[%s1647_s1 + $0x50] sm:$0xff] }
  0x16   :  { %819 = vmatpush1.bf16.msra.mxu0 %v1097_v42  ;;  %860 = vmatpush1.bf16.msra.mxu1 %v1099_v43  ;;  %v1138_v14 = vcombine.high %v107_v8, %v111_v9  ;;  %v115_v16 = vld [vmem:[%s1647_s1 + $0x280] sm:$0xff]  ;;  %v120_v19 = vld [vmem:[%s1647_s1 + $0x2a8] sm:$0xff]  ;;  %v1137_v20 = vcombine.low %v107_v8, %v111_v9  ;;  %v1070_v8 = vcombine.high %v37_v2, %v41_v3  ;;  %v49_v11 = vld [vmem:[%s1647_s1 + $0x70] sm:$0xff] }
  0x17   :  { %820 = vmatprep.subr.bf16.mxu0 %v1106_v44  ;;  %861 = vmatprep.subr.bf16.mxu1 %v1108_v45  ;;  %v119_v17 = vld [vmem:[%s1647_s1 + $0x2a0] sm:$0xff]  ;;  %v1148_v23 = vcombine.high %v116_v18, %v120_v19  ;;  %v124_v26 = vld [vmem:[%s1647_s1 + $0x2c8] sm:$0xff]  ;;  %v1147_v29 = vcombine.low %v116_v18, %v120_v19  ;;  %v57_v19 = vld [vmem:[%s1647_s1 + $0xb0] sm:$0xff] }
  0x18   :  { %v1146_v22 = vcombine.high %v115_v16, %v119_v17  ;;  %v123_v24 = vld [vmem:[%s1647_s1 + $0x2c0] sm:$0xff]  ;;  %v128_v27 = vld [vmem:[%s1647_s1 + $0x2e8] sm:$0xff]  ;;  %v1145_v28 = vcombine.low %v115_v16, %v119_v17  ;;  %v1078_v17 = vcombine.high %v45_v10, %v49_v11 }
  0x19   :  { %v127_v25 = vld [vmem:[%s1647_s1 + $0x2e0] sm:$0xff]  ;;  %v1156_v31 = vcombine.high %v124_v26, %v128_v27  ;;  %v132_v34 = vld [vmem:[%s1647_s1 + $0x308] sm:$0xff]  ;;  %v1155_v37 = vcombine.low %v124_v26, %v128_v27  ;;  %v61_v26 = vld [vmem:[%s1647_s1 + $0xd0] sm:$0xff] }
  0x1a   :  { %821 = vmatpush1.bf16.msra.mxu0 %v1105_v50  ;;  %862 = vmatpush1.bf16.msra.mxu1 %v1107_v51  ;;  %v1154_v30 = vcombine.high %v123_v24, %v127_v25  ;;  %v131_v32 = vld [vmem:[%s1647_s1 + $0x300] sm:$0xff]  ;;  %v136_v35 = vld [vmem:[%s1647_s1 + $0x328] sm:$0xff]  ;;  %v1153_v36 = vcombine.low %v123_v24, %v127_v25  ;;  %v65_v27 = vld [vmem:[%s1647_s1 + $0xf0] sm:$0xff] }
  0x1b   :  { %822 = vmatprep.subr.bf16.mxu0 %v1114_v52  ;;  %863 = vmatprep.subr.bf16.mxu1 %v1116_v54  ;;  %v135_v33 = vld [vmem:[%s1647_s1 + $0x320] sm:$0xff]  ;;  %v1164_v39 = vcombine.high %v132_v34, %v136_v35  ;;  %v140_v42 = vld [vmem:[%s1647_s1 + $0x348] sm:$0xff]  ;;  %v1163_v45 = vcombine.low %v132_v34, %v136_v35  ;;  %v69_v34 = vld [vmem:[%s1647_s1 + $0x110] sm:$0xff] }
  0x1c   :  { %v1162_v38 = vcombine.high %v131_v32, %v135_v33  ;;  %v139_v40 = vld [vmem:[%s1647_s1 + $0x340] sm:$0xff]  ;;  %v144_v43 = vld [vmem:[%s1647_s1 + $0x368] sm:$0xff]  ;;  %v1161_v44 = vcombine.low %v131_v32, %v135_v33  ;;  %v1094_v32 = vcombine.high %v61_v26, %v65_v27  ;;  %v73_v35 = vld [vmem:[%s1647_s1 + $0x130] sm:$0xff] }
  0x1d   :  { %v143_v41 = vld [vmem:[%s1647_s1 + $0x360] sm:$0xff]  ;;  %v1172_v47 = vcombine.high %v140_v42, %v144_v43  ;;  %v148_v50 = vld [vmem:[%s1647_s1 + $0x388] sm:$0xff]  ;;  %v1171_v54 = vcombine.low %v140_v42, %v144_v43  ;;  %v81_v42 = vld [vmem:[%s1647_s1 + $0x170] sm:$0xff] }
  0x1e   :  { %823 = vmatpush1.bf16.msra.mxu0 %v1113_v60  ;;  %864 = vmatpush1.bf16.msra.mxu1 %v1115_v61  ;;  %v1170_v46 = vcombine.high %v139_v40, %v143_v41  ;;  %v147_v48 = vld [vmem:[%s1647_s1 + $0x380] sm:$0xff]  ;;  %v152_v51 = vld [vmem:[%s1647_s1 + $0x3a8] sm:$0xff]  ;;  %v1169_v52 = vcombine.low %v139_v40, %v143_v41  ;;  %v77_v41 = vld [vmem:[%s1647_s1 + $0x150] sm:$0xff] }
  0x1f   :  { %824 = vmatprep.subr.bf16.mxu0 %v1122_v62  ;;  %865 = vmatprep.subr.bf16.mxu1 %v1124_v63  ;;  %v151_v49 = vld [vmem:[%s1647_s1 + $0x3a0] sm:$0xff]  ;;  %v1180_v56 = vcombine.high %v148_v50, %v152_v51  ;;  %v156_v60 = vld [vmem:[%s1647_s1 + $0x3c8] sm:$0xff]  ;;  %v1179_v63 = vcombine.low %v148_v50, %v152_v51  ;;  %v78_v43 = vld [vmem:[%s1647_s1 + $0x158] sm:$0xff] }
  0x20   :  { %v1178_v55 = vcombine.high %v147_v48, %v151_v49  ;;  %v155_v58 = vld [vmem:[%s1647_s1 + $0x3c0] sm:$0xff]  ;;  %v160_v61 = vld [vmem:[%s1647_s1 + $0x3e8] sm:$0xff]  ;;  %v1177_v62 = vcombine.low %v147_v48, %v151_v49  ;;  %v85_v49 = vld [vmem:[%s1647_s1 + $0x190] sm:$0xff] }
  0x21   :  { %v159_v59 = vld [vmem:[%s1647_s1 + $0x3e0] sm:$0xff]  ;;  %v1188_v1 = vcombine.high %v156_v60, %v160_v61  ;;  %v89_v50 = vld [vmem:[%s1647_s1 + $0x1b0] sm:$0xff]  ;;  %v86_v51 = vld [vmem:[%s1647_s1 + $0x198] sm:$0xff] }
  0x22   :  { %825 = vmatpush1.bf16.msra.mxu0 %v1121_v4  ;;  %866 = vmatpush1.bf16.msra.mxu1 %v1123_v5  ;;  %v1186_v0 = vcombine.high %v155_v58, %v159_v59  ;;  %v38_v4 = vld [vmem:[%s1647_s1 + $0x18] sm:$0xff] }
  0x23   :  { %826 = vmatprep.subr.bf16.mxu0 %v1130_v6  ;;  %867 = vmatprep.subr.bf16.mxu1 %v1132_v7  ;;  %v42_v5 = vld [vmem:[%s1647_s1 + $0x38] sm:$0xff]  ;;  %v1185_v6 = vcombine.low %v155_v58, %v159_v59  ;;  %v1187_v7 = vcombine.low %v156_v60, %v160_v61  ;;  %v93_v59 = vld [vmem:[%s1647_s1 + $0x1d0] sm:$0xff] }
  0x24   :  { %v1072_v9 = vcombine.high %v38_v4, %v42_v5  ;;  %v1071_v16 = vcombine.low %v38_v4, %v42_v5  ;;  %v97_v60 = vld [vmem:[%s1647_s1 + $0x1f0] sm:$0xff]  ;;  %v94_v61 = vld [vmem:[%s1647_s1 + $0x1d8] sm:$0xff] }
  0x25   :  { %v105_v4 = vld [vmem:[%s1647_s1 + $0x230] sm:$0xff]  ;;  %v102_v5 = vld [vmem:[%s1647_s1 + $0x218] sm:$0xff] }
  0x26   :  { %827 = vmatpush1.bf16.msra.mxu0 %v1129_v12  ;;  %868 = vmatpush1.bf16.msra.mxu1 %v1131_v13  ;;  %v1438_v12 = vcombine.low %v1302_v53, %v1302_v53  ;;  %v46_v13 = vld [vmem:[%s1647_s1 + $0x58] sm:$0xff]  ;;  %v53_v53 = vld [vmem:[%s1647_s1 + $0x90] sm:$0xff] }
  0x27   :  { %828 = vmatprep.subr.bf16.mxu0 %v1138_v14  ;;  %869 = vmatprep.subr.bf16.mxu1 %v1140_v15  ;;  %v50_v14 = vld [vmem:[%s1647_s1 + $0x78] sm:$0xff]  ;;  %v1069_v15 = vcombine.low %v37_v2, %v41_v3  ;;  %v1086_v24 = vcombine.high %v53_v53, %v57_v19  ;;  %v101_v3 = vld [vmem:[%s1647_s1 + $0x210] sm:$0xff] }
  0x28   :  { %v1080_v18 = vcombine.high %v46_v13, %v50_v14 }
  0x2a   :  { %829 = vmatpush1.bf16.msra.mxu0 %v1137_v20  ;;  %870 = vmatpush1.bf16.msra.mxu1 %v1139_v21  ;;  %v54_v20 = vld [vmem:[%s1647_s1 + $0x98] sm:$0xff] }
  0x2b   :  { %830 = vmatprep.subr.bf16.mxu0 %v1146_v22  ;;  %871 = vmatprep.subr.bf16.mxu1 %v1148_v23  ;;  %v58_v21 = vld [vmem:[%s1647_s1 + $0xb8] sm:$0xff]  ;;  %v1077_v22 = vcombine.low %v45_v10, %v49_v11  ;;  %v1079_v23 = vcombine.low %v46_v13, %v50_v14  ;;  %v109_v11 = vld [vmem:[%s1647_s1 + $0x250] sm:$0xff] }
  0x2c   :  { %v1088_v25 = vcombine.high %v54_v20, %v58_v21  ;;  %v113_v13 = vld [vmem:[%s1647_s1 + $0x270] sm:$0xff]  ;;  %v110_v14 = vld [vmem:[%s1647_s1 + $0x258] sm:$0xff] }
  0x2e   :  { %831 = vmatpush1.bf16.msra.mxu0 %v1145_v28  ;;  %872 = vmatpush1.bf16.msra.mxu1 %v1147_v29  ;;  %v62_v28 = vld [vmem:[%s1647_s1 + $0xd8] sm:$0xff] }
  0x2f   :  { %832 = vmatprep.subr.bf16.mxu0 %v1154_v30  ;;  %873 = vmatprep.subr.bf16.mxu1 %v1156_v31  ;;  %v66_v29 = vld [vmem:[%s1647_s1 + $0xf8] sm:$0xff]  ;;  %v1085_v30 = vcombine.low %v53_v53, %v57_v19  ;;  %v1087_v31 = vcombine.low %v54_v20, %v58_v21  ;;  %v117_v19 = vld [vmem:[%s1647_s1 + $0x290] sm:$0xff] }
  0x30   :  { %v1096_v33 = vcombine.high %v62_v28, %v66_v29  ;;  %v121_v20 = vld [vmem:[%s1647_s1 + $0x2b0] sm:$0xff]  ;;  %v118_v21 = vld [vmem:[%s1647_s1 + $0x298] sm:$0xff] }
  0x32   :  { %833 = vmatpush1.bf16.msra.mxu0 %v1153_v36  ;;  %874 = vmatpush1.bf16.msra.mxu1 %v1155_v37  ;;  %v74_v36 = vld [vmem:[%s1647_s1 + $0x138] sm:$0xff]  ;;  %v1093_v37 = vcombine.low %v61_v26, %v65_v27  ;;  %v125_v27 = vld [vmem:[%s1647_s1 + $0x2d0] sm:$0xff] }
  0x33   :  { %834 = vmatprep.subr.bf16.mxu0 %v1162_v38  ;;  %875 = vmatprep.subr.bf16.mxu1 %v1164_v39  ;;  %v1095_v38 = vcombine.low %v62_v28, %v66_v29  ;;  %v1102_v39 = vcombine.high %v69_v34, %v73_v35  ;;  %v129_v28 = vld [vmem:[%s1647_s1 + $0x2f0] sm:$0xff]  ;;  %v126_v29 = vld [vmem:[%s1647_s1 + $0x2d8] sm:$0xff] }
  0x36   :  { %835 = vmatpush1.bf16.msra.mxu0 %v1161_v44  ;;  %876 = vmatpush1.bf16.msra.mxu1 %v1163_v45  ;;  %v82_v44 = vld [vmem:[%s1647_s1 + $0x178] sm:$0xff]  ;;  %v1101_v45 = vcombine.low %v69_v34, %v73_v35  ;;  %v133_v35 = vld [vmem:[%s1647_s1 + $0x310] sm:$0xff] }
  0x37   :  { %836 = vmatprep.subr.bf16.mxu0 %v1170_v46  ;;  %877 = vmatprep.subr.bf16.mxu1 %v1172_v47  ;;  %v1110_v47 = vcombine.high %v77_v41, %v81_v42  ;;  %v1112_v48 = vcombine.high %v78_v43, %v82_v44 }
  0x3a   :  { %837 = vmatpush1.bf16.msra.mxu0 %v1169_v52  ;;  %878 = vmatpush1.bf16.msra.mxu1 %v1171_v54  ;;  %v90_v52 = vld [vmem:[%s1647_s1 + $0x1b8] sm:$0xff]  ;;  %v1109_v54 = vcombine.low %v77_v41, %v81_v42  ;;  %v141_v42 = vld [vmem:[%s1647_s1 + $0x350] sm:$0xff] }
  0x3b   :  { %838 = vmatprep.subr.bf16.mxu0 %v1178_v55  ;;  %879 = vmatprep.subr.bf16.mxu1 %v1180_v56  ;;  %v1111_v55 = vcombine.low %v78_v43, %v82_v44  ;;  %v1118_v56 = vcombine.high %v85_v49, %v89_v50  ;;  %v1120_v58 = vcombine.high %v86_v51, %v90_v52  ;;  %v145_v43 = vld [vmem:[%s1647_s1 + $0x370] sm:$0xff]  ;;  %v142_v44 = vld [vmem:[%s1647_s1 + $0x358] sm:$0xff] }
  0x3e   :  { %839 = vmatpush1.bf16.msra.mxu0 %v1177_v62  ;;  %880 = vmatpush1.bf16.msra.mxu1 %v1179_v63  ;;  %v98_v62 = vld [vmem:[%s1647_s1 + $0x1f8] sm:$0xff]  ;;  %v1117_v63 = vcombine.low %v85_v49, %v89_v50  ;;  %v149_v50 = vld [vmem:[%s1647_s1 + $0x390] sm:$0xff] }
  0x3f   :  { %840 = vmatprep.subr.bf16.mxu0 %v1186_v0  ;;  %881 = vmatprep.subr.bf16.mxu1 %v1188_v1  ;;  %v1119_v0 = vcombine.low %v86_v51, %v90_v52  ;;  %v1126_v1 = vcombine.high %v93_v59, %v97_v60  ;;  %v1128_v2 = vcombine.high %v94_v61, %v98_v62  ;;  %v153_v51 = vld [vmem:[%s1647_s1 + $0x3b0] sm:$0xff]  ;;  %v150_v52 = vld [vmem:[%s1647_s1 + $0x398] sm:$0xff] }
  0x42   :  { %841 = vmatpush1.bf16.msra.mxu0 %v1185_v6  ;;  %882 = vmatpush1.bf16.msra.mxu1 %v1187_v7  ;;  %v106_v6 = vld [vmem:[%s1647_s1 + $0x238] sm:$0xff]  ;;  %v1125_v7 = vcombine.low %v93_v59, %v97_v60  ;;  %v157_v60 = vld [vmem:[%s1647_s1 + $0x3d0] sm:$0xff] }
  0x43   :  { %892 = vmatprep.subr.bf16.mxu0 %v1070_v8  ;;  %933 = vmatprep.subr.bf16.mxu1 %v1072_v9  ;;  %v1127_v8 = vcombine.low %v94_v61, %v98_v62  ;;  %v1134_v9 = vcombine.high %v101_v3, %v105_v4  ;;  %v1136_v10 = vcombine.high %v102_v5, %v106_v6  ;;  %v161_v61 = vld [vmem:[%s1647_s1 + $0x3f0] sm:$0xff]  ;;  %v158_v62 = vld [vmem:[%s1647_s1 + $0x3d8] sm:$0xff] }
  0x45   :  { %843 = vmatmul.mubr.bf16.vlgmr.msra.gmra.mrb[0].mxu0 %v1438_v12  ;;  %884 = vmatmul.mubr.bf16.vlgmr.msra.gmra.mrb[0].mxu1 %v1438_v12 }
  0x46   :  { %893 = vmatpush1.bf16.msra.mxu0 %v1069_v15  ;;  %934 = vmatpush1.bf16.msra.mxu1 %v1071_v16  ;;  %v114_v15 = vld [vmem:[%s1647_s1 + $0x278] sm:$0xff]  ;;  %v1133_v16 = vcombine.low %v101_v3, %v105_v4  ;;  %v1189_v4 = vcombine.low %v157_v60, %v161_v61 }
  0x47   :  { %894 = vmatprep.subr.bf16.mxu0 %v1078_v17  ;;  %935 = vmatprep.subr.bf16.mxu1 %v1080_v18  ;;  %v1135_v17 = vcombine.low %v102_v5, %v106_v6  ;;  %v1142_v18 = vcombine.high %v109_v11, %v113_v13  ;;  %v1144_v53 = vcombine.high %v110_v14, %v114_v15  ;;  %v1003_v6 = vlaneseq }
  0x48   :  { %924 = vmatprep.mubr.bf16.mxu0 %v1312_v57  ;;  %965 = vmatprep.mubr.bf16.mxu1 %v1312_v57  ;;  %v70_v57 = vld [vmem:[%s1647_s1 + $0x118] sm:$0xff] }
  0x49   :  { %v1104_v40 = vcombine.high %v70_v57, %v74_v36  ;;  %v1103_v46 = vcombine.low %v70_v57, %v74_v36  ;;  %v137_v57 = vld [vmem:[%s1647_s1 + $0x330] sm:$0xff]  ;;  %v134_v36 = vld [vmem:[%s1647_s1 + $0x318] sm:$0xff] }
  0x4a   :  { %895 = vmatpush1.bf16.msra.mxu0 %v1077_v22  ;;  %936 = vmatpush1.bf16.msra.mxu1 %v1079_v23  ;;  %v122_v22 = vld [vmem:[%s1647_s1 + $0x2b8] sm:$0xff]  ;;  %v1141_v23 = vcombine.low %v109_v11, %v113_v13 }
  0x4b   :  { %896 = vmatprep.subr.bf16.mxu0 %v1086_v24  ;;  %937 = vmatprep.subr.bf16.mxu1 %v1088_v25  ;;  %v1143_v24 = vcombine.low %v110_v14, %v114_v15  ;;  %v1150_v25 = vcombine.high %v117_v19, %v121_v20  ;;  %v1152_v26 = vcombine.high %v118_v21, %v122_v22 }
  0x4e   :  { %897 = vmatpush1.bf16.msra.mxu0 %v1085_v30  ;;  %938 = vmatpush1.bf16.msra.mxu1 %v1087_v31  ;;  %v130_v30 = vld [vmem:[%s1647_s1 + $0x2f8] sm:$0xff]  ;;  %v1149_v31 = vcombine.low %v117_v19, %v121_v20 }
  0x4f   :  { %898 = vmatprep.subr.bf16.mxu0 %v1094_v32  ;;  %939 = vmatprep.subr.bf16.mxu1 %v1096_v33  ;;  %v1151_v32 = vcombine.low %v118_v21, %v122_v22  ;;  %v1158_v33 = vcombine.high %v125_v27, %v129_v28  ;;  %v1160_v34 = vcombine.high %v126_v29, %v130_v30 }
  0x52   :  { %899 = vmatpush1.bf16.msra.mxu0 %v1093_v37  ;;  %940 = vmatpush1.bf16.msra.mxu1 %v1095_v38  ;;  %v138_v37 = vld [vmem:[%s1647_s1 + $0x338] sm:$0xff]  ;;  %v1157_v38 = vcombine.low %v125_v27, %v129_v28 }
  0x53   :  { %900 = vmatprep.subr.bf16.mxu0 %v1102_v39  ;;  %941 = vmatprep.subr.bf16.mxu1 %v1104_v40  ;;  %v1159_v39 = vcombine.low %v126_v29, %v130_v30  ;;  %v1166_v40 = vcombine.high %v133_v35, %v137_v57  ;;  %v1168_v41 = vcombine.high %v134_v36, %v138_v37 }
  0x56   :  { %901 = vmatpush1.bf16.msra.mxu0 %v1101_v45  ;;  %942 = vmatpush1.bf16.msra.mxu1 %v1103_v46  ;;  %v146_v45 = vld [vmem:[%s1647_s1 + $0x378] sm:$0xff]  ;;  %v1165_v46 = vcombine.low %v133_v35, %v137_v57 }
  0x57   :  { %902 = vmatprep.subr.bf16.mxu0 %v1110_v47  ;;  %943 = vmatprep.subr.bf16.mxu1 %v1112_v48  ;;  %v1167_v47 = vcombine.low %v134_v36, %v138_v37  ;;  %v1174_v48 = vcombine.high %v141_v42, %v145_v43  ;;  %v1176_v49 = vcombine.high %v142_v44, %v146_v45 }
  0x5a   :  { %903 = vmatpush1.bf16.msra.mxu0 %v1109_v54  ;;  %944 = vmatpush1.bf16.msra.mxu1 %v1111_v55  ;;  %v154_v54 = vld [vmem:[%s1647_s1 + $0x3b8] sm:$0xff]  ;;  %v1173_v55 = vcombine.low %v141_v42, %v145_v43 }
  0x5b   :  { %904 = vmatprep.subr.bf16.mxu0 %v1118_v56  ;;  %945 = vmatprep.subr.bf16.mxu1 %v1120_v58  ;;  %v1175_v56 = vcombine.low %v142_v44, %v146_v45  ;;  %v1182_v58 = vcombine.high %v149_v50, %v153_v51  ;;  %v1184_v59 = vcombine.high %v150_v52, %v154_v54 }
  0x5e   :  { %905 = vmatpush1.bf16.msra.mxu0 %v1117_v63  ;;  %946 = vmatpush1.bf16.msra.mxu1 %v1119_v0  ;;  %v162_v63 = vld [vmem:[%s1647_s1 + $0x3f8] sm:$0xff]  ;;  %v1181_v0 = vcombine.low %v149_v50, %v153_v51 }
  0x5f   :  { %906 = vmatprep.subr.bf16.mxu0 %v1126_v1  ;;  %947 = vmatprep.subr.bf16.mxu1 %v1128_v2  ;;  %v1183_v1 = vcombine.low %v150_v52, %v154_v54  ;;  %v1190_v2 = vcombine.high %v157_v60, %v161_v61  ;;  %v1192_v3 = vcombine.high %v158_v62, %v162_v63 }
  0x60   :  { %v1191_v5 = vcombine.low %v158_v62, %v162_v63 }
  0x62   :  { %907 = vmatpush1.bf16.msra.mxu0 %v1125_v7  ;;  %948 = vmatpush1.bf16.msra.mxu1 %v1127_v8  ;;  %v1004_v7 = vshrl.u32 %v1003_v6, 7 }
  0x63   :  { %908 = vmatprep.subr.bf16.mxu0 %v1134_v9  ;;  %949 = vmatprep.subr.bf16.mxu1 %v1136_v10  ;;  %v1001_v10 = vld [vmem:[%s1649_s2] sm:$0xff] }
  0x64   :  { %v1021_v8 = vsub.s32 4, %v1004_v7  ;;  %v1029_v9 = vsub.s32 6, %v1004_v7  ;;  %v1025_v11 = vsub.s32 5, %v1004_v7  ;;  %v1033_v13 = vsub.s32 7, %v1004_v7 }
  0x65   :  { %v1009_v19 = vsub.s32 1, %v1004_v7  ;;  %v1017_v20 = vsub.s32 3, %v1004_v7 }
  0x66   :  { %909 = vmatpush1.bf16.msra.mxu0 %v1133_v16  ;;  %950 = vmatpush1.bf16.msra.mxu1 %v1135_v17  ;;  %v1022_v14 = vrot.slane %v1001_v10, %v1021_v8  ;;  %v1030_v15 = vrot.slane %v1001_v10, %v1029_v9  ;;  %v1026_v16 = vrot.slane %v1001_v10, %v1025_v11 }
  0x67   :  { %910 = vmatprep.subr.bf16.mxu0 %v1142_v18  ;;  %951 = vmatprep.subr.bf16.mxu1 %v1144_v53  ;;  %v1034_v17 = vrot.slane %v1001_v10, %v1033_v13  ;;  %v1005_v18 = vsub.s32 0, %v1004_v7  ;;  %v1013_v53 = vsub.s32 2, %v1004_v7  ;;  %v1010_v22 = vrot.slane %v1001_v10, %v1009_v19 }
  0x69   :  { %v1006_v21 = vrot.slane %v1001_v10, %v1005_v18 }
  0x6a   :  { %911 = vmatpush1.bf16.msra.mxu0 %v1141_v23  ;;  %952 = vmatpush1.bf16.msra.mxu1 %v1143_v24  ;;  %v1018_v23 = vrot.slane %v1001_v10, %v1017_v20 }
  0x6b   :  { %912 = vmatprep.subr.bf16.mxu0 %v1150_v25  ;;  %953 = vmatprep.subr.bf16.mxu1 %v1152_v26 }
  0x6e   :  { %913 = vmatpush1.bf16.msra.mxu0 %v1149_v31  ;;  %954 = vmatpush1.bf16.msra.mxu1 %v1151_v32 }
  0x6f   :  { %914 = vmatprep.subr.bf16.mxu0 %v1158_v33  ;;  %955 = vmatprep.subr.bf16.mxu1 %v1160_v34 }
  0x72   :  { %915 = vmatpush1.bf16.msra.mxu0 %v1157_v38  ;;  %956 = vmatpush1.bf16.msra.mxu1 %v1159_v39 }
  0x73   :  { %916 = vmatprep.subr.bf16.mxu0 %v1166_v40  ;;  %957 = vmatprep.subr.bf16.mxu1 %v1168_v41 }
  0x76   :  { %917 = vmatpush1.bf16.msra.mxu0 %v1165_v46  ;;  %958 = vmatpush1.bf16.msra.mxu1 %v1167_v47 }
  0x77   :  { %918 = vmatprep.subr.bf16.mxu0 %v1174_v48  ;;  %959 = vmatprep.subr.bf16.mxu1 %v1176_v49 }
  0x7a   :  { %919 = vmatpush1.bf16.msra.mxu0 %v1173_v55  ;;  %960 = vmatpush1.bf16.msra.mxu1 %v1175_v56 }
  0x7b   :  { %920 = vmatprep.subr.bf16.mxu0 %v1182_v58  ;;  %961 = vmatprep.subr.bf16.mxu1 %v1184_v59 }
  0x7e   :  { %921 = vmatpush1.bf16.msra.mxu0 %v1181_v0  ;;  %962 = vmatpush1.bf16.msra.mxu1 %v1183_v1 }
  0x7f   :  { %922 = vmatprep.subr.bf16.mxu0 %v1190_v2  ;;  %963 = vmatprep.subr.bf16.mxu1 %v1192_v3 }
  0x82   :  { %923 = vmatpush1.bf16.msra.mxu0 %v1189_v4  ;;  %964 = vmatpush1.bf16.msra.mxu1 %v1191_v5 }
  0x85   :  { %925 = vmatmul.mubr.bf16.vlgmr.msra.gmra.mrb[4].mxu0 %v1438_v12  ;;  %966 = vmatmul.mubr.bf16.vlgmr.msra.gmra.mrb[4].mxu1 %v1438_v12  ;;  %v1014_v12 = vrot.slane %v1001_v10, %v1013_v53 }
 0x118   :  { %v844_v24 = vpop.f32.mrb[0].mxu0  ;;  %v885_v26 = vpop.f32.mrb[0].mxu1 }
 0x119   :  { %v1043_v25 = vadd.f32 %v1006_v21, %v844_v24  ;;  %v846_v27 = vpop.f32.mrb[1].mxu0  ;;  %v1045_v28 = vadd.f32 %v1014_v12, %v885_v26  ;;  %v887_v30 = vpop.f32.mrb[1].mxu1 }
 0x11a   :  { %v1044_v29 = vadd.f32 %v1010_v22, %v846_v27  ;;  %v848_v31 = vpop.f32.mrb[2].mxu0  ;;  %v1046_v32 = vadd.f32 %v1018_v23, %v887_v30  ;;  %v889_v33 = vpop.f32.mrb[2].mxu1 }
 0x11b   :  { %1051 = vst [vmem:[%s1650_s3] sm:$0xff] %v1043_v25  ;;  %v849_v34 = vpop.f32.mrb[3].mxu0  ;;  %1053 = vst [vmem:[%s1650_s3 + $0x10] sm:$0xff] %v1045_v28  ;;  %v890_v35 = vpop.f32.mrb[3].mxu1 }
 0x11c   :  { %1052 = vst [vmem:[%s1650_s3 + $0x8] sm:$0xff] %v1044_v29  ;;  %1054 = vst [vmem:[%s1650_s3 + $0x18] sm:$0xff] %v1046_v32 }
 0x158   :  { %v926_v57 = vpop.f32.mrb[4].mxu0  ;;  %v967_v37 = vpop.f32.mrb[4].mxu1 }
 0x159   :  { %v1047_v36 = vadd.f32 %v1022_v14, %v926_v57  ;;  %v928_v38 = vpop.f32.mrb[5].mxu0  ;;  %v1049_v39 = vadd.f32 %v1030_v15, %v967_v37  ;;  %v969_v41 = vpop.f32.mrb[5].mxu1 }
 0x15a   :  { %v1048_v40 = vadd.f32 %v1026_v16, %v928_v38  ;;  %v930_v42 = vpop.f32.mrb[6].mxu0  ;;  %v1050_v43 = vadd.f32 %v1034_v17, %v969_v41  ;;  %v971_v44 = vpop.f32.mrb[6].mxu1 }
 0x15b   :  { %1055 = vst [vmem:[%s1650_s3 + $0x20] sm:$0xff] %v1047_v36  ;;  %v931_v45 = vpop.f32.mrb[7].mxu0  ;;  %1057 = vst [vmem:[%s1650_s3 + $0x30] sm:$0xff] %v1049_v39  ;;  %v972_v46 = vpop.f32.mrb[7].mxu1 }
 0x15c   :  { %1056 = vst [vmem:[%s1650_s3 + $0x28] sm:$0xff] %v1048_v40  ;;  %1058 = vst [vmem:[%s1650_s3 + $0x38] sm:$0xff] %v1050_v43 }

</bundles_post_ra>
